<compile_context>
chip_gen: v5e
topology: v5e:2x2
jax: 0.10.0
libtpu: 0.0.40
codegen_flags: <defaults>
</compile_context>

<pallas_src>
import jax
import jax.numpy as jnp
from jax import lax
from jax.experimental import pallas as pl
from jax.experimental.pallas import tpu as pltpu

NEG_SLOPE = 0.01   # nn.LeakyReLU default
BN_EPS = 1e-5      # nn.BatchNorm1d default
OUT_PAD = 128      # latent_dim=10 rounded up to a lane-dense 128-wide store


def encoder_kernel(x_ref, w1_ref, w2_ref, w3_ref, p_ref, out_ref):
    """Whole-forward kernel; all operands resident in VMEM (single grid step).

    x_ref is f32 (cast to bf16 in-kernel for the MXU); w*_ref are bf16.
    p_ref is the packed (8, 512) f32 parameter slab:
      row 0: b1(512)  row 1: g1(512)  row 2: beta1(512)
      row 3: b2(256)  row 4: g2(256)  row 5: beta2(256)
      row 6: b3(128, zero-padded past latent_dim)  row 7: zeros
    """
    x = x_ref[...].astype(jnp.bfloat16)       # (B, 784) f32 -> bf16 in-kernel
    inv_b = 1.0 / x.shape[0]                  # static batch size

    b1 = p_ref[0:1, :]                        # (1, 512)
    g1 = p_ref[1:2, :]
    beta1 = p_ref[2:3, :]
    b2 = p_ref[3:4, :256]                     # (1, 256)
    g2 = p_ref[4:5, :256]
    beta2 = p_ref[5:6, :256]
    b3 = p_ref[6:7, :OUT_PAD]                 # (1, 128)

    def bn_lrelu(h, gamma, beta):
        # BatchNorm1d training-mode (biased batch variance), single reduction
        # pass: var = E[h^2] - mean^2 (clamped >= 0 for safety).  Fold
        # gamma*rsqrt(var+eps) into one per-feature scale and
        # (beta - mean*scale) into one shift, then fuse LeakyReLU.
        mean = jnp.sum(h, axis=0, keepdims=True) * inv_b
        ex2 = jnp.sum(h * h, axis=0, keepdims=True) * inv_b
        var = jnp.maximum(ex2 - mean * mean, 0.0)
        scale = gamma * lax.rsqrt(var + BN_EPS)          # EUP rsqrt
        shift = beta - mean * scale
        h = h * scale + shift
        return jnp.maximum(h, NEG_SLOPE * h)             # LeakyReLU(0.01)

    # Layer 1: bf16 x bf16 -> f32 accumulate on the MXU.
    h1 = jnp.dot(x, w1_ref[...], preferred_element_type=jnp.float32) + b1
    h1 = bn_lrelu(h1, g1, beta1)

    # Layer 2: cast activations to bf16 only for the dot operands.
    h2 = jnp.dot(h1.astype(jnp.bfloat16), w2_ref[...],
                 preferred_element_type=jnp.float32) + b2
    h2 = bn_lrelu(h2, g2, beta2)

    # Layer 3: lane-dense (B, 128) store; columns >= latent_dim are zero
    # because w3/b3 are zero-padded.
    out_ref[...] = (jnp.dot(h2.astype(jnp.bfloat16), w3_ref[...],
                            preferred_element_type=jnp.float32) + b3)


def pack_encoder_params(params):
    """bf16 weights (zero-padded where needed) + one packed f32 param slab."""
    lat = params["w3"].shape[1]
    w1 = params["w1"].astype(jnp.bfloat16)                        # (784, 512)
    w2 = params["w2"].astype(jnp.bfloat16)                        # (512, 256)
    w3 = jnp.zeros((256, OUT_PAD), jnp.bfloat16).at[:, :lat].set(
        params["w3"].astype(jnp.bfloat16))                        # (256, 128)

    pslab = jnp.zeros((8, 512), jnp.float32)
    pslab = pslab.at[0, :512].set(params["b1"][0])
    pslab = pslab.at[1, :512].set(params["g1"][0])
    pslab = pslab.at[2, :512].set(params["beta1"][0])
    pslab = pslab.at[3, :256].set(params["b2"][0])
    pslab = pslab.at[4, :256].set(params["g2"][0])
    pslab = pslab.at[5, :256].set(params["beta2"][0])
    pslab = pslab.at[6, :lat].set(params["b3"][0])
    return dict(w1=w1, w2=w2, w3=w3, pslab=pslab)


def encoder_forward(x, packed, latent_dim=10):
    """x: (B, input_size) float32 -> (B, latent_dim) float32."""
    B, K = x.shape
    operands = (x, packed["w1"], packed["w2"], packed["w3"], packed["pslab"])

    flops = 2 * B * (K * 512 + 512 * 256 + 256 * OUT_PAD)
    transcendentals = 512 + 256                      # per-feature rsqrt
    bytes_accessed = (sum(int(a.size) * a.dtype.itemsize for a in operands)
                      + B * OUT_PAD * 4)

    # Everything fits comfortably in VMEM (~0.9 MB bf16 params + f32
    # activations), so we run a single grid step with whole-array blocks.
    # 32 MiB limit is also v7x's scoped default (64 MiB physical).
    vmem_spec = pl.BlockSpec(memory_space=pltpu.MemorySpace.VMEM)
    out = pl.pallas_call(
        encoder_kernel,
        out_shape=jax.ShapeDtypeStruct((B, OUT_PAD), jnp.float32),
        in_specs=[vmem_spec] * len(operands),
        out_specs=vmem_spec,
        compiler_params=pltpu.CompilerParams(vmem_limit_bytes=32 * 1024 * 1024),
        cost_estimate=pl.CostEstimate(flops=flops,
                                      transcendentals=transcendentals,
                                      bytes_accessed=bytes_accessed),
    )(*operands)
    return out[:, :latent_dim]


def init_encoder_params(key, input_size=28 * 28, latent_dim=10):
    """Deterministic init mimicking PyTorch defaults (uniform +/- 1/sqrt(fan_in);
    BatchNorm gamma=1, beta=0). Weights stored as (in_features, out_features)."""
    dims = [(input_size, 512), (512, 256), (256, latent_dim)]
    params = {}
    for idx, (fan_in, fan_out) in enumerate(dims, start=1):
        key, kw, kb = jax.random.split(key, 3)
        bound = 1.0 / jnp.sqrt(jnp.float32(fan_in))
        params[f"w{idx}"] = jax.random.uniform(
            kw, (fan_in, fan_out), jnp.float32, minval=-bound, maxval=bound)
        params[f"b{idx}"] = jax.random.uniform(
            kb, (1, fan_out), jnp.float32, minval=-bound, maxval=bound)
    # BatchNorm1d affine params (layers 1 and 2 only).
    params["g1"] = jnp.ones((1, 512), jnp.float32)
    params["beta1"] = jnp.zeros((1, 512), jnp.float32)
    params["g2"] = jnp.ones((1, 256), jnp.float32)
    params["beta2"] = jnp.zeros((1, 256), jnp.float32)
    return params


def encoder_reference(x, params):
    """Pure-JAX reference.  Mirrors the kernel's (intentional) bf16 rounding of
    matmul operands so the check is tight; BN uses the classic two-pass form."""
    def bdot(a, w):
        return jnp.dot(a.astype(jnp.bfloat16).astype(jnp.float32),
                       w.astype(jnp.bfloat16).astype(jnp.float32))

    def bn(h, g, b):
        m = jnp.mean(h, axis=0, keepdims=True)
        v = jnp.mean((h - m) ** 2, axis=0, keepdims=True)
        return (h - m) / jnp.sqrt(v + BN_EPS) * g + b

    def lrelu(h):
        return jnp.where(h >= 0, h, NEG_SLOPE * h)

    h = lrelu(bn(bdot(x, params["w1"]) + params["b1"],
                 params["g1"], params["beta1"]))
    h = lrelu(bn(bdot(h, params["w2"]) + params["b2"],
                 params["g2"], params["beta2"]))
    return bdot(h, params["w3"]) + params["b3"]


if __name__ == "__main__":
    key = jax.random.PRNGKey(0)
    key, kx, kp = jax.random.split(key, 3)

    # B=256 fills the 256-row MXU on v6e/v7x and amortizes the weight DMA.
    B, INPUT_SIZE, LATENT_DIM = 256, 28 * 28, 10
    x = jax.random.normal(kx, (B, INPUT_SIZE), jnp.float32)
    params = init_encoder_params(kp, INPUT_SIZE, LATENT_DIM)
    packed = pack_encoder_params(params)

    out = encoder_forward(x, packed, LATENT_DIM)
    out = jax.block_until_ready(out)

    ref = encoder_reference(x, params)
    assert out.shape == (B, LATENT_DIM), out.shape
    max_err = jnp.max(jnp.abs(out - ref))
    assert max_err < 2e-2, f"max abs err {max_err}"

    print("KERNEL_OK")
</pallas_src>

<mosaic_0001>
module attributes {stable_mosaic.version = 11 : i64} {
  func.func @encoder_kernel(%arg0: memref<256x784xf32, #tpu.memory_space<vmem>>, %arg1: memref<784x512xbf16, #tpu.memory_space<vmem>>, %arg2: memref<512x256xbf16, #tpu.memory_space<vmem>>, %arg3: memref<256x128xbf16, #tpu.memory_space<vmem>>, %arg4: memref<8x512xf32, #tpu.memory_space<vmem>>, %arg5: memref<256x128xf32, #tpu.memory_space<vmem>>) attributes {dimension_semantics = [], scalar_prefetch = 0 : i64, scratch_operands = 0 : i64, tpu.core_type = #tpu.core_type<tc>} {
    %c0 = arith.constant 0 : index
    %c0_0 = arith.constant 0 : index
    %0 = vector.load %arg0[%c0, %c0_0] : memref<256x784xf32, #tpu.memory_space<vmem>>, vector<256x784xf32>
    %1 = arith.truncf %0 : vector<256x784xf32> to vector<256x784xbf16>
    %c0_1 = arith.constant 0 : index
    %c0_2 = arith.constant 0 : index
    %2 = vector.load %arg4[%c0_1, %c0_2] : memref<8x512xf32, #tpu.memory_space<vmem>>, vector<1x512xf32>
    %c1 = arith.constant 1 : index
    %c0_3 = arith.constant 0 : index
    %3 = vector.load %arg4[%c1, %c0_3] : memref<8x512xf32, #tpu.memory_space<vmem>>, vector<1x512xf32>
    %c2 = arith.constant 2 : index
    %c0_4 = arith.constant 0 : index
    %4 = vector.load %arg4[%c2, %c0_4] : memref<8x512xf32, #tpu.memory_space<vmem>>, vector<1x512xf32>
    %c3 = arith.constant 3 : index
    %c0_5 = arith.constant 0 : index
    %5 = vector.load %arg4[%c3, %c0_5] : memref<8x512xf32, #tpu.memory_space<vmem>>, vector<1x256xf32>
    %c4 = arith.constant 4 : index
    %c0_6 = arith.constant 0 : index
    %6 = vector.load %arg4[%c4, %c0_6] : memref<8x512xf32, #tpu.memory_space<vmem>>, vector<1x256xf32>
    %c5 = arith.constant 5 : index
    %c0_7 = arith.constant 0 : index
    %7 = vector.load %arg4[%c5, %c0_7] : memref<8x512xf32, #tpu.memory_space<vmem>>, vector<1x256xf32>
    %c6 = arith.constant 6 : index
    %c0_8 = arith.constant 0 : index
    %8 = vector.load %arg4[%c6, %c0_8] : memref<8x512xf32, #tpu.memory_space<vmem>>, vector<1x128xf32>
    %c0_9 = arith.constant 0 : index
    %c0_10 = arith.constant 0 : index
    %9 = vector.load %arg1[%c0_9, %c0_10] : memref<784x512xbf16, #tpu.memory_space<vmem>>, vector<784x512xbf16>
    %cst = arith.constant dense<0.000000e+00> : vector<256x512xf32>
    %10 = tpu.matmul %1, %9, %cst {dimension_numbers = #tpu.dot_dimension_numbers<[1], [0], [0], [1], [0, 0, 1, 1], [], []>} : vector<256x784xbf16>, vector<784x512xbf16>, vector<256x512xf32> -> vector<256x512xf32>
    %11 = vector.broadcast %2 : vector<1x512xf32> to vector<256x512xf32>
    %12 = arith.addf %10, %11 : vector<256x512xf32>
    %cst_11 = arith.constant dense<0.000000e+00> : vector<512xf32>
    %13 = vector.multi_reduction <add>, %12, %cst_11 [0] : vector<256x512xf32> to vector<512xf32>
    %14 = vector.shape_cast %13 : vector<512xf32> to vector<1x512xf32>
    %cst_12 = arith.constant 3.906250e-03 : f32
    %15 = vector.broadcast %cst_12 : f32 to vector<1x512xf32>
    %16 = arith.mulf %14, %15 : vector<1x512xf32>
    %17 = arith.mulf %12, %12 : vector<256x512xf32>
    %cst_13 = arith.constant dense<0.000000e+00> : vector<512xf32>
    %18 = vector.multi_reduction <add>, %17, %cst_13 [0] : vector<256x512xf32> to vector<512xf32>
    %19 = vector.shape_cast %18 : vector<512xf32> to vector<1x512xf32>
    %cst_14 = arith.constant 3.906250e-03 : f32
    %20 = vector.broadcast %cst_14 : f32 to vector<1x512xf32>
    %21 = arith.mulf %19, %20 : vector<1x512xf32>
    %22 = arith.mulf %16, %16 : vector<1x512xf32>
    %23 = arith.subf %21, %22 : vector<1x512xf32>
    %cst_15 = arith.constant 0.000000e+00 : f32
    %24 = vector.broadcast %cst_15 : f32 to vector<1x512xf32>
    %25 = arith.maximumf %23, %24 : vector<1x512xf32>
    %cst_16 = arith.constant 9.99999974E-6 : f32
    %26 = vector.broadcast %cst_16 : f32 to vector<1x512xf32>
    %27 = arith.addf %25, %26 : vector<1x512xf32>
    %28 = math.rsqrt %27 : vector<1x512xf32>
    %29 = arith.mulf %3, %28 : vector<1x512xf32>
    %30 = arith.mulf %16, %29 : vector<1x512xf32>
    %31 = arith.subf %4, %30 : vector<1x512xf32>
    %32 = vector.broadcast %29 : vector<1x512xf32> to vector<256x512xf32>
    %33 = arith.mulf %12, %32 : vector<256x512xf32>
    %34 = vector.broadcast %31 : vector<1x512xf32> to vector<256x512xf32>
    %35 = arith.addf %33, %34 : vector<256x512xf32>
    %cst_17 = arith.constant 0.00999999977 : f32
    %36 = vector.broadcast %cst_17 : f32 to vector<256x512xf32>
    %37 = arith.mulf %36, %35 : vector<256x512xf32>
    %38 = arith.maximumf %35, %37 : vector<256x512xf32>
    %39 = arith.truncf %38 : vector<256x512xf32> to vector<256x512xbf16>
    %c0_18 = arith.constant 0 : index
    %c0_19 = arith.constant 0 : index
    %40 = vector.load %arg2[%c0_18, %c0_19] : memref<512x256xbf16, #tpu.memory_space<vmem>>, vector<512x256xbf16>
    %cst_20 = arith.constant dense<0.000000e+00> : vector<256x256xf32>
    %41 = tpu.matmul %39, %40, %cst_20 {dimension_numbers = #tpu.dot_dimension_numbers<[1], [0], [0], [1], [0, 0, 1, 1], [], []>} : vector<256x512xbf16>, vector<512x256xbf16>, vector<256x256xf32> -> vector<256x256xf32>
    %42 = vector.broadcast %5 : vector<1x256xf32> to vector<256x256xf32>
    %43 = arith.addf %41, %42 : vector<256x256xf32>
    %cst_21 = arith.constant dense<0.000000e+00> : vector<256xf32>
    %44 = vector.multi_reduction <add>, %43, %cst_21 [0] : vector<256x256xf32> to vector<256xf32>
    %45 = vector.shape_cast %44 : vector<256xf32> to vector<1x256xf32>
    %cst_22 = arith.constant 3.906250e-03 : f32
    %46 = vector.broadcast %cst_22 : f32 to vector<1x256xf32>
    %47 = arith.mulf %45, %46 : vector<1x256xf32>
    %48 = arith.mulf %43, %43 : vector<256x256xf32>
    %cst_23 = arith.constant dense<0.000000e+00> : vector<256xf32>
    %49 = vector.multi_reduction <add>, %48, %cst_23 [0] : vector<256x256xf32> to vector<256xf32>
    %50 = vector.shape_cast %49 : vector<256xf32> to vector<1x256xf32>
    %cst_24 = arith.constant 3.906250e-03 : f32
    %51 = vector.broadcast %cst_24 : f32 to vector<1x256xf32>
    %52 = arith.mulf %50, %51 : vector<1x256xf32>
    %53 = arith.mulf %47, %47 : vector<1x256xf32>
    %54 = arith.subf %52, %53 : vector<1x256xf32>
    %cst_25 = arith.constant 0.000000e+00 : f32
    %55 = vector.broadcast %cst_25 : f32 to vector<1x256xf32>
    %56 = arith.maximumf %54, %55 : vector<1x256xf32>
    %cst_26 = arith.constant 9.99999974E-6 : f32
    %57 = vector.broadcast %cst_26 : f32 to vector<1x256xf32>
    %58 = arith.addf %56, %57 : vector<1x256xf32>
    %59 = math.rsqrt %58 : vector<1x256xf32>
    %60 = arith.mulf %6, %59 : vector<1x256xf32>
    %61 = arith.mulf %47, %60 : vector<1x256xf32>
    %62 = arith.subf %7, %61 : vector<1x256xf32>
    %63 = vector.broadcast %60 : vector<1x256xf32> to vector<256x256xf32>
    %64 = arith.mulf %43, %63 : vector<256x256xf32>
    %65 = vector.broadcast %62 : vector<1x256xf32> to vector<256x256xf32>
    %66 = arith.addf %64, %65 : vector<256x256xf32>
    %cst_27 = arith.constant 0.00999999977 : f32
    %67 = vector.broadcast %cst_27 : f32 to vector<256x256xf32>
    %68 = arith.mulf %67, %66 : vector<256x256xf32>
    %69 = arith.maximumf %66, %68 : vector<256x256xf32>
    %70 = arith.truncf %69 : vector<256x256xf32> to vector<256x256xbf16>
    %c0_28 = arith.constant 0 : index
    %c0_29 = arith.constant 0 : index
    %71 = vector.load %arg3[%c0_28, %c0_29] : memref<256x128xbf16, #tpu.memory_space<vmem>>, vector<256x128xbf16>
    %cst_30 = arith.constant dense<0.000000e+00> : vector<256x128xf32>
    %72 = tpu.matmul %70, %71, %cst_30 {dimension_numbers = #tpu.dot_dimension_numbers<[1], [0], [0], [1], [0, 0, 1, 1], [], []>} : vector<256x256xbf16>, vector<256x128xbf16>, vector<256x128xf32> -> vector<256x128xf32>
    %73 = vector.broadcast %8 : vector<1x128xf32> to vector<256x128xf32>
    %74 = arith.addf %72, %73 : vector<256x128xf32>
    %c0_31 = arith.constant 0 : index
    %c0_32 = arith.constant 0 : index
    %75 = vector.load %arg5[%c0_31, %c0_32] : memref<256x128xf32, #tpu.memory_space<vmem>>, vector<256x128xf32>
    tpu.vector_store %arg5[%c0_31, %c0_32], %74 {strides = array<i32>} : memref<256x128xf32, #tpu.memory_space<vmem>>, vector<256x128xf32>,
    return
  }
}

</mosaic_0001>

<bundles_post_ra>
// kernel: tpu_custom_call.1
= control target key start
LH: loop header
LB: loop body
LE: loop exit
PB: predicated region body
PF: predicated region fallthrough
CT: control target
= control target key end

     0   :  { %s14911_s0 = inlined_call_operand.vmem [shape: f32[256,784], index: 0, kind: input, shape index: {}]   ;;  %s14912_s1 = inlined_call_operand.vmem [shape: bf16[784,512], index: 1, kind: input, shape index: {}]   ;;  %s14913_s2 = inlined_call_operand.vmem [shape: bf16[512,256], index: 2, kind: input, shape index: {}]   ;;  %s14914_s3 = inlined_call_operand.vmem [shape: bf16[256,128], index: 3, kind: input, shape index: {}]   ;;  %s14915_s4 = inlined_call_operand.vmem [shape: f32[8,512], index: 4, kind: input, shape index: {}]   ;;  %s14916_s5 = inlined_call_operand.hbm [shape: f32[256,128], index: 5, kind: output, shape index: {}]  }
   0x1   :  { %v7341_v0 = vld [vmem:[%s14912_s1 + $0xe0] sm:$0xf]  ;;  %v8425_v1 = vld [vmem:[%s14912_s1 + $0xec] sm:$0xf0] }
   0x2   :  { %v7469_v2 = vld [vmem:[%s14912_s1 + $0x1e0] sm:$0xf]  ;;  %v7342_v3 = vor.u32 %v8425_v1, %v7341_v0  ;;  %v8457_v4 = vld [vmem:[%s14912_s1 + $0x1ec] sm:$0xf0] }
   0x3   :  { %v7325_v5 = vld [vmem:[%s14912_s1 + $0xc0] sm:$0xf]  ;;  %v8421_v6 = vld [vmem:[%s14912_s1 + $0xcc] sm:$0xf0]  ;;  %v7470_v7 = vor.u32 %v8457_v4, %v7469_v2 }
   0x4   :  { %v7453_v8 = vld [vmem:[%s14912_s1 + $0x1c0] sm:$0xf]  ;;  %v8453_v9 = vld [vmem:[%s14912_s1 + $0x1cc] sm:$0xf0]  ;;  %8671 = vmatpush.bf16.msra.mxu2 %v7342_v3  ;;  %v7326_v10 = vor.u32 %v8421_v6, %v7325_v5  ;;  %1604 = vmatpush.bf16.msra.mxu0 %v7342_v3 }
   0x5   :  { %8679 = vmatpush.bf16.msra.mxu3 %v7470_v7  ;;  %v7454_v11 = vor.u32 %v8453_v9, %v7453_v8  ;;  %v7309_v12 = vld [vmem:[%s14912_s1 + $0xa0] sm:$0xf]  ;;  %v8417_v13 = vld [vmem:[%s14912_s1 + $0xac] sm:$0xf0]  ;;  %1693 = vmatpush.bf16.msra.mxu1 %v7470_v7 }
   0x6   :  { %v7437_v14 = vld [vmem:[%s14912_s1 + $0x1a0] sm:$0xf]  ;;  %v8449_v15 = vld [vmem:[%s14912_s1 + $0x1ac] sm:$0xf0]  ;;  %v7310_v16 = vor.u32 %v8417_v13, %v7309_v12 }
   0x7   :  { %v7438_v17 = vor.u32 %v8449_v15, %v7437_v14  ;;  %v7293_v18 = vld [vmem:[%s14912_s1 + $0x80] sm:$0xf]  ;;  %v8413_v19 = vld [vmem:[%s14912_s1 + $0x8c] sm:$0xf0] }
   0x8   :  { %8672 = vmatpush.bf16.msra.mxu2 %v7326_v10  ;;  %1605 = vmatpush.bf16.msra.mxu0 %v7326_v10  ;;  %v7421_v20 = vld [vmem:[%s14912_s1 + $0x180] sm:$0xf]  ;;  %v8445_v21 = vld [vmem:[%s14912_s1 + $0x18c] sm:$0xf0]  ;;  %v7294_v22 = vor.u32 %v8413_v19, %v7293_v18 }
   0x9   :  { %8680 = vmatpush.bf16.msra.mxu3 %v7454_v11  ;;  %1694 = vmatpush.bf16.msra.mxu1 %v7454_v11  ;;  %v7422_v23 = vor.u32 %v8445_v21, %v7421_v20  ;;  %v7277_v24 = vld [vmem:[%s14912_s1 + $0x60] sm:$0xf]  ;;  %v8409_v25 = vld [vmem:[%s14912_s1 + $0x6c] sm:$0xf0] }
   0xa   :  { %v7405_v26 = vld [vmem:[%s14912_s1 + $0x160] sm:$0xf]  ;;  %v8441_v27 = vld [vmem:[%s14912_s1 + $0x16c] sm:$0xf0]  ;;  %v7278_v28 = vor.u32 %v8409_v25, %v7277_v24 }
   0xc   :  { %8673 = vmatpush.bf16.msra.mxu2 %v7310_v16  ;;  %1606 = vmatpush.bf16.msra.mxu0 %v7310_v16 }
   0xd   :  { %8681 = vmatpush.bf16.msra.mxu3 %v7438_v17  ;;  %1695 = vmatpush.bf16.msra.mxu1 %v7438_v17 }
  0x10   :  { %8674 = vmatpush.bf16.msra.mxu2 %v7294_v22  ;;  %1607 = vmatpush.bf16.msra.mxu0 %v7294_v22 }
  0x11   :  { %10 = vsyncpa [#allocation3], 0  ;;  %8682 = vmatpush.bf16.msra.mxu3 %v7422_v23  ;;  %v7406_v29 = vor.u32 %v8441_v27, %v7405_v26  ;;  %v7261_v30 = vld [vmem:[%s14912_s1 + $0x40] sm:$0xf]  ;;  %v8405_v31 = vld [vmem:[%s14912_s1 + $0x4c] sm:$0xf0]  ;;  %1696 = vmatpush.bf16.msra.mxu1 %v7422_v23 }
  0x12   :  { %v7389_v32 = vld [vmem:[%s14912_s1 + $0x140] sm:$0xf]  ;;  %v8437_v33 = vld [vmem:[%s14912_s1 + $0x14c] sm:$0xf0]  ;;  %v7262_v34 = vor.u32 %v8405_v31, %v7261_v30  ;;  %v141_v52 = vld [vmem:[%s14911_s0 + $0x3b8] sm:$0xff]  ;;  %vm1555_vm0 = vcmask 130048  }
  0x13   :  { %v7390_v35 = vor.u32 %v8437_v33, %v7389_v32  ;;  %v7245_v36 = vld [vmem:[%s14912_s1 + $0x20] sm:$0xf]  ;;  %v8401_v37 = vld [vmem:[%s14912_s1 + $0x2c] sm:$0xf0]  ;;  %v29_v54 = vld [vmem:[%s14911_s0 + $0x38] sm:$0xff]  ;;  %vm4591_vm12 = vcmask 1040384  }
  0x14   :  { %8675 = vmatpush.bf16.msra.mxu2 %v7278_v28  ;;  %1608 = vmatpush.bf16.msra.mxu0 %v7278_v28  ;;  %v7373_v38 = vld [vmem:[%s14912_s1 + $0x120] sm:$0xf]  ;;  %v8433_v39 = vld [vmem:[%s14912_s1 + $0x12c] sm:$0xf0]  ;;  %v7246_v40 = vor.u32 %v8401_v37, %v7245_v36  ;;  %v135_v56 = vld [vmem:[%s14911_s0 + $0x388] sm:$0xff]  ;;  %vm4593_vm13 = vcmask 1042434  }
  0x15   :  { %8683 = vmatpush.bf16.msra.mxu3 %v7406_v29  ;;  %1697 = vmatpush.bf16.msra.mxu1 %v7406_v29  ;;  %v7374_v41 = vor.u32 %v8433_v39, %v7373_v38  ;;  %v7229_v42 = vld [vmem:[%s14912_s1] sm:$0xf]  ;;  %v8397_v43 = vld [vmem:[%s14912_s1 + $0xc] sm:$0xf0]  ;;  %v23_v59 = vld [vmem:[%s14911_s0 + $0x8] sm:$0xff]  ;;  %vm4595_vm15 = vcmask 1041408  }
  0x16   :  { %v7357_v44 = vld [vmem:[%s14912_s1 + $0x100] sm:$0xf]  ;;  %v8429_v45 = vld [vmem:[%s14912_s1 + $0x10c] sm:$0xf0]  ;;  %v7230_v51 = vor.u32 %v8397_v43, %v7229_v42  ;;  %v155_v15 = vld [vmem:[%s14911_s0 + $0x428] sm:$0xff]  ;;  %s7210_s21 = sshll.u32 %s14916_s5, 4  ;;  %s7211_s21 = int_to_ptr.hbm [resolvable:$true] %s7210_s21 }
  0x17   :  { %v7597_v46 = vld [vmem:[%s14912_s1 + $0x2e0] sm:$0xf]  ;;  %v8489_v47 = vld [vmem:[%s14912_s1 + $0x2ec] sm:$0xf0]  ;;  %v7358_v55 = vor.u32 %v8429_v45, %v7357_v44  ;;  %v43_v17 = vld [vmem:[%s14911_s0 + $0xa8] sm:$0xff]  ;;  %s8733_s22 = smov 128  }
  0x18   :  { %8676 = vmatpush.bf16.msra.mxu2 %v7262_v34  ;;  %1609 = vmatpush.bf16.msra.mxu0 %v7262_v34  ;;  %v134_v48 = vld [vmem:[%s14911_s0 + $0x380] sm:$0xff]  ;;  %v8521_v50 = vld [vmem:[%s14912_s1 + $0x3ec] sm:$0xf0]  ;;  %v7598_v58 = vor.u32 %v8489_v47, %v7597_v46  ;;  %v149_v18 = vld [vmem:[%s14911_s0 + $0x3f8] sm:$0xff]  ;;  %s8734_s23 = smov 8  }
  0x19   :  { %8684 = vmatpush.bf16.msra.mxu3 %v7390_v35  ;;  %1698 = vmatpush.bf16.msra.mxu1 %v7390_v35  ;;  %v7725_v49 = vld [vmem:[%s14912_s1 + $0x3e0] sm:$0xf]  ;;  %v8485_v63 = vld [vmem:[%s14912_s1 + $0x2cc] sm:$0xf0]  ;;  %v8903_v0 = vpack.c.bf16 %v141_v52, %v134_v48  ;;  %v37_v20 = vld [vmem:[%s14911_s0 + $0x78] sm:$0xff] }
  0x1a   :  { %v22_v53 = vld [vmem:[%s14911_s0] sm:$0xff]  ;;  %v7726_v60 = vor.u32 %v8521_v50, %v7725_v49  ;;  %v8517_v3 = vld [vmem:[%s14912_s1 + $0x3cc] sm:$0xf0]  ;;  %v169_v33 = vld [vmem:[%s14911_s0 + $0x498] sm:$0xff] }
  0x1b   :  { %v142_v57 = vld [vmem:[%s14911_s0 + $0x3c0] sm:$0xff]  ;;  %15445 = vst [vmem:[#allocation5_spill] sm:$0xff] %v8903_v0  ;;  %v8905_v1 = vpack.c.bf16 %v29_v54, %v22_v53  ;;  %v8481_v9 = vld [vmem:[%s14912_s1 + $0x2ac] sm:$0xf0]  ;;  %v57_v35 = vld [vmem:[%s14911_s0 + $0x118] sm:$0xff] }
  0x1c   :  { %8677 = vmatpush.bf16.msra.mxu2 %v7246_v40  ;;  %1610 = vmatpush.bf16.msra.mxu0 %v7246_v40  ;;  %v30_v61 = vld [vmem:[%s14911_s0 + $0x40] sm:$0xff]  ;;  %v8913_v4 = vpack.c.bf16 %v142_v57, %v135_v56  ;;  %v8513_v12 = vld [vmem:[%s14912_s1 + $0x3ac] sm:$0xf0]  ;;  %v163_v36 = vld [vmem:[%s14911_s0 + $0x468] sm:$0xff] }
  0x1d   :  { %8685 = vmatpush.bf16.msra.mxu3 %v7374_v41  ;;  %1699 = vmatpush.bf16.msra.mxu1 %v7374_v41  ;;  %v7581_v62 = vld [vmem:[%s14912_s1 + $0x2c0] sm:$0xf]  ;;  %15446 = vst [vmem:[#allocation6_spill] sm:$0xff] %v8905_v1  ;;  %v8915_v5 = vpack.c.bf16 %v30_v61, %v23_v59  ;;  %v148_v14 = vld [vmem:[%s14911_s0 + $0x3f0] sm:$0xff]  ;;  %v51_v38 = vld [vmem:[%s14911_s0 + $0xe8] sm:$0xff] }
  0x1e   :  { %v7709_v2 = vld [vmem:[%s14912_s1 + $0x3c0] sm:$0xf]  ;;  %15447 = vst [vmem:[#allocation7_spill] sm:$0xff] %v8913_v4  ;;  %v7582_v6 = vor.u32 %v8485_v63, %v7581_v62  ;;  %v36_v16 = vld [vmem:[%s14911_s0 + $0x70] sm:$0xff]  ;;  %v8957_v22 = vpack.c.bf16 %v155_v15, %v148_v14  ;;  %v71_v53 = vld [vmem:[%s14911_s0 + $0x188] sm:$0xff] }
  0x1f   :  { %15448 = vst [vmem:[#allocation8_spill] sm:$0xff] %v8915_v5  ;;  %v7710_v7 = vor.u32 %v8517_v3, %v7709_v2  ;;  %v7565_v8 = vld [vmem:[%s14912_s1 + $0x2a0] sm:$0xf]  ;;  %v156_v19 = vld [vmem:[%s14911_s0 + $0x430] sm:$0xff]  ;;  %v8959_v23 = vpack.c.bf16 %v43_v17, %v36_v16  ;;  %v177_v54 = vld [vmem:[%s14911_s0 + $0x4d8] sm:$0xff] }
  0x20   :  { %8678 = vmatpush.bf16.msra.mxu2 %v7230_v51  ;;  %1611 = vmatpush.bf16.msra.mxu0 %v7230_v51  ;;  %v7693_v10 = vld [vmem:[%s14912_s1 + $0x3a0] sm:$0xf]  ;;  %v7566_v11 = vor.u32 %v8481_v9, %v7565_v8  ;;  %v44_v21 = vld [vmem:[%s14911_s0 + $0xb0] sm:$0xff]  ;;  %15449 = vst [vmem:[#allocation9_spill] sm:$0xff] %v8957_v22  ;;  %v8961_v24 = vpack.c.bf16 %v156_v19, %v149_v18  ;;  %v183_v51 = vld [vmem:[%s14911_s0 + $0x508] sm:$0xff] }
  0x21   :  { %8686 = vmatpush.bf16.msra.mxu3 %v7358_v55  ;;  %1700 = vmatpush.bf16.msra.mxu1 %v7358_v55  ;;  %v7694_v13 = vor.u32 %v8513_v12, %v7693_v10  ;;  %15450 = vst [vmem:[#allocation10_spill] sm:$0xff] %v8959_v23  ;;  %v8963_v25 = vpack.c.bf16 %v44_v21, %v37_v20  ;;  %v7549_v26 = vld [vmem:[%s14912_s1 + $0x280] sm:$0xf]  ;;  %v8477_v27 = vld [vmem:[%s14912_s1 + $0x28c] sm:$0xf0]  ;;  %v65_v56 = vld [vmem:[%s14911_s0 + $0x158] sm:$0xff] }
  0x22   :  { %15451 = vst [vmem:[#allocation11_spill] sm:$0xff] %v8961_v24  ;;  %v7677_v28 = vld [vmem:[%s14912_s1 + $0x380] sm:$0xf]  ;;  %v7550_v29 = vor.u32 %v8477_v27, %v7549_v26  ;;  %v8509_v30 = vld [vmem:[%s14912_s1 + $0x38c] sm:$0xf0]  ;;  %v197_v9 = vld [vmem:[%s14911_s0 + $0x578] sm:$0xff] }
  0x23   :  { %1652 = vmatmul.bf16.vlgmr.msra.gmra.mxu2 %v8903_v0  ;;  %1612 = vmatmul.bf16.vlgmr.msra.gmra.mxu0 %v8905_v1  ;;  %15452 = vst [vmem:[#allocation12_spill] sm:$0xff] %v8963_v25  ;;  %v7678_v31 = vor.u32 %v8509_v30, %v7677_v28  ;;  %v162_v32 = vld [vmem:[%s14911_s0 + $0x460] sm:$0xff]  ;;  %v8473_v45 = vld [vmem:[%s14912_s1 + $0x26c] sm:$0xf0]  ;;  %v191_v12 = vld [vmem:[%s14911_s0 + $0x548] sm:$0xff] }
  0x24   :  { %1782 = vmatpush.bf16.msrb.mxu2 %v7598_v58  ;;  %1741 = vmatmul.bf16.vlgmr.msra.gmra.mxu3 %v8913_v4  ;;  %v50_v34 = vld [vmem:[%s14911_s0 + $0xe0] sm:$0xff]  ;;  %v9005_v40 = vpack.c.bf16 %v169_v33, %v162_v32  ;;  %v8505_v48 = vld [vmem:[%s14912_s1 + $0x36c] sm:$0xf0]  ;;  %v79_v14 = vld [vmem:[%s14911_s0 + $0x1c8] sm:$0xff] }
  0x25   :  { %1871 = vmatpush.bf16.msrb.mxu3 %v7726_v60  ;;  %1701 = vmatmul.bf16.vlgmr.msra.gmra.mxu1 %v8915_v5  ;;  %v170_v37 = vld [vmem:[%s14911_s0 + $0x4a0] sm:$0xff]  ;;  %v9007_v41 = vpack.c.bf16 %v57_v35, %v50_v34  ;;  %v176_v50 = vld [vmem:[%s14911_s0 + $0x4d0] sm:$0xff] }
  0x26   :  { %v58_v39 = vld [vmem:[%s14911_s0 + $0x120] sm:$0xff]  ;;  %15453 = vst [vmem:[#allocation13_spill] sm:$0xff] %v9005_v40  ;;  %v9009_v42 = vpack.c.bf16 %v170_v37, %v163_v36  ;;  %v64_v52 = vld [vmem:[%s14911_s0 + $0x150] sm:$0xff]  ;;  %v9053_v58 = vpack.c.bf16 %v183_v51, %v176_v50  ;;  %v205_v50 = vld [vmem:[%s14911_s0 + $0x5b8] sm:$0xff] }
  0x27   :  { %15454 = vst [vmem:[#allocation14_spill] sm:$0xff] %v9007_v41  ;;  %v9011_v43 = vpack.c.bf16 %v58_v39, %v51_v38  ;;  %v7533_v44 = vld [vmem:[%s14912_s1 + $0x260] sm:$0xf]  ;;  %v184_v55 = vld [vmem:[%s14911_s0 + $0x510] sm:$0xff]  ;;  %v9055_v59 = vpack.c.bf16 %v71_v53, %v64_v52  ;;  %v93_v52 = vld [vmem:[%s14911_s0 + $0x238] sm:$0xff] }
  0x28   :  { %1783 = vmatpush.bf16.msrb.mxu2 %v7582_v6  ;;  %15455 = vst [vmem:[#allocation15_spill] sm:$0xff] %v9009_v42  ;;  %v7661_v46 = vld [vmem:[%s14912_s1 + $0x360] sm:$0xf]  ;;  %v7534_v47 = vor.u32 %v8473_v45, %v7533_v44  ;;  %v72_v57 = vld [vmem:[%s14911_s0 + $0x190] sm:$0xff]  ;;  %v9057_v60 = vpack.c.bf16 %v184_v55, %v177_v54 }
  0x29   :  { %1872 = vmatpush.bf16.msrb.mxu3 %v7710_v7  ;;  %15456 = vst [vmem:[#allocation16_spill] sm:$0xff] %v9011_v43  ;;  %v7662_v49 = vor.u32 %v8505_v48, %v7661_v46  ;;  %v9059_v61 = vpack.c.bf16 %v72_v57, %v65_v56  ;;  %v7517_v62 = vld [vmem:[%s14912_s1 + $0x240] sm:$0xf]  ;;  %v8469_v63 = vld [vmem:[%s14912_s1 + $0x24c] sm:$0xf0] }
  0x2a   :  { %15457 = vst [vmem:[#allocation17_spill] sm:$0xff] %v9053_v58  ;;  %v7645_v2 = vld [vmem:[%s14912_s1 + $0x340] sm:$0xf]  ;;  %v7518_v3 = vor.u32 %v8469_v63, %v7517_v62  ;;  %v8501_v6 = vld [vmem:[%s14912_s1 + $0x34c] sm:$0xf0] }
  0x2b   :  { %15458 = vst [vmem:[#allocation18_spill] sm:$0xff] %v9055_v59  ;;  %v7646_v7 = vor.u32 %v8501_v6, %v7645_v2  ;;  %v190_v8 = vld [vmem:[%s14911_s0 + $0x540] sm:$0xff]  ;;  %v8465_v21 = vld [vmem:[%s14912_s1 + $0x22c] sm:$0xf0] }
  0x2c   :  { %1784 = vmatpush.bf16.msrb.mxu2 %v7566_v11  ;;  %15459 = vst [vmem:[#allocation19_spill] sm:$0xff] %v9057_v60  ;;  %v78_v10 = vld [vmem:[%s14911_s0 + $0x1c0] sm:$0xff]  ;;  %v85_v11 = vld [vmem:[%s14911_s0 + $0x1f8] sm:$0xff]  ;;  %v9101_v16 = vpack.c.bf16 %v197_v9, %v190_v8  ;;  %v8497_v28 = vld [vmem:[%s14912_s1 + $0x32c] sm:$0xf0] }
  0x2d   :  { %1873 = vmatpush.bf16.msrb.mxu3 %v7694_v13  ;;  %15460 = vst [vmem:[#allocation20_spill] sm:$0xff] %v9059_v61  ;;  %v198_v13 = vld [vmem:[%s14911_s0 + $0x580] sm:$0xff]  ;;  %v9103_v17 = vpack.c.bf16 %v85_v11, %v78_v10  ;;  %v8585_v34 = vld [vmem:[%s14912_s1 + $0x5ec] sm:$0xf0] }
  0x2e   :  { %v86_v15 = vld [vmem:[%s14911_s0 + $0x200] sm:$0xff]  ;;  %15461 = vst [vmem:[#allocation21_spill] sm:$0xff] %v9101_v16  ;;  %v9105_v18 = vpack.c.bf16 %v198_v13, %v191_v12  ;;  %v8549_v37 = vld [vmem:[%s14912_s1 + $0x4cc] sm:$0xf0] }
  0x2f   :  { %15462 = vst [vmem:[#allocation22_spill] sm:$0xff] %v9103_v17  ;;  %v9107_v19 = vpack.c.bf16 %v86_v15, %v79_v14  ;;  %v7501_v20 = vld [vmem:[%s14912_s1 + $0x220] sm:$0xf]  ;;  %v8581_v44 = vld [vmem:[%s14912_s1 + $0x5cc] sm:$0xf0] }
  0x30   :  { %1785 = vmatpush.bf16.msrb.mxu2 %v7550_v29  ;;  %15463 = vst [vmem:[#allocation23_spill] sm:$0xff] %v9105_v18  ;;  %v7629_v26 = vld [vmem:[%s14912_s1 + $0x320] sm:$0xf]  ;;  %v7502_v27 = vor.u32 %v8465_v21, %v7501_v20  ;;  %v204_v46 = vld [vmem:[%s14911_s0 + $0x5b0] sm:$0xff] }
  0x31   :  { %1874 = vmatpush.bf16.msrb.mxu3 %v7678_v31  ;;  %15464 = vst [vmem:[#allocation24_spill] sm:$0xff] %v9107_v19  ;;  %v7630_v29 = vor.u32 %v8497_v28, %v7629_v26  ;;  %v7853_v30 = vld [vmem:[%s14912_s1 + $0x4e0] sm:$0xf]  ;;  %v8553_v31 = vld [vmem:[%s14912_s1 + $0x4ec] sm:$0xf0] }
  0x32   :  { %v7854_v32 = vor.u32 %v8553_v31, %v7853_v30  ;;  %v7981_v33 = vld [vmem:[%s14912_s1 + $0x5e0] sm:$0xf]  ;;  %v92_v48 = vld [vmem:[%s14911_s0 + $0x230] sm:$0xff] }
  0x33   :  { %1657 = vmatmul.bf16.gmra.mxu2 %v8957_v22  ;;  %1617 = vmatmul.bf16.gmra.mxu0 %v8959_v23  ;;  %v7982_v35 = vor.u32 %v8585_v34, %v7981_v33  ;;  %v7837_v36 = vld [vmem:[%s14912_s1 + $0x4c0] sm:$0xf]  ;;  %v212_v51 = vld [vmem:[%s14911_s0 + $0x5f0] sm:$0xff] }
  0x34   :  { %1746 = vmatmul.bf16.gmra.mxu3 %v8961_v24  ;;  %1786 = vmatpush.bf16.msrb.mxu2 %v7534_v47  ;;  %v7965_v38 = vld [vmem:[%s14912_s1 + $0x5c0] sm:$0xf]  ;;  %v7838_v39 = vor.u32 %v8549_v37, %v7837_v36  ;;  %v211_v47 = vld [vmem:[%s14911_s0 + $0x5e8] sm:$0xff]  ;;  %v100_v53 = vld [vmem:[%s14911_s0 + $0x270] sm:$0xff]  ;;  %v9177_v56 = vpack.c.bf16 %v212_v51, %v205_v50 }
  0x35   :  { %1706 = vmatmul.bf16.gmra.mxu1 %v8963_v25  ;;  %1875 = vmatpush.bf16.msrb.mxu3 %v7662_v49  ;;  %v7966_v45 = vor.u32 %v8581_v44, %v7965_v38  ;;  %v99_v49 = vld [vmem:[%s14911_s0 + $0x268] sm:$0xff]  ;;  %v9173_v54 = vpack.c.bf16 %v211_v47, %v204_v46  ;;  %v9179_v57 = vpack.c.bf16 %v100_v53, %v93_v52  ;;  %v7821_v62 = vld [vmem:[%s14912_s1 + $0x4a0] sm:$0xf]  ;;  %v8545_v63 = vld [vmem:[%s14912_s1 + $0x4ac] sm:$0xf0] }
  0x36   :  { %1960 = vmatpush.bf16.msrb.mxu0 %v7854_v32  ;;  %2049 = vmatpush.bf16.msrb.mxu1 %v7982_v35  ;;  %v9175_v55 = vpack.c.bf16 %v99_v49, %v92_v48  ;;  %15467 = vst [vmem:[#allocation27_spill] sm:$0xff] %v9177_v56  ;;  %v7822_v2 = vor.u32 %v8545_v63, %v7821_v62  ;;  %v8461_v6 = vld [vmem:[%s14912_s1 + $0x20c] sm:$0xf0]  ;;  %v7949_v10 = vld [vmem:[%s14912_s1 + $0x5a0] sm:$0xf]  ;;  %v225_v36 = vld [vmem:[%s14911_s0 + $0x658] sm:$0xff] }
  0x37   :  { %15465 = vst [vmem:[#allocation25_spill] sm:$0xff] %v9173_v54  ;;  %v8493_v9 = vld [vmem:[%s14912_s1 + $0x30c] sm:$0xf0]  ;;  %v7805_v14 = vld [vmem:[%s14912_s1 + $0x480] sm:$0xf]  ;;  %v219_v37 = vld [vmem:[%s14911_s0 + $0x628] sm:$0xff] }
  0x38   :  { %1787 = vmatpush.bf16.msrb.mxu2 %v7518_v3  ;;  %15466 = vst [vmem:[#allocation26_spill] sm:$0xff] %v9175_v55  ;;  %v7485_v3 = vld [vmem:[%s14912_s1 + $0x200] sm:$0xf]  ;;  %v8577_v11 = vld [vmem:[%s14912_s1 + $0x5ac] sm:$0xf0]  ;;  %v107_v49 = vld [vmem:[%s14911_s0 + $0x2a8] sm:$0xff] }
  0x39   :  { %1876 = vmatpush.bf16.msrb.mxu3 %v7646_v7  ;;  %15468 = vst [vmem:[#allocation28_spill] sm:$0xff] %v9179_v57  ;;  %v7613_v7 = vld [vmem:[%s14912_s1 + $0x300] sm:$0xf]  ;;  %v7486_v8 = vor.u32 %v8461_v6, %v7485_v3  ;;  %v7950_v13 = vor.u32 %v8577_v11, %v7949_v10  ;;  %v8541_v15 = vld [vmem:[%s14912_s1 + $0x48c] sm:$0xf0] }
  0x3a   :  { %1961 = vmatpush.bf16.msrb.mxu0 %v7838_v39  ;;  %2050 = vmatpush.bf16.msrb.mxu1 %v7966_v45  ;;  %v7614_v12 = vor.u32 %v8493_v9, %v7613_v7  ;;  %v7933_v20 = vld [vmem:[%s14912_s1 + $0x580] sm:$0xf]  ;;  %v7806_v21 = vor.u32 %v8541_v15, %v7805_v14  ;;  %v8573_v26 = vld [vmem:[%s14912_s1 + $0x58c] sm:$0xf0]  ;;  %v113_v39 = vld [vmem:[%s14911_s0 + $0x2d8] sm:$0xff] }
  0x3b   :  { %v7789_v28 = vld [vmem:[%s14912_s1 + $0x460] sm:$0xf]  ;;  %v8569_v32 = vld [vmem:[%s14912_s1 + $0x56c] sm:$0xf0]  ;;  %v8423_v9 = vld [vmem:[%s14912_s1 + $0xe4] sm:$0xf] }
  0x3c   :  { %1788 = vmatpush.bf16.msrb.mxu2 %v7502_v27  ;;  %v7934_v27 = vor.u32 %v8573_v26, %v7933_v20  ;;  %v7917_v31 = vld [vmem:[%s14912_s1 + $0x560] sm:$0xf]  ;;  %v8533_v34 = vld [vmem:[%s14912_s1 + $0x44c] sm:$0xf0]  ;;  %v7343_v11 = vld [vmem:[%s14912_s1 + $0xf0] sm:$0xf0] }
  0x3d   :  { %1877 = vmatpush.bf16.msrb.mxu3 %v7630_v29  ;;  %v8537_v29 = vld [vmem:[%s14912_s1 + $0x46c] sm:$0xf0]  ;;  %v7773_v33 = vld [vmem:[%s14912_s1 + $0x440] sm:$0xf]  ;;  %v7918_v44 = vor.u32 %v8569_v32, %v7917_v31  ;;  %v239_v31 = vld [vmem:[%s14911_s0 + $0x6c8] sm:$0xff] }
  0x3e   :  { %1962 = vmatpush.bf16.msrb.mxu0 %v7822_v2  ;;  %2051 = vmatpush.bf16.msrb.mxu1 %v7950_v13  ;;  %v7790_v30 = vor.u32 %v8537_v29, %v7789_v28  ;;  %v218_v35 = vld [vmem:[%s14911_s0 + $0x620] sm:$0xff]  ;;  %v7774_v46 = vor.u32 %v8533_v34, %v7773_v33  ;;  %v8565_v48 = vld [vmem:[%s14912_s1 + $0x54c] sm:$0xf0]  ;;  %v127_v33 = vld [vmem:[%s14911_s0 + $0x348] sm:$0xff] }
  0x3f   :  { %v106_v38 = vld [vmem:[%s14911_s0 + $0x2a0] sm:$0xff]  ;;  %v9269_v51 = vpack.c.bf16 %v225_v36, %v218_v35  ;;  %v8529_v3 = vld [vmem:[%s14912_s1 + $0x42c] sm:$0xf0]  ;;  %v233_v34 = vld [vmem:[%s14911_s0 + $0x698] sm:$0xff] }
  0x40   :  { %1789 = vmatpush.bf16.msrb.mxu2 %v7486_v8  ;;  %v226_v45 = vld [vmem:[%s14911_s0 + $0x660] sm:$0xff]  ;;  %v9271_v52 = vpack.c.bf16 %v113_v39, %v106_v38  ;;  %v8589_v8 = vld [vmem:[%s14912_s1 + $0x60c] sm:$0xf0]  ;;  %v121_v36 = vld [vmem:[%s14911_s0 + $0x318] sm:$0xff] }
  0x41   :  { %1878 = vmatpush.bf16.msrb.mxu3 %v7614_v12  ;;  %v7901_v47 = vld [vmem:[%s14912_s1 + $0x540] sm:$0xf]  ;;  %15469 = vst [vmem:[#allocation29_spill] sm:$0xff] %v9269_v51  ;;  %v9273_v53 = vpack.c.bf16 %v226_v45, %v219_v37  ;;  %v7346_v12 = vor.u32 %v8423_v9, %v7343_v11  ;;  %v8561_v14 = vld [vmem:[%s14912_s1 + $0x52c] sm:$0xf0] }
  0x42   :  { %1963 = vmatpush.bf16.msrb.mxu0 %v7806_v21  ;;  %2052 = vmatpush.bf16.msrb.mxu1 %v7934_v27  ;;  %v114_v50 = vld [vmem:[%s14911_s0 + $0x2e0] sm:$0xff]  ;;  %15470 = vst [vmem:[#allocation30_spill] sm:$0xff] %v9271_v52  ;;  %v7902_v62 = vor.u32 %v8565_v48, %v7901_v47  ;;  %v8525_v21 = vld [vmem:[%s14912_s1 + $0x40c] sm:$0xf0]  ;;  %v31_v47 = vld [vmem:[%s14911_s0 + $0x48] sm:$0xff] }
  0x43   :  { %1662 = vmatmul.bf16.gmra.mxu2 %v9005_v40  ;;  %1622 = vmatmul.bf16.gmra.mxu0 %v9007_v41  ;;  %15471 = vst [vmem:[#allocation31_spill] sm:$0xff] %v9273_v53  ;;  %v9275_v63 = vpack.c.bf16 %v114_v50, %v107_v49  ;;  %v7757_v2 = vld [vmem:[%s14912_s1 + $0x420] sm:$0xf]  ;;  %v8557_v28 = vld [vmem:[%s14912_s1 + $0x50c] sm:$0xf0]  ;;  %v33_v50 = vld [vmem:[%s14911_s0 + $0x58] sm:$0xff] }
  0x44   :  { %1751 = vmatmul.bf16.gmra.mxu3 %v9009_v42  ;;  %v7758_v6 = vor.u32 %v8529_v3, %v7757_v2  ;;  %v7997_v7 = vld [vmem:[%s14912_s1 + $0x600] sm:$0xf]  ;;  %v120_v32 = vld [vmem:[%s14911_s0 + $0x310] sm:$0xff]  ;;  %v27_v3 = vld [vmem:[%s14911_s0 + $0x28] sm:$0xff] }
  0x45   :  { %1711 = vmatmul.bf16.gmra.mxu1 %v9011_v43  ;;  %15472 = vst [vmem:[#allocation32_spill] sm:$0xff] %v9275_v63  ;;  %v7998_v10 = vor.u32 %v8589_v8, %v7997_v7  ;;  %v7885_v13 = vld [vmem:[%s14912_s1 + $0x520] sm:$0xf]  ;;  %2227 = vmatpush.bf16.msra.mxu3 %v7346_v12  ;;  %v240_v35 = vld [vmem:[%s14911_s0 + $0x6d0] sm:$0xff]  ;;  %v9343_v39 = vpack.c.bf16 %v127_v33, %v120_v32 }
  0x46   :  { %1964 = vmatpush.bf16.msrb.mxu0 %v7790_v30  ;;  %2053 = vmatpush.bf16.msrb.mxu1 %v7918_v44  ;;  %v7886_v15 = vor.u32 %v8561_v14, %v7885_v13  ;;  %v7741_v20 = vld [vmem:[%s14912_s1 + $0x400] sm:$0xf]  ;;  %v232_v30 = vld [vmem:[%s14911_s0 + $0x690] sm:$0xff]  ;;  %v9345_v44 = vpack.c.bf16 %v240_v35, %v233_v34 }
  0x47   :  { %2145 = vmatpush.bf16.msra.mxu2 %v7998_v10  ;;  %v7742_v26 = vor.u32 %v8525_v21, %v7741_v20  ;;  %v7869_v27 = vld [vmem:[%s14912_s1 + $0x500] sm:$0xf]  ;;  %v128_v37 = vld [vmem:[%s14911_s0 + $0x350] sm:$0xff]  ;;  %v9341_v38 = vpack.c.bf16 %v239_v31, %v232_v30  ;;  %15474 = vst [vmem:[#allocation34_spill] sm:$0xff] %v9343_v39  ;;  %v8419_v20 = vld [vmem:[%s14912_s1 + $0xc4] sm:$0xf] }
  0x48   :  { %v7870_v29 = vor.u32 %v8557_v28, %v7869_v27  ;;  %15475 = vst [vmem:[#allocation35_spill] sm:$0xff] %v9345_v44  ;;  %v9347_v45 = vpack.c.bf16 %v128_v37, %v121_v36  ;;  %v358_v48 = vld [vmem:[%s14915_s4] ss:$8 sm:$0xf]  ;;  %v7327_v21 = vld [vmem:[%s14912_s1 + $0xd0] sm:$0xf0] }
  0x49   :  { %15473 = vst [vmem:[#allocation33_spill] sm:$0xff] %v9341_v38  ;;  %v26_v49 = vld [vmem:[%s14911_s0 + $0x20] sm:$0xff]  ;;  %v32_v2 = vld [vmem:[%s14911_s0 + $0x50] sm:$0xff]  ;;  %v9382_v8 = vperm.slane %v358_v48, 0  ;;  %v45_v36 = vld [vmem:[%s14911_s0 + $0xb8] sm:$0xff] }
  0x4a   :  { %1965 = vmatpush.bf16.msrb.mxu0 %v7774_v46  ;;  %2054 = vmatpush.bf16.msrb.mxu1 %v7902_v62  ;;  %15476 = vst [vmem:[#allocation36_spill] sm:$0xff] %v9347_v45  ;;  %v24_v46 = vld [vmem:[%s14911_s0 + $0x10] sm:$0xff]  ;;  %v25_v62 = vld [vmem:[%s14911_s0 + $0x18] sm:$0xff]  ;;  %v9384_v9 = vpack.c.bf16 %v33_v50, %v26_v49  ;;  %v38_v35 = vld [vmem:[%s14911_s0 + $0x80] sm:$0xff] }
  0x4b   :  { %v9380_v7 = vpack.c.bf16 %v31_v47, %v24_v46  ;;  %v9386_v10 = vpack.c.bf16 %v32_v2, %v25_v62  ;;  %v40_v37 = vld [vmem:[%s14911_s0 + $0x90] sm:$0xff]  ;;  %v47_v46 = vld [vmem:[%s14911_s0 + $0xc8] sm:$0xff]  ;;  %v46_v48 = vld [vmem:[%s14911_s0 + $0xc0] sm:$0xff] }
  0x4c   :  { %15478 = vst [vmem:[#allocation38_spill] sm:$0xff] %v9384_v9  ;;  %v39_v47 = vld [vmem:[%s14911_s0 + $0x88] sm:$0xff]  ;;  %v41_v50 = vld [vmem:[%s14911_s0 + $0x98] sm:$0xff]  ;;  %v48_v62 = vld [vmem:[%s14911_s0 + $0xd0] sm:$0xff] }
  0x4d   :  { %15477 = vst [vmem:[#allocation37_spill] sm:$0xff] %v9380_v7 }
  0x4e   :  { %1966 = vmatpush.bf16.msrb.mxu0 %v7758_v6  ;;  %2055 = vmatpush.bf16.msrb.mxu1 %v7886_v15  ;;  %v34_v6 = vld [vmem:[%s14911_s0 + $0x60] sm:$0xff]  ;;  %15479 = vst [vmem:[#allocation39_spill] sm:$0xff] %v9386_v10 }
  0x4f   :  { %v9389_v13 = vpack.c.bf16 %v34_v6, %v27_v3  ;;  %v9434_v6 = vpack.c.bf16 %v45_v36, %v38_v35 }
  0x51   :  { %15480 = vst [vmem:[#allocation40_spill] sm:$0xff] %v9389_v13 }
  0x52   :  { %1967 = vmatpush.bf16.msrb.mxu0 %v7742_v26  ;;  %2056 = vmatpush.bf16.msrb.mxu1 %v7870_v29  ;;  %v7330_v26 = vor.u32 %v8419_v20, %v7327_v21  ;;  %15481 = vst [vmem:[#allocation41_spill] sm:$0xff] %v9434_v6 }
  0x53   :  { %1667 = vmatmul.bf16.gmra.mxu2 %v9053_v58  ;;  %1627 = vmatmul.bf16.gmra.mxu0 %v9055_v59 }
  0x54   :  { %1756 = vmatmul.bf16.gmra.mxu3 %v9057_v60 }
  0x55   :  { %1716 = vmatmul.bf16.gmra.mxu1 %v9059_v61  ;;  %2228 = vmatpush.bf16.msra.mxu3 %v7330_v26  ;;  %v9443_v26 = vpack.c.bf16 %v48_v62, %v41_v50  ;;  %v61_v50 = vld [vmem:[%s14911_s0 + $0x138] sm:$0xff] }
  0x56   :  { %v53_v62 = vld [vmem:[%s14911_s0 + $0xf8] sm:$0xff] }
  0x57   :  { %15484 = vst [vmem:[#allocation44_spill] sm:$0xff] %v9443_v26 }
  0x63   :  { %1672 = vmatmul.bf16.gmra.mxu2 %v9101_v16  ;;  %1632 = vmatmul.bf16.gmra.mxu0 %v9103_v17 }
  0x64   :  { %1761 = vmatmul.bf16.gmra.mxu3 %v9105_v18 }
  0x65   :  { %1721 = vmatmul.bf16.gmra.mxu1 %v9107_v19 }
  0x73   :  { %1677 = vmatmul.bf16.gmra.mxu2 %v9173_v54  ;;  %1637 = vmatmul.bf16.gmra.mxu0 %v9175_v55 }
  0x74   :  { %1766 = vmatmul.bf16.gmra.mxu3 %v9177_v56 }
  0x75   :  { %1726 = vmatmul.bf16.gmra.mxu1 %v9179_v57 }
  0x83   :  { %1682 = vmatmul.bf16.gmra.mxu2 %v9269_v51  ;;  %1642 = vmatmul.bf16.gmra.mxu0 %v9271_v52 }
  0x84   :  { %1771 = vmatmul.bf16.gmra.mxu3 %v9273_v53 }
  0x85   :  { %1731 = vmatmul.bf16.gmra.mxu1 %v9275_v63 }
  0x93   :  { %1687 = vmatmul.bf16.gmra.mxu2 %v9341_v38  ;;  %1647 = vmatmul.bf16.gmra.mxu0 %v9343_v39 }
  0x94   :  { %1776 = vmatmul.bf16.gmra.mxu3 %v9345_v44 }
  0x95   :  { %1736 = vmatmul.bf16.gmra.mxu1 %v9347_v45 }
  0xa0   :  { %v1613_v11 = vpop.f32.mrf.mxu0 }
  0xa1   :  { %v1614_v12 = vadd.f32 %v1613_v11, %v9382_v8  ;;  %v9436_v11 = vpack.c.bf16 %v47_v46, %v40_v37 }
  0xa2   :  { %v1702_v14 = vpop.f32.mrf.mxu1 }
  0xa3   :  { %1790 = vmatmul.bf16.vlgmr.msrb.gmra.mxu2 %v9380_v7  ;;  %v9392_v15 = vadd.f32 %v1702_v14, %v1614_v12  ;;  %1968 = vmatmul.bf16.vlgmr.msrb.gmra.mxu0 %v9384_v9  ;;  %15482 = vst [vmem:[#allocation42_spill] sm:$0xff] %v9436_v11  ;;  %v9438_v12 = vpack.c.bf16 %v46_v48, %v39_v47  ;;  %v52_v47 = vld [vmem:[%s14911_s0 + $0xf0] sm:$0xff]  ;;  %v59_v48 = vld [vmem:[%s14911_s0 + $0x128] sm:$0xff] }
  0xa4   :  { %1879 = vmatmul.bf16.vlgmr.msrb.gmra.mxu3 %v9386_v10 }
  0xa5   :  { %2057 = vmatmul.bf16.vlgmr.msrb.gmra.mxu1 %v9389_v13  ;;  %15483 = vst [vmem:[#allocation43_spill] sm:$0xff] %v9438_v12 }
  0xa6   :  { %v1653_v27 = vpop.f32.mrf.mxu2 }
  0xa7   :  { %v1654_v28 = vadd.f32 %v1653_v27, %v9382_v8  ;;  %v1742_v29 = vpop.f32.mrf.mxu3 }
  0xa8   :  { %v1615_v30 = vpop.f32.mrf.mxu0 }
  0xa9   :  { %v9404_v31 = vadd.f32 %v1742_v29, %v1654_v28  ;;  %v1616_v32 = vadd.f32 %v1615_v30, %v9382_v8 }
  0xaa   :  { %v1704_v33 = vpop.f32.mrf.mxu1 }
  0xab   :  { %v9407_v34 = vadd.f32 %v1704_v33, %v1616_v32 }
  0xae   :  { %v1655_v49 = vpop.f32.mrf.mxu2 }
  0xaf   :  { %v1656_v2 = vadd.f32 %v1655_v49, %v9382_v8  ;;  %v1744_v3 = vpop.f32.mrf.mxu3  ;;  %v54_v49 = vld [vmem:[%s14911_s0 + $0x100] sm:$0xff] }
  0xb0   :  { %v1618_v14 = vpop.f32.mrf.mxu0 }
  0xb1   :  { %v9440_v20 = vadd.f32 %v1744_v3, %v1656_v2  ;;  %v1619_v21 = vadd.f32 %v1618_v14, %v9382_v8  ;;  %v60_v2 = vld [vmem:[%s14911_s0 + $0x130] sm:$0xff]  ;;  %v55_v14 = vld [vmem:[%s14911_s0 + $0x108] sm:$0xff] }
  0xb2   :  { %v1707_v27 = vpop.f32.mrf.mxu1 }
  0xb3   :  { %1795 = vmatmul.bf16.gmra.mxu2 %v9434_v6  ;;  %v9446_v28 = vadd.f32 %v1707_v27, %v1619_v21  ;;  %1973 = vmatmul.bf16.gmra.mxu0 %v9436_v11  ;;  %v62_v21 = vld [vmem:[%s14911_s0 + $0x140] sm:$0xff] }
  0xb4   :  { %1884 = vmatmul.bf16.gmra.mxu3 %v9438_v12 }
  0xb5   :  { %2062 = vmatmul.bf16.gmra.mxu1 %v9443_v26  ;;  %v9491_v26 = vpack.c.bf16 %v62_v21, %v55_v14 }
  0xb6   :  { %v1658_v29 = vpop.f32.mrf.mxu2 }
  0xb7   :  { %v1659_v30 = vadd.f32 %v1658_v29, %v9382_v8  ;;  %v1747_v32 = vpop.f32.mrf.mxu3  ;;  %15488 = vst [vmem:[#allocation48_spill] sm:$0xff] %v9491_v26 }
  0xb8   :  { %v1620_v33 = vpop.f32.mrf.mxu0 }
  0xb9   :  { %v9452_v35 = vadd.f32 %v1747_v32, %v1659_v30  ;;  %v1621_v36 = vadd.f32 %v1620_v33, %v9382_v8  ;;  %v9482_v30 = vpack.c.bf16 %v59_v48, %v52_v47  ;;  %v9484_v32 = vpack.c.bf16 %v61_v50, %v54_v49  ;;  %v8415_v47 = vld [vmem:[%s14912_s1 + $0xa4] sm:$0xf]  ;;  %v7311_v48 = vld [vmem:[%s14912_s1 + $0xb0] sm:$0xf0] }
  0xba   :  { %v1709_v37 = vpop.f32.mrf.mxu1  ;;  %v9486_v33 = vpack.c.bf16 %v60_v2, %v53_v62  ;;  %v7314_v49 = vor.u32 %v8415_v47, %v7311_v48  ;;  %v75_v47 = vld [vmem:[%s14911_s0 + $0x1a8] sm:$0xff] }
  0xbb   :  { %v9455_v46 = vadd.f32 %v1709_v37, %v1621_v36  ;;  %15485 = vst [vmem:[#allocation45_spill] sm:$0xff] %v9482_v30  ;;  %v67_v48 = vld [vmem:[%s14911_s0 + $0x168] sm:$0xff] }
  0xbc   :  { %15486 = vst [vmem:[#allocation46_spill] sm:$0xff] %v9484_v32  ;;  %2229 = vmatpush.bf16.msra.mxu3 %v7314_v49  ;;  %v74_v49 = vld [vmem:[%s14911_s0 + $0x1a0] sm:$0xff] }
  0xbd   :  { %15487 = vst [vmem:[#allocation47_spill] sm:$0xff] %v9486_v33 }
  0xbe   :  { %v1660_v3 = vpop.f32.mrf.mxu2 }
  0xbf   :  { %v1661_v27 = vadd.f32 %v1660_v3, %v9382_v8  ;;  %v1749_v29 = vpop.f32.mrf.mxu3 }
  0xc0   :  { %v1623_v36 = vpop.f32.mrf.mxu0 }
  0xc1   :  { %v9488_v37 = vadd.f32 %v1749_v29, %v1661_v27  ;;  %v1624_v11 = vadd.f32 %v1623_v36, %v9382_v8  ;;  %v66_v27 = vld [vmem:[%s14911_s0 + $0x160] sm:$0xff]  ;;  %v73_v29 = vld [vmem:[%s14911_s0 + $0x198] sm:$0xff]  ;;  %v68_v36 = vld [vmem:[%s14911_s0 + $0x170] sm:$0xff] }
  0xc2   :  { %v1712_v12 = vpop.f32.mrf.mxu1 }
  0xc3   :  { %1800 = vmatmul.bf16.gmra.mxu2 %v9482_v30  ;;  %v9494_v9 = vadd.f32 %v1712_v12, %v1624_v11  ;;  %1978 = vmatmul.bf16.gmra.mxu0 %v9484_v32  ;;  %v9538_v32 = vpack.c.bf16 %v75_v47, %v68_v36 }
  0xc4   :  { %1889 = vmatmul.bf16.gmra.mxu3 %v9486_v33 }
  0xc5   :  { %2067 = vmatmul.bf16.gmra.mxu1 %v9491_v26  ;;  %15490 = vst [vmem:[#allocation50_spill] sm:$0xff] %v9538_v32  ;;  %v9540_v26 = vpack.c.bf16 %v74_v49, %v67_v48 }
  0xc6   :  { %v1663_v50 = vpop.f32.mrf.mxu2 }
  0xc7   :  { %v1664_v62 = vadd.f32 %v1663_v50, %v9382_v8  ;;  %v1752_v11 = vpop.f32.mrf.mxu3  ;;  %15491 = vst [vmem:[#allocation51_spill] sm:$0xff] %v9540_v26 }
  0xc8   :  { %v1625_v12 = vpop.f32.mrf.mxu0 }
  0xc9   :  { %v9506_v2 = vadd.f32 %v1752_v11, %v1664_v62  ;;  %v1626_v3 = vadd.f32 %v1625_v12, %v9382_v8  ;;  %v69_v62 = vld [vmem:[%s14911_s0 + $0x178] sm:$0xff]  ;;  %v76_v11 = vld [vmem:[%s14911_s0 + $0x1b0] sm:$0xff] }
  0xca   :  { %v1714_v14 = vpop.f32.mrf.mxu1  ;;  %v9545_v38 = vpack.c.bf16 %v76_v11, %v69_v62  ;;  %v82_v62 = vld [vmem:[%s14911_s0 + $0x1e0] sm:$0xff]  ;;  %v89_v11 = vld [vmem:[%s14911_s0 + $0x218] sm:$0xff] }
  0xcb   :  { %v9509_v21 = vadd.f32 %v1714_v14, %v1626_v3  ;;  %v9536_v14 = vpack.c.bf16 %v73_v29, %v66_v27 }
  0xcc   :  { %15492 = vst [vmem:[#allocation52_spill] sm:$0xff] %v9545_v38 }
  0xcd   :  { %15489 = vst [vmem:[#allocation49_spill] sm:$0xff] %v9536_v14 }
  0xce   :  { %v1665_v50 = vpop.f32.mrf.mxu2 }
  0xcf   :  { %v1666_v12 = vadd.f32 %v1665_v50, %v9382_v8  ;;  %v1754_v3 = vpop.f32.mrf.mxu3 }
  0xd0   :  { %v1628_v33 = vpop.f32.mrf.mxu0 }
  0xd1   :  { %v9542_v13 = vadd.f32 %v1754_v3, %v1666_v12  ;;  %v1629_v10 = vadd.f32 %v1628_v33, %v9382_v8  ;;  %v81_v12 = vld [vmem:[%s14911_s0 + $0x1d8] sm:$0xff]  ;;  %v88_v3 = vld [vmem:[%s14911_s0 + $0x210] sm:$0xff] }
  0xd2   :  { %v1717_v44 = vpop.f32.mrf.mxu1 }
  0xd3   :  { %1805 = vmatmul.bf16.gmra.mxu2 %v9536_v14  ;;  %v9548_v51 = vadd.f32 %v1717_v44, %v1629_v10  ;;  %1983 = vmatmul.bf16.gmra.mxu0 %v9538_v32  ;;  %v80_v44 = vld [vmem:[%s14911_s0 + $0x1d0] sm:$0xff]  ;;  %v87_v10 = vld [vmem:[%s14911_s0 + $0x208] sm:$0xff]  ;;  %v9586_v32 = vpack.c.bf16 %v89_v11, %v82_v62 }
  0xd4   :  { %1894 = vmatmul.bf16.gmra.mxu3 %v9540_v26 }
  0xd5   :  { %2072 = vmatmul.bf16.gmra.mxu1 %v9545_v38  ;;  %15494 = vst [vmem:[#allocation54_spill] sm:$0xff] %v9586_v32  ;;  %v9588_v38 = vpack.c.bf16 %v88_v3, %v81_v12 }
  0xd6   :  { %v1668_v27 = vpop.f32.mrf.mxu2 }
  0xd7   :  { %v1669_v29 = vadd.f32 %v1668_v27, %v9382_v8  ;;  %v1757_v36 = vpop.f32.mrf.mxu3  ;;  %15495 = vst [vmem:[#allocation55_spill] sm:$0xff] %v9588_v38 }
  0xd8   :  { %v1630_v47 = vpop.f32.mrf.mxu0 }
  0xd9   :  { %v9554_v48 = vadd.f32 %v1757_v36, %v1669_v29  ;;  %v1631_v33 = vadd.f32 %v1630_v47, %v9382_v8  ;;  %v83_v29 = vld [vmem:[%s14911_s0 + $0x1e8] sm:$0xff]  ;;  %v90_v36 = vld [vmem:[%s14911_s0 + $0x220] sm:$0xff] }
  0xda   :  { %v1719_v49 = vpop.f32.mrf.mxu1  ;;  %v9593_v56 = vpack.c.bf16 %v90_v36, %v83_v29  ;;  %v94_v36 = vld [vmem:[%s14911_s0 + $0x240] sm:$0xff] }
  0xdb   :  { %v9557_v50 = vadd.f32 %v1719_v49, %v1631_v33  ;;  %v9584_v49 = vpack.c.bf16 %v87_v10, %v80_v44  ;;  %v8411_v44 = vld [vmem:[%s14912_s1 + $0x84] sm:$0xf]  ;;  %v7295_v10 = vld [vmem:[%s14912_s1 + $0x90] sm:$0xf0] }
  0xdc   :  { %15496 = vst [vmem:[#allocation56_spill] sm:$0xff] %v9593_v56 }
  0xdd   :  { %15493 = vst [vmem:[#allocation53_spill] sm:$0xff] %v9584_v49 }
  0xde   :  { %v1670_v27 = vpop.f32.mrf.mxu2 }
  0xdf   :  { %v1671_v47 = vadd.f32 %v1670_v27, %v9382_v8  ;;  %v1759_v33 = vpop.f32.mrf.mxu3 }
  0xe0   :  { %v1633_v26 = vpop.f32.mrf.mxu0 }
  0xe1   :  { %v9590_v53 = vadd.f32 %v1759_v33, %v1671_v47  ;;  %v1634_v54 = vadd.f32 %v1633_v26, %v9382_v8  ;;  %v7298_v26 = vor.u32 %v8411_v44, %v7295_v10  ;;  %v101_v47 = vld [vmem:[%s14911_s0 + $0x278] sm:$0xff]  ;;  %v96_v33 = vld [vmem:[%s14911_s0 + $0x250] sm:$0xff]  ;;  %v103_v44 = vld [vmem:[%s14911_s0 + $0x288] sm:$0xff] }
  0xe2   :  { %v1722_v16 = vpop.f32.mrf.mxu1  ;;  %v95_v10 = vld [vmem:[%s14911_s0 + $0x248] sm:$0xff] }
  0xe3   :  { %1810 = vmatmul.bf16.gmra.mxu2 %v9584_v49  ;;  %v9596_v18 = vadd.f32 %v1722_v16, %v1634_v54  ;;  %1988 = vmatmul.bf16.gmra.mxu0 %v9586_v32  ;;  %v9640_v32 = vpack.c.bf16 %v103_v44, %v96_v33 }
  0xe4   :  { %1899 = vmatmul.bf16.gmra.mxu3 %v9588_v38 }
  0xe5   :  { %2077 = vmatmul.bf16.gmra.mxu1 %v9593_v56  ;;  %2230 = vmatpush.bf16.msra.mxu3 %v7298_v26  ;;  %v102_v26 = vld [vmem:[%s14911_s0 + $0x280] sm:$0xff]  ;;  %15498 = vst [vmem:[#allocation58_spill] sm:$0xff] %v9640_v32 }
  0xe6   :  { %v1673_v62 = vpop.f32.mrf.mxu2  ;;  %v9642_v56 = vpack.c.bf16 %v102_v26, %v95_v10 }
  0xe7   :  { %v1674_v11 = vadd.f32 %v1673_v62, %v9382_v8  ;;  %v1762_v16 = vpop.f32.mrf.mxu3 }
  0xe8   :  { %v1635_v54 = vpop.f32.mrf.mxu0  ;;  %15499 = vst [vmem:[#allocation59_spill] sm:$0xff] %v9642_v56 }
  0xe9   :  { %v9608_v12 = vadd.f32 %v1762_v16, %v1674_v11  ;;  %v1636_v3 = vadd.f32 %v1635_v54, %v9382_v8  ;;  %v97_v11 = vld [vmem:[%s14911_s0 + $0x258] sm:$0xff]  ;;  %v104_v16 = vld [vmem:[%s14911_s0 + $0x290] sm:$0xff] }
  0xea   :  { %v1724_v27 = vpop.f32.mrf.mxu1  ;;  %v9647_v40 = vpack.c.bf16 %v104_v16, %v97_v11  ;;  %v110_v11 = vld [vmem:[%s14911_s0 + $0x2c0] sm:$0xff]  ;;  %v117_v16 = vld [vmem:[%s14911_s0 + $0x2f8] sm:$0xff] }
  0xeb   :  { %v9611_v29 = vadd.f32 %v1724_v27, %v1636_v3  ;;  %v9638_v27 = vpack.c.bf16 %v101_v47, %v94_v36 }
  0xec   :  { %15500 = vst [vmem:[#allocation60_spill] sm:$0xff] %v9647_v40 }
  0xed   :  { %15497 = vst [vmem:[#allocation57_spill] sm:$0xff] %v9638_v27 }
  0xee   :  { %v1675_v62 = vpop.f32.mrf.mxu2 }
  0xef   :  { %v1676_v54 = vadd.f32 %v1675_v62, %v9382_v8  ;;  %v1764_v3 = vpop.f32.mrf.mxu3 }
  0xf0   :  { %v1638_v38 = vpop.f32.mrf.mxu0 }
  0xf1   :  { %v9644_v58 = vadd.f32 %v1764_v3, %v1676_v54  ;;  %v1639_v60 = vadd.f32 %v1638_v38, %v9382_v8  ;;  %v109_v54 = vld [vmem:[%s14911_s0 + $0x2b8] sm:$0xff]  ;;  %v116_v3 = vld [vmem:[%s14911_s0 + $0x2f0] sm:$0xff] }
  0xf2   :  { %v1727_v42 = vpop.f32.mrf.mxu1 }
  0xf3   :  { %1815 = vmatmul.bf16.gmra.mxu2 %v9638_v27  ;;  %v9650_v22 = vadd.f32 %v1727_v42, %v1639_v60  ;;  %1993 = vmatmul.bf16.gmra.mxu0 %v9640_v32  ;;  %v108_v42 = vld [vmem:[%s14911_s0 + $0x2b0] sm:$0xff]  ;;  %v115_v60 = vld [vmem:[%s14911_s0 + $0x2e8] sm:$0xff]  ;;  %v9688_v32 = vpack.c.bf16 %v117_v16, %v110_v11 }
  0xf4   :  { %1904 = vmatmul.bf16.gmra.mxu3 %v9642_v56 }
  0xf5   :  { %2082 = vmatmul.bf16.gmra.mxu1 %v9647_v40  ;;  %15503 = vst [vmem:[#allocation63_spill] sm:$0xff] %v9688_v32  ;;  %v9690_v40 = vpack.c.bf16 %v116_v3, %v109_v54 }
  0xf6   :  { %v1678_v36 = vpop.f32.mrf.mxu2 }
  0xf7   :  { %v1679_v47 = vadd.f32 %v1678_v36, %v9382_v8  ;;  %v1767_v33 = vpop.f32.mrf.mxu3  ;;  %15504 = vst [vmem:[#allocation64_spill] sm:$0xff] %v9690_v40 }
  0xf8   :  { %v1640_v44 = vpop.f32.mrf.mxu0 }
  0xf9   :  { %v9656_v10 = vadd.f32 %v1767_v33, %v1679_v47  ;;  %v1641_v38 = vadd.f32 %v1640_v44, %v9382_v8  ;;  %v111_v47 = vld [vmem:[%s14911_s0 + $0x2c8] sm:$0xff]  ;;  %v118_v33 = vld [vmem:[%s14911_s0 + $0x300] sm:$0xff] }
  0xfa   :  { %v1729_v26 = vpop.f32.mrf.mxu1  ;;  %v9695_v4 = vpack.c.bf16 %v118_v33, %v111_v47  ;;  %v122_v33 = vld [vmem:[%s14911_s0 + $0x320] sm:$0xff] }
  0xfb   :  { %15501 = vst [vmem:[#allocation61_spill] sm:$0xff] %v9656_v10  ;;  %v9659_v62 = vadd.f32 %v1729_v26, %v1641_v38  ;;  %v9686_v26 = vpack.c.bf16 %v115_v60, %v108_v42  ;;  %v8407_v42 = vld [vmem:[%s14912_s1 + $0x64] sm:$0xf]  ;;  %v7279_v60 = vld [vmem:[%s14912_s1 + $0x70] sm:$0xf0] }
  0xfc   :  { %15506 = vst [vmem:[#allocation66_spill] sm:$0xff] %v9695_v4 }
  0xfd   :  { %15502 = vst [vmem:[#allocation62_spill] sm:$0xff] %v9686_v26 }
  0xfe   :  { %v1680_v36 = vpop.f32.mrf.mxu2 }
  0xff   :  { %v1681_v44 = vadd.f32 %v1680_v36, %v9382_v8  ;;  %v1769_v38 = vpop.f32.mrf.mxu3 }
 0x100   :  { %v1643_v56 = vpop.f32.mrf.mxu0 }
 0x101   :  { %v9692_v24 = vadd.f32 %v1769_v38, %v1681_v44  ;;  %v1644_v0 = vadd.f32 %v1643_v56, %v9382_v8  ;;  %v7282_v56 = vor.u32 %v8407_v42, %v7279_v60  ;;  %v129_v44 = vld [vmem:[%s14911_s0 + $0x358] sm:$0xff]  ;;  %v124_v38 = vld [vmem:[%s14911_s0 + $0x330] sm:$0xff]  ;;  %v131_v42 = vld [vmem:[%s14911_s0 + $0x368] sm:$0xff] }
 0x102   :  { %v1732_v39 = vpop.f32.mrf.mxu1  ;;  %v123_v60 = vld [vmem:[%s14911_s0 + $0x328] sm:$0xff] }
 0x103   :  { %15505 = vst [vmem:[#allocation65_spill] sm:$0xff] %v9692_v24  ;;  %1820 = vmatmul.bf16.gmra.mxu2 %v9686_v26  ;;  %v9698_v45 = vadd.f32 %v1732_v39, %v1644_v0  ;;  %1998 = vmatmul.bf16.gmra.mxu0 %v9688_v32  ;;  %v9742_v32 = vpack.c.bf16 %v131_v42, %v124_v38 }
 0x104   :  { %1909 = vmatmul.bf16.gmra.mxu3 %v9690_v40 }
 0x105   :  { %2087 = vmatmul.bf16.gmra.mxu1 %v9695_v4  ;;  %2231 = vmatpush.bf16.msra.mxu3 %v7282_v56  ;;  %v130_v56 = vld [vmem:[%s14911_s0 + $0x360] sm:$0xff]  ;;  %15509 = vst [vmem:[#allocation69_spill] sm:$0xff] %v9742_v32 }
 0x106   :  { %v1683_v11 = vpop.f32.mrf.mxu2  ;;  %v9744_v4 = vpack.c.bf16 %v130_v56, %v123_v60 }
 0x107   :  { %v1684_v16 = vadd.f32 %v1683_v11, %v9382_v8  ;;  %v1772_v0 = vpop.f32.mrf.mxu3 }
 0x108   :  { %v1645_v39 = vpop.f32.mrf.mxu0  ;;  %15510 = vst [vmem:[#allocation70_spill] sm:$0xff] %v9744_v4 }
 0x109   :  { %v9710_v54 = vadd.f32 %v1772_v0, %v1684_v16  ;;  %v1646_v3 = vadd.f32 %v1645_v39, %v9382_v8  ;;  %v125_v16 = vld [vmem:[%s14911_s0 + $0x338] sm:$0xff]  ;;  %v132_v0 = vld [vmem:[%s14911_s0 + $0x370] sm:$0xff] }
 0x10a   :  { %v1734_v36 = vpop.f32.mrf.mxu1  ;;  %v9749_v52 = vpack.c.bf16 %v132_v0, %v125_v16  ;;  %v138_v16 = vld [vmem:[%s14911_s0 + $0x3a0] sm:$0xff]  ;;  %v145_v0 = vld [vmem:[%s14911_s0 + $0x3d8] sm:$0xff] }
 0x10b   :  { %15507 = vst [vmem:[#allocation67_spill] sm:$0xff] %v9710_v54  ;;  %v9713_v47 = vadd.f32 %v1734_v36, %v1646_v3  ;;  %v9740_v36 = vpack.c.bf16 %v129_v44, %v122_v33 }
 0x10c   :  { %15512 = vst [vmem:[#allocation72_spill] sm:$0xff] %v9749_v52 }
 0x10d   :  { %15508 = vst [vmem:[#allocation68_spill] sm:$0xff] %v9740_v36 }
 0x10e   :  { %v1685_v11 = vpop.f32.mrf.mxu2 }
 0x10f   :  { %v1686_v39 = vadd.f32 %v1685_v11, %v9382_v8  ;;  %v1774_v3 = vpop.f32.mrf.mxu3 }
 0x110   :  { %v1648_v40 = vpop.f32.mrf.mxu0 }
 0x111   :  { %v9746_v54 = vadd.f32 %v1774_v3, %v1686_v39  ;;  %v1649_v26 = vadd.f32 %v1648_v40, %v9382_v8  ;;  %v137_v39 = vld [vmem:[%s14911_s0 + $0x398] sm:$0xff]  ;;  %v144_v3 = vld [vmem:[%s14911_s0 + $0x3d0] sm:$0xff] }
 0x112   :  { %v1737_v63 = vpop.f32.mrf.mxu1 }
 0x113   :  { %15511 = vst [vmem:[#allocation71_spill] sm:$0xff] %v9746_v54  ;;  %1825 = vmatmul.bf16.gmra.mxu2 %v9740_v36  ;;  %v9752_v24 = vadd.f32 %v1737_v63, %v1649_v26  ;;  %2003 = vmatmul.bf16.gmra.mxu0 %v9742_v32  ;;  %v136_v63 = vld [vmem:[%s14911_s0 + $0x390] sm:$0xff]  ;;  %v143_v26 = vld [vmem:[%s14911_s0 + $0x3c8] sm:$0xff]  ;;  %v9790_v32 = vpack.c.bf16 %v145_v0, %v138_v16 }
 0x114   :  { %1914 = vmatmul.bf16.gmra.mxu3 %v9744_v4 }
 0x115   :  { %2092 = vmatmul.bf16.gmra.mxu1 %v9749_v52  ;;  %15515 = vst [vmem:[#allocation75_spill] sm:$0xff] %v9790_v32  ;;  %v9792_v52 = vpack.c.bf16 %v144_v3, %v137_v39 }
 0x116   :  { %v1688_v33 = vpop.f32.mrf.mxu2 }
 0x117   :  { %v1689_v44 = vadd.f32 %v1688_v33, %v9382_v8  ;;  %v1777_v38 = vpop.f32.mrf.mxu3  ;;  %15516 = vst [vmem:[#allocation76_spill] sm:$0xff] %v9792_v52 }
 0x118   :  { %v1650_v42 = vpop.f32.mrf.mxu0 }
 0x119   :  { %v9758_v60 = vadd.f32 %v1777_v38, %v1689_v44  ;;  %v1651_v40 = vadd.f32 %v1650_v42, %v9382_v8  ;;  %v139_v44 = vld [vmem:[%s14911_s0 + $0x3a8] sm:$0xff]  ;;  %v146_v38 = vld [vmem:[%s14911_s0 + $0x3e0] sm:$0xff] }
 0x11a   :  { %v1739_v56 = vpop.f32.mrf.mxu1  ;;  %v9796_v36 = vpack.c.bf16 %v146_v38, %v139_v44 }
 0x11b   :  { %15513 = vst [vmem:[#allocation73_spill] sm:$0xff] %v9758_v60  ;;  %v9761_v11 = vadd.f32 %v1739_v56, %v1651_v40  ;;  %v9788_v56 = vpack.c.bf16 %v143_v26, %v136_v63  ;;  %v7263_v63 = vld [vmem:[%s14912_s1 + $0x50] sm:$0xf0] }
 0x11c   :  { %15518 = vst [vmem:[#allocation78_spill] sm:$0xff] %v9796_v36 }
 0x11d   :  { %15514 = vst [vmem:[#allocation74_spill] sm:$0xff] %v9788_v56 }
 0x11e   :  { %v1690_v33 = vpop.f32.mrf.mxu2 }
 0x11f   :  { %v1691_v42 = vadd.f32 %v1690_v33, %v9382_v8  ;;  %v1779_v40 = vpop.f32.mrf.mxu3  ;;  %v8403_v8 = vld [vmem:[%s14912_s1 + $0x44] sm:$0xf] }
 0x120   :  { %v1969_v4 = vpop.f32.mrf.mxu0  ;;  %v7266_v16 = vor.u32 %v8403_v8, %v7263_v63  ;;  %v152_v8 = vld [vmem:[%s14911_s0 + $0x410] sm:$0xff] }
 0x121   :  { %v9794_v60 = vadd.f32 %v1779_v40, %v1691_v42  ;;  %v150_v42 = vld [vmem:[%s14911_s0 + $0x400] sm:$0xff]  ;;  %v157_v40 = vld [vmem:[%s14911_s0 + $0x438] sm:$0xff] }
 0x122   :  { %v2058_v54 = vpop.f32.mrf.mxu1  ;;  %2232 = vmatpush.bf16.msra.mxu3 %v7266_v16 }
 0x123   :  { %15517 = vst [vmem:[#allocation77_spill] sm:$0xff] %v9794_v60  ;;  %1830 = vmatmul.bf16.gmra.mxu2 %v9788_v56  ;;  %2008 = vmatmul.bf16.gmra.mxu0 %v9790_v32 }
 0x124   :  { %1919 = vmatmul.bf16.gmra.mxu3 %v9792_v52 }
 0x125   :  { %2097 = vmatmul.bf16.gmra.mxu1 %v9796_v36 }
 0x126   :  { %v1791_v26 = vpop.f32.mrf.mxu2 }
 0x127   :  { %v1792_v0 = vadd.f32 %v1791_v26, %v9392_v15  ;;  %v1880_v39 = vpop.f32.mrf.mxu3  ;;  %v159_v15 = vld [vmem:[%s14911_s0 + $0x448] sm:$0xff]  ;;  %v158_v26 = vld [vmem:[%s14911_s0 + $0x440] sm:$0xff] }
 0x128   :  { %v1971_v3 = vpop.f32.mrf.mxu0  ;;  %v9838_v32 = vpack.c.bf16 %v159_v15, %v152_v8 }
 0x129   :  { %v1881_v33 = vadd.f32 %v1880_v39, %v1792_v0  ;;  %v153_v0 = vld [vmem:[%s14911_s0 + $0x418] sm:$0xff]  ;;  %v160_v39 = vld [vmem:[%s14911_s0 + $0x450] sm:$0xff] }
 0x12a   :  { %v2060_v44 = vpop.f32.mrf.mxu1  ;;  %15521 = vst [vmem:[#allocation81_spill] sm:$0xff] %v9838_v32  ;;  %v9842_v56 = vpack.c.bf16 %v160_v39, %v153_v0  ;;  %v172_v0 = vld [vmem:[%s14911_s0 + $0x4b0] sm:$0xff] }
 0x12b   :  { %v1970_v38 = vadd.f32 %v1969_v4, %v1881_v33  ;;  %v151_v4 = vld [vmem:[%s14911_s0 + $0x408] sm:$0xff] }
 0x12c   :  { %v9840_v36 = vpack.c.bf16 %v158_v26, %v151_v4  ;;  %15523 = vst [vmem:[#allocation83_spill] sm:$0xff] %v9842_v56 }
 0x12d   :  { %v9821_v63 = vadd.f32 %v2058_v54, %v1970_v38  ;;  %v9836_v38 = vpack.c.bf16 %v157_v40, %v150_v42 }
 0x12e   :  { %v1793_v16 = vpop.f32.mrf.mxu2  ;;  %15522 = vst [vmem:[#allocation82_spill] sm:$0xff] %v9840_v36 }
 0x12f   :  { %15519 = vst [vmem:[#allocation79_spill] sm:$0xff] %v9821_v63  ;;  %v1794_v54 = vadd.f32 %v1793_v16, %v9407_v34  ;;  %v1882_v33 = vpop.f32.mrf.mxu3 }
 0x130   :  { %15520 = vst [vmem:[#allocation80_spill] sm:$0xff] %v9836_v38  ;;  %v1974_v52 = vpop.f32.mrf.mxu0 }
 0x131   :  { %v1883_v63 = vadd.f32 %v1882_v33, %v1794_v54  ;;  %v167_v54 = vld [vmem:[%s14911_s0 + $0x488] sm:$0xff]  ;;  %v174_v33 = vld [vmem:[%s14911_s0 + $0x4c0] sm:$0xff] }
 0x132   :  { %v2063_v60 = vpop.f32.mrf.mxu1 }
 0x133   :  { %v1972_v10 = vadd.f32 %v1971_v3, %v1883_v63  ;;  %1835 = vmatmul.bf16.gmra.mxu2 %v9836_v38  ;;  %2013 = vmatmul.bf16.gmra.mxu0 %v9838_v32  ;;  %v164_v3 = vld [vmem:[%s14911_s0 + $0x470] sm:$0xff]  ;;  %v171_v63 = vld [vmem:[%s14911_s0 + $0x4a8] sm:$0xff] }
 0x134   :  { %1924 = vmatmul.bf16.gmra.mxu3 %v9840_v36 }
 0x135   :  { %v9847_v34 = vadd.f32 %v2060_v44, %v1972_v10  ;;  %2102 = vmatmul.bf16.gmra.mxu1 %v9842_v56  ;;  %v166_v10 = vld [vmem:[%s14911_s0 + $0x480] sm:$0xff]  ;;  %v9884_v56 = vpack.c.bf16 %v174_v33, %v167_v54  ;;  %v185_v54 = vld [vmem:[%s14911_s0 + $0x518] sm:$0xff]  ;;  %v180_v33 = vld [vmem:[%s14911_s0 + $0x4f0] sm:$0xff] }
 0x136   :  { %v1796_v42 = vpop.f32.mrf.mxu2 }
 0x137   :  { %v1797_v40 = vadd.f32 %v1796_v42, %v9446_v28  ;;  %v1885_v8 = vpop.f32.mrf.mxu3  ;;  %v173_v28 = vld [vmem:[%s14911_s0 + $0x4b8] sm:$0xff]  ;;  %15528 = vst [vmem:[#allocation88_spill] sm:$0xff] %v9884_v56 }
 0x138   :  { %v1976_v15 = vpop.f32.mrf.mxu0 }
 0x139   :  { %v1886_v4 = vadd.f32 %v1885_v8, %v1797_v40  ;;  %v9878_v40 = vpack.c.bf16 %v171_v63, %v164_v3  ;;  %v9880_v8 = vpack.c.bf16 %v173_v28, %v166_v10  ;;  %v8399_v3 = vld [vmem:[%s14912_s1 + $0x24] sm:$0xf]  ;;  %v7247_v63 = vld [vmem:[%s14912_s1 + $0x30] sm:$0xf0] }
 0x13a   :  { %v2065_v26 = vpop.f32.mrf.mxu1 }
 0x13b   :  { %v1975_v16 = vadd.f32 %v1974_v52, %v1886_v4  ;;  %v165_v52 = vld [vmem:[%s14911_s0 + $0x478] sm:$0xff]  ;;  %15525 = vst [vmem:[#allocation85_spill] sm:$0xff] %v9878_v40 }
 0x13c   :  { %15526 = vst [vmem:[#allocation86_spill] sm:$0xff] %v9880_v8  ;;  %v9882_v4 = vpack.c.bf16 %v172_v0, %v165_v52 }
 0x13d   :  { %v9863_v44 = vadd.f32 %v2063_v60, %v1975_v16 }
 0x13e   :  { %v1798_v39 = vpop.f32.mrf.mxu2  ;;  %15527 = vst [vmem:[#allocation87_spill] sm:$0xff] %v9882_v4 }
 0x13f   :  { %15524 = vst [vmem:[#allocation84_spill] sm:$0xff] %v9863_v44  ;;  %v1799_v60 = vadd.f32 %v1798_v39, %v9455_v46  ;;  %v1887_v42 = vpop.f32.mrf.mxu3  ;;  %v178_v39 = vld [vmem:[%s14911_s0 + $0x4e0] sm:$0xff] }
 0x140   :  { %v1979_v16 = vpop.f32.mrf.mxu0 }
 0x141   :  { %v1888_v32 = vadd.f32 %v1887_v42, %v1799_v60  ;;  %v179_v42 = vld [vmem:[%s14911_s0 + $0x4e8] sm:$0xff] }
 0x142   :  { %v2068_v36 = vpop.f32.mrf.mxu1 }
 0x143   :  { %v1977_v44 = vadd.f32 %v1976_v15, %v1888_v32  ;;  %1840 = vmatmul.bf16.gmra.mxu2 %v9878_v40  ;;  %2018 = vmatmul.bf16.gmra.mxu0 %v9880_v8  ;;  %v7250_v32 = vor.u32 %v8399_v3, %v7247_v63  ;;  %v181_v63 = vld [vmem:[%s14911_s0 + $0x4f8] sm:$0xff] }
 0x144   :  { %1929 = vmatmul.bf16.gmra.mxu3 %v9882_v4 }
 0x145   :  { %v9889_v46 = vadd.f32 %v2065_v26, %v1977_v44  ;;  %2107 = vmatmul.bf16.gmra.mxu1 %v9884_v56  ;;  %2233 = vmatpush.bf16.msra.mxu3 %v7250_v32 }
 0x146   :  { %v1801_v10 = vpop.f32.mrf.mxu2 }
 0x147   :  { %v1802_v15 = vadd.f32 %v1801_v10, %v9494_v9  ;;  %v1890_v28 = vpop.f32.mrf.mxu3  ;;  %v187_v9 = vld [vmem:[%s14911_s0 + $0x528] sm:$0xff]  ;;  %v188_v10 = vld [vmem:[%s14911_s0 + $0x530] sm:$0xff] }
 0x148   :  { %v1981_v52 = vpop.f32.mrf.mxu0  ;;  %v9932_v56 = vpack.c.bf16 %v188_v10, %v181_v63  ;;  %v193_v63 = vld [vmem:[%s14911_s0 + $0x558] sm:$0xff]  ;;  %v200_v10 = vld [vmem:[%s14911_s0 + $0x590] sm:$0xff] }
 0x149   :  { %v1891_v0 = vadd.f32 %v1890_v28, %v1802_v15  ;;  %v9926_v15 = vpack.c.bf16 %v185_v54, %v178_v39  ;;  %v9928_v28 = vpack.c.bf16 %v187_v9, %v180_v33 }
 0x14a   :  { %v2070_v26 = vpop.f32.mrf.mxu1  ;;  %15533 = vst [vmem:[#allocation93_spill] sm:$0xff] %v9932_v56 }
 0x14b   :  { %v1980_v44 = vadd.f32 %v1979_v16, %v1891_v0  ;;  %v186_v16 = vld [vmem:[%s14911_s0 + $0x520] sm:$0xff]  ;;  %15530 = vst [vmem:[#allocation90_spill] sm:$0xff] %v9926_v15 }
 0x14c   :  { %15531 = vst [vmem:[#allocation91_spill] sm:$0xff] %v9928_v28  ;;  %v9930_v0 = vpack.c.bf16 %v186_v16, %v179_v42 }
 0x14d   :  { %v9911_v60 = vadd.f32 %v2068_v36, %v1980_v44 }
 0x14e   :  { %v1803_v3 = vpop.f32.mrf.mxu2  ;;  %15532 = vst [vmem:[#allocation92_spill] sm:$0xff] %v9930_v0 }
 0x14f   :  { %15529 = vst [vmem:[#allocation89_spill] sm:$0xff] %v9911_v60  ;;  %v1804_v36 = vadd.f32 %v1803_v3, %v9509_v21  ;;  %v1892_v32 = vpop.f32.mrf.mxu3 }
 0x150   :  { %v1984_v44 = vpop.f32.mrf.mxu0 }
 0x151   :  { %v1893_v8 = vadd.f32 %v1892_v32, %v1804_v36  ;;  %v195_v32 = vld [vmem:[%s14911_s0 + $0x568] sm:$0xff] }
 0x152   :  { %v2073_v4 = vpop.f32.mrf.mxu1 }
 0x153   :  { %v1982_v60 = vadd.f32 %v1981_v52, %v1893_v8  ;;  %1845 = vmatmul.bf16.gmra.mxu2 %v9926_v15  ;;  %2023 = vmatmul.bf16.gmra.mxu0 %v9928_v28  ;;  %v192_v8 = vld [vmem:[%s14911_s0 + $0x550] sm:$0xff]  ;;  %v199_v52 = vld [vmem:[%s14911_s0 + $0x588] sm:$0xff] }
 0x154   :  { %1934 = vmatmul.bf16.gmra.mxu3 %v9930_v0 }
 0x155   :  { %v9937_v21 = vadd.f32 %v2070_v26, %v1982_v60  ;;  %2112 = vmatmul.bf16.gmra.mxu1 %v9932_v56  ;;  %v194_v26 = vld [vmem:[%s14911_s0 + $0x560] sm:$0xff] }
 0x156   :  { %v1806_v39 = vpop.f32.mrf.mxu2 }
 0x157   :  { %v1807_v54 = vadd.f32 %v1806_v39, %v9548_v51  ;;  %v1895_v33 = vpop.f32.mrf.mxu3  ;;  %v201_v51 = vld [vmem:[%s14911_s0 + $0x598] sm:$0xff] }
 0x158   :  { %v1986_v9 = vpop.f32.mrf.mxu0 }
 0x159   :  { %v1896_v42 = vadd.f32 %v1895_v33, %v1807_v54  ;;  %v9968_v54 = vpack.c.bf16 %v199_v52, %v192_v8  ;;  %v9970_v33 = vpack.c.bf16 %v201_v51, %v194_v26  ;;  %v8395_v8 = vld [vmem:[%s14912_s1 + $0x4] sm:$0xf]  ;;  %v7231_v52 = vld [vmem:[%s14912_s1 + $0x10] sm:$0xf0] }
 0x15a   :  { %v2075_v16 = vpop.f32.mrf.mxu1 }
 0x15b   :  { %v1985_v3 = vadd.f32 %v1984_v44, %v1896_v42  ;;  %v202_v44 = vld [vmem:[%s14911_s0 + $0x5a0] sm:$0xff]  ;;  %15535 = vst [vmem:[#allocation95_spill] sm:$0xff] %v9968_v54  ;;  %v9972_v42 = vpack.c.bf16 %v200_v10, %v193_v63 }
 0x15c   :  { %15536 = vst [vmem:[#allocation96_spill] sm:$0xff] %v9970_v33  ;;  %v9974_v56 = vpack.c.bf16 %v202_v44, %v195_v32  ;;  %v206_v44 = vld [vmem:[%s14911_s0 + $0x5c0] sm:$0xff] }
 0x15d   :  { %v9953_v60 = vadd.f32 %v2073_v4, %v1985_v3  ;;  %15537 = vst [vmem:[#allocation97_spill] sm:$0xff] %v9972_v42 }
 0x15e   :  { %v1808_v36 = vpop.f32.mrf.mxu2  ;;  %15538 = vst [vmem:[#allocation98_spill] sm:$0xff] %v9974_v56 }
 0x15f   :  { %15534 = vst [vmem:[#allocation94_spill] sm:$0xff] %v9953_v60  ;;  %v1809_v4 = vadd.f32 %v1808_v36, %v9557_v50  ;;  %v1897_v39 = vpop.f32.mrf.mxu3  ;;  %v7471_v36 = vld [vmem:[%s14912_s1 + $0x1f0] sm:$0xf0] }
 0x160   :  { %v1989_v3 = vpop.f32.mrf.mxu0 }
 0x161   :  { %v1898_v28 = vadd.f32 %v1897_v39, %v1809_v4  ;;  %v208_v4 = vld [vmem:[%s14911_s0 + $0x5d0] sm:$0xff] }
 0x162   :  { %v2078_v0 = vpop.f32.mrf.mxu1 }
 0x163   :  { %v1987_v60 = vadd.f32 %v1986_v9, %v1898_v28  ;;  %1850 = vmatmul.bf16.gmra.mxu2 %v9968_v54  ;;  %2028 = vmatmul.bf16.gmra.mxu0 %v9970_v33  ;;  %v7234_v28 = vor.u32 %v8395_v8, %v7231_v52  ;;  %v215_v8 = vld [vmem:[%s14911_s0 + $0x608] sm:$0xff]  ;;  %v7599_v52 = vld [vmem:[%s14912_s1 + $0x2f0] sm:$0xf0]  ;;  %v8483_v54 = vld [vmem:[%s14912_s1 + $0x2c4] sm:$0xf] }
 0x164   :  { %1939 = vmatmul.bf16.gmra.mxu3 %v9972_v42 }
 0x165   :  { %v9979_v50 = vadd.f32 %v2075_v16, %v1987_v60  ;;  %2117 = vmatmul.bf16.gmra.mxu1 %v9974_v56  ;;  %2234 = vmatpush.bf16.msra.mxu3 %v7234_v28  ;;  %v8455_v60 = vld [vmem:[%s14912_s1 + $0x1e4] sm:$0xf]  ;;  %v207_v28 = vld [vmem:[%s14911_s0 + $0x5c8] sm:$0xff] }
 0x166   :  { %v1811_v26 = vpop.f32.mrf.mxu2  ;;  %v7474_v39 = vor.u32 %v8455_v60, %v7471_v36  ;;  %v8451_v36 = vld [vmem:[%s14912_s1 + $0x1c4] sm:$0xf] }
 0x167   :  { %15539 = vst [vmem:[#allocation99_spill] sm:$0xff] %v9979_v50  ;;  %v1812_v9 = vadd.f32 %v1811_v26, %v9596_v18  ;;  %v1900_v51 = vpop.f32.mrf.mxu3  ;;  %v213_v18 = vld [vmem:[%s14911_s0 + $0x5f8] sm:$0xff]  ;;  %v7583_v50 = vld [vmem:[%s14912_s1 + $0x2d0] sm:$0xf0] }
 0x168   :  { %v1991_v63 = vpop.f32.mrf.mxu0  ;;  %2316 = vmatpush.bf16.msra.mxu0 %v7474_v39  ;;  %v10034_v42 = vpack.c.bf16 %v213_v18, %v206_v44  ;;  %v10036_v39 = vpack.c.bf16 %v215_v8, %v208_v4  ;;  %v7586_v44 = vor.u32 %v8483_v54, %v7583_v50  ;;  %v8447_v4 = vld [vmem:[%s14912_s1 + $0x1a4] sm:$0xf]  ;;  %v7439_v8 = vld [vmem:[%s14912_s1 + $0x1b0] sm:$0xf0] }
 0x169   :  { %v1901_v10 = vadd.f32 %v1900_v51, %v1812_v9  ;;  %v214_v9 = vld [vmem:[%s14911_s0 + $0x600] sm:$0xff]  ;;  %v209_v51 = vld [vmem:[%s14911_s0 + $0x5d8] sm:$0xff]  ;;  %v7567_v54 = vld [vmem:[%s14912_s1 + $0x2b0] sm:$0xf0] }
 0x16a   :  { %v2080_v16 = vpop.f32.mrf.mxu1  ;;  %15541 = vst [vmem:[#allocation101_spill] sm:$0xff] %v10034_v42 }
 0x16b   :  { %v1990_v32 = vadd.f32 %v1989_v3, %v1901_v10  ;;  %v8487_v3 = vld [vmem:[%s14912_s1 + $0x2e4] sm:$0xf]  ;;  %15542 = vst [vmem:[#allocation102_spill] sm:$0xff] %v10036_v39 }
 0x16c   :  { %v7602_v10 = vor.u32 %v8487_v3, %v7599_v52  ;;  %v10038_v52 = vpack.c.bf16 %v214_v9, %v207_v28  ;;  %v7442_v9 = vor.u32 %v8447_v4, %v7439_v8  ;;  %v7407_v8 = vld [vmem:[%s14912_s1 + $0x170] sm:$0xf0] }
 0x16d   :  { %v10013_v26 = vadd.f32 %v2078_v0, %v1990_v32  ;;  %v216_v0 = vld [vmem:[%s14911_s0 + $0x610] sm:$0xff] }
 0x16e   :  { %v1813_v60 = vpop.f32.mrf.mxu2  ;;  %v7455_v32 = vld [vmem:[%s14912_s1 + $0x1d0] sm:$0xf0]  ;;  %2405 = vmatpush.bf16.msra.mxu1 %v7602_v10  ;;  %15543 = vst [vmem:[#allocation103_spill] sm:$0xff] %v10038_v52 }
 0x16f   :  { %15540 = vst [vmem:[#allocation100_spill] sm:$0xff] %v10013_v26  ;;  %v1814_v33 = vadd.f32 %v1813_v60, %v9611_v29  ;;  %v1902_v56 = vpop.f32.mrf.mxu3  ;;  %v7458_v3 = vor.u32 %v8451_v36, %v7455_v32  ;;  %v10046_v29 = vpack.c.bf16 %v216_v0, %v209_v51  ;;  %v7423_v51 = vld [vmem:[%s14912_s1 + $0x190] sm:$0xf0] }
 0x170   :  { %v1994_v26 = vpop.f32.mrf.mxu0  ;;  %v7551_v32 = vld [vmem:[%s14912_s1 + $0x290] sm:$0xf0] }
 0x171   :  { %v1903_v15 = vadd.f32 %v1902_v56, %v1814_v33  ;;  %15544 = vst [vmem:[#allocation104_spill] sm:$0xff] %v10046_v29  ;;  %2317 = vmatpush.bf16.msra.mxu0 %v7458_v3  ;;  %v8479_v56 = vld [vmem:[%s14912_s1 + $0x2a4] sm:$0xf] }
 0x172   :  { %v2083_v18 = vpop.f32.mrf.mxu1  ;;  %2406 = vmatpush.bf16.msra.mxu1 %v7586_v44 }
 0x173   :  { %v1992_v28 = vadd.f32 %v1991_v63, %v1903_v15  ;;  %1855 = vmatmul.bf16.gmra.mxu2 %v10034_v42  ;;  %2033 = vmatmul.bf16.gmra.mxu0 %v10036_v39  ;;  %v7570_v15 = vor.u32 %v8479_v56, %v7567_v54  ;;  %v8443_v63 = vld [vmem:[%s14912_s1 + $0x184] sm:$0xf]  ;;  %v227_v56 = vld [vmem:[%s14911_s0 + $0x668] sm:$0xff] }
 0x174   :  { %1944 = vmatmul.bf16.gmra.mxu3 %v10038_v52  ;;  %v7426_v0 = vor.u32 %v8443_v63, %v7423_v51  ;;  %v222_v54 = vld [vmem:[%s14911_s0 + $0x640] sm:$0xff]  ;;  %v7535_v63 = vld [vmem:[%s14912_s1 + $0x270] sm:$0xf0] }
 0x175   :  { %v10063_v33 = vadd.f32 %v2080_v16, %v1992_v28  ;;  %2122 = vmatmul.bf16.gmra.mxu1 %v10046_v29  ;;  %2318 = vmatpush.bf16.msra.mxu0 %v7442_v9  ;;  %v8475_v16 = vld [vmem:[%s14912_s1 + $0x284] sm:$0xf]  ;;  %v220_v9 = vld [vmem:[%s14911_s0 + $0x630] sm:$0xff] }
 0x176   :  { %v1816_v50 = vpop.f32.mrf.mxu2  ;;  %2407 = vmatpush.bf16.msra.mxu1 %v7570_v15  ;;  %v7554_v44 = vor.u32 %v8475_v16, %v7551_v32  ;;  %v8467_v29 = vld [vmem:[%s14912_s1 + $0x244] sm:$0xf]  ;;  %v7519_v52 = vld [vmem:[%s14912_s1 + $0x250] sm:$0xf0] }
 0x177   :  { %v1817_v10 = vadd.f32 %v1816_v50, %v9650_v22  ;;  %v1905_v60 = vpop.f32.mrf.mxu3  ;;  %v8439_v22 = vld [vmem:[%s14912_s1 + $0x164] sm:$0xf]  ;;  %v229_v50 = vld [vmem:[%s14911_s0 + $0x678] sm:$0xff] }
 0x178   :  { %v1996_v36 = vpop.f32.mrf.mxu0  ;;  %v7410_v15 = vor.u32 %v8439_v22, %v7407_v8 }
 0x179   :  { %v1906_v3 = vadd.f32 %v1905_v60, %v1817_v10  ;;  %2319 = vmatpush.bf16.msra.mxu0 %v7426_v0  ;;  %v221_v10 = vld [vmem:[%s14911_s0 + $0x638] sm:$0xff]  ;;  %v228_v60 = vld [vmem:[%s14911_s0 + $0x670] sm:$0xff]  ;;  %v223_v0 = vld [vmem:[%s14911_s0 + $0x648] sm:$0xff] }
 0x17a   :  { %v2085_v4 = vpop.f32.mrf.mxu1  ;;  %2408 = vmatpush.bf16.msra.mxu1 %v7554_v44  ;;  %v7391_v44 = vld [vmem:[%s14912_s1 + $0x150] sm:$0xf0] }
 0x17b   :  { %v1995_v28 = vadd.f32 %v1994_v26, %v1906_v3  ;;  %v8471_v26 = vld [vmem:[%s14912_s1 + $0x264] sm:$0xf] }
 0x17c   :  { %v7538_v16 = vor.u32 %v8471_v26, %v7535_v63  ;;  %v8435_v3 = vld [vmem:[%s14912_s1 + $0x144] sm:$0xf]  ;;  %v10128_v63 = vpack.c.bf16 %v228_v60, %v221_v10 }
 0x17d   :  { %v10103_v51 = vadd.f32 %v2083_v18, %v1995_v28  ;;  %2320 = vmatpush.bf16.msra.mxu0 %v7410_v15  ;;  %v230_v18 = vld [vmem:[%s14911_s0 + $0x680] sm:$0xff]  ;;  %v10124_v28 = vpack.c.bf16 %v227_v56, %v220_v9  ;;  %v10126_v15 = vpack.c.bf16 %v229_v50, %v222_v54  ;;  %v7394_v26 = vor.u32 %v8435_v3, %v7391_v44  ;;  %v7375_v50 = vld [vmem:[%s14912_s1 + $0x130] sm:$0xf0] }
 0x17e   :  { %v1818_v32 = vpop.f32.mrf.mxu2  ;;  %15548 = vst [vmem:[#allocation108_spill] sm:$0xff] %v10128_v63  ;;  %2409 = vmatpush.bf16.msra.mxu1 %v7538_v16  ;;  %v7522_v9 = vor.u32 %v8467_v29, %v7519_v52  ;;  %v8431_v54 = vld [vmem:[%s14912_s1 + $0x124] sm:$0xf]  ;;  %v7503_v29 = vld [vmem:[%s14912_s1 + $0x230] sm:$0xf0] }
 0x17f   :  { %15545 = vst [vmem:[#allocation105_spill] sm:$0xff] %v10103_v51  ;;  %v1819_v22 = vadd.f32 %v1818_v32, %v9659_v62  ;;  %v1907_v8 = vpop.f32.mrf.mxu3  ;;  %v10136_v62 = vpack.c.bf16 %v230_v18, %v223_v0  ;;  %v7378_v60 = vor.u32 %v8431_v54, %v7375_v50  ;;  %v8463_v52 = vld [vmem:[%s14912_s1 + $0x224] sm:$0xf] }
 0x180   :  { %15546 = vst [vmem:[#allocation106_spill] sm:$0xff] %v10124_v28  ;;  %v1999_v39 = vpop.f32.mrf.mxu0  ;;  %v8551_v16 = vld [vmem:[%s14912_s1 + $0x4e4] sm:$0xf]  ;;  %v7506_v32 = vor.u32 %v8463_v52, %v7503_v29 }
 0x181   :  { %15547 = vst [vmem:[#allocation107_spill] sm:$0xff] %v10126_v15  ;;  %v1908_v51 = vadd.f32 %v1907_v8, %v1819_v22  ;;  %2321 = vmatpush.bf16.msra.mxu0 %v7394_v26  ;;  %v8427_v44 = vld [vmem:[%s14912_s1 + $0x104] sm:$0xf]  ;;  %v7359_v22 = vld [vmem:[%s14912_s1 + $0x110] sm:$0xf0] }
 0x182   :  { %15549 = vst [vmem:[#allocation109_spill] sm:$0xff] %v10136_v62  ;;  %v2088_v56 = vpop.f32.mrf.mxu1  ;;  %2410 = vmatpush.bf16.msra.mxu1 %v7522_v9  ;;  %v7362_v54 = vor.u32 %v8427_v44, %v7359_v22  ;;  %v237_v22 = vld [vmem:[%s14911_s0 + $0x6b8] sm:$0xff] }
 0x183   :  { %v1997_v10 = vadd.f32 %v1996_v36, %v1908_v51  ;;  %1860 = vmatmul.bf16.gmra.mxu2 %v10124_v28  ;;  %2038 = vmatmul.bf16.gmra.mxu0 %v10126_v15  ;;  %v8519_v36 = vld [vmem:[%s14912_s1 + $0x3e4] sm:$0xf]  ;;  %v7727_v51 = vld [vmem:[%s14912_s1 + $0x3f0] sm:$0xf0] }
 0x184   :  { %1949 = vmatmul.bf16.gmra.mxu3 %v10128_v63  ;;  %v7730_v3 = vor.u32 %v8519_v36, %v7727_v51  ;;  %v234_v51 = vld [vmem:[%s14911_s0 + $0x6a0] sm:$0xff] }
 0x185   :  { %v10153_v0 = vadd.f32 %v2085_v4, %v1997_v10  ;;  %2127 = vmatmul.bf16.gmra.mxu1 %v10136_v62  ;;  %2322 = vmatpush.bf16.msra.mxu0 %v7378_v60  ;;  %v7855_v4 = vld [vmem:[%s14912_s1 + $0x4f0] sm:$0xf0]  ;;  %v8459_v10 = vld [vmem:[%s14912_s1 + $0x204] sm:$0xf] }
 0x186   :  { %v1821_v18 = vpop.f32.mrf.mxu2  ;;  %v7858_v9 = vor.u32 %v8551_v16, %v7855_v4  ;;  %2494 = vmatpush.bf16.msrb.mxu2 %v7730_v3  ;;  %2411 = vmatpush.bf16.msra.mxu1 %v7506_v32  ;;  %v7487_v60 = vld [vmem:[%s14912_s1 + $0x210] sm:$0xf0]  ;;  %v241_v16 = vld [vmem:[%s14911_s0 + $0x6d8] sm:$0xff]  ;;  %v242_v4 = vld [vmem:[%s14911_s0 + $0x6e0] sm:$0xff] }
 0x187   :  { %v1822_v8 = vadd.f32 %v1821_v18, %v9698_v45  ;;  %v1910_v26 = vpop.f32.mrf.mxu3  ;;  %v7490_v29 = vor.u32 %v8459_v10, %v7487_v60  ;;  %v236_v32 = vld [vmem:[%s14911_s0 + $0x6b0] sm:$0xff]  ;;  %v243_v18 = vld [vmem:[%s14911_s0 + $0x6e8] sm:$0xff] }
 0x188   :  { %v2001_v50 = vpop.f32.mrf.mxu0  ;;  %2583 = vmatpush.bf16.msrb.mxu3 %v7858_v9  ;;  %v10208_v9 = vpack.c.bf16 %v241_v16, %v234_v51 }
 0x189   :  { %v1911_v52 = vadd.f32 %v1910_v26, %v1822_v8  ;;  %2323 = vmatpush.bf16.msra.mxu0 %v7362_v54  ;;  %v244_v8 = vld [vmem:[%s14911_s0 + $0x6f0] sm:$0xff]  ;;  %v10210_v54 = vpack.c.bf16 %v243_v18, %v236_v32 }
 0x18a   :  { %v2090_v36 = vpop.f32.mrf.mxu1  ;;  %2412 = vmatpush.bf16.msra.mxu1 %v7490_v29  ;;  %15550 = vst [vmem:[#allocation110_spill] sm:$0xff] %v10208_v9  ;;  %v10214_v29 = vpack.c.bf16 %v244_v8, %v237_v22  ;;  %v35_v22 = vld [vmem:[%s14911_s0 + $0x68] sm:$0xff] }
 0x18b   :  { %v2000_v45 = vadd.f32 %v1999_v39, %v1911_v52  ;;  %v235_v39 = vld [vmem:[%s14911_s0 + $0x6a8] sm:$0xff]  ;;  %15551 = vst [vmem:[#allocation111_spill] sm:$0xff] %v10210_v54 }
 0x18c   :  { %v10212_v10 = vpack.c.bf16 %v242_v4, %v235_v39  ;;  %15553 = vst [vmem:[#allocation113_spill] sm:$0xff] %v10214_v29 }
 0x18d   :  { %v10193_v3 = vadd.f32 %v2088_v56, %v2000_v45 }
 0x18e   :  { %v1823_v44 = vpop.f32.mrf.mxu2  ;;  %15552 = vst [vmem:[#allocation112_spill] sm:$0xff] %v10212_v10 }
 0x18f   :  { %v1824_v56 = vadd.f32 %v1823_v44, %v9713_v47  ;;  %v1912_v26 = vpop.f32.mrf.mxu3 }
 0x190   :  { %v2004_v60 = vpop.f32.mrf.mxu0 }
 0x191   :  { %v1913_v52 = vadd.f32 %v1912_v26, %v1824_v56 }
 0x192   :  { %v2093_v45 = vpop.f32.mrf.mxu1 }
 0x193   :  { %v2002_v15 = vadd.f32 %v2001_v50, %v1913_v52  ;;  %1865 = vmatmul.bf16.gmra.mxu2 %v10208_v9  ;;  %2043 = vmatmul.bf16.gmra.mxu0 %v10210_v54  ;;  %v28_v50 = vld [vmem:[%s14911_s0 + $0x30] sm:$0xff] }
 0x194   :  { %1954 = vmatmul.bf16.gmra.mxu3 %v10212_v10 }
 0x195   :  { %v10219_v47 = vadd.f32 %v2090_v36, %v2002_v15  ;;  %2132 = vmatmul.bf16.gmra.mxu1 %v10214_v29  ;;  %v15600_v29 = vld [vmem:[#allocation21_spill] sm:$0xff] }
 0x196   :  { %v1826_v51 = vpop.f32.mrf.mxu2 }
 0x197   :  { %v1827_v16 = vadd.f32 %v1826_v51, %v9752_v24  ;;  %v1915_v32 = vpop.f32.mrf.mxu3  ;;  %v10232_v24 = vpack.c.bf16 %v35_v22, %v28_v50 }
 0x198   :  { %v2006_v18 = vpop.f32.mrf.mxu0 }
 0x199   :  { %v1916_v39 = vadd.f32 %v1915_v32, %v1827_v16  ;;  %15554 = vst [vmem:[#allocation114_spill] sm:$0xff] %v10232_v24  ;;  %v7711_v16 = vld [vmem:[%s14912_s1 + $0x3d0] sm:$0xf0]  ;;  %v8547_v32 = vld [vmem:[%s14912_s1 + $0x4c4] sm:$0xf] }
 0x19a   :  { %v2095_v4 = vpop.f32.mrf.mxu1 }
 0x19b   :  { %v2005_v44 = vadd.f32 %v2004_v60, %v1916_v39 }
 0x19d   :  { %v10229_v15 = vadd.f32 %v2093_v45, %v2005_v44 }
 0x19e   :  { %v1828_v36 = vpop.f32.mrf.mxu2 }
 0x19f   :  { %v1829_v8 = vadd.f32 %v1828_v36, %v9761_v11  ;;  %v1917_v56 = vpop.f32.mrf.mxu3  ;;  %v8515_v11 = vld [vmem:[%s14912_s1 + $0x3c4] sm:$0xf] }
 0x1a0   :  { %v2009_v26 = vpop.f32.mrf.mxu0  ;;  %v7714_v39 = vor.u32 %v8515_v11, %v7711_v16  ;;  %v49_v11 = vld [vmem:[%s14911_s0 + $0xd8] sm:$0xff] }
 0x1a1   :  { %v1918_v52 = vadd.f32 %v1917_v56, %v1829_v8 }
 0x1a2   :  { %v2098_v60 = vpop.f32.mrf.mxu1  ;;  %2495 = vmatpush.bf16.msrb.mxu2 %v7714_v39 }
 0x1a3   :  { %v2007_v51 = vadd.f32 %v2006_v18, %v1918_v52  ;;  %8011 = vmatmul.msk.bf16.vlgmr.msra.gmra.mxu2 %vm1555_vm0, %v10232_v24  ;;  %2324 = vmatmul.bf16.vlgmr.msra.gmra.mxu0 %v8915_v5 }
 0x1a4   :  { %2235 = vmatmul.bf16.vlgmr.msra.gmra.mxu3 %v8905_v1 }
 0x1a5   :  { %v10238_v45 = vadd.f32 %v2095_v4, %v2007_v51  ;;  %2413 = vmatmul.bf16.vlgmr.msra.gmra.mxu1 %v9380_v7  ;;  %v7839_v4 = vld [vmem:[%s14912_s1 + $0x4d0] sm:$0xf0]  ;;  %v42_v51 = vld [vmem:[%s14911_s0 + $0xa0] sm:$0xff] }
 0x1a6   :  { %v1831_v18 = vpop.f32.mrf.mxu2  ;;  %v7842_v22 = vor.u32 %v8547_v32, %v7839_v4 }
 0x1a7   :  { %v1832_v44 = vadd.f32 %v1831_v18, %v9404_v31  ;;  %v1920_v50 = vpop.f32.mrf.mxu3  ;;  %v10263_v18 = vpack.c.bf16 %v49_v11, %v42_v51  ;;  %v63_v11 = vld [vmem:[%s14911_s0 + $0x148] sm:$0xff] }
 0x1a8   :  { %v2011_v36 = vpop.f32.mrf.mxu0  ;;  %2584 = vmatpush.bf16.msrb.mxu3 %v7842_v22 }
 0x1a9   :  { %v1921_v8 = vadd.f32 %v1920_v50, %v1832_v44  ;;  %15555 = vst [vmem:[#allocation115_spill] sm:$0xff] %v10263_v18 }
 0x1aa   :  { %v2100_v56 = vpop.f32.mrf.mxu1 }
 0x1ab   :  { %v2010_v52 = vadd.f32 %v2009_v26, %v1921_v8 }
 0x1ad   :  { %v10260_v16 = vadd.f32 %v2098_v60, %v2010_v52 }
 0x1ae   :  { %v1833_v5 = vpop.f32.mrf.mxu2 }
 0x1af   :  { %v1834_v31 = vadd.f32 %v1833_v5, %v9440_v20  ;;  %v1922_v32 = vpop.f32.mrf.mxu3 }
 0x1b0   :  { %v2014_v39 = vpop.f32.mrf.mxu0 }
 0x1b1   :  { %v1923_v4 = vadd.f32 %v1922_v32, %v1834_v31 }
 0x1b2   :  { %v2103_v44 = vpop.f32.mrf.mxu1 }
 0x1b3   :  { %v2012_v26 = vadd.f32 %v2011_v36, %v1923_v4  ;;  %8012 = vmatmul.msk.bf16.gmra.mxu2 %vm1555_vm0, %v10263_v18  ;;  %2329 = vmatmul.bf16.gmra.mxu0 %v8963_v25  ;;  %v56_v36 = vld [vmem:[%s14911_s0 + $0x110] sm:$0xff] }
 0x1b4   :  { %2240 = vmatmul.bf16.gmra.mxu3 %v8959_v23 }
 0x1b5   :  { %v10269_v50 = vadd.f32 %v2100_v56, %v2012_v26  ;;  %2418 = vmatmul.bf16.gmra.mxu1 %v9434_v6 }
 0x1b6   :  { %v1836_v60 = vpop.f32.mrf.mxu2 }
 0x1b7   :  { %v1837_v5 = vadd.f32 %v1836_v60, %v9452_v35  ;;  %v1925_v20 = vpop.f32.mrf.mxu3  ;;  %v10282_v35 = vpack.c.bf16 %v63_v11, %v56_v36 }
 0x1b8   :  { %v2016_v22 = vpop.f32.mrf.mxu0 }
 0x1b9   :  { %v1926_v8 = vadd.f32 %v1925_v20, %v1837_v5  ;;  %15556 = vst [vmem:[#allocation116_spill] sm:$0xff] %v10282_v35 }
 0x1ba   :  { %v2105_v52 = vpop.f32.mrf.mxu1 }
 0x1bb   :  { %v2015_v51 = vadd.f32 %v2014_v39, %v1926_v8 }
 0x1bd   :  { %v10279_v56 = vadd.f32 %v2103_v44, %v2015_v51  ;;  %v7695_v44 = vld [vmem:[%s14912_s1 + $0x3b0] sm:$0xf0] }
 0x1be   :  { %v1838_v31 = vpop.f32.mrf.mxu2 }
 0x1bf   :  { %v1839_v32 = vadd.f32 %v1838_v31, %v9488_v37  ;;  %v1927_v4 = vpop.f32.mrf.mxu3  ;;  %v8511_v37 = vld [vmem:[%s14912_s1 + $0x3a4] sm:$0xf] }
 0x1c0   :  { %v2019_v26 = vpop.f32.mrf.mxu0  ;;  %v7698_v51 = vor.u32 %v8511_v37, %v7695_v44  ;;  %v77_v37 = vld [vmem:[%s14911_s0 + $0x1b8] sm:$0xff] }
 0x1c1   :  { %v1928_v60 = vadd.f32 %v1927_v4, %v1839_v32 }
 0x1c2   :  { %v2108_v5 = vpop.f32.mrf.mxu1  ;;  %2496 = vmatpush.bf16.msrb.mxu2 %v7698_v51 }
 0x1c3   :  { %v2017_v39 = vadd.f32 %v2016_v22, %v1928_v60  ;;  %8013 = vmatmul.msk.bf16.gmra.mxu2 %vm1555_vm0, %v10282_v35  ;;  %2334 = vmatmul.bf16.gmra.mxu0 %v9011_v43  ;;  %v8543_v22 = vld [vmem:[%s14912_s1 + $0x4a4] sm:$0xf] }
 0x1c4   :  { %2245 = vmatmul.bf16.gmra.mxu3 %v9007_v41  ;;  %v70_v43 = vld [vmem:[%s14911_s0 + $0x180] sm:$0xff] }
 0x1c5   :  { %v10288_v20 = vadd.f32 %v2105_v52, %v2017_v39  ;;  %2423 = vmatmul.bf16.gmra.mxu1 %v9482_v30  ;;  %v7823_v52 = vld [vmem:[%s14912_s1 + $0x4b0] sm:$0xf0] }
 0x1c6   :  { %v1841_v8 = vpop.f32.mrf.mxu2  ;;  %v7826_v31 = vor.u32 %v8543_v22, %v7823_v52 }
 0x1c7   :  { %v1842_v36 = vadd.f32 %v1841_v8, %v9506_v2  ;;  %v1930_v11 = vpop.f32.mrf.mxu3  ;;  %v10313_v8 = vpack.c.bf16 %v77_v37, %v70_v43  ;;  %v91_v37 = vld [vmem:[%s14911_s0 + $0x228] sm:$0xff] }
 0x1c8   :  { %v2021_v32 = vpop.f32.mrf.mxu0  ;;  %2585 = vmatpush.bf16.msrb.mxu3 %v7826_v31 }
 0x1c9   :  { %v1931_v4 = vadd.f32 %v1930_v11, %v1842_v36  ;;  %15557 = vst [vmem:[#allocation117_spill] sm:$0xff] %v10313_v8 }
 0x1ca   :  { %v2110_v60 = vpop.f32.mrf.mxu1 }
 0x1cb   :  { %v2020_v39 = vadd.f32 %v2019_v26, %v1931_v4 }
 0x1cd   :  { %v10310_v44 = vadd.f32 %v2108_v5, %v2020_v39 }
 0x1ce   :  { %v1843_v30 = vpop.f32.mrf.mxu2 }
 0x1cf   :  { %v1844_v2 = vadd.f32 %v1843_v30, %v9542_v13  ;;  %v1932_v22 = vpop.f32.mrf.mxu3 }
 0x1d0   :  { %v2024_v51 = vpop.f32.mrf.mxu0 }
 0x1d1   :  { %v1933_v52 = vadd.f32 %v1932_v22, %v1844_v2 }
 0x1d2   :  { %v2113_v36 = vpop.f32.mrf.mxu1 }
 0x1d3   :  { %v2022_v26 = vadd.f32 %v2021_v32, %v1933_v52  ;;  %8014 = vmatmul.msk.bf16.gmra.mxu2 %vm1555_vm0, %v10313_v8  ;;  %2339 = vmatmul.bf16.gmra.mxu0 %v9059_v61  ;;  %v84_v32 = vld [vmem:[%s14911_s0 + $0x1f0] sm:$0xff] }
 0x1d4   :  { %2250 = vmatmul.bf16.gmra.mxu3 %v9055_v59 }
 0x1d5   :  { %v10319_v11 = vadd.f32 %v2110_v60, %v2022_v26  ;;  %2428 = vmatmul.bf16.gmra.mxu1 %v9536_v14 }
 0x1d6   :  { %v1846_v5 = vpop.f32.mrf.mxu2 }
 0x1d7   :  { %v1847_v13 = vadd.f32 %v1846_v5, %v9554_v48  ;;  %v1935_v43 = vpop.f32.mrf.mxu3  ;;  %v10332_v48 = vpack.c.bf16 %v91_v37, %v84_v32 }
 0x1d8   :  { %v2026_v30 = vpop.f32.mrf.mxu0 }
 0x1d9   :  { %v1936_v31 = vadd.f32 %v1935_v43, %v1847_v13  ;;  %15558 = vst [vmem:[#allocation118_spill] sm:$0xff] %v10332_v48 }
 0x1da   :  { %v2115_v4 = vpop.f32.mrf.mxu1 }
 0x1db   :  { %v2025_v39 = vadd.f32 %v2024_v51, %v1936_v31 }
 0x1dd   :  { %v10329_v60 = vadd.f32 %v2113_v36, %v2025_v39  ;;  %v7679_v36 = vld [vmem:[%s14912_s1 + $0x390] sm:$0xf0] }
 0x1de   :  { %v1848_v2 = vpop.f32.mrf.mxu2 }
 0x1df   :  { %v1849_v22 = vadd.f32 %v1848_v2, %v9590_v53  ;;  %v1937_v52 = vpop.f32.mrf.mxu3  ;;  %v8507_v53 = vld [vmem:[%s14912_s1 + $0x384] sm:$0xf] }
 0x1e0   :  { %v2029_v26 = vpop.f32.mrf.mxu0  ;;  %v7682_v39 = vor.u32 %v8507_v53, %v7679_v36  ;;  %v105_v53 = vld [vmem:[%s14911_s0 + $0x298] sm:$0xff] }
 0x1e1   :  { %v1938_v5 = vadd.f32 %v1937_v52, %v1849_v22 }
 0x1e2   :  { %v2118_v13 = vpop.f32.mrf.mxu1  ;;  %2497 = vmatpush.bf16.msrb.mxu2 %v7682_v39 }
 0x1e3   :  { %v2027_v51 = vadd.f32 %v2026_v30, %v1938_v5  ;;  %8015 = vmatmul.msk.bf16.gmra.mxu2 %vm1555_vm0, %v10332_v48  ;;  %2344 = vmatmul.bf16.gmra.mxu0 %v9107_v19  ;;  %v8539_v30 = vld [vmem:[%s14912_s1 + $0x484] sm:$0xf] }
 0x1e4   :  { %2255 = vmatmul.bf16.gmra.mxu3 %v9103_v17  ;;  %v98_v19 = vld [vmem:[%s14911_s0 + $0x260] sm:$0xff] }
 0x1e5   :  { %v10338_v43 = vadd.f32 %v2115_v4, %v2027_v51  ;;  %2433 = vmatmul.bf16.gmra.mxu1 %v9584_v49  ;;  %v7807_v4 = vld [vmem:[%s14912_s1 + $0x490] sm:$0xf0]  ;;  %v126_v17 = vld [vmem:[%s14911_s0 + $0x340] sm:$0xff] }
 0x1e6   :  { %v1851_v31 = vpop.f32.mrf.mxu2  ;;  %v7810_v2 = vor.u32 %v8539_v30, %v7807_v4 }
 0x1e7   :  { %v1852_v32 = vadd.f32 %v1851_v31, %v9608_v12  ;;  %v1940_v37 = vpop.f32.mrf.mxu3  ;;  %v10363_v31 = vpack.c.bf16 %v105_v53, %v98_v19 }
 0x1e8   :  { %v2031_v22 = vpop.f32.mrf.mxu0  ;;  %2586 = vmatpush.bf16.msrb.mxu3 %v7810_v2 }
 0x1e9   :  { %v1941_v52 = vadd.f32 %v1940_v37, %v1852_v32  ;;  %15559 = vst [vmem:[#allocation119_spill] sm:$0xff] %v10363_v31 }
 0x1ea   :  { %v2120_v5 = vpop.f32.mrf.mxu1 }
 0x1eb   :  { %v2030_v51 = vadd.f32 %v2029_v26, %v1941_v52 }
 0x1ed   :  { %v10360_v36 = vadd.f32 %v2118_v13, %v2030_v51 }
 0x1ee   :  { %v1853_v49 = vpop.f32.mrf.mxu2 }
 0x1ef   :  { %v1854_v12 = vadd.f32 %v1853_v49, %v9644_v58  ;;  %v1942_v30 = vpop.f32.mrf.mxu3  ;;  %v15560_v58 = vld [vmem:[#allocation61_spill] sm:$0xff] }
 0x1f0   :  { %v2034_v39 = vpop.f32.mrf.mxu0 }
 0x1f1   :  { %v1943_v4 = vadd.f32 %v1942_v30, %v1854_v12  ;;  %v119_v12 = vld [vmem:[%s14911_s0 + $0x308] sm:$0xff] }
 0x1f2   :  { %v2123_v32 = vpop.f32.mrf.mxu1 }
 0x1f3   :  { %v2032_v26 = vadd.f32 %v2031_v22, %v1943_v4  ;;  %8016 = vmatmul.msk.bf16.gmra.mxu2 %vm1555_vm0, %v10363_v31  ;;  %2349 = vmatmul.bf16.gmra.mxu0 %v9179_v57  ;;  %v112_v22 = vld [vmem:[%s14911_s0 + $0x2d0] sm:$0xff]  ;;  %v15561_v4 = vld [vmem:[#allocation65_spill] sm:$0xff] }
 0x1f4   :  { %2260 = vmatmul.bf16.gmra.mxu3 %v9175_v55 }
 0x1f5   :  { %v10369_v37 = vadd.f32 %v2120_v5, %v2032_v26  ;;  %2438 = vmatmul.bf16.gmra.mxu1 %v9638_v27  ;;  %v15564_v27 = vld [vmem:[#allocation30_spill] sm:$0xff] }
 0x1f6   :  { %v1856_v13 = vpop.f32.mrf.mxu2 }
 0x1f7   :  { %v1857_v49 = vadd.f32 %v1856_v13, %v15560_v58  ;;  %v1945_v19 = vpop.f32.mrf.mxu3  ;;  %v10382_v13 = vpack.c.bf16 %v119_v12, %v112_v22 }
 0x1f8   :  { %v2036_v2 = vpop.f32.mrf.mxu0 }
 0x1f9   :  { %v1946_v52 = vadd.f32 %v1945_v19, %v1857_v49  ;;  %15562 = vst [vmem:[#allocation61_spill] sm:$0xff] %v10382_v13 }
 0x1fa   :  { %v2125_v51 = vpop.f32.mrf.mxu1 }
 0x1fb   :  { %v2035_v53 = vadd.f32 %v2034_v39, %v1946_v52  ;;  %v15563_v52 = vld [vmem:[#allocation32_spill] sm:$0xff] }
 0x1fd   :  { %v10379_v5 = vadd.f32 %v2123_v32, %v2035_v53  ;;  %v15565_v32 = vld [vmem:[#allocation62_spill] sm:$0xff]  ;;  %v8503_v53 = vld [vmem:[%s14912_s1 + $0x364] sm:$0xf] }
 0x1fe   :  { %v1858_v30 = vpop.f32.mrf.mxu2 }
 0x1ff   :  { %v1859_v26 = vadd.f32 %v1858_v30, %v15561_v4  ;;  %v1947_v57 = vpop.f32.mrf.mxu3  ;;  %v15566_v30 = vld [vmem:[#allocation67_spill] sm:$0xff] }
 0x200   :  { %v2039_v58 = vpop.f32.mrf.mxu0 }
 0x201   :  { %v1948_v49 = vadd.f32 %v1947_v57, %v1859_v26  ;;  %v7663_v57 = vld [vmem:[%s14912_s1 + $0x370] sm:$0xf0] }
 0x202   :  { %v2128_v19 = vpop.f32.mrf.mxu1  ;;  %v7666_v12 = vor.u32 %v8503_v53, %v7663_v57  ;;  %v133_v53 = vld [vmem:[%s14911_s0 + $0x378] sm:$0xff] }
 0x203   :  { %v2037_v39 = vadd.f32 %v2036_v2, %v1948_v49  ;;  %8017 = vmatmul.msk.bf16.gmra.mxu2 %vm1555_vm0, %v10382_v13  ;;  %2354 = vmatmul.bf16.gmra.mxu0 %v15563_v52  ;;  %v8535_v2 = vld [vmem:[%s14912_s1 + $0x464] sm:$0xf] }
 0x204   :  { %2265 = vmatmul.bf16.gmra.mxu3 %v15564_v27  ;;  %2498 = vmatpush.bf16.msrb.mxu2 %v7666_v12 }
 0x205   :  { %v10388_v55 = vadd.f32 %v2125_v51, %v2037_v39  ;;  %2443 = vmatmul.bf16.gmra.mxu1 %v15565_v32  ;;  %v7791_v51 = vld [vmem:[%s14912_s1 + $0x470] sm:$0xf0] }
 0x206   :  { %v1861_v22 = vpop.f32.mrf.mxu2  ;;  %v7794_v49 = vor.u32 %v8535_v2, %v7791_v51  ;;  %v10413_v51 = vpack.c.bf16 %v133_v53, %v126_v17 }
 0x207   :  { %v1862_v4 = vadd.f32 %v1861_v22, %v15566_v30  ;;  %v1950_v26 = vpop.f32.mrf.mxu3  ;;  %v15567_v22 = vld [vmem:[#allocation71_spill] sm:$0xff] }
 0x208   :  { %v2041_v39 = vpop.f32.mrf.mxu0  ;;  %2587 = vmatpush.bf16.msrb.mxu3 %v7794_v49  ;;  %15568 = vst [vmem:[#allocation65_spill] sm:$0xff] %v10413_v51  ;;  %v15570_v49 = vld [vmem:[#allocation34_spill] sm:$0xff] }
 0x209   :  { %v1951_v52 = vadd.f32 %v1950_v26, %v1862_v4 }
 0x20a   :  { %v2130_v32 = vpop.f32.mrf.mxu1 }
 0x20b   :  { %v2040_v27 = vadd.f32 %v2039_v58, %v1951_v52  ;;  %v15569_v52 = vld [vmem:[#allocation36_spill] sm:$0xff] }
 0x20d   :  { %v10410_v57 = vadd.f32 %v2128_v19, %v2040_v27  ;;  %v15571_v27 = vld [vmem:[#allocation68_spill] sm:$0xff] }
 0x20e   :  { %v1863_v61 = vpop.f32.mrf.mxu2 }
 0x20f   :  { %v1864_v30 = vadd.f32 %v1863_v61, %v15567_v22  ;;  %v1952_v2 = vpop.f32.mrf.mxu3  ;;  %v15572_v61 = vld [vmem:[#allocation73_spill] sm:$0xff] }
 0x210   :  { %v2044_v12 = vpop.f32.mrf.mxu0 }
 0x211   :  { %v1953_v4 = vadd.f32 %v1952_v2, %v1864_v30 }
 0x212   :  { %v2133_v26 = vpop.f32.mrf.mxu1 }
 0x213   :  { %v2042_v58 = vadd.f32 %v2041_v39, %v1953_v4  ;;  %8018 = vmatmul.msk.bf16.gmra.mxu2 %vm1555_vm0, %v10413_v51  ;;  %2359 = vmatmul.bf16.gmra.mxu0 %v15569_v52  ;;  %v140_v39 = vld [vmem:[%s14911_s0 + $0x3b0] sm:$0xff]  ;;  %v147_v4 = vld [vmem:[%s14911_s0 + $0x3e8] sm:$0xff]  ;;  %v15573_v52 = vld [vmem:[#allocation77_spill] sm:$0xff] }
 0x214   :  { %2270 = vmatmul.bf16.gmra.mxu3 %v15570_v49 }
 0x215   :  { %v10419_v14 = vadd.f32 %v2130_v32, %v2042_v58  ;;  %2448 = vmatmul.bf16.gmra.mxu1 %v15571_v27 }
 0x216   :  { %v1866_v19 = vpop.f32.mrf.mxu2 }
 0x217   :  { %v1867_v22 = vadd.f32 %v1866_v19, %v15572_v61  ;;  %v1955_v17 = vpop.f32.mrf.mxu3  ;;  %v10432_v19 = vpack.c.bf16 %v147_v4, %v140_v39  ;;  %v15577_v39 = vld [vmem:[#allocation74_spill] sm:$0xff] }
 0x218   :  { %v2046_v53 = vpop.f32.mrf.mxu0 }
 0x219   :  { %v1956_v59 = vadd.f32 %v1955_v17, %v1867_v22  ;;  %15574 = vst [vmem:[#allocation67_spill] sm:$0xff] %v10432_v19 }
 0x21a   :  { %v2135_v30 = vpop.f32.mrf.mxu1 }
 0x21b   :  { %v2045_v2 = vadd.f32 %v2044_v12, %v1956_v59  ;;  %v8702_v12 = vld [vmem:[%s14915_s4] ss:$8 sm:$0xf] }
 0x21c   :  { %v10439_v41 = vperm.slane %v8702_v12, 1 }
 0x21d   :  { %v10429_v32 = vadd.f32 %v2133_v26, %v2045_v2  ;;  %v15575_v26 = vld [vmem:[#allocation7_spill] sm:$0xff]  ;;  %v15576_v2 = vld [vmem:[#allocation5_spill] sm:$0xff] }
 0x21e   :  { %v1868_v58 = vpop.f32.mrf.mxu2 }
 0x21f   :  { %v1869_v27 = vadd.f32 %v1868_v58, %v15573_v52  ;;  %v1957_v49 = vpop.f32.mrf.mxu3  ;;  %v8499_v52 = vld [vmem:[%s14912_s1 + $0x344] sm:$0xf]  ;;  %v7775_v58 = vld [vmem:[%s14912_s1 + $0x450] sm:$0xf0] }
 0x220   :  { %v2325_v61 = vpop.f32.mrf.mxu0 }
 0x221   :  { %v1958_v22 = vadd.f32 %v1957_v49, %v1869_v27  ;;  %v7647_v49 = vld [vmem:[%s14912_s1 + $0x350] sm:$0xf0]  ;;  %v8531_v27 = vld [vmem:[%s14912_s1 + $0x444] sm:$0xf] }
 0x222   :  { %v2414_v17 = vpop.f32.mrf.mxu1  ;;  %v7650_v4 = vor.u32 %v8499_v52, %v7647_v49  ;;  %v7778_v12 = vor.u32 %v8531_v27, %v7775_v58  ;;  %v154_v52 = vld [vmem:[%s14911_s0 + $0x420] sm:$0xff]  ;;  %v161_v49 = vld [vmem:[%s14911_s0 + $0x458] sm:$0xff] }
 0x223   :  { %v2047_v59 = vadd.f32 %v2046_v53, %v1958_v22  ;;  %8019 = vmatmul.msk.bf16.gmra.mxu2 %vm1555_vm0, %v10432_v19  ;;  %2364 = vmatmul.bf16.gmra.mxu0 %v15575_v26  ;;  %v15578_v26 = vld [vmem:[#allocation79_spill] sm:$0xff] }
 0x224   :  { %2275 = vmatmul.bf16.gmra.mxu3 %v15576_v2  ;;  %2499 = vmatpush.bf16.msrb.mxu2 %v7650_v4 }
 0x225   :  { %v10452_v53 = vadd.f32 %v2135_v30, %v2047_v59  ;;  %2453 = vmatmul.bf16.gmra.mxu1 %v15577_v39  ;;  %2588 = vmatpush.bf16.msrb.mxu3 %v7778_v12 }
 0x226   :  { %v2147_v22 = vpop.f32.mrf.mxu2 }
 0x227   :  { %v10459_v2 = vadd.f32 %v2147_v22, %v15578_v26  ;;  %v2236_v25 = vpop.f32.mrf.mxu3  ;;  %v15581_v22 = vld [vmem:[#allocation11_spill] sm:$0xff] }
 0x228   :  { %v2237_v6 = vadd.f32 %v2236_v25, %v10439_v41  ;;  %v2327_v23 = vpop.f32.mrf.mxu0  ;;  %v10473_v25 = vpack.c.bf16 %v161_v49, %v154_v52 }
 0x229   :  { %15579 = vst [vmem:[#allocation71_spill] sm:$0xff] %v10459_v2 }
 0x22a   :  { %v2326_v30 = vadd.f32 %v2325_v61, %v2237_v6  ;;  %v2416_v59 = vpop.f32.mrf.mxu1 }
 0x22c   :  { %v10462_v7 = vadd.f32 %v2414_v17, %v2326_v30  ;;  %v15582_v30 = vld [vmem:[#allocation9_spill] sm:$0xff] }
 0x22e   :  { %v2149_v26 = vpop.f32.mrf.mxu2 }
 0x22f   :  { %v10471_v27 = vadd.f32 %v2149_v26, %v9847_v34  ;;  %v2238_v4 = vpop.f32.mrf.mxu3  ;;  %v15583_v26 = vld [vmem:[#allocation84_spill] sm:$0xff] }
 0x230   :  { %v2239_v6 = vadd.f32 %v2238_v4, %v10439_v41  ;;  %v2330_v61 = vpop.f32.mrf.mxu0 }
 0x231   :  { %15580 = vst [vmem:[#allocation73_spill] sm:$0xff] %v10471_v27 }
 0x232   :  { %v2328_v17 = vadd.f32 %v2327_v23, %v2239_v6  ;;  %v2419_v58 = vpop.f32.mrf.mxu1 }
 0x233   :  { %8020 = vmatmul.msk.bf16.gmra.mxu2 %vm1555_vm0, %v10473_v25  ;;  %2369 = vmatmul.bf16.gmra.mxu0 %v15581_v22 }
 0x234   :  { %v10479_v12 = vadd.f32 %v2416_v59, %v2328_v17  ;;  %2280 = vmatmul.bf16.gmra.mxu3 %v15582_v30  ;;  %v168_v59 = vld [vmem:[%s14911_s0 + $0x490] sm:$0xff]  ;;  %v175_v17 = vld [vmem:[%s14911_s0 + $0x4c8] sm:$0xff]  ;;  %v15587_v30 = vld [vmem:[#allocation13_spill] sm:$0xff] }
 0x235   :  { %2458 = vmatmul.bf16.gmra.mxu1 %v9836_v38 }
 0x236   :  { %v2152_v34 = vpop.f32.mrf.mxu2 }
 0x237   :  { %v10484_v52 = vadd.f32 %v2152_v34, %v15583_v26  ;;  %v2241_v49 = vpop.f32.mrf.mxu3 }
 0x238   :  { %v2242_v4 = vadd.f32 %v2241_v49, %v10439_v41  ;;  %v2332_v23 = vpop.f32.mrf.mxu0 }
 0x239   :  { %15584 = vst [vmem:[#allocation77_spill] sm:$0xff] %v10484_v52  ;;  %v10498_v52 = vpack.c.bf16 %v175_v17, %v168_v59 }
 0x23a   :  { %v2331_v6 = vadd.f32 %v2330_v61, %v2242_v4  ;;  %v2421_v2 = vpop.f32.mrf.mxu1 }
 0x23c   :  { %v10487_v27 = vadd.f32 %v2419_v58, %v2331_v6  ;;  %v15586_v6 = vld [vmem:[#allocation15_spill] sm:$0xff] }
 0x23e   :  { %v2154_v22 = vpop.f32.mrf.mxu2 }
 0x23f   :  { %v10496_v34 = vadd.f32 %v2154_v22, %v9889_v46  ;;  %v2243_v26 = vpop.f32.mrf.mxu3  ;;  %v8495_v46 = vld [vmem:[%s14912_s1 + $0x324] sm:$0xf]  ;;  %v7631_v22 = vld [vmem:[%s14912_s1 + $0x330] sm:$0xf0] }
 0x240   :  { %v2244_v61 = vadd.f32 %v2243_v26, %v10439_v41  ;;  %v2335_v49 = vpop.f32.mrf.mxu0  ;;  %v7634_v59 = vor.u32 %v8495_v46, %v7631_v22  ;;  %v182_v46 = vld [vmem:[%s14911_s0 + $0x500] sm:$0xff]  ;;  %v189_v22 = vld [vmem:[%s14911_s0 + $0x538] sm:$0xff] }
 0x241   :  { %15585 = vst [vmem:[#allocation79_spill] sm:$0xff] %v10496_v34 }
 0x242   :  { %v2333_v58 = vadd.f32 %v2332_v23, %v2244_v61  ;;  %v2424_v4 = vpop.f32.mrf.mxu1  ;;  %v8527_v23 = vld [vmem:[%s14912_s1 + $0x424] sm:$0xf]  ;;  %2500 = vmatpush.bf16.msrb.mxu2 %v7634_v59 }
 0x243   :  { %8021 = vmatmul.msk.bf16.gmra.mxu2 %vm1555_vm0, %v10498_v52  ;;  %2374 = vmatmul.bf16.gmra.mxu0 %v15586_v6  ;;  %v15588_v61 = vld [vmem:[#allocation89_spill] sm:$0xff] }
 0x244   :  { %v10504_v38 = vadd.f32 %v2421_v2, %v2333_v58  ;;  %2285 = vmatmul.bf16.gmra.mxu3 %v15587_v30  ;;  %v7759_v2 = vld [vmem:[%s14912_s1 + $0x430] sm:$0xf0] }
 0x245   :  { %2463 = vmatmul.bf16.gmra.mxu1 %v9878_v40  ;;  %v7762_v26 = vor.u32 %v8527_v23, %v7759_v2 }
 0x246   :  { %v2157_v17 = vpop.f32.mrf.mxu2 }
 0x247   :  { %v10521_v58 = vadd.f32 %v2157_v17, %v15588_v61  ;;  %v2246_v34 = vpop.f32.mrf.mxu3  ;;  %2589 = vmatpush.bf16.msrb.mxu3 %v7762_v26  ;;  %v15591_v17 = vld [vmem:[#allocation19_spill] sm:$0xff]  ;;  %v15592_v61 = vld [vmem:[#allocation17_spill] sm:$0xff] }
 0x248   :  { %v2247_v6 = vadd.f32 %v2246_v34, %v10439_v41  ;;  %v2337_v30 = vpop.f32.mrf.mxu0  ;;  %v10535_v34 = vpack.c.bf16 %v189_v22, %v182_v46 }
 0x249   :  { %15589 = vst [vmem:[#allocation84_spill] sm:$0xff] %v10521_v58  ;;  %v15593_v58 = vld [vmem:[#allocation90_spill] sm:$0xff] }
 0x24a   :  { %v2336_v39 = vadd.f32 %v2335_v49, %v2247_v6  ;;  %v2426_v1 = vpop.f32.mrf.mxu1 }
 0x24c   :  { %v10524_v54 = vadd.f32 %v2424_v4, %v2336_v39 }
 0x24e   :  { %v2159_v23 = vpop.f32.mrf.mxu2 }
 0x24f   :  { %v10533_v2 = vadd.f32 %v2159_v23, %v9937_v21  ;;  %v2248_v59 = vpop.f32.mrf.mxu3  ;;  %v15594_v23 = vld [vmem:[#allocation94_spill] sm:$0xff] }
 0x250   :  { %v2249_v49 = vadd.f32 %v2248_v59, %v10439_v41  ;;  %v2340_v6 = vpop.f32.mrf.mxu0 }
 0x251   :  { %15590 = vst [vmem:[#allocation89_spill] sm:$0xff] %v10533_v2 }
 0x252   :  { %v2338_v39 = vadd.f32 %v2337_v30, %v2249_v49  ;;  %v2429_v4 = vpop.f32.mrf.mxu1 }
 0x253   :  { %8022 = vmatmul.msk.bf16.gmra.mxu2 %vm1555_vm0, %v10535_v34  ;;  %2379 = vmatmul.bf16.gmra.mxu0 %v15591_v17 }
 0x254   :  { %v10541_v26 = vadd.f32 %v2426_v1, %v2338_v39  ;;  %2290 = vmatmul.bf16.gmra.mxu3 %v15592_v61  ;;  %v196_v1 = vld [vmem:[%s14911_s0 + $0x570] sm:$0xff]  ;;  %v203_v39 = vld [vmem:[%s14911_s0 + $0x5a8] sm:$0xff] }
 0x255   :  { %2468 = vmatmul.bf16.gmra.mxu1 %v15593_v58  ;;  %v15596_v58 = vld [vmem:[#allocation99_spill] sm:$0xff] }
 0x256   :  { %v2162_v21 = vpop.f32.mrf.mxu2 }
 0x257   :  { %v10546_v46 = vadd.f32 %v2162_v21, %v15594_v23  ;;  %v2251_v22 = vpop.f32.mrf.mxu3 }
 0x258   :  { %v2252_v59 = vadd.f32 %v2251_v22, %v10439_v41  ;;  %v2342_v30 = vpop.f32.mrf.mxu0 }
 0x259   :  { %15595 = vst [vmem:[#allocation94_spill] sm:$0xff] %v10546_v46  ;;  %v10560_v46 = vpack.c.bf16 %v203_v39, %v196_v1  ;;  %v15601_v1 = vld [vmem:[#allocation95_spill] sm:$0xff] }
 0x25a   :  { %v2341_v49 = vadd.f32 %v2340_v6, %v2252_v59  ;;  %v2431_v2 = vpop.f32.mrf.mxu1 }
 0x25b   :  { %15598 = vst [vmem:[#allocation120_spill] sm:$0xff] %v10560_v46 }
 0x25c   :  { %v10549_v40 = vadd.f32 %v2429_v4, %v2341_v49  ;;  %v15599_v49 = vld [vmem:[#allocation23_spill] sm:$0xff] }
 0x25e   :  { %v2164_v17 = vpop.f32.mrf.mxu2 }
 0x25f   :  { %v10558_v21 = vadd.f32 %v2164_v17, %v15596_v58  ;;  %v2253_v23 = vpop.f32.mrf.mxu3  ;;  %v8491_v58 = vld [vmem:[%s14912_s1 + $0x304] sm:$0xf]  ;;  %v7615_v17 = vld [vmem:[%s14912_s1 + $0x310] sm:$0xf0] }
 0x260   :  { %v2254_v6 = vadd.f32 %v2253_v23, %v10439_v41  ;;  %v2345_v22 = vpop.f32.mrf.mxu0  ;;  %v7618_v39 = vor.u32 %v8491_v58, %v7615_v17  ;;  %v210_v58 = vld [vmem:[%s14911_s0 + $0x5e0] sm:$0xff] }
 0x261   :  { %15597 = vst [vmem:[#allocation99_spill] sm:$0xff] %v10558_v21 }
 0x262   :  { %v2343_v4 = vadd.f32 %v2342_v30, %v2254_v6  ;;  %v2434_v59 = vpop.f32.mrf.mxu1  ;;  %v8523_v30 = vld [vmem:[%s14912_s1 + $0x404] sm:$0xf]  ;;  %2501 = vmatpush.bf16.msrb.mxu2 %v7618_v39 }
 0x263   :  { %8023 = vmatmul.msk.bf16.gmra.mxu2 %vm1555_vm0, %v10560_v46  ;;  %2384 = vmatmul.bf16.gmra.mxu0 %v15599_v49  ;;  %v8583_v39 = vld [vmem:[%s14912_s1 + $0x5e4] sm:$0xf] }
 0x264   :  { %v10566_v61 = vadd.f32 %v2431_v2, %v2343_v4  ;;  %2295 = vmatmul.bf16.gmra.mxu3 %v15600_v29  ;;  %v7743_v2 = vld [vmem:[%s14912_s1 + $0x410] sm:$0xf0]  ;;  %v15602_v4 = vld [vmem:[#allocation100_spill] sm:$0xff] }
 0x265   :  { %2473 = vmatmul.bf16.gmra.mxu1 %v15601_v1  ;;  %v7746_v6 = vor.u32 %v8523_v30, %v7743_v2  ;;  %v217_v30 = vld [vmem:[%s14911_s0 + $0x618] sm:$0xff] }
 0x266   :  { %v2167_v23 = vpop.f32.mrf.mxu2 }
 0x267   :  { %v10583_v21 = vadd.f32 %v2167_v23, %v15602_v4  ;;  %v2256_v49 = vpop.f32.mrf.mxu3  ;;  %2590 = vmatpush.bf16.msrb.mxu3 %v7746_v6  ;;  %v8579_v4 = vld [vmem:[%s14912_s1 + $0x5c4] sm:$0xf] }
 0x268   :  { %v2257_v29 = vadd.f32 %v2256_v49, %v10439_v41  ;;  %v2347_v10 = vpop.f32.mrf.mxu0  ;;  %v7983_v49 = vld [vmem:[%s14912_s1 + $0x5f0] sm:$0xf0] }
 0x269   :  { %15603 = vst [vmem:[#allocation100_spill] sm:$0xff] %v10583_v21  ;;  %v7967_v21 = vld [vmem:[%s14912_s1 + $0x5d0] sm:$0xf0] }
 0x26a   :  { %v2346_v62 = vadd.f32 %v2345_v22, %v2257_v29  ;;  %v2436_v63 = vpop.f32.mrf.mxu1  ;;  %v7986_v29 = vor.u32 %v8583_v39, %v7983_v49  ;;  %v7970_v39 = vor.u32 %v8579_v4, %v7967_v21  ;;  %v7951_v21 = vld [vmem:[%s14912_s1 + $0x5b0] sm:$0xf0] }
 0x26c   :  { %v10589_v17 = vadd.f32 %v2434_v59, %v2346_v62  ;;  %v10603_v62 = vpack.c.bf16 %v217_v30, %v210_v58  ;;  %2672 = vmatpush.bf16.msrb.mxu0 %v7986_v29  ;;  %v15607_v30 = vld [vmem:[#allocation25_spill] sm:$0xff] }
 0x26d   :  { %v8575_v29 = vld [vmem:[%s14912_s1 + $0x5a4] sm:$0xf] }
 0x26e   :  { %v2169_v22 = vpop.f32.mrf.mxu2  ;;  %15605 = vst [vmem:[#allocation122_spill] sm:$0xff] %v10603_v62 }
 0x26f   :  { %v10601_v2 = vadd.f32 %v2169_v22, %v10063_v33  ;;  %v2258_v23 = vpop.f32.mrf.mxu3  ;;  %v15606_v33 = vld [vmem:[#allocation27_spill] sm:$0xff] }
 0x270   :  { %v2259_v59 = vadd.f32 %v2258_v23, %v10439_v41  ;;  %v2350_v6 = vpop.f32.mrf.mxu0  ;;  %2673 = vmatpush.bf16.msrb.mxu0 %v7970_v39  ;;  %v15608_v23 = vld [vmem:[#allocation105_spill] sm:$0xff] }
 0x271   :  { %15604 = vst [vmem:[#allocation121_spill] sm:$0xff] %v10601_v2  ;;  %v8571_v39 = vld [vmem:[%s14912_s1 + $0x584] sm:$0xf]  ;;  %v7935_v2 = vld [vmem:[%s14912_s1 + $0x590] sm:$0xf0] }
 0x272   :  { %v2348_v49 = vadd.f32 %v2347_v10, %v2259_v59  ;;  %v2439_v1 = vpop.f32.mrf.mxu1  ;;  %v7954_v10 = vor.u32 %v8575_v29, %v7951_v21  ;;  %v224_v21 = vld [vmem:[%s14911_s0 + $0x650] sm:$0xff] }
 0x273   :  { %8024 = vmatmul.msk.bf16.gmra.mxu2 %vm1555_vm0, %v10603_v62  ;;  %2389 = vmatmul.bf16.gmra.mxu0 %v15606_v33  ;;  %v7938_v33 = vor.u32 %v8571_v39, %v7935_v2  ;;  %v7919_v2 = vld [vmem:[%s14912_s1 + $0x570] sm:$0xf0] }
 0x274   :  { %v10615_v58 = vadd.f32 %v2436_v63, %v2348_v49  ;;  %2300 = vmatmul.bf16.gmra.mxu3 %v15607_v30  ;;  %2674 = vmatpush.bf16.msrb.mxu0 %v7954_v10  ;;  %v231_v10 = vld [vmem:[%s14911_s0 + $0x688] sm:$0xff]  ;;  %v7903_v30 = vld [vmem:[%s14912_s1 + $0x550] sm:$0xf0] }
 0x275   :  { %2478 = vmatmul.bf16.gmra.mxu1 %v10034_v42 }
 0x276   :  { %v2172_v22 = vpop.f32.mrf.mxu2 }
 0x277   :  { %v10626_v59 = vadd.f32 %v2172_v22, %v15608_v23  ;;  %v2261_v63 = vpop.f32.mrf.mxu3  ;;  %v8567_v23 = vld [vmem:[%s14912_s1 + $0x564] sm:$0xf] }
 0x278   :  { %v2262_v4 = vadd.f32 %v2261_v63, %v10439_v41  ;;  %v2352_v49 = vpop.f32.mrf.mxu0  ;;  %2675 = vmatpush.bf16.msrb.mxu0 %v7938_v33  ;;  %v8563_v33 = vld [vmem:[%s14912_s1 + $0x544] sm:$0xf] }
 0x279   :  { %15609 = vst [vmem:[#allocation105_spill] sm:$0xff] %v10626_v59 }
 0x27a   :  { %v2351_v42 = vadd.f32 %v2350_v6, %v2262_v4  ;;  %v2441_v29 = vpop.f32.mrf.mxu1  ;;  %v7922_v6 = vor.u32 %v8567_v23, %v7919_v2  ;;  %v7906_v23 = vor.u32 %v8563_v33, %v7903_v30  ;;  %v8426_v30 = vld [vmem:[%s14912_s1 + $0xf4] sm:$0xf0] }
 0x27c   :  { %v10638_v22 = vadd.f32 %v2439_v1, %v2351_v42  ;;  %v10652_v1 = vpack.c.bf16 %v231_v10, %v224_v21  ;;  %2676 = vmatpush.bf16.msrb.mxu0 %v7922_v6  ;;  %v15614_v10 = vld [vmem:[#allocation29_spill] sm:$0xff]  ;;  %v7349_v6 = vld [vmem:[%s14912_s1 + $0xe8] sm:$0xf] }
 0x27e   :  { %15610 = vst [vmem:[#allocation123_spill] sm:$0xff] %v10638_v22  ;;  %v2174_v63 = vpop.f32.mrf.mxu2 }
 0x27f   :  { %v10650_v4 = vadd.f32 %v2174_v63, %v10153_v0  ;;  %v2263_v42 = vpop.f32.mrf.mxu3  ;;  %15612 = vst [vmem:[#allocation125_spill] sm:$0xff] %v10652_v1  ;;  %v15613_v0 = vld [vmem:[#allocation31_spill] sm:$0xff]  ;;  %v7350_v63 = vor.u32 %v8426_v30, %v7349_v6 }
 0x280   :  { %v2264_v39 = vadd.f32 %v2263_v42, %v10439_v41  ;;  %v2355_v59 = vpop.f32.mrf.mxu0  ;;  %2677 = vmatpush.bf16.msrb.mxu0 %v7906_v23  ;;  %v8559_v42 = vld [vmem:[%s14912_s1 + $0x524] sm:$0xf] }
 0x281   :  { %15611 = vst [vmem:[#allocation124_spill] sm:$0xff] %v10650_v4  ;;  %2850 = vmatpush.bf16.msra.mxu2 %v7350_v63 }
 0x282   :  { %v2353_v2 = vadd.f32 %v2352_v49, %v2264_v39  ;;  %v2444_v22 = vpop.f32.mrf.mxu1  ;;  %v7477_v49 = vld [vmem:[%s14912_s1 + $0x1e8] sm:$0xf]  ;;  %v7887_v39 = vld [vmem:[%s14912_s1 + $0x530] sm:$0xf0] }
 0x283   :  { %8025 = vmatmul.msk.bf16.gmra.mxu2 %vm1555_vm0, %v10652_v1  ;;  %2394 = vmatmul.bf16.gmra.mxu0 %v15613_v0 }
 0x284   :  { %v10664_v21 = vadd.f32 %v2441_v29, %v2353_v2  ;;  %2305 = vmatmul.bf16.gmra.mxu3 %v15614_v10  ;;  %v8458_v29 = vld [vmem:[%s14912_s1 + $0x1f4] sm:$0xf0]  ;;  %v7890_v2 = vor.u32 %v8559_v42, %v7887_v39  ;;  %v7871_v10 = vld [vmem:[%s14912_s1 + $0x510] sm:$0xf0] }
 0x285   :  { %2483 = vmatmul.bf16.gmra.mxu1 %v10124_v28  ;;  %v7478_v23 = vor.u32 %v8458_v29, %v7477_v49  ;;  %v8555_v28 = vld [vmem:[%s14912_s1 + $0x504] sm:$0xf] }
 0x286   :  { %v2177_v33 = vpop.f32.mrf.mxu2  ;;  %2678 = vmatpush.bf16.msrb.mxu0 %v7890_v2  ;;  %v7874_v49 = vor.u32 %v8555_v28, %v7871_v10  ;;  %v245_v28 = vld [vmem:[%s14911_s0 + $0x6f8] sm:$0xff] }
 0x287   :  { %v10687_v4 = vadd.f32 %v2177_v33, %v10193_v3  ;;  %v2266_v0 = vpop.f32.mrf.mxu3  ;;  %2939 = vmatpush.bf16.msra.mxu3 %v7478_v23  ;;  %v8587_v3 = vld [vmem:[%s14912_s1 + $0x604] sm:$0xf] }
 0x288   :  { %v2267_v6 = vadd.f32 %v2266_v0, %v10439_v41  ;;  %v2357_v30 = vpop.f32.mrf.mxu0  ;;  %v7999_v0 = vld [vmem:[%s14912_s1 + $0x610] sm:$0xf0]  ;;  %v238_v33 = vld [vmem:[%s14911_s0 + $0x6c0] sm:$0xff] }
 0x289   :  { %15615 = vst [vmem:[#allocation126_spill] sm:$0xff] %v10687_v4  ;;  %v8002_v63 = vor.u32 %v8587_v3, %v7999_v0  ;;  %v10713_v2 = vpack.c.bf16 %v245_v28, %v238_v33  ;;  %v15618_v0 = vld [vmem:[#allocation35_spill] sm:$0xff] }
 0x28a   :  { %v2356_v29 = vadd.f32 %v2355_v59, %v2267_v6  ;;  %v2446_v42 = vpop.f32.mrf.mxu1  ;;  %2679 = vmatpush.bf16.msrb.mxu0 %v7874_v49  ;;  %v15619_v49 = vld [vmem:[#allocation33_spill] sm:$0xff] }
 0x28b   :  { %2768 = vmatpush.bf16.msrb.mxu1 %v8002_v63  ;;  %15617 = vst [vmem:[#allocation128_spill] sm:$0xff] %v10713_v2 }
 0x28c   :  { %v10702_v39 = vadd.f32 %v2444_v22, %v2356_v29 }
 0x28e   :  { %v2179_v59 = vpop.f32.mrf.mxu2 }
 0x28f   :  { %v10711_v10 = vadd.f32 %v2179_v59, %v10219_v47  ;;  %v2268_v23 = vpop.f32.mrf.mxu3 }
 0x290   :  { %v2269_v22 = vadd.f32 %v2268_v23, %v10439_v41  ;;  %v2360_v6 = vpop.f32.mrf.mxu0 }
 0x291   :  { %15616 = vst [vmem:[#allocation127_spill] sm:$0xff] %v10711_v10 }
 0x292   :  { %v2358_v29 = vadd.f32 %v2357_v30, %v2269_v22  ;;  %v2449_v3 = vpop.f32.mrf.mxu1 }
 0x293   :  { %8026 = vmatmul.msk.bf16.gmra.mxu2 %vm1555_vm0, %v10713_v2  ;;  %2399 = vmatmul.bf16.gmra.mxu0 %v15618_v0 }
 0x294   :  { %v10719_v4 = vadd.f32 %v2446_v42, %v2358_v29  ;;  %2310 = vmatmul.bf16.gmra.mxu3 %v15619_v49 }
 0x295   :  { %2488 = vmatmul.bf16.gmra.mxu1 %v10208_v9 }
 0x296   :  { %v2182_v47 = vpop.f32.mrf.mxu2 }
 0x297   :  { %v10724_v63 = vadd.f32 %v2182_v47, %v10229_v15  ;;  %v2271_v33 = vpop.f32.mrf.mxu3  ;;  %v15622_v15 = vld [vmem:[#allocation39_spill] sm:$0xff]  ;;  %v15623_v47 = vld [vmem:[#allocation40_spill] sm:$0xff] }
 0x298   :  { %v2272_v28 = vadd.f32 %v2271_v33, %v10439_v41  ;;  %v2362_v30 = vpop.f32.mrf.mxu0 }
 0x299   :  { %15620 = vst [vmem:[#allocation129_spill] sm:$0xff] %v10724_v63 }
 0x29a   :  { %v2361_v59 = vadd.f32 %v2360_v6, %v2272_v28  ;;  %v2451_v23 = vpop.f32.mrf.mxu1  ;;  %v15624_v6 = vld [vmem:[#allocation38_spill] sm:$0xff] }
 0x29c   :  { %v10727_v22 = vadd.f32 %v2449_v3, %v2361_v59  ;;  %v7333_v3 = vld [vmem:[%s14912_s1 + $0xc8] sm:$0xf] }
 0x29e   :  { %v2184_v10 = vpop.f32.mrf.mxu2 }
 0x29f   :  { %v10730_v42 = vadd.f32 %v2184_v10, %v10238_v45  ;;  %v2273_v29 = vpop.f32.mrf.mxu3  ;;  %v8422_v45 = vld [vmem:[%s14912_s1 + $0xd4] sm:$0xf0]  ;;  %v7461_v10 = vld [vmem:[%s14912_s1 + $0x1c8] sm:$0xf] }
 0x2a0   :  { %v2274_v0 = vadd.f32 %v2273_v29, %v10439_v41  ;;  %v2365_v9 = vpop.f32.mrf.mxu0 }
 0x2a1   :  { %15621 = vst [vmem:[#allocation130_spill] sm:$0xff] %v10730_v42 }
 0x2a2   :  { %v2363_v49 = vadd.f32 %v2362_v30, %v2274_v0  ;;  %v2454_v2 = vpop.f32.mrf.mxu1  ;;  %v7334_v0 = vor.u32 %v8422_v45, %v7333_v3 }
 0x2a3   :  { %2502 = vmatmul.bf16.vlgmr.msrb.gmra.mxu2 %v15622_v15  ;;  %2680 = vmatmul.bf16.vlgmr.msrb.gmra.mxu0 %v15623_v47 }
 0x2a4   :  { %v10735_v33 = vadd.f32 %v2451_v23, %v2363_v49  ;;  %2591 = vmatmul.bf16.vlgmr.msrb.gmra.mxu3 %v15624_v6  ;;  %v8454_v49 = vld [vmem:[%s14912_s1 + $0x1d4] sm:$0xf0]  ;;  %2851 = vmatpush.bf16.msra.mxu2 %v7334_v0 }
 0x2a5   :  { %8027 = vmatmul.msk.bf16.vlgmr.msrb.gmra.mxu1 %vm1555_vm0, %v10232_v24  ;;  %v7462_v30 = vor.u32 %v8454_v49, %v7461_v10  ;;  %v15628_v0 = vld [vmem:[#allocation44_spill] sm:$0xff] }
 0x2a6   :  { %v2187_v28 = vpop.f32.mrf.mxu2 }
 0x2a7   :  { %v10753_v59 = vadd.f32 %v2187_v28, %v10260_v16  ;;  %v2276_v23 = vpop.f32.mrf.mxu3  ;;  %2940 = vmatpush.bf16.msra.mxu3 %v7462_v30 }
 0x2a8   :  { %v2277_v29 = vadd.f32 %v2276_v23, %v10439_v41  ;;  %v2367_v42 = vpop.f32.mrf.mxu0 }
 0x2a9   :  { %15625 = vst [vmem:[#allocation131_spill] sm:$0xff] %v10753_v59  ;;  %v15627_v59 = vld [vmem:[#allocation43_spill] sm:$0xff] }
 0x2aa   :  { %v2366_v63 = vadd.f32 %v2365_v9, %v2277_v29  ;;  %v2456_v47 = vpop.f32.mrf.mxu1  ;;  %v15629_v9 = vld [vmem:[#allocation42_spill] sm:$0xff] }
 0x2ac   :  { %v10756_v6 = vadd.f32 %v2454_v2, %v2366_v63 }
 0x2ae   :  { %v2189_v3 = vpop.f32.mrf.mxu2 }
 0x2af   :  { %v10759_v45 = vadd.f32 %v2189_v3, %v10269_v50  ;;  %v2278_v24 = vpop.f32.mrf.mxu3 }
 0x2b0   :  { %v2279_v10 = vadd.f32 %v2278_v24, %v10439_v41  ;;  %v2370_v49 = vpop.f32.mrf.mxu0 }
 0x2b1   :  { %15626 = vst [vmem:[#allocation132_spill] sm:$0xff] %v10759_v45 }
 0x2b2   :  { %v2368_v16 = vadd.f32 %v2367_v42, %v2279_v10  ;;  %v2459_v28 = vpop.f32.mrf.mxu1 }
 0x2b3   :  { %2507 = vmatmul.bf16.gmra.mxu2 %v15627_v59  ;;  %2685 = vmatmul.bf16.gmra.mxu0 %v15628_v0 }
 0x2b4   :  { %v10764_v23 = vadd.f32 %v2456_v47, %v2368_v16  ;;  %2596 = vmatmul.bf16.gmra.mxu3 %v15629_v9 }
 0x2b5   :  { %8028 = vmatmul.msk.bf16.gmra.mxu1 %vm1555_vm0, %v10263_v18 }
 0x2b6   :  { %v2192_v2 = vpop.f32.mrf.mxu2 }
 0x2b7   :  { %v10770_v50 = vadd.f32 %v2192_v2, %v10279_v56  ;;  %v2281_v63 = vpop.f32.mrf.mxu3  ;;  %v15632_v56 = vld [vmem:[#allocation47_spill] sm:$0xff]  ;;  %v15633_v2 = vld [vmem:[#allocation48_spill] sm:$0xff] }
 0x2b8   :  { %v2282_v24 = vadd.f32 %v2281_v63, %v10439_v41  ;;  %v2372_v42 = vpop.f32.mrf.mxu0 }
 0x2b9   :  { %15630 = vst [vmem:[#allocation133_spill] sm:$0xff] %v10770_v50 }
 0x2ba   :  { %v2371_v30 = vadd.f32 %v2370_v49, %v2282_v24  ;;  %v2461_v29 = vpop.f32.mrf.mxu1  ;;  %v15634_v49 = vld [vmem:[#allocation46_spill] sm:$0xff] }
 0x2bc   :  { %v10773_v3 = vadd.f32 %v2459_v28, %v2371_v30  ;;  %v7317_v28 = vld [vmem:[%s14912_s1 + $0xa8] sm:$0xf] }
 0x2be   :  { %v2194_v10 = vpop.f32.mrf.mxu2 }
 0x2bf   :  { %v10776_v47 = vadd.f32 %v2194_v10, %v10288_v20  ;;  %v2283_v16 = vpop.f32.mrf.mxu3  ;;  %v8418_v20 = vld [vmem:[%s14912_s1 + $0xb4] sm:$0xf0] }
 0x2c0   :  { %v2284_v45 = vadd.f32 %v2283_v16, %v10439_v41  ;;  %v2375_v0 = vpop.f32.mrf.mxu0  ;;  %v7318_v24 = vor.u32 %v8418_v20, %v7317_v28 }
 0x2c1   :  { %15631 = vst [vmem:[#allocation134_spill] sm:$0xff] %v10776_v47 }
 0x2c2   :  { %v2373_v18 = vadd.f32 %v2372_v42, %v2284_v45  ;;  %v2464_v9 = vpop.f32.mrf.mxu1  ;;  %v7445_v45 = vld [vmem:[%s14912_s1 + $0x1a8] sm:$0xf]  ;;  %2852 = vmatpush.bf16.msra.mxu2 %v7318_v24  ;;  %v15638_v24 = vld [vmem:[#allocation52_spill] sm:$0xff] }
 0x2c3   :  { %2512 = vmatmul.bf16.gmra.mxu2 %v15632_v56  ;;  %2690 = vmatmul.bf16.gmra.mxu0 %v15633_v2 }
 0x2c4   :  { %v10781_v63 = vadd.f32 %v2461_v29, %v2373_v18  ;;  %2601 = vmatmul.bf16.gmra.mxu3 %v15634_v49  ;;  %v8450_v18 = vld [vmem:[%s14912_s1 + $0x1b4] sm:$0xf0] }
 0x2c5   :  { %8029 = vmatmul.msk.bf16.gmra.mxu1 %vm1555_vm0, %v10282_v35  ;;  %v7446_v30 = vor.u32 %v8450_v18, %v7445_v45 }
 0x2c6   :  { %v2197_v42 = vpop.f32.mrf.mxu2 }
 0x2c7   :  { %v10799_v29 = vadd.f32 %v2197_v42, %v10310_v44  ;;  %v2286_v10 = vpop.f32.mrf.mxu3  ;;  %2941 = vmatpush.bf16.msra.mxu3 %v7446_v30 }
 0x2c8   :  { %v2287_v16 = vadd.f32 %v2286_v10, %v10439_v41  ;;  %v2377_v47 = vpop.f32.mrf.mxu0 }
 0x2c9   :  { %15635 = vst [vmem:[#allocation135_spill] sm:$0xff] %v10799_v29  ;;  %v15637_v29 = vld [vmem:[#allocation51_spill] sm:$0xff] }
 0x2ca   :  { %v2376_v50 = vadd.f32 %v2375_v0, %v2287_v16  ;;  %v2466_v2 = vpop.f32.mrf.mxu1  ;;  %v15639_v0 = vld [vmem:[#allocation50_spill] sm:$0xff] }
 0x2cc   :  { %v10802_v49 = vadd.f32 %v2464_v9, %v2376_v50 }
 0x2ce   :  { %v2199_v28 = vpop.f32.mrf.mxu2 }
 0x2cf   :  { %v10805_v20 = vadd.f32 %v2199_v28, %v10319_v11  ;;  %v2288_v35 = vpop.f32.mrf.mxu3 }
 0x2d0   :  { %v2289_v45 = vadd.f32 %v2288_v35, %v10439_v41  ;;  %v2380_v18 = vpop.f32.mrf.mxu0 }
 0x2d1   :  { %15636 = vst [vmem:[#allocation136_spill] sm:$0xff] %v10805_v20 }
 0x2d2   :  { %v2378_v44 = vadd.f32 %v2377_v47, %v2289_v45  ;;  %v2469_v42 = vpop.f32.mrf.mxu1 }
 0x2d3   :  { %2517 = vmatmul.bf16.gmra.mxu2 %v15637_v29  ;;  %2695 = vmatmul.bf16.gmra.mxu0 %v15638_v24 }
 0x2d4   :  { %v10810_v10 = vadd.f32 %v2466_v2, %v2378_v44  ;;  %2606 = vmatmul.bf16.gmra.mxu3 %v15639_v0 }
 0x2d5   :  { %8030 = vmatmul.msk.bf16.gmra.mxu1 %vm1555_vm0, %v10313_v8 }
 0x2d6   :  { %v2202_v9 = vpop.f32.mrf.mxu2 }
 0x2d7   :  { %v10816_v11 = vadd.f32 %v2202_v9, %v10329_v60  ;;  %v2291_v50 = vpop.f32.mrf.mxu3  ;;  %v15642_v60 = vld [vmem:[#allocation55_spill] sm:$0xff]  ;;  %v15643_v9 = vld [vmem:[#allocation56_spill] sm:$0xff] }
 0x2d8   :  { %v2292_v35 = vadd.f32 %v2291_v50, %v10439_v41  ;;  %v2382_v47 = vpop.f32.mrf.mxu0 }
 0x2d9   :  { %15640 = vst [vmem:[#allocation137_spill] sm:$0xff] %v10816_v11 }
 0x2da   :  { %v2381_v30 = vadd.f32 %v2380_v18, %v2292_v35  ;;  %v2471_v16 = vpop.f32.mrf.mxu1  ;;  %v15644_v18 = vld [vmem:[#allocation54_spill] sm:$0xff] }
 0x2dc   :  { %v10819_v28 = vadd.f32 %v2469_v42, %v2381_v30  ;;  %v7301_v42 = vld [vmem:[%s14912_s1 + $0x88] sm:$0xf] }
 0x2de   :  { %v2204_v45 = vpop.f32.mrf.mxu2 }
 0x2df   :  { %v10822_v2 = vadd.f32 %v2204_v45, %v10338_v43  ;;  %v2293_v44 = vpop.f32.mrf.mxu3  ;;  %v8414_v43 = vld [vmem:[%s14912_s1 + $0x94] sm:$0xf0] }
 0x2e0   :  { %v2294_v20 = vadd.f32 %v2293_v44, %v10439_v41  ;;  %v2385_v24 = vpop.f32.mrf.mxu0  ;;  %v7302_v35 = vor.u32 %v8414_v43, %v7301_v42 }
 0x2e1   :  { %15641 = vst [vmem:[#allocation138_spill] sm:$0xff] %v10822_v2 }
 0x2e2   :  { %v2383_v8 = vadd.f32 %v2382_v47, %v2294_v20  ;;  %v2474_v0 = vpop.f32.mrf.mxu1  ;;  %v7429_v20 = vld [vmem:[%s14912_s1 + $0x188] sm:$0xf]  ;;  %2853 = vmatpush.bf16.msra.mxu2 %v7302_v35  ;;  %v15648_v35 = vld [vmem:[#allocation60_spill] sm:$0xff] }
 0x2e3   :  { %2522 = vmatmul.bf16.gmra.mxu2 %v15642_v60  ;;  %2700 = vmatmul.bf16.gmra.mxu0 %v15643_v9 }
 0x2e4   :  { %v10827_v50 = vadd.f32 %v2471_v16, %v2383_v8  ;;  %2611 = vmatmul.bf16.gmra.mxu3 %v15644_v18  ;;  %v8446_v8 = vld [vmem:[%s14912_s1 + $0x194] sm:$0xf0] }
 0x2e5   :  { %8031 = vmatmul.msk.bf16.gmra.mxu1 %vm1555_vm0, %v10332_v48  ;;  %v7430_v30 = vor.u32 %v8446_v8, %v7429_v20 }
 0x2e6   :  { %v2207_v47 = vpop.f32.mrf.mxu2 }
 0x2e7   :  { %v10845_v16 = vadd.f32 %v2207_v47, %v10360_v36  ;;  %v2296_v45 = vpop.f32.mrf.mxu3  ;;  %2942 = vmatpush.bf16.msra.mxu3 %v7430_v30 }
 0x2e8   :  { %v2297_v44 = vadd.f32 %v2296_v45, %v10439_v41  ;;  %v2387_v2 = vpop.f32.mrf.mxu0 }
 0x2e9   :  { %15645 = vst [vmem:[#allocation139_spill] sm:$0xff] %v10845_v16  ;;  %v15647_v16 = vld [vmem:[#allocation59_spill] sm:$0xff] }
 0x2ea   :  { %v2386_v11 = vadd.f32 %v2385_v24, %v2297_v44  ;;  %v2476_v9 = vpop.f32.mrf.mxu1  ;;  %v15649_v24 = vld [vmem:[#allocation58_spill] sm:$0xff] }
 0x2ec   :  { %v10848_v18 = vadd.f32 %v2474_v0, %v2386_v11 }
 0x2ee   :  { %v2209_v42 = vpop.f32.mrf.mxu2 }
 0x2ef   :  { %v10851_v43 = vadd.f32 %v2209_v42, %v10369_v37  ;;  %v2298_v48 = vpop.f32.mrf.mxu3 }
 0x2f0   :  { %v2299_v20 = vadd.f32 %v2298_v48, %v10439_v41  ;;  %v2390_v8 = vpop.f32.mrf.mxu0 }
 0x2f1   :  { %15646 = vst [vmem:[#allocation140_spill] sm:$0xff] %v10851_v43 }
 0x2f2   :  { %v2388_v36 = vadd.f32 %v2387_v2, %v2299_v20  ;;  %v2479_v47 = vpop.f32.mrf.mxu1 }
 0x2f3   :  { %2527 = vmatmul.bf16.gmra.mxu2 %v15647_v16  ;;  %2705 = vmatmul.bf16.gmra.mxu0 %v15648_v35 }
 0x2f4   :  { %v10856_v45 = vadd.f32 %v2476_v9, %v2388_v36  ;;  %2616 = vmatmul.bf16.gmra.mxu3 %v15649_v24 }
 0x2f5   :  { %8032 = vmatmul.msk.bf16.gmra.mxu1 %vm1555_vm0, %v10363_v31 }
 0x2f6   :  { %v2212_v0 = vpop.f32.mrf.mxu2 }
 0x2f7   :  { %v10862_v37 = vadd.f32 %v2212_v0, %v10379_v5  ;;  %v2301_v11 = vpop.f32.mrf.mxu3  ;;  %v15652_v5 = vld [vmem:[#allocation64_spill] sm:$0xff]  ;;  %v15653_v0 = vld [vmem:[#allocation66_spill] sm:$0xff] }
 0x2f8   :  { %v2302_v48 = vadd.f32 %v2301_v11, %v10439_v41  ;;  %v2392_v2 = vpop.f32.mrf.mxu0 }
 0x2f9   :  { %15650 = vst [vmem:[#allocation141_spill] sm:$0xff] %v10862_v37 }
 0x2fa   :  { %v2391_v30 = vadd.f32 %v2390_v8, %v2302_v48  ;;  %v2481_v44 = vpop.f32.mrf.mxu1  ;;  %v15654_v8 = vld [vmem:[#allocation63_spill] sm:$0xff] }
 0x2fc   :  { %v10865_v42 = vadd.f32 %v2479_v47, %v2391_v30 }
 0x2fe   :  { %v2214_v20 = vpop.f32.mrf.mxu2 }
 0x2ff   :  { %v10868_v9 = vadd.f32 %v2214_v20, %v10388_v55  ;;  %v2303_v36 = vpop.f32.mrf.mxu3 }
 0x300   :  { %v2304_v43 = vadd.f32 %v2303_v36, %v10439_v41  ;;  %v2395_v35 = vpop.f32.mrf.mxu0 }
 0x301   :  { %15651 = vst [vmem:[#allocation142_spill] sm:$0xff] %v10868_v9 }
 0x302   :  { %v2393_v31 = vadd.f32 %v2392_v2, %v2304_v43  ;;  %v2484_v24 = vpop.f32.mrf.mxu1 }
 0x303   :  { %2532 = vmatmul.bf16.gmra.mxu2 %v15652_v5  ;;  %2710 = vmatmul.bf16.gmra.mxu0 %v15653_v0 }
 0x304   :  { %v10873_v11 = vadd.f32 %v2481_v44, %v2393_v31  ;;  %2621 = vmatmul.bf16.gmra.mxu3 %v15654_v8 }
 0x305   :  { %8033 = vmatmul.msk.bf16.gmra.mxu1 %vm1555_vm0, %v10382_v13 }
 0x306   :  { %v2217_v47 = vpop.f32.mrf.mxu2 }
 0x307   :  { %v10879_v55 = vadd.f32 %v2217_v47, %v10410_v57  ;;  %v2306_v48 = vpop.f32.mrf.mxu3  ;;  %v15657_v57 = vld [vmem:[#allocation70_spill] sm:$0xff]  ;;  %v15658_v47 = vld [vmem:[#allocation72_spill] sm:$0xff] }
 0x308   :  { %v2307_v30 = vadd.f32 %v2306_v48, %v10439_v41  ;;  %v2397_v43 = vpop.f32.mrf.mxu0 }
 0x309   :  { %15655 = vst [vmem:[#allocation143_spill] sm:$0xff] %v10879_v55 }
 0x30a   :  { %v2396_v2 = vadd.f32 %v2395_v35, %v2307_v30  ;;  %v2486_v20 = vpop.f32.mrf.mxu1  ;;  %v15659_v35 = vld [vmem:[#allocation69_spill] sm:$0xff] }
 0x30c   :  { %v10882_v36 = vadd.f32 %v2484_v24, %v2396_v2 }
 0x30e   :  { %v2219_v9 = vpop.f32.mrf.mxu2 }
 0x30f   :  { %v10885_v31 = vadd.f32 %v2219_v9, %v10419_v14  ;;  %v2308_v44 = vpop.f32.mrf.mxu3 }
 0x310   :  { %v2309_v37 = vadd.f32 %v2308_v44, %v10439_v41  ;;  %v2400_v0 = vpop.f32.mrf.mxu0 }
 0x311   :  { %15656 = vst [vmem:[#allocation144_spill] sm:$0xff] %v10885_v31 }
 0x312   :  { %v2398_v13 = vadd.f32 %v2397_v43, %v2309_v37  ;;  %v2489_v8 = vpop.f32.mrf.mxu1 }
 0x313   :  { %2537 = vmatmul.bf16.gmra.mxu2 %v15657_v57  ;;  %2715 = vmatmul.bf16.gmra.mxu0 %v15658_v47 }
 0x314   :  { %v10890_v48 = vadd.f32 %v2486_v20, %v2398_v13  ;;  %2626 = vmatmul.bf16.gmra.mxu3 %v15659_v35 }
 0x315   :  { %8034 = vmatmul.msk.bf16.gmra.mxu1 %vm1555_vm0, %v10413_v51 }
 0x316   :  { %v2222_v24 = vpop.f32.mrf.mxu2 }
 0x317   :  { %v10896_v14 = vadd.f32 %v2222_v24, %v10429_v32  ;;  %v2311_v9 = vpop.f32.mrf.mxu3  ;;  %v15663_v32 = vld [vmem:[#allocation76_spill] sm:$0xff]  ;;  %v15664_v24 = vld [vmem:[#allocation78_spill] sm:$0xff] }
 0x318   :  { %v2312_v30 = vadd.f32 %v2311_v9, %v10439_v41  ;;  %v2402_v37 = vpop.f32.mrf.mxu0 }
 0x319   :  { %15660 = vst [vmem:[#allocation145_spill] sm:$0xff] %v10896_v14 }
 0x31a   :  { %v2401_v43 = vadd.f32 %v2400_v0, %v2312_v30  ;;  %v2491_v2 = vpop.f32.mrf.mxu1  ;;  %v15666_v0 = vld [vmem:[#allocation75_spill] sm:$0xff] }
 0x31c   :  { %v10899_v44 = vadd.f32 %v2489_v8, %v2401_v43 }
 0x31e   :  { %15661 = vst [vmem:[#allocation146_spill] sm:$0xff] %v10899_v44  ;;  %v2224_v31 = vpop.f32.mrf.mxu2  ;;  %v15669_v44 = vld [vmem:[#allocation83_spill] sm:$0xff] }
 0x31f   :  { %v10902_v13 = vadd.f32 %v2224_v31, %v10452_v53  ;;  %v2313_v20 = vpop.f32.mrf.mxu3 }
 0x320   :  { %v2314_v55 = vadd.f32 %v2313_v20, %v10439_v41  ;;  %v2681_v47 = vpop.f32.mrf.mxu0 }
 0x321   :  { %15662 = vst [vmem:[#allocation147_spill] sm:$0xff] %v10902_v13  ;;  %v7397_v13 = vld [vmem:[%s14912_s1 + $0x148] sm:$0xf] }
 0x322   :  { %v2403_v51 = vadd.f32 %v2402_v37, %v2314_v55  ;;  %v2770_v35 = vpop.f32.mrf.mxu1  ;;  %v7285_v55 = vld [vmem:[%s14912_s1 + $0x68] sm:$0xf] }
 0x323   :  { %2542 = vmatmul.bf16.gmra.mxu2 %v15663_v32  ;;  %2720 = vmatmul.bf16.gmra.mxu0 %v15664_v24  ;;  %v7413_v37 = vld [vmem:[%s14912_s1 + $0x168] sm:$0xf] }
 0x324   :  { %v10907_v9 = vadd.f32 %v2491_v2, %v2403_v51  ;;  %2631 = vmatmul.bf16.gmra.mxu3 %v15666_v0  ;;  %v8410_v51 = vld [vmem:[%s14912_s1 + $0x74] sm:$0xf0] }
 0x325   :  { %8035 = vmatmul.msk.bf16.gmra.mxu1 %vm1555_vm0, %v10432_v19  ;;  %v7286_v2 = vor.u32 %v8410_v51, %v7285_v55  ;;  %v8438_v55 = vld [vmem:[%s14912_s1 + $0x154] sm:$0xf0] }
 0x326   :  { %15665 = vst [vmem:[#allocation148_spill] sm:$0xff] %v10907_v9  ;;  %v2503_v8 = vpop.f32.mrf.mxu2  ;;  %v7398_v14 = vor.u32 %v8438_v55, %v7397_v13  ;;  %v15668_v9 = vld [vmem:[#allocation82_spill] sm:$0xff] }
 0x327   :  { %v2504_v53 = vadd.f32 %v2503_v8, %v10462_v7  ;;  %v2592_v31 = vpop.f32.mrf.mxu3  ;;  %v8442_v7 = vld [vmem:[%s14912_s1 + $0x174] sm:$0xf0]  ;;  %v7269_v8 = vld [vmem:[%s14912_s1 + $0x48] sm:$0xf]  ;;  %2854 = vmatpush.bf16.msra.mxu2 %v7286_v2  ;;  %v15670_v2 = vld [vmem:[#allocation81_spill] sm:$0xff] }
 0x328   :  { %v2683_v30 = vpop.f32.mrf.mxu0 }
 0x329   :  { %v2593_v41 = vadd.f32 %v2592_v31, %v2504_v53  ;;  %v7414_v53 = vor.u32 %v8442_v7, %v7413_v37  ;;  %v8406_v31 = vld [vmem:[%s14912_s1 + $0x54] sm:$0xf0] }
 0x32a   :  { %v2772_v43 = vpop.f32.mrf.mxu1 }
 0x32b   :  { %v2682_v20 = vadd.f32 %v2681_v47, %v2593_v41  ;;  %v7270_v47 = vor.u32 %v8406_v31, %v7269_v8  ;;  %2943 = vmatpush.bf16.msra.mxu3 %v7414_v53 }
 0x32d   :  { %v10937_v51 = vadd.f32 %v2770_v35, %v2682_v20  ;;  %2855 = vmatpush.bf16.msra.mxu2 %v7270_v47 }
 0x32e   :  { %v2505_v41 = vpop.f32.mrf.mxu2 }
 0x32f   :  { %15667 = vst [vmem:[#allocation149_spill] sm:$0xff] %v10937_v51  ;;  %v2506_v37 = vadd.f32 %v2505_v41, %v10479_v12  ;;  %v2594_v7 = vpop.f32.mrf.mxu3  ;;  %2944 = vmatpush.bf16.msra.mxu3 %v7398_v14  ;;  %v15674_v51 = vld [vmem:[#allocation88_spill] sm:$0xff] }
 0x330   :  { %v2686_v24 = vpop.f32.mrf.mxu0 }
 0x331   :  { %v2595_v19 = vadd.f32 %v2594_v7, %v2506_v37  ;;  %v15673_v7 = vld [vmem:[#allocation87_spill] sm:$0xff] }
 0x332   :  { %v2775_v0 = vpop.f32.mrf.mxu1 }
 0x333   :  { %v2684_v32 = vadd.f32 %v2683_v30, %v2595_v19  ;;  %2547 = vmatmul.bf16.gmra.mxu2 %v15668_v9  ;;  %2725 = vmatmul.bf16.gmra.mxu0 %v15669_v44 }
 0x334   :  { %2636 = vmatmul.bf16.gmra.mxu3 %v15670_v2 }
 0x335   :  { %v10943_v35 = vadd.f32 %v2772_v43, %v2684_v32  ;;  %8036 = vmatmul.msk.bf16.gmra.mxu1 %vm1555_vm0, %v10473_v25 }
 0x336   :  { %v2508_v13 = vpop.f32.mrf.mxu2 }
 0x337   :  { %15671 = vst [vmem:[#allocation83_spill] sm:$0xff] %v10943_v35  ;;  %v2509_v12 = vadd.f32 %v2508_v13, %v10487_v27  ;;  %v2597_v20 = vpop.f32.mrf.mxu3  ;;  %v15675_v27 = vld [vmem:[#allocation86_spill] sm:$0xff]  ;;  %v15680_v35 = vld [vmem:[#allocation91_spill] sm:$0xff] }
 0x338   :  { %v2688_v8 = vpop.f32.mrf.mxu0 }
 0x339   :  { %v2598_v53 = vadd.f32 %v2597_v20, %v2509_v12 }
 0x33a   :  { %v2777_v31 = vpop.f32.mrf.mxu1 }
 0x33b   :  { %v2687_v14 = vadd.f32 %v2686_v24, %v2598_v53  ;;  %v7253_v24 = vld [vmem:[%s14912_s1 + $0x28] sm:$0xf] }
 0x33d   :  { %v10948_v19 = vadd.f32 %v2775_v0, %v2687_v14  ;;  %v8402_v0 = vld [vmem:[%s14912_s1 + $0x34] sm:$0xf0] }
 0x33e   :  { %v2510_v30 = vpop.f32.mrf.mxu2  ;;  %v7254_v13 = vor.u32 %v8402_v0, %v7253_v24 }
 0x33f   :  { %15672 = vst [vmem:[#allocation81_spill] sm:$0xff] %v10948_v19  ;;  %v2511_v55 = vadd.f32 %v2510_v30, %v10504_v38  ;;  %v2599_v47 = vpop.f32.mrf.mxu3  ;;  %v7381_v30 = vld [vmem:[%s14912_s1 + $0x128] sm:$0xf]  ;;  %v15679_v19 = vld [vmem:[#allocation93_spill] sm:$0xff] }
 0x340   :  { %v2691_v41 = vpop.f32.mrf.mxu0  ;;  %2856 = vmatpush.bf16.msra.mxu2 %v7254_v13 }
 0x341   :  { %v2600_v32 = vadd.f32 %v2599_v47, %v2511_v55 }
 0x342   :  { %v2780_v43 = vpop.f32.mrf.mxu1 }
 0x343   :  { %v2689_v37 = vadd.f32 %v2688_v8, %v2600_v32  ;;  %2552 = vmatmul.bf16.gmra.mxu2 %v15673_v7  ;;  %2730 = vmatmul.bf16.gmra.mxu0 %v15674_v51 }
 0x344   :  { %2641 = vmatmul.bf16.gmra.mxu3 %v15675_v27 }
 0x345   :  { %v10960_v38 = vadd.f32 %v2777_v31, %v2689_v37  ;;  %8037 = vmatmul.msk.bf16.gmra.mxu1 %vm1555_vm0, %v10498_v52  ;;  %v8434_v31 = vld [vmem:[%s14912_s1 + $0x134] sm:$0xf0] }
 0x346   :  { %v2513_v12 = vpop.f32.mrf.mxu2  ;;  %v7382_v47 = vor.u32 %v8434_v31, %v7381_v30 }
 0x347   :  { %15676 = vst [vmem:[#allocation86_spill] sm:$0xff] %v10960_v38  ;;  %v2514_v20 = vadd.f32 %v2513_v12, %v10524_v54  ;;  %v2602_v8 = vpop.f32.mrf.mxu3  ;;  %v15678_v38 = vld [vmem:[#allocation92_spill] sm:$0xff] }
 0x348   :  { %v2693_v53 = vpop.f32.mrf.mxu0  ;;  %2945 = vmatpush.bf16.msra.mxu3 %v7382_v47 }
 0x349   :  { %v2603_v14 = vadd.f32 %v2602_v8, %v2514_v20 }
 0x34a   :  { %v2782_v55 = vpop.f32.mrf.mxu1 }
 0x34b   :  { %v2692_v32 = vadd.f32 %v2691_v41, %v2603_v14 }
 0x34d   :  { %v10971_v37 = vadd.f32 %v2780_v43, %v2692_v32 }
 0x34e   :  { %v2515_v24 = vpop.f32.mrf.mxu2 }
 0x34f   :  { %15677 = vst [vmem:[#allocation150_spill] sm:$0xff] %v10971_v37  ;;  %v2516_v54 = vadd.f32 %v2515_v24, %v10541_v26  ;;  %v2604_v0 = vpop.f32.mrf.mxu3  ;;  %v15684_v37 = vld [vmem:[#allocation98_spill] sm:$0xff] }
 0x350   :  { %v2696_v13 = vpop.f32.mrf.mxu0 }
 0x351   :  { %v2605_v12 = vadd.f32 %v2604_v0, %v2516_v54 }
 0x352   :  { %v2785_v20 = vpop.f32.mrf.mxu1 }
 0x353   :  { %v2694_v8 = vadd.f32 %v2693_v53, %v2605_v12  ;;  %2557 = vmatmul.bf16.gmra.mxu2 %v15678_v38  ;;  %2735 = vmatmul.bf16.gmra.mxu0 %v15679_v19 }
 0x354   :  { %2646 = vmatmul.bf16.gmra.mxu3 %v15680_v35 }
 0x355   :  { %v10977_v51 = vadd.f32 %v2782_v55, %v2694_v8  ;;  %8038 = vmatmul.msk.bf16.gmra.mxu1 %vm1555_vm0, %v10535_v34 }
 0x356   :  { %v2518_v41 = vpop.f32.mrf.mxu2 }
 0x357   :  { %15681 = vst [vmem:[#allocation93_spill] sm:$0xff] %v10977_v51  ;;  %v2519_v43 = vadd.f32 %v2518_v41, %v10549_v40  ;;  %v2607_v26 = vpop.f32.mrf.mxu3  ;;  %v15683_v51 = vld [vmem:[#allocation97_spill] sm:$0xff]  ;;  %v15685_v40 = vld [vmem:[#allocation96_spill] sm:$0xff] }
 0x358   :  { %v2698_v14 = vpop.f32.mrf.mxu0 }
 0x359   :  { %v2608_v30 = vadd.f32 %v2607_v26, %v2519_v43 }
 0x35a   :  { %v2787_v31 = vpop.f32.mrf.mxu1 }
 0x35b   :  { %v2697_v47 = vadd.f32 %v2696_v13, %v2608_v30  ;;  %v7237_v13 = vld [vmem:[%s14912_s1 + $0x8] sm:$0xf] }
 0x35d   :  { %v10982_v53 = vadd.f32 %v2785_v20, %v2697_v47  ;;  %v8398_v20 = vld [vmem:[%s14912_s1 + $0x14] sm:$0xf0] }
 0x35e   :  { %v2520_v32 = vpop.f32.mrf.mxu2  ;;  %v7238_v41 = vor.u32 %v8398_v20, %v7237_v13 }
 0x35f   :  { %15682 = vst [vmem:[#allocation91_spill] sm:$0xff] %v10982_v53  ;;  %v2521_v24 = vadd.f32 %v2520_v32, %v10566_v61  ;;  %v2609_v54 = vpop.f32.mrf.mxu3  ;;  %v7365_v32 = vld [vmem:[%s14912_s1 + $0x108] sm:$0xf]  ;;  %v15696_v53 = vld [vmem:[#allocation107_spill] sm:$0xff] }
 0x360   :  { %v2701_v0 = vpop.f32.mrf.mxu0  ;;  %2857 = vmatpush.bf16.msra.mxu2 %v7238_v41 }
 0x361   :  { %v2610_v55 = vadd.f32 %v2609_v54, %v2521_v24 }
 0x362   :  { %v2790_v12 = vpop.f32.mrf.mxu1 }
 0x363   :  { %v2699_v8 = vadd.f32 %v2698_v14, %v2610_v55  ;;  %2562 = vmatmul.bf16.gmra.mxu2 %v15683_v51  ;;  %2740 = vmatmul.bf16.gmra.mxu0 %v15684_v37 }
 0x364   :  { %2651 = vmatmul.bf16.gmra.mxu3 %v15685_v40 }
 0x365   :  { %v10994_v61 = vadd.f32 %v2787_v31, %v2699_v8  ;;  %8039 = vmatmul.msk.bf16.gmra.mxu1 %vm1555_vm0, %v10560_v46  ;;  %v8430_v31 = vld [vmem:[%s14912_s1 + $0x114] sm:$0xf0] }
 0x366   :  { %v2523_v43 = vpop.f32.mrf.mxu2  ;;  %v7366_v54 = vor.u32 %v8430_v31, %v7365_v32  ;;  %v8490_v8 = vld [vmem:[%s14912_s1 + $0x2f4] sm:$0xf0] }
 0x367   :  { %15686 = vst [vmem:[#allocation96_spill] sm:$0xff] %v10994_v61  ;;  %v2524_v26 = vadd.f32 %v2523_v43, %v10589_v17  ;;  %v2612_v14 = vpop.f32.mrf.mxu3  ;;  %v7605_v17 = vld [vmem:[%s14912_s1 + $0x2e8] sm:$0xf]  ;;  %v8486_v31 = vld [vmem:[%s14912_s1 + $0x2d4] sm:$0xf0] }
 0x368   :  { %v2703_v30 = vpop.f32.mrf.mxu0  ;;  %2946 = vmatpush.bf16.msra.mxu3 %v7366_v54  ;;  %v7606_v20 = vor.u32 %v8490_v8, %v7605_v17  ;;  %v7733_v43 = vld [vmem:[%s14912_s1 + $0x3e8] sm:$0xf]  ;;  %v8518_v8 = vld [vmem:[%s14912_s1 + $0x3d4] sm:$0xf0] }
 0x369   :  { %v2613_v47 = vadd.f32 %v2612_v14, %v2524_v26 }
 0x36a   :  { %v2792_v24 = vpop.f32.mrf.mxu1  ;;  %3028 = vmatpush.bf16.msra.mxu0 %v7606_v20 }
 0x36b   :  { %v2702_v55 = vadd.f32 %v2701_v0, %v2613_v47  ;;  %v8522_v0 = vld [vmem:[%s14912_s1 + $0x3f4] sm:$0xf0] }
 0x36c   :  { %v7734_v47 = vor.u32 %v8522_v0, %v7733_v43  ;;  %v15689_v43 = vld [vmem:[#allocation104_spill] sm:$0xff] }
 0x36d   :  { %v11011_v13 = vadd.f32 %v2790_v12, %v2702_v55  ;;  %v7589_v12 = vld [vmem:[%s14912_s1 + $0x2c8] sm:$0xf] }
 0x36e   :  { %v2525_v41 = vpop.f32.mrf.mxu2  ;;  %3117 = vmatpush.bf16.msra.mxu1 %v7734_v47  ;;  %v7590_v55 = vor.u32 %v8486_v31, %v7589_v12  ;;  %v7701_v31 = vld [vmem:[%s14912_s1 + $0x3a8] sm:$0xf] }
 0x36f   :  { %15687 = vst [vmem:[#allocation151_spill] sm:$0xff] %v11011_v13  ;;  %v2526_v26 = vadd.f32 %v2525_v41, %v10615_v58  ;;  %v2614_v14 = vpop.f32.mrf.mxu3  ;;  %v7717_v58 = vld [vmem:[%s14912_s1 + $0x3c8] sm:$0xf]  ;;  %v15688_v41 = vld [vmem:[#allocation103_spill] sm:$0xff] }
 0x370   :  { %v2706_v32 = vpop.f32.mrf.mxu0  ;;  %v7718_v0 = vor.u32 %v8518_v8, %v7717_v58  ;;  %v15690_v13 = vld [vmem:[#allocation102_spill] sm:$0xff]  ;;  %3029 = vmatpush.bf16.msra.mxu0 %v7590_v55  ;;  %v15692_v55 = vld [vmem:[#allocation123_spill] sm:$0xff] }
 0x371   :  { %v2615_v54 = vadd.f32 %v2614_v14, %v2526_v26  ;;  %v7573_v26 = vld [vmem:[%s14912_s1 + $0x2a8] sm:$0xf]  ;;  %v8482_v14 = vld [vmem:[%s14912_s1 + $0x2b4] sm:$0xf0] }
 0x372   :  { %v2795_v17 = vpop.f32.mrf.mxu1  ;;  %3118 = vmatpush.bf16.msra.mxu1 %v7718_v0  ;;  %v8478_v0 = vld [vmem:[%s14912_s1 + $0x294] sm:$0xf0] }
 0x373   :  { %v2704_v20 = vadd.f32 %v2703_v30, %v2615_v54  ;;  %2567 = vmatmul.bf16.gmra.mxu2 %v15688_v41  ;;  %2745 = vmatmul.bf16.gmra.mxu0 %v15689_v43  ;;  %v7574_v30 = vor.u32 %v8482_v14, %v7573_v26  ;;  %v8514_v54 = vld [vmem:[%s14912_s1 + $0x3b4] sm:$0xf0] }
 0x374   :  { %2656 = vmatmul.bf16.gmra.mxu3 %v15690_v13  ;;  %v7702_v61 = vor.u32 %v8514_v54, %v7701_v31  ;;  %v15699_v43 = vld [vmem:[#allocation112_spill] sm:$0xff]  ;;  %v15701_v13 = vld [vmem:[#allocation111_spill] sm:$0xff] }
 0x375   :  { %v11041_v47 = vadd.f32 %v2792_v24, %v2704_v20  ;;  %8040 = vmatmul.msk.bf16.gmra.mxu1 %vm1555_vm0, %v10603_v62  ;;  %3030 = vmatpush.bf16.msra.mxu0 %v7574_v30  ;;  %v7557_v20 = vld [vmem:[%s14912_s1 + $0x288] sm:$0xf]  ;;  %v8510_v30 = vld [vmem:[%s14912_s1 + $0x394] sm:$0xf0]  ;;  %v15700_v62 = vld [vmem:[#allocation113_spill] sm:$0xff] }
 0x376   :  { %v2528_v12 = vpop.f32.mrf.mxu2  ;;  %v7558_v14 = vor.u32 %v8478_v0, %v7557_v20  ;;  %3119 = vmatpush.bf16.msra.mxu1 %v7702_v61  ;;  %v7669_v0 = vld [vmem:[%s14912_s1 + $0x368] sm:$0xf] }
 0x377   :  { %15691 = vst [vmem:[#allocation152_spill] sm:$0xff] %v11041_v47  ;;  %v2529_v58 = vadd.f32 %v2528_v12, %v15692_v55  ;;  %v2617_v8 = vpop.f32.mrf.mxu3  ;;  %v7685_v12 = vld [vmem:[%s14912_s1 + $0x388] sm:$0xf] }
 0x378   :  { %v2708_v24 = vpop.f32.mrf.mxu0  ;;  %v7686_v54 = vor.u32 %v8510_v30, %v7685_v12  ;;  %v7541_v55 = vld [vmem:[%s14912_s1 + $0x268] sm:$0xf] }
 0x379   :  { %v2618_v26 = vadd.f32 %v2617_v8, %v2529_v58  ;;  %3031 = vmatpush.bf16.msra.mxu0 %v7558_v14  ;;  %v8474_v58 = vld [vmem:[%s14912_s1 + $0x274] sm:$0xf0] }
 0x37a   :  { %v2797_v47 = vpop.f32.mrf.mxu1  ;;  %v7542_v8 = vor.u32 %v8474_v58, %v7541_v55  ;;  %3120 = vmatpush.bf16.msra.mxu1 %v7686_v54 }
 0x37b   :  { %v2707_v31 = vadd.f32 %v2706_v32, %v2618_v26  ;;  %v8506_v32 = vld [vmem:[%s14912_s1 + $0x374] sm:$0xf0] }
 0x37c   :  { %v7670_v12 = vor.u32 %v8506_v32, %v7669_v0  ;;  %v15694_v0 = vld [vmem:[#allocation108_spill] sm:$0xff]  ;;  %v15695_v32 = vld [vmem:[#allocation109_spill] sm:$0xff] }
 0x37d   :  { %v11070_v61 = vadd.f32 %v2795_v17, %v2707_v31  ;;  %3032 = vmatpush.bf16.msra.mxu0 %v7542_v8  ;;  %v7525_v17 = vld [vmem:[%s14912_s1 + $0x248] sm:$0xf]  ;;  %v8470_v31 = vld [vmem:[%s14912_s1 + $0x254] sm:$0xf0] }
 0x37e   :  { %v2530_v20 = vpop.f32.mrf.mxu2  ;;  %v7526_v55 = vor.u32 %v8470_v31, %v7525_v17  ;;  %3121 = vmatpush.bf16.msra.mxu1 %v7670_v12  ;;  %v8502_v8 = vld [vmem:[%s14912_s1 + $0x354] sm:$0xf0] }
 0x37f   :  { %15693 = vst [vmem:[#allocation123_spill] sm:$0xff] %v11070_v61  ;;  %v2531_v26 = vadd.f32 %v2530_v20, %v10664_v21  ;;  %v2619_v14 = vpop.f32.mrf.mxu3  ;;  %v7653_v21 = vld [vmem:[%s14912_s1 + $0x348] sm:$0xf]  ;;  %v8466_v31 = vld [vmem:[%s14912_s1 + $0x234] sm:$0xf0] }
 0x380   :  { %v2711_v30 = vpop.f32.mrf.mxu0  ;;  %v7654_v61 = vor.u32 %v8502_v8, %v7653_v21  ;;  %v7637_v21 = vld [vmem:[%s14912_s1 + $0x328] sm:$0xf] }
 0x381   :  { %v2620_v54 = vadd.f32 %v2619_v14, %v2531_v26  ;;  %3033 = vmatpush.bf16.msra.mxu0 %v7526_v55  ;;  %v7861_v26 = vld [vmem:[%s14912_s1 + $0x4e8] sm:$0xf]  ;;  %v8554_v14 = vld [vmem:[%s14912_s1 + $0x4f4] sm:$0xf0] }
 0x382   :  { %v2800_v58 = vpop.f32.mrf.mxu1  ;;  %v7862_v17 = vor.u32 %v8554_v14, %v7861_v26  ;;  %3122 = vmatpush.bf16.msra.mxu1 %v7654_v61  ;;  %v7493_v61 = vld [vmem:[%s14912_s1 + $0x208] sm:$0xf] }
 0x383   :  { %v2709_v20 = vadd.f32 %v2708_v24, %v2620_v54  ;;  %2572 = vmatmul.bf16.gmra.mxu2 %v15694_v0  ;;  %2750 = vmatmul.bf16.gmra.mxu0 %v15695_v32  ;;  %v7509_v24 = vld [vmem:[%s14912_s1 + $0x228] sm:$0xf] }
 0x384   :  { %2661 = vmatmul.bf16.gmra.mxu3 %v15696_v53  ;;  %v7510_v55 = vor.u32 %v8466_v31, %v7509_v24  ;;  %3206 = vmatpush.bf16.msrb.mxu2 %v7862_v17  ;;  %v8462_v24 = vld [vmem:[%s14912_s1 + $0x214] sm:$0xf0] }
 0x385   :  { %v11103_v12 = vadd.f32 %v2797_v47, %v2709_v20  ;;  %8041 = vmatmul.msk.bf16.gmra.mxu1 %vm1555_vm0, %v10652_v1  ;;  %v8498_v47 = vld [vmem:[%s14912_s1 + $0x334] sm:$0xf0]  ;;  %v7494_v17 = vor.u32 %v8462_v24, %v7493_v61 }
 0x386   :  { %v2533_v54 = vpop.f32.mrf.mxu2  ;;  %v7638_v26 = vor.u32 %v8498_v47, %v7637_v21  ;;  %3034 = vmatpush.bf16.msra.mxu0 %v7510_v55  ;;  %v7621_v21 = vld [vmem:[%s14912_s1 + $0x308] sm:$0xf]  ;;  %v8494_v47 = vld [vmem:[%s14912_s1 + $0x314] sm:$0xf0] }
 0x387   :  { %15697 = vst [vmem:[#allocation153_spill] sm:$0xff] %v11103_v12  ;;  %v2534_v8 = vadd.f32 %v2533_v54, %v10702_v39  ;;  %v2622_v20 = vpop.f32.mrf.mxu3  ;;  %v7989_v12 = vld [vmem:[%s14912_s1 + $0x5e8] sm:$0xf]  ;;  %v8586_v39 = vld [vmem:[%s14912_s1 + $0x5f4] sm:$0xf0] }
 0x388   :  { %v2713_v14 = vpop.f32.mrf.mxu0  ;;  %v7990_v55 = vor.u32 %v8586_v39, %v7989_v12  ;;  %3123 = vmatpush.bf16.msra.mxu1 %v7638_v26 }
 0x389   :  { %v2623_v31 = vadd.f32 %v2622_v20, %v2534_v8  ;;  %v7622_v20 = vor.u32 %v8494_v47, %v7621_v21 }
 0x38a   :  { %v2802_v54 = vpop.f32.mrf.mxu1  ;;  %3295 = vmatpush.bf16.msrb.mxu3 %v7990_v55  ;;  %3035 = vmatpush.bf16.msra.mxu0 %v7494_v17 }
 0x38b   :  { %v2712_v8 = vadd.f32 %v2711_v30, %v2623_v31  ;;  %v15703_v31 = vld [vmem:[#allocation128_spill] sm:$0xff] }
 0x38c   :  { %3124 = vmatpush.bf16.msra.mxu1 %v7622_v20 }
 0x38d   :  { %v11135_v32 = vadd.f32 %v2800_v58, %v2712_v8 }
 0x38e   :  { %v2535_v1 = vpop.f32.mrf.mxu2 }
 0x38f   :  { %15698 = vst [vmem:[#allocation154_spill] sm:$0xff] %v11135_v32  ;;  %v2536_v61 = vadd.f32 %v2535_v1, %v10719_v4  ;;  %v2624_v12 = vpop.f32.mrf.mxu3  ;;  %v15706_v32 = vld [vmem:[#allocation37_spill] sm:$0xff] }
 0x390   :  { %v2716_v26 = vpop.f32.mrf.mxu0 }
 0x391   :  { %v2625_v24 = vadd.f32 %v2624_v12, %v2536_v61 }
 0x392   :  { %v2805_v39 = vpop.f32.mrf.mxu1 }
 0x393   :  { %v2714_v53 = vadd.f32 %v2713_v14, %v2625_v24  ;;  %2577 = vmatmul.bf16.gmra.mxu2 %v15699_v43  ;;  %2755 = vmatmul.bf16.gmra.mxu0 %v15700_v62 }
 0x394   :  { %2666 = vmatmul.bf16.gmra.mxu3 %v15701_v13 }
 0x395   :  { %v11141_v30 = vadd.f32 %v2802_v54, %v2714_v53  ;;  %8042 = vmatmul.msk.bf16.gmra.mxu1 %vm1555_vm0, %v15703_v31 }
 0x396   :  { %v2538_v58 = vpop.f32.mrf.mxu2 }
 0x397   :  { %15702 = vst [vmem:[#allocation111_spill] sm:$0xff] %v11141_v30  ;;  %v2539_v17 = vadd.f32 %v2538_v58, %v10727_v22  ;;  %v2627_v4 = vpop.f32.mrf.mxu3  ;;  %v15705_v30 = vld [vmem:[#allocation6_spill] sm:$0xff]  ;;  %v15707_v22 = vld [vmem:[#allocation8_spill] sm:$0xff] }
 0x398   :  { %v2718_v1 = vpop.f32.mrf.mxu0 }
 0x399   :  { %v2628_v55 = vadd.f32 %v2627_v4, %v2539_v17 }
 0x39a   :  { %v2807_v21 = vpop.f32.mrf.mxu1 }
 0x39b   :  { %v2717_v47 = vadd.f32 %v2716_v26, %v2628_v55  ;;  %v7845_v26 = vld [vmem:[%s14912_s1 + $0x4c8] sm:$0xf] }
 0x39d   :  { %v11146_v14 = vadd.f32 %v2805_v39, %v2717_v47  ;;  %v8550_v39 = vld [vmem:[%s14912_s1 + $0x4d4] sm:$0xf0] }
 0x39e   :  { %v2540_v8 = vpop.f32.mrf.mxu2  ;;  %v7846_v58 = vor.u32 %v8550_v39, %v7845_v26 }
 0x39f   :  { %15704 = vst [vmem:[#allocation155_spill] sm:$0xff] %v11146_v14  ;;  %v2541_v20 = vadd.f32 %v2540_v8, %v10735_v33  ;;  %v2629_v61 = vpop.f32.mrf.mxu3  ;;  %v7973_v8 = vld [vmem:[%s14912_s1 + $0x5c8] sm:$0xf]  ;;  %v15711_v14 = vld [vmem:[#allocation41_spill] sm:$0xff] }
 0x3a0   :  { %v2721_v12 = vpop.f32.mrf.mxu0  ;;  %3207 = vmatpush.bf16.msrb.mxu2 %v7846_v58 }
 0x3a1   :  { %v2630_v53 = vadd.f32 %v2629_v61, %v2541_v20  ;;  %v8582_v20 = vld [vmem:[%s14912_s1 + $0x5d4] sm:$0xf0] }
 0x3a2   :  { %v2810_v54 = vpop.f32.mrf.mxu1  ;;  %v7974_v61 = vor.u32 %v8582_v20, %v7973_v8 }
 0x3a3   :  { %v2719_v24 = vadd.f32 %v2718_v1, %v2630_v53  ;;  %2858 = vmatmul.bf16.vlgmr.msra.gmra.mxu2 %v15705_v30  ;;  %3036 = vmatmul.bf16.vlgmr.msra.gmra.mxu0 %v15706_v32  ;;  %v15712_v32 = vld [vmem:[#allocation12_spill] sm:$0xff] }
 0x3a4   :  { %2947 = vmatmul.bf16.vlgmr.msra.gmra.mxu3 %v15707_v22 }
 0x3a5   :  { %v11158_v33 = vadd.f32 %v2807_v21, %v2719_v24  ;;  %3125 = vmatmul.bf16.vlgmr.msra.gmra.mxu1 %v15622_v15  ;;  %3296 = vmatpush.bf16.msrb.mxu3 %v7974_v61 }
 0x3a6   :  { %v2543_v17 = vpop.f32.mrf.mxu2 }
 0x3a7   :  { %15708 = vst [vmem:[#allocation6_spill] sm:$0xff] %v11158_v33  ;;  %v2544_v4 = vadd.f32 %v2543_v17, %v10756_v6  ;;  %v2632_v1 = vpop.f32.mrf.mxu3  ;;  %v15710_v33 = vld [vmem:[#allocation10_spill] sm:$0xff] }
 0x3a8   :  { %v2723_v55 = vpop.f32.mrf.mxu0 }
 0x3a9   :  { %v2633_v47 = vadd.f32 %v2632_v1, %v2544_v4 }
 0x3aa   :  { %v2812_v21 = vpop.f32.mrf.mxu1 }
 0x3ab   :  { %v2722_v53 = vadd.f32 %v2721_v12, %v2633_v47 }
 0x3ad   :  { %v11168_v24 = vadd.f32 %v2810_v54, %v2722_v53 }
 0x3ae   :  { %v2545_v26 = vpop.f32.mrf.mxu2 }
 0x3af   :  { %15709 = vst [vmem:[#allocation156_spill] sm:$0xff] %v11168_v24  ;;  %v2546_v6 = vadd.f32 %v2545_v26, %v10764_v23  ;;  %v2634_v39 = vpop.f32.mrf.mxu3  ;;  %v15716_v24 = vld [vmem:[#allocation45_spill] sm:$0xff] }
 0x3b0   :  { %v2726_v58 = vpop.f32.mrf.mxu0 }
 0x3b1   :  { %v2635_v17 = vadd.f32 %v2634_v39, %v2546_v6 }
 0x3b2   :  { %v2815_v4 = vpop.f32.mrf.mxu1 }
 0x3b3   :  { %v2724_v1 = vadd.f32 %v2723_v55, %v2635_v17  ;;  %2863 = vmatmul.bf16.gmra.mxu2 %v15710_v33  ;;  %3041 = vmatmul.bf16.gmra.mxu0 %v15711_v14  ;;  %v7239_v14 = vld [vmem:[%s14912_s1 + $0x18] sm:$0xf0] }
 0x3b4   :  { %2952 = vmatmul.bf16.gmra.mxu3 %v15712_v32 }
 0x3b5   :  { %v11174_v15 = vadd.f32 %v2812_v21, %v2724_v1  ;;  %3130 = vmatmul.bf16.gmra.mxu1 %v15627_v59 }
 0x3b6   :  { %v2548_v12 = vpop.f32.mrf.mxu2 }
 0x3b7   :  { %15713 = vst [vmem:[#allocation10_spill] sm:$0xff] %v11174_v15  ;;  %v2549_v54 = vadd.f32 %v2548_v12, %v10773_v3  ;;  %v2637_v47 = vpop.f32.mrf.mxu3  ;;  %v15715_v15 = vld [vmem:[#allocation14_spill] sm:$0xff]  ;;  %v15717_v3 = vld [vmem:[#allocation16_spill] sm:$0xff] }
 0x3b8   :  { %v2728_v23 = vpop.f32.mrf.mxu0 }
 0x3b9   :  { %v2638_v8 = vadd.f32 %v2637_v47, %v2549_v54 }
 0x3ba   :  { %v2817_v20 = vpop.f32.mrf.mxu1 }
 0x3bb   :  { %v2727_v61 = vadd.f32 %v2726_v58, %v2638_v8  ;;  %v7829_v58 = vld [vmem:[%s14912_s1 + $0x4a8] sm:$0xf] }
 0x3bd   :  { %v11178_v53 = vadd.f32 %v2815_v4, %v2727_v61  ;;  %v8546_v4 = vld [vmem:[%s14912_s1 + $0x4b4] sm:$0xf0] }
 0x3be   :  { %v2550_v55 = vpop.f32.mrf.mxu2  ;;  %v7830_v12 = vor.u32 %v8546_v4, %v7829_v58 }
 0x3bf   :  { %15714 = vst [vmem:[#allocation157_spill] sm:$0xff] %v11178_v53  ;;  %v2551_v26 = vadd.f32 %v2550_v55, %v10781_v63  ;;  %v2639_v6 = vpop.f32.mrf.mxu3  ;;  %v7957_v55 = vld [vmem:[%s14912_s1 + $0x5a8] sm:$0xf]  ;;  %v15721_v53 = vld [vmem:[#allocation49_spill] sm:$0xff] }
 0x3c0   :  { %v2731_v39 = vpop.f32.mrf.mxu0  ;;  %3208 = vmatpush.bf16.msrb.mxu2 %v7830_v12 }
 0x3c1   :  { %v2640_v17 = vadd.f32 %v2639_v6, %v2551_v26  ;;  %v8578_v26 = vld [vmem:[%s14912_s1 + $0x5b4] sm:$0xf0] }
 0x3c2   :  { %v2820_v21 = vpop.f32.mrf.mxu1  ;;  %v7958_v6 = vor.u32 %v8578_v26, %v7957_v55 }
 0x3c3   :  { %v2729_v1 = vadd.f32 %v2728_v23, %v2640_v17  ;;  %2868 = vmatmul.bf16.gmra.mxu2 %v15715_v15  ;;  %3046 = vmatmul.bf16.gmra.mxu0 %v15716_v24  ;;  %v15722_v24 = vld [vmem:[#allocation20_spill] sm:$0xff] }
 0x3c4   :  { %2957 = vmatmul.bf16.gmra.mxu3 %v15717_v3  ;;  %v8396_v3 = vld [vmem:[%s14912_s1 + $0xc] sm:$0xf] }
 0x3c5   :  { %v11190_v63 = vadd.f32 %v2817_v20, %v2729_v1  ;;  %3135 = vmatmul.bf16.gmra.mxu1 %v15632_v56  ;;  %3297 = vmatpush.bf16.msrb.mxu3 %v7958_v6 }
 0x3c6   :  { %v2553_v54 = vpop.f32.mrf.mxu2 }
 0x3c7   :  { %15718 = vst [vmem:[#allocation14_spill] sm:$0xff] %v11190_v63  ;;  %v2554_v47 = vadd.f32 %v2553_v54, %v10802_v49  ;;  %v2642_v23 = vpop.f32.mrf.mxu3  ;;  %v15720_v63 = vld [vmem:[#allocation18_spill] sm:$0xff] }
 0x3c8   :  { %v2733_v8 = vpop.f32.mrf.mxu0 }
 0x3c9   :  { %v2643_v61 = vadd.f32 %v2642_v23, %v2554_v47 }
 0x3ca   :  { %v2822_v20 = vpop.f32.mrf.mxu1 }
 0x3cb   :  { %v2732_v17 = vadd.f32 %v2731_v39, %v2643_v61 }
 0x3cd   :  { %v11200_v1 = vadd.f32 %v2820_v21, %v2732_v17 }
 0x3ce   :  { %v2555_v58 = vpop.f32.mrf.mxu2 }
 0x3cf   :  { %15719 = vst [vmem:[#allocation158_spill] sm:$0xff] %v11200_v1  ;;  %v2556_v49 = vadd.f32 %v2555_v58, %v10810_v10  ;;  %v2644_v4 = vpop.f32.mrf.mxu3  ;;  %v15726_v1 = vld [vmem:[#allocation53_spill] sm:$0xff] }
 0x3d0   :  { %v2736_v12 = vpop.f32.mrf.mxu0 }
 0x3d1   :  { %v2645_v54 = vadd.f32 %v2644_v4, %v2556_v49 }
 0x3d2   :  { %v2825_v47 = vpop.f32.mrf.mxu1 }
 0x3d3   :  { %v2734_v23 = vadd.f32 %v2733_v8, %v2645_v54  ;;  %2873 = vmatmul.bf16.gmra.mxu2 %v15720_v63  ;;  %3051 = vmatmul.bf16.gmra.mxu0 %v15721_v53  ;;  %v15766_v53 = vld [vmem:[#allocation27_spill] sm:$0xff] }
 0x3d4   :  { %2962 = vmatmul.bf16.gmra.mxu3 %v15722_v24 }
 0x3d5   :  { %v11206_v56 = vadd.f32 %v2822_v20, %v2734_v23  ;;  %3140 = vmatmul.bf16.gmra.mxu1 %v15637_v29 }
 0x3d6   :  { %v2558_v39 = vpop.f32.mrf.mxu2 }
 0x3d7   :  { %15723 = vst [vmem:[#allocation18_spill] sm:$0xff] %v11206_v56  ;;  %v2559_v21 = vadd.f32 %v2558_v39, %v10819_v28  ;;  %v2647_v61 = vpop.f32.mrf.mxu3  ;;  %v15725_v56 = vld [vmem:[#allocation22_spill] sm:$0xff]  ;;  %v15727_v28 = vld [vmem:[#allocation24_spill] sm:$0xff] }
 0x3d8   :  { %v2738_v10 = vpop.f32.mrf.mxu0 }
 0x3d9   :  { %v2648_v55 = vadd.f32 %v2647_v61, %v2559_v21 }
 0x3da   :  { %v2827_v26 = vpop.f32.mrf.mxu1 }
 0x3db   :  { %v2737_v6 = vadd.f32 %v2736_v12, %v2648_v55  ;;  %v7813_v12 = vld [vmem:[%s14912_s1 + $0x488] sm:$0xf] }
 0x3dd   :  { %v11210_v17 = vadd.f32 %v2825_v47, %v2737_v6  ;;  %v8542_v47 = vld [vmem:[%s14912_s1 + $0x494] sm:$0xf0] }
 0x3de   :  { %v2560_v8 = vpop.f32.mrf.mxu2  ;;  %v7814_v39 = vor.u32 %v8542_v47, %v7813_v12 }
 0x3df   :  { %15724 = vst [vmem:[#allocation159_spill] sm:$0xff] %v11210_v17  ;;  %v2561_v58 = vadd.f32 %v2560_v8, %v10827_v50  ;;  %v2649_v49 = vpop.f32.mrf.mxu3  ;;  %v7941_v8 = vld [vmem:[%s14912_s1 + $0x588] sm:$0xf]  ;;  %v15731_v17 = vld [vmem:[#allocation57_spill] sm:$0xff] }
 0x3e0   :  { %v2741_v4 = vpop.f32.mrf.mxu0  ;;  %3209 = vmatpush.bf16.msrb.mxu2 %v7814_v39 }
 0x3e1   :  { %v2650_v54 = vadd.f32 %v2649_v49, %v2561_v58  ;;  %v8574_v58 = vld [vmem:[%s14912_s1 + $0x594] sm:$0xf0] }
 0x3e2   :  { %v2830_v20 = vpop.f32.mrf.mxu1  ;;  %v7942_v49 = vor.u32 %v8574_v58, %v7941_v8 }
 0x3e3   :  { %v2739_v23 = vadd.f32 %v2738_v10, %v2650_v54  ;;  %2878 = vmatmul.bf16.gmra.mxu2 %v15725_v56  ;;  %3056 = vmatmul.bf16.gmra.mxu0 %v15726_v1  ;;  %v15732_v1 = vld [vmem:[#allocation28_spill] sm:$0xff] }
 0x3e4   :  { %2967 = vmatmul.bf16.gmra.mxu3 %v15727_v28 }
 0x3e5   :  { %v11222_v50 = vadd.f32 %v2827_v26, %v2739_v23  ;;  %3145 = vmatmul.bf16.gmra.mxu1 %v15642_v60  ;;  %3298 = vmatpush.bf16.msrb.mxu3 %v7942_v49 }
 0x3e6   :  { %v2563_v21 = vpop.f32.mrf.mxu2 }
 0x3e7   :  { %15728 = vst [vmem:[#allocation22_spill] sm:$0xff] %v11222_v50  ;;  %v2564_v61 = vadd.f32 %v2563_v21, %v10848_v18  ;;  %v2652_v10 = vpop.f32.mrf.mxu3  ;;  %v15730_v50 = vld [vmem:[#allocation26_spill] sm:$0xff] }
 0x3e8   :  { %v2743_v55 = vpop.f32.mrf.mxu0 }
 0x3e9   :  { %v2653_v6 = vadd.f32 %v2652_v10, %v2564_v61 }
 0x3ea   :  { %v2832_v26 = vpop.f32.mrf.mxu1 }
 0x3eb   :  { %v2742_v54 = vadd.f32 %v2741_v4, %v2653_v6 }
 0x3ed   :  { %v11232_v23 = vadd.f32 %v2830_v20, %v2742_v54 }
 0x3ee   :  { %v2565_v12 = vpop.f32.mrf.mxu2 }
 0x3ef   :  { %15729 = vst [vmem:[#allocation160_spill] sm:$0xff] %v11232_v23  ;;  %v2566_v18 = vadd.f32 %v2565_v12, %v10856_v45  ;;  %v2654_v47 = vpop.f32.mrf.mxu3  ;;  %v15736_v23 = vld [vmem:[#allocation62_spill] sm:$0xff] }
 0x3f0   :  { %v2746_v39 = vpop.f32.mrf.mxu0 }
 0x3f1   :  { %v2655_v21 = vadd.f32 %v2654_v47, %v2566_v18 }
 0x3f2   :  { %v2835_v61 = vpop.f32.mrf.mxu1 }
 0x3f3   :  { %v2744_v10 = vadd.f32 %v2743_v55, %v2655_v21  ;;  %2883 = vmatmul.bf16.gmra.mxu2 %v15730_v50  ;;  %3061 = vmatmul.bf16.gmra.mxu0 %v15731_v17 }
 0x3f4   :  { %2972 = vmatmul.bf16.gmra.mxu3 %v15732_v1 }
 0x3f5   :  { %v11238_v60 = vadd.f32 %v2832_v26, %v2744_v10  ;;  %3150 = vmatmul.bf16.gmra.mxu1 %v15647_v16 }
 0x3f6   :  { %v2568_v4 = vpop.f32.mrf.mxu2 }
 0x3f7   :  { %15733 = vst [vmem:[#allocation26_spill] sm:$0xff] %v11238_v60  ;;  %v2569_v20 = vadd.f32 %v2568_v4, %v10865_v42  ;;  %v2657_v6 = vpop.f32.mrf.mxu3  ;;  %v15735_v60 = vld [vmem:[#allocation30_spill] sm:$0xff]  ;;  %v15737_v42 = vld [vmem:[#allocation32_spill] sm:$0xff] }
 0x3f8   :  { %v2748_v45 = vpop.f32.mrf.mxu0 }
 0x3f9   :  { %v2658_v8 = vadd.f32 %v2657_v6, %v2569_v20 }
 0x3fa   :  { %v2837_v58 = vpop.f32.mrf.mxu1 }
 0x3fb   :  { %v2747_v49 = vadd.f32 %v2746_v39, %v2658_v8  ;;  %v7797_v39 = vld [vmem:[%s14912_s1 + $0x468] sm:$0xf] }
 0x3fd   :  { %v11242_v54 = vadd.f32 %v2835_v61, %v2747_v49  ;;  %v8538_v61 = vld [vmem:[%s14912_s1 + $0x474] sm:$0xf0] }
 0x3fe   :  { %v2570_v55 = vpop.f32.mrf.mxu2  ;;  %v7798_v4 = vor.u32 %v8538_v61, %v7797_v39  ;;  %v15740_v39 = vld [vmem:[#allocation34_spill] sm:$0xff]  ;;  %v15741_v61 = vld [vmem:[#allocation68_spill] sm:$0xff] }
 0x3ff   :  { %15734 = vst [vmem:[#allocation161_spill] sm:$0xff] %v11242_v54  ;;  %v2571_v12 = vadd.f32 %v2570_v55, %v10873_v11  ;;  %v2659_v18 = vpop.f32.mrf.mxu3 }
 0x400   :  { %v2751_v47 = vpop.f32.mrf.mxu0  ;;  %3210 = vmatpush.bf16.msrb.mxu2 %v7798_v4 }
 0x401   :  { %v2660_v21 = vadd.f32 %v2659_v18, %v2571_v12 }
 0x402   :  { %v2840_v26 = vpop.f32.mrf.mxu1 }
 0x403   :  { %v2749_v10 = vadd.f32 %v2748_v45, %v2660_v21  ;;  %2888 = vmatmul.bf16.gmra.mxu2 %v15735_v60  ;;  %3066 = vmatmul.bf16.gmra.mxu0 %v15736_v23 }
 0x404   :  { %2977 = vmatmul.bf16.gmra.mxu3 %v15737_v42 }
 0x405   :  { %v11254_v11 = vadd.f32 %v2837_v58, %v2749_v10  ;;  %3155 = vmatmul.bf16.gmra.mxu1 %v15652_v5 }
 0x406   :  { %v2573_v20 = vpop.f32.mrf.mxu2 }
 0x407   :  { %15738 = vst [vmem:[#allocation30_spill] sm:$0xff] %v11254_v11  ;;  %v2574_v6 = vadd.f32 %v2573_v20, %v10882_v36  ;;  %v2662_v45 = vpop.f32.mrf.mxu3  ;;  %v15742_v36 = vld [vmem:[#allocation36_spill] sm:$0xff] }
 0x408   :  { %v2753_v8 = vpop.f32.mrf.mxu0 }
 0x409   :  { %v2663_v49 = vadd.f32 %v2662_v45, %v2574_v6 }
 0x40a   :  { %v2842_v55 = vpop.f32.mrf.mxu1 }
 0x40b   :  { %v2752_v12 = vadd.f32 %v2751_v47, %v2663_v49 }
 0x40d   :  { %v11258_v18 = vadd.f32 %v2840_v26, %v2752_v12  ;;  %v15744_v26 = vld [vmem:[#allocation146_spill] sm:$0xff]  ;;  %v15746_v12 = vld [vmem:[#allocation148_spill] sm:$0xff] }
 0x40e   :  { %v2575_v21 = vpop.f32.mrf.mxu2 }
 0x40f   :  { %15739 = vst [vmem:[#allocation162_spill] sm:$0xff] %v11258_v18  ;;  %v2576_v54 = vadd.f32 %v2575_v21, %v10890_v48  ;;  %v2664_v23 = vpop.f32.mrf.mxu3 }
 0x410   :  { %v2756_v58 = vpop.f32.mrf.mxu0 }
 0x411   :  { %v2665_v10 = vadd.f32 %v2664_v23, %v2576_v54 }
 0x412   :  { %v2845_v11 = vpop.f32.mrf.mxu1 }
 0x413   :  { %v2754_v5 = vadd.f32 %v2753_v8, %v2665_v10  ;;  %2893 = vmatmul.bf16.gmra.mxu2 %v15740_v39  ;;  %3071 = vmatmul.bf16.gmra.mxu0 %v15741_v61 }
 0x414   :  { %2982 = vmatmul.bf16.gmra.mxu3 %v15742_v36 }
 0x415   :  { %v11264_v4 = vadd.f32 %v2842_v55, %v2754_v5  ;;  %3160 = vmatmul.bf16.gmra.mxu1 %v15657_v57 }
 0x416   :  { %v2578_v47 = vpop.f32.mrf.mxu2 }
 0x417   :  { %15743 = vst [vmem:[#allocation34_spill] sm:$0xff] %v11264_v4  ;;  %v2579_v20 = vadd.f32 %v2578_v47, %v15744_v26  ;;  %v2667_v6 = vpop.f32.mrf.mxu3  ;;  %v15747_v4 = vld [vmem:[#allocation5_spill] sm:$0xff] }
 0x418   :  { %v2758_v48 = vpop.f32.mrf.mxu0  ;;  %v8703_v47 = vld [vmem:[%s14915_s4] ss:$8 sm:$0xf] }
 0x419   :  { %v2668_v45 = vadd.f32 %v2667_v6, %v2579_v20  ;;  %v11275_v26 = vperm.slane %v8703_v47, 2  ;;  %v15748_v20 = vld [vmem:[#allocation74_spill] sm:$0xff]  ;;  %v15751_v6 = vld [vmem:[#allocation76_spill] sm:$0xff] }
 0x41a   :  { %v2847_v49 = vpop.f32.mrf.mxu1 }
 0x41b   :  { %v2757_v23 = vadd.f32 %v2756_v58, %v2668_v45 }
 0x41d   :  { %v11268_v54 = vadd.f32 %v2845_v11, %v2757_v23  ;;  %v15749_v11 = vld [vmem:[#allocation7_spill] sm:$0xff] }
 0x41e   :  { %v2580_v8 = vpop.f32.mrf.mxu2 }
 0x41f   :  { %15745 = vst [vmem:[#allocation146_spill] sm:$0xff] %v11268_v54  ;;  %v2581_v21 = vadd.f32 %v2580_v8, %v15746_v12  ;;  %v2669_v10 = vpop.f32.mrf.mxu3 }
 0x420   :  { %v3037_v18 = vpop.f32.mrf.mxu0 }
 0x421   :  { %v2670_v61 = vadd.f32 %v2669_v10, %v2581_v21 }
 0x422   :  { %v3126_v5 = vpop.f32.mrf.mxu1 }
 0x423   :  { %v2759_v55 = vadd.f32 %v2758_v48, %v2670_v61  ;;  %2898 = vmatmul.bf16.gmra.mxu2 %v15747_v4  ;;  %3076 = vmatmul.bf16.gmra.mxu0 %v15748_v20 }
 0x424   :  { %2987 = vmatmul.bf16.gmra.mxu3 %v15749_v11 }
 0x425   :  { %v11279_v58 = vadd.f32 %v2847_v49, %v2759_v55  ;;  %3165 = vmatmul.bf16.gmra.mxu1 %v15751_v6  ;;  %v7925_v55 = vld [vmem:[%s14912_s1 + $0x568] sm:$0xf] }
 0x426   :  { %v2859_v45 = vpop.f32.mrf.mxu2 }
 0x427   :  { %15750 = vst [vmem:[#allocation148_spill] sm:$0xff] %v11279_v58  ;;  %v2860_v23 = vadd.f32 %v2859_v45, %v11275_v26  ;;  %v2948_v61 = vpop.f32.mrf.mxu3  ;;  %v8570_v45 = vld [vmem:[%s14912_s1 + $0x574] sm:$0xf0] }
 0x428   :  { %v3039_v48 = vpop.f32.mrf.mxu0 }
 0x429   :  { %v2949_v8 = vadd.f32 %v2948_v61, %v2860_v23  ;;  %v15752_v61 = vld [vmem:[#allocation9_spill] sm:$0xff] }
 0x42a   :  { %v3128_v12 = vpop.f32.mrf.mxu1 }
 0x42b   :  { %v3038_v21 = vadd.f32 %v3037_v18, %v2949_v8  ;;  %v15753_v18 = vld [vmem:[#allocation80_spill] sm:$0xff]  ;;  %v15754_v8 = vld [vmem:[#allocation11_spill] sm:$0xff] }
 0x42d   :  { %v11283_v10 = vadd.f32 %v3126_v5, %v3038_v21  ;;  %v7926_v5 = vor.u32 %v8570_v45, %v7925_v55  ;;  %v7909_v21 = vld [vmem:[%s14912_s1 + $0x548] sm:$0xf] }
 0x42e   :  { %v2861_v47 = vpop.f32.mrf.mxu2 }
 0x42f   :  { %v2862_v54 = vadd.f32 %v2861_v47, %v11275_v26  ;;  %v2950_v20 = vpop.f32.mrf.mxu3  ;;  %v8566_v47 = vld [vmem:[%s14912_s1 + $0x554] sm:$0xf0]  ;;  %3299 = vmatpush.bf16.msrb.mxu3 %v7926_v5 }
 0x430   :  { %v3042_v57 = vpop.f32.mrf.mxu0  ;;  %v7910_v45 = vor.u32 %v8566_v47, %v7909_v21  ;;  %v15755_v21 = vld [vmem:[#allocation13_spill] sm:$0xff] }
 0x431   :  { %v2951_v11 = vadd.f32 %v2950_v20, %v2862_v54  ;;  %v7781_v54 = vld [vmem:[%s14912_s1 + $0x448] sm:$0xf]  ;;  %v8534_v20 = vld [vmem:[%s14912_s1 + $0x454] sm:$0xf0]  ;;  %v15756_v47 = vld [vmem:[#allocation85_spill] sm:$0xff] }
 0x432   :  { %v3131_v49 = vpop.f32.mrf.mxu1 }
 0x433   :  { %v3040_v23 = vadd.f32 %v3039_v48, %v2951_v11  ;;  %2903 = vmatmul.bf16.gmra.mxu2 %v15752_v61  ;;  %3081 = vmatmul.bf16.gmra.mxu0 %v15753_v18  ;;  %v7782_v48 = vor.u32 %v8534_v20, %v7781_v54 }
 0x434   :  { %2992 = vmatmul.bf16.gmra.mxu3 %v15754_v8 }
 0x435   :  { %v11304_v11 = vadd.f32 %v3128_v12, %v3040_v23  ;;  %3170 = vmatmul.bf16.gmra.mxu1 %v15668_v9  ;;  %3211 = vmatpush.bf16.msrb.mxu2 %v7782_v48  ;;  %v15757_v48 = vld [vmem:[#allocation15_spill] sm:$0xff] }
 0x436   :  { %v2864_v55 = vpop.f32.mrf.mxu2  ;;  %3300 = vmatpush.bf16.msrb.mxu3 %v7910_v45 }
 0x437   :  { %v2865_v58 = vadd.f32 %v2864_v55, %v11275_v26  ;;  %v2953_v18 = vpop.f32.mrf.mxu3 }
 0x438   :  { %v3044_v8 = vpop.f32.mrf.mxu0 }
 0x439   :  { %v2954_v6 = vadd.f32 %v2953_v18, %v2865_v58  ;;  %v8530_v58 = vld [vmem:[%s14912_s1 + $0x434] sm:$0xf0] }
 0x43a   :  { %v3133_v36 = vpop.f32.mrf.mxu1 }
 0x43b   :  { %v3043_v12 = vadd.f32 %v3042_v57, %v2954_v6  ;;  %v7765_v57 = vld [vmem:[%s14912_s1 + $0x428] sm:$0xf] }
 0x43c   :  { %v7766_v6 = vor.u32 %v8530_v58, %v7765_v57 }
 0x43d   :  { %v11311_v23 = vadd.f32 %v3131_v49, %v3043_v12  ;;  %v8562_v49 = vld [vmem:[%s14912_s1 + $0x534] sm:$0xf0] }
 0x43e   :  { %v2866_v9 = vpop.f32.mrf.mxu2  ;;  %3212 = vmatpush.bf16.msrb.mxu2 %v7766_v6  ;;  %v15760_v6 = vld [vmem:[#allocation19_spill] sm:$0xff] }
 0x43f   :  { %v2867_v54 = vadd.f32 %v2866_v9, %v11275_v26  ;;  %v2955_v20 = vpop.f32.mrf.mxu3 }
 0x440   :  { %v3047_v42 = vpop.f32.mrf.mxu0 }
 0x441   :  { %v2956_v17 = vadd.f32 %v2955_v20, %v2867_v54 }
 0x442   :  { %v3136_v5 = vpop.f32.mrf.mxu1 }
 0x443   :  { %v3045_v16 = vadd.f32 %v3044_v8, %v2956_v17  ;;  %2908 = vmatmul.bf16.gmra.mxu2 %v15755_v21  ;;  %3086 = vmatmul.bf16.gmra.mxu0 %v15756_v47  ;;  %v7893_v17 = vld [vmem:[%s14912_s1 + $0x528] sm:$0xf] }
 0x444   :  { %2997 = vmatmul.bf16.gmra.mxu3 %v15757_v48  ;;  %v7894_v8 = vor.u32 %v8562_v49, %v7893_v17  ;;  %v15758_v17 = vld [vmem:[#allocation17_spill] sm:$0xff]  ;;  %v15759_v49 = vld [vmem:[#allocation90_spill] sm:$0xff] }
 0x445   :  { %v11323_v9 = vadd.f32 %v3133_v36, %v3045_v16  ;;  %3175 = vmatmul.bf16.gmra.mxu1 %v15673_v7 }
 0x446   :  { %v2869_v18 = vpop.f32.mrf.mxu2  ;;  %3301 = vmatpush.bf16.msrb.mxu3 %v7894_v8 }
 0x447   :  { %v2870_v55 = vadd.f32 %v2869_v18, %v11275_v26  ;;  %v2958_v45 = vpop.f32.mrf.mxu3 }
 0x448   :  { %v3049_v12 = vpop.f32.mrf.mxu0 }
 0x449   :  { %v2959_v16 = vadd.f32 %v2958_v45, %v2870_v55 }
 0x44a   :  { %v3138_v36 = vpop.f32.mrf.mxu1 }
 0x44b   :  { %v3048_v54 = vadd.f32 %v3047_v42, %v2959_v16 }
 0x44d   :  { %v11333_v20 = vadd.f32 %v3136_v5, %v3048_v54 }
 0x44e   :  { %v2871_v57 = vpop.f32.mrf.mxu2 }
 0x44f   :  { %v2872_v58 = vadd.f32 %v2871_v57, %v11275_v26  ;;  %v2960_v47 = vpop.f32.mrf.mxu3 }
 0x450   :  { %v3052_v7 = vpop.f32.mrf.mxu0 }
 0x451   :  { %v2961_v48 = vadd.f32 %v2960_v47, %v2872_v58 }
 0x452   :  { %v3141_v1 = vpop.f32.mrf.mxu1 }
 0x453   :  { %v3050_v28 = vadd.f32 %v3049_v12, %v2961_v48  ;;  %2913 = vmatmul.bf16.gmra.mxu2 %v15758_v17  ;;  %3091 = vmatmul.bf16.gmra.mxu0 %v15759_v49 }
 0x454   :  { %3002 = vmatmul.bf16.gmra.mxu3 %v15760_v6  ;;  %v15761_v6 = vld [vmem:[#allocation21_spill] sm:$0xff] }
 0x455   :  { %v11339_v18 = vadd.f32 %v3138_v36, %v3050_v28  ;;  %3180 = vmatmul.bf16.gmra.mxu1 %v15678_v38  ;;  %v15762_v38 = vld [vmem:[#allocation95_spill] sm:$0xff] }
 0x456   :  { %v2874_v42 = vpop.f32.mrf.mxu2 }
 0x457   :  { %v2875_v5 = vadd.f32 %v2874_v42, %v11275_v26  ;;  %v2963_v8 = vpop.f32.mrf.mxu3  ;;  %v15763_v42 = vld [vmem:[#allocation23_spill] sm:$0xff] }
 0x458   :  { %v3054_v55 = vpop.f32.mrf.mxu0 }
 0x459   :  { %v2964_v45 = vadd.f32 %v2963_v8, %v2875_v5 }
 0x45a   :  { %v3143_v16 = vpop.f32.mrf.mxu1 }
 0x45b   :  { %v3053_v47 = vadd.f32 %v3052_v7, %v2964_v45  ;;  %v7749_v7 = vld [vmem:[%s14912_s1 + $0x408] sm:$0xf] }
 0x45d   :  { %v11343_v54 = vadd.f32 %v3141_v1, %v3053_v47  ;;  %v8526_v1 = vld [vmem:[%s14912_s1 + $0x414] sm:$0xf0] }
 0x45e   :  { %v2876_v48 = vpop.f32.mrf.mxu2  ;;  %v7750_v8 = vor.u32 %v8526_v1, %v7749_v7 }
 0x45f   :  { %v2877_v12 = vadd.f32 %v2876_v48, %v11275_v26  ;;  %v2965_v57 = vpop.f32.mrf.mxu3 }
 0x460   :  { %v3057_v58 = vpop.f32.mrf.mxu0  ;;  %3213 = vmatpush.bf16.msrb.mxu2 %v7750_v8 }
 0x461   :  { %v2966_v49 = vadd.f32 %v2965_v57, %v2877_v12 }
 0x462   :  { %v3146_v28 = vpop.f32.mrf.mxu1 }
 0x463   :  { %v3055_v36 = vadd.f32 %v3054_v55, %v2966_v49  ;;  %2918 = vmatmul.bf16.gmra.mxu2 %v15761_v6  ;;  %3096 = vmatmul.bf16.gmra.mxu0 %v15762_v38  ;;  %v7877_v49 = vld [vmem:[%s14912_s1 + $0x508] sm:$0xf]  ;;  %v8558_v55 = vld [vmem:[%s14912_s1 + $0x514] sm:$0xf0] }
 0x464   :  { %3007 = vmatmul.bf16.gmra.mxu3 %v15763_v42  ;;  %v7878_v47 = vor.u32 %v8558_v55, %v7877_v49  ;;  %v7351_v49 = vld [vmem:[%s14912_s1 + $0xf8] sm:$0xf0] }
 0x465   :  { %v11355_v5 = vadd.f32 %v3143_v16, %v3055_v36  ;;  %3185 = vmatmul.bf16.gmra.mxu1 %v15683_v51  ;;  %v8424_v51 = vld [vmem:[%s14912_s1 + $0xec] sm:$0xf] }
 0x466   :  { %v2879_v45 = vpop.f32.mrf.mxu2  ;;  %3302 = vmatpush.bf16.msrb.mxu3 %v7878_v47  ;;  %v7354_v8 = vor.u32 %v8424_v51, %v7351_v49 }
 0x467   :  { %v2880_v48 = vadd.f32 %v2879_v45, %v11275_v26  ;;  %v2968_v12 = vpop.f32.mrf.mxu3 }
 0x468   :  { %v3059_v57 = vpop.f32.mrf.mxu0  ;;  %3473 = vmatpush.bf16.msrb.mxu1 %v7354_v8 }
 0x469   :  { %v2969_v16 = vadd.f32 %v2968_v12, %v2880_v48  ;;  %v15764_v12 = vld [vmem:[#allocation25_spill] sm:$0xff] }
 0x46a   :  { %v3148_v36 = vpop.f32.mrf.mxu1 }
 0x46b   :  { %v3058_v38 = vadd.f32 %v3057_v58, %v2969_v16  ;;  %v7335_v58 = vld [vmem:[%s14912_s1 + $0xd8] sm:$0xf0]  ;;  %v15765_v16 = vld [vmem:[#allocation101_spill] sm:$0xff] }
 0x46d   :  { %v11365_v7 = vadd.f32 %v3146_v28, %v3058_v38  ;;  %v8420_v38 = vld [vmem:[%s14912_s1 + $0xcc] sm:$0xf] }
 0x46e   :  { %v2881_v1 = vpop.f32.mrf.mxu2 }
 0x46f   :  { %v2882_v55 = vadd.f32 %v2881_v1, %v11275_v26  ;;  %v2970_v45 = vpop.f32.mrf.mxu3  ;;  %v7338_v1 = vor.u32 %v8420_v38, %v7335_v58 }
 0x470   :  { %v3062_v42 = vpop.f32.mrf.mxu0 }
 0x471   :  { %v2971_v47 = vadd.f32 %v2970_v45, %v2882_v55  ;;  %3474 = vmatpush.bf16.msrb.mxu1 %v7338_v1  ;;  %v8416_v55 = vld [vmem:[%s14912_s1 + $0xac] sm:$0xf]  ;;  %v7303_v1 = vld [vmem:[%s14912_s1 + $0x98] sm:$0xf0] }
 0x472   :  { %v3151_v48 = vpop.f32.mrf.mxu1 }
 0x473   :  { %v3060_v28 = vadd.f32 %v3059_v57, %v2971_v47  ;;  %2923 = vmatmul.bf16.gmra.mxu2 %v15764_v12  ;;  %3101 = vmatmul.bf16.gmra.mxu0 %v15765_v16  ;;  %v7319_v57 = vld [vmem:[%s14912_s1 + $0xb8] sm:$0xf0] }
 0x474   :  { %3012 = vmatmul.bf16.gmra.mxu3 %v15766_v53  ;;  %v7322_v47 = vor.u32 %v8416_v55, %v7319_v57  ;;  %v7287_v55 = vld [vmem:[%s14912_s1 + $0x78] sm:$0xf0] }
 0x475   :  { %v11383_v51 = vadd.f32 %v3148_v36, %v3060_v28  ;;  %3190 = vmatmul.bf16.gmra.mxu1 %v15688_v41  ;;  %v8412_v28 = vld [vmem:[%s14912_s1 + $0x8c] sm:$0xf] }
 0x476   :  { %v2884_v49 = vpop.f32.mrf.mxu2  ;;  %3475 = vmatpush.bf16.msrb.mxu1 %v7322_v47  ;;  %v7306_v41 = vor.u32 %v8412_v28, %v7303_v1  ;;  %v15768_v28 = vld [vmem:[#allocation106_spill] sm:$0xff]  ;;  %v15769_v1 = vld [vmem:[#allocation31_spill] sm:$0xff] }
 0x477   :  { %v2885_v45 = vadd.f32 %v2884_v49, %v11275_v26  ;;  %v2973_v8 = vpop.f32.mrf.mxu3  ;;  %v8408_v49 = vld [vmem:[%s14912_s1 + $0x6c] sm:$0xf] }
 0x478   :  { %v3064_v38 = vpop.f32.mrf.mxu0 }
 0x479   :  { %v2974_v58 = vadd.f32 %v2973_v8, %v2885_v45  ;;  %v7290_v8 = vor.u32 %v8408_v49, %v7287_v55  ;;  %v8456_v49 = vld [vmem:[%s14912_s1 + $0x1ec] sm:$0xf]  ;;  %v7479_v55 = vld [vmem:[%s14912_s1 + $0x1f8] sm:$0xf0] }
 0x47a   :  { %v3153_v36 = vpop.f32.mrf.mxu1  ;;  %3476 = vmatpush.bf16.msrb.mxu1 %v7306_v41  ;;  %v8404_v41 = vld [vmem:[%s14912_s1 + $0x4c] sm:$0xf] }
 0x47b   :  { %v3063_v16 = vadd.f32 %v3062_v42, %v2974_v58  ;;  %v15767_v58 = vld [vmem:[#allocation29_spill] sm:$0xff] }
 0x47d   :  { %v11399_v53 = vadd.f32 %v3151_v48, %v3063_v16  ;;  %v7271_v48 = vld [vmem:[%s14912_s1 + $0x58] sm:$0xf0] }
 0x47e   :  { %v2886_v29 = vpop.f32.mrf.mxu2  ;;  %3477 = vmatpush.bf16.msrb.mxu1 %v7290_v8  ;;  %v8488_v8 = vld [vmem:[%s14912_s1 + $0x2ec] sm:$0xf] }
 0x47f   :  { %v2887_v57 = vadd.f32 %v2886_v29, %v11275_v26  ;;  %v2975_v45 = vpop.f32.mrf.mxu3  ;;  %v7274_v29 = vor.u32 %v8404_v41, %v7271_v48 }
 0x480   :  { %v3067_v47 = vpop.f32.mrf.mxu0 }
 0x481   :  { %v2976_v24 = vadd.f32 %v2975_v45, %v2887_v57  ;;  %v8590_v45 = vld [vmem:[%s14912_s1 + $0x614] sm:$0xf0] }
 0x482   :  { %v3156_v42 = vpop.f32.mrf.mxu1  ;;  %3478 = vmatpush.bf16.msrb.mxu1 %v7274_v29 }
 0x483   :  { %v3065_v16 = vadd.f32 %v3064_v38, %v2976_v24  ;;  %2928 = vmatmul.bf16.gmra.mxu2 %v15767_v58  ;;  %3106 = vmatmul.bf16.gmra.mxu0 %v15768_v28  ;;  %v7482_v24 = vor.u32 %v8456_v49, %v7479_v55  ;;  %v8005_v38 = vld [vmem:[%s14912_s1 + $0x608] sm:$0xf]  ;;  %v7255_v49 = vld [vmem:[%s14912_s1 + $0x38] sm:$0xf0] }
 0x484   :  { %3017 = vmatmul.bf16.gmra.mxu3 %v15769_v1  ;;  %v8006_v48 = vor.u32 %v8590_v45, %v8005_v38 }
 0x485   :  { %v11423_v57 = vadd.f32 %v3153_v36, %v3065_v16  ;;  %3195 = vmatmul.bf16.gmra.mxu1 %v15694_v0  ;;  %v7607_v36 = vld [vmem:[%s14912_s1 + $0x2f8] sm:$0xf0]  ;;  %v8400_v16 = vld [vmem:[%s14912_s1 + $0x2c] sm:$0xf]  ;;  %3562 = vmatpush.bf16.msra.mxu2 %v7482_v24 }
 0x486   :  { %v2889_v41 = vpop.f32.mrf.mxu2  ;;  %v7610_v0 = vor.u32 %v8488_v8, %v7607_v36  ;;  %v7258_v1 = vor.u32 %v8400_v16, %v7255_v49  ;;  %3391 = vmatpush.bf16.msrb.mxu0 %v8006_v48  ;;  %v15770_v16 = vld [vmem:[#allocation33_spill] sm:$0xff]  ;;  %v15771_v49 = vld [vmem:[#allocation110_spill] sm:$0xff] }
 0x487   :  { %v2890_v55 = vadd.f32 %v2889_v41, %v11275_v26  ;;  %v2978_v28 = vpop.f32.mrf.mxu3  ;;  %v7242_v41 = vor.u32 %v8396_v3, %v7239_v14 }
 0x488   :  { %v3069_v29 = vpop.f32.mrf.mxu0  ;;  %3651 = vmatpush.bf16.msra.mxu3 %v7610_v0  ;;  %3479 = vmatpush.bf16.msrb.mxu1 %v7258_v1 }
 0x489   :  { %v2979_v38 = vadd.f32 %v2978_v28, %v2890_v55  ;;  %v15772_v55 = vld [vmem:[#allocation35_spill] sm:$0xff] }
 0x48a   :  { %v3158_v45 = vpop.f32.mrf.mxu1 }
 0x48b   :  { %v3068_v59 = vadd.f32 %v3067_v47, %v2979_v38 }
 0x48c   :  { %3480 = vmatpush.bf16.msrb.mxu1 %v7242_v41 }
 0x48d   :  { %v11451_v32 = vadd.f32 %v3156_v42, %v3068_v59 }
 0x48e   :  { %v2891_v24 = vpop.f32.mrf.mxu2 }
 0x48f   :  { %v2892_v8 = vadd.f32 %v2891_v24, %v11275_v26  ;;  %v2980_v28 = vpop.f32.mrf.mxu3 }
 0x490   :  { %v3072_v0 = vpop.f32.mrf.mxu0 }
 0x491   :  { %v2981_v48 = vadd.f32 %v2980_v28, %v2892_v8 }
 0x492   :  { %v3161_v1 = vpop.f32.mrf.mxu1 }
 0x493   :  { %v3070_v36 = vadd.f32 %v3069_v29, %v2981_v48  ;;  %2933 = vmatmul.bf16.gmra.mxu2 %v15770_v16  ;;  %3111 = vmatmul.bf16.gmra.mxu0 %v15771_v49 }
 0x494   :  { %3022 = vmatmul.bf16.gmra.mxu3 %v15772_v55  ;;  %v15774_v55 = vld [vmem:[#allocation38_spill] sm:$0xff] }
 0x495   :  { %v11457_v22 = vadd.f32 %v3158_v45, %v3070_v36  ;;  %3200 = vmatmul.bf16.gmra.mxu1 %v15699_v43  ;;  %v15775_v43 = vld [vmem:[#allocation114_spill] sm:$0xff] }
 0x496   :  { %v2894_v59 = vpop.f32.mrf.mxu2 }
 0x497   :  { %v2895_v14 = vadd.f32 %v2894_v59, %v11275_v26  ;;  %v2983_v3 = vpop.f32.mrf.mxu3  ;;  %v15776_v59 = vld [vmem:[#allocation40_spill] sm:$0xff] }
 0x498   :  { %v3074_v47 = vpop.f32.mrf.mxu0 }
 0x499   :  { %v2984_v42 = vadd.f32 %v2983_v3, %v2895_v14  ;;  %v8484_v3 = vld [vmem:[%s14912_s1 + $0x2cc] sm:$0xf] }
 0x49a   :  { %v3163_v38 = vpop.f32.mrf.mxu1 }
 0x49b   :  { %v3073_v41 = vadd.f32 %v3072_v0, %v2984_v42  ;;  %v8452_v0 = vld [vmem:[%s14912_s1 + $0x1cc] sm:$0xf] }
 0x49d   :  { %v11461_v24 = vadd.f32 %v3161_v1, %v3073_v41  ;;  %v7463_v1 = vld [vmem:[%s14912_s1 + $0x1d8] sm:$0xf0] }
 0x49e   :  { %v2896_v29 = vpop.f32.mrf.mxu2 }
 0x49f   :  { %15773 = vst [vmem:[#allocation5_spill] sm:$0xff] %v11461_v24  ;;  %v2897_v8 = vadd.f32 %v2896_v29, %v11275_v26  ;;  %v2985_v28 = vpop.f32.mrf.mxu3 }
 0x4a0   :  { %v3077_v48 = vpop.f32.mrf.mxu0 }
 0x4a1   :  { %v2986_v49 = vadd.f32 %v2985_v28, %v2897_v8 }
 0x4a2   :  { %v3166_v45 = vpop.f32.mrf.mxu1 }
 0x4a3   :  { %v3075_v36 = vadd.f32 %v3074_v47, %v2986_v49  ;;  %3214 = vmatmul.bf16.vlgmr.msrb.gmra.mxu2 %v15774_v55  ;;  %8043 = vmatmul.msk.bf16.vlgmr.msrb.gmra.mxu0 %vm1555_vm0, %v15775_v43  ;;  %v7466_v49 = vor.u32 %v8452_v0, %v7463_v1  ;;  %v7591_v47 = vld [vmem:[%s14912_s1 + $0x2d8] sm:$0xf0] }
 0x4a4   :  { %3303 = vmatmul.bf16.vlgmr.msrb.gmra.mxu3 %v15776_v59  ;;  %v7594_v41 = vor.u32 %v8484_v3, %v7591_v47  ;;  %v15778_v3 = vld [vmem:[#allocation42_spill] sm:$0xff]  ;;  %v15779_v47 = vld [vmem:[#allocation115_spill] sm:$0xff] }
 0x4a5   :  { %v11474_v14 = vadd.f32 %v3163_v38, %v3075_v36  ;;  %3481 = vmatmul.bf16.vlgmr.msrb.gmra.mxu1 %v15705_v30  ;;  %3563 = vmatpush.bf16.msra.mxu2 %v7466_v49  ;;  %v15780_v49 = vld [vmem:[#allocation44_spill] sm:$0xff] }
 0x4a6   :  { %v2899_v42 = vpop.f32.mrf.mxu2  ;;  %3652 = vmatpush.bf16.msra.mxu3 %v7594_v41 }
 0x4a7   :  { %15777 = vst [vmem:[#allocation9_spill] sm:$0xff] %v11474_v14  ;;  %v2900_v29 = vadd.f32 %v2899_v42, %v11275_v26  ;;  %v2988_v8 = vpop.f32.mrf.mxu3 }
 0x4a8   :  { %v3079_v28 = vpop.f32.mrf.mxu0 }
 0x4a9   :  { %v2989_v38 = vadd.f32 %v2988_v8, %v2900_v29 }
 0x4aa   :  { %v3168_v36 = vpop.f32.mrf.mxu1 }
 0x4ab   :  { %v3078_v30 = vadd.f32 %v3077_v48, %v2989_v38 }
 0x4ad   :  { %v11484_v0 = vadd.f32 %v3166_v45, %v3078_v30 }
 0x4ae   :  { %v2901_v1 = vpop.f32.mrf.mxu2 }
 0x4af   :  { %v2902_v43 = vadd.f32 %v2901_v1, %v11275_v26  ;;  %v2990_v59 = vpop.f32.mrf.mxu3 }
 0x4b0   :  { %v3082_v55 = vpop.f32.mrf.mxu0 }
 0x4b1   :  { %v2991_v14 = vadd.f32 %v2990_v59, %v2902_v43 }
 0x4b2   :  { %v3171_v24 = vpop.f32.mrf.mxu1 }
 0x4b3   :  { %v3080_v16 = vadd.f32 %v3079_v28, %v2991_v14  ;;  %3219 = vmatmul.bf16.gmra.mxu2 %v15778_v3  ;;  %8044 = vmatmul.msk.bf16.gmra.mxu0 %vm1555_vm0, %v15779_v47 }
 0x4b4   :  { %3308 = vmatmul.bf16.gmra.mxu3 %v15780_v49  ;;  %v15782_v49 = vld [vmem:[#allocation46_spill] sm:$0xff] }
 0x4b5   :  { %v11491_v42 = vadd.f32 %v3168_v36, %v3080_v16  ;;  %3486 = vmatmul.bf16.gmra.mxu1 %v15710_v33  ;;  %v15783_v33 = vld [vmem:[#allocation116_spill] sm:$0xff] }
 0x4b6   :  { %v2904_v48 = vpop.f32.mrf.mxu2 }
 0x4b7   :  { %v2905_v45 = vadd.f32 %v2904_v48, %v11275_v26  ;;  %v2993_v41 = vpop.f32.mrf.mxu3  ;;  %v15784_v48 = vld [vmem:[#allocation48_spill] sm:$0xff] }
 0x4b8   :  { %v3084_v29 = vpop.f32.mrf.mxu0 }
 0x4b9   :  { %v2994_v8 = vadd.f32 %v2993_v41, %v2905_v45  ;;  %v8480_v41 = vld [vmem:[%s14912_s1 + $0x2ac] sm:$0xf] }
 0x4ba   :  { %v3173_v43 = vpop.f32.mrf.mxu1 }
 0x4bb   :  { %v3083_v59 = vadd.f32 %v3082_v55, %v2994_v8  ;;  %v8448_v55 = vld [vmem:[%s14912_s1 + $0x1ac] sm:$0xf] }
 0x4bd   :  { %v11495_v14 = vadd.f32 %v3171_v24, %v3083_v59  ;;  %v7447_v24 = vld [vmem:[%s14912_s1 + $0x1b8] sm:$0xf0] }
 0x4be   :  { %v2906_v28 = vpop.f32.mrf.mxu2 }
 0x4bf   :  { %15781 = vst [vmem:[#allocation13_spill] sm:$0xff] %v11495_v14  ;;  %v2907_v38 = vadd.f32 %v2906_v28, %v11275_v26  ;;  %v2995_v30 = vpop.f32.mrf.mxu3 }
 0x4c0   :  { %v3087_v1 = vpop.f32.mrf.mxu0 }
 0x4c1   :  { %v2996_v47 = vadd.f32 %v2995_v30, %v2907_v38 }
 0x4c2   :  { %v3176_v16 = vpop.f32.mrf.mxu1 }
 0x4c3   :  { %v3085_v36 = vadd.f32 %v3084_v29, %v2996_v47  ;;  %3224 = vmatmul.bf16.gmra.mxu2 %v15782_v49  ;;  %8045 = vmatmul.msk.bf16.gmra.mxu0 %vm1555_vm0, %v15783_v33  ;;  %v7450_v47 = vor.u32 %v8448_v55, %v7447_v24  ;;  %v7575_v29 = vld [vmem:[%s14912_s1 + $0x2b8] sm:$0xf0] }
 0x4c4   :  { %3313 = vmatmul.bf16.gmra.mxu3 %v15784_v48  ;;  %v7578_v59 = vor.u32 %v8480_v41, %v7575_v29  ;;  %v15786_v41 = vld [vmem:[#allocation50_spill] sm:$0xff]  ;;  %v15787_v29 = vld [vmem:[#allocation117_spill] sm:$0xff] }
 0x4c5   :  { %v11508_v45 = vadd.f32 %v3173_v43, %v3085_v36  ;;  %3491 = vmatmul.bf16.gmra.mxu1 %v15715_v15  ;;  %3564 = vmatpush.bf16.msra.mxu2 %v7450_v47  ;;  %v15788_v47 = vld [vmem:[#allocation52_spill] sm:$0xff] }
 0x4c6   :  { %v2909_v8 = vpop.f32.mrf.mxu2  ;;  %3653 = vmatpush.bf16.msra.mxu3 %v7578_v59 }
 0x4c7   :  { %15785 = vst [vmem:[#allocation17_spill] sm:$0xff] %v11508_v45  ;;  %v2910_v28 = vadd.f32 %v2909_v8, %v11275_v26  ;;  %v2998_v38 = vpop.f32.mrf.mxu3 }
 0x4c8   :  { %v3089_v30 = vpop.f32.mrf.mxu0 }
 0x4c9   :  { %v2999_v43 = vadd.f32 %v2998_v38, %v2910_v28 }
 0x4ca   :  { %v3178_v36 = vpop.f32.mrf.mxu1 }
 0x4cb   :  { %v3088_v15 = vadd.f32 %v3087_v1, %v2999_v43 }
 0x4cd   :  { %v11518_v55 = vadd.f32 %v3176_v16, %v3088_v15 }
 0x4ce   :  { %v2911_v24 = vpop.f32.mrf.mxu2 }
 0x4cf   :  { %v2912_v33 = vadd.f32 %v2911_v24, %v11275_v26  ;;  %v3000_v48 = vpop.f32.mrf.mxu3 }
 0x4d0   :  { %v3092_v49 = vpop.f32.mrf.mxu0 }
 0x4d1   :  { %v3001_v45 = vadd.f32 %v3000_v48, %v2912_v33 }
 0x4d2   :  { %v3181_v14 = vpop.f32.mrf.mxu1 }
 0x4d3   :  { %v3090_v3 = vadd.f32 %v3089_v30, %v3001_v45  ;;  %3229 = vmatmul.bf16.gmra.mxu2 %v15786_v41  ;;  %8046 = vmatmul.msk.bf16.gmra.mxu0 %vm1555_vm0, %v15787_v29 }
 0x4d4   :  { %3318 = vmatmul.bf16.gmra.mxu3 %v15788_v47  ;;  %v15790_v47 = vld [vmem:[#allocation54_spill] sm:$0xff] }
 0x4d5   :  { %v11525_v8 = vadd.f32 %v3178_v36, %v3090_v3  ;;  %3496 = vmatmul.bf16.gmra.mxu1 %v15720_v63  ;;  %v15791_v63 = vld [vmem:[#allocation118_spill] sm:$0xff] }
 0x4d6   :  { %v2914_v1 = vpop.f32.mrf.mxu2 }
 0x4d7   :  { %v2915_v16 = vadd.f32 %v2914_v1, %v11275_v26  ;;  %v3003_v59 = vpop.f32.mrf.mxu3  ;;  %v15792_v1 = vld [vmem:[#allocation56_spill] sm:$0xff] }
 0x4d8   :  { %v3094_v28 = vpop.f32.mrf.mxu0 }
 0x4d9   :  { %v3004_v38 = vadd.f32 %v3003_v59, %v2915_v16  ;;  %v8476_v59 = vld [vmem:[%s14912_s1 + $0x28c] sm:$0xf] }
 0x4da   :  { %v3183_v33 = vpop.f32.mrf.mxu1 }
 0x4db   :  { %v3093_v48 = vadd.f32 %v3092_v49, %v3004_v38  ;;  %v8444_v49 = vld [vmem:[%s14912_s1 + $0x18c] sm:$0xf] }
 0x4dd   :  { %v11529_v45 = vadd.f32 %v3181_v14, %v3093_v48  ;;  %v7431_v14 = vld [vmem:[%s14912_s1 + $0x198] sm:$0xf0] }
 0x4de   :  { %v2916_v30 = vpop.f32.mrf.mxu2 }
 0x4df   :  { %15789 = vst [vmem:[#allocation21_spill] sm:$0xff] %v11529_v45  ;;  %v2917_v43 = vadd.f32 %v2916_v30, %v11275_v26  ;;  %v3005_v15 = vpop.f32.mrf.mxu3 }
 0x4e0   :  { %v3097_v24 = vpop.f32.mrf.mxu0 }
 0x4e1   :  { %v3006_v29 = vadd.f32 %v3005_v15, %v2917_v43 }
 0x4e2   :  { %v3186_v3 = vpop.f32.mrf.mxu1 }
 0x4e3   :  { %v3095_v36 = vadd.f32 %v3094_v28, %v3006_v29  ;;  %3234 = vmatmul.bf16.gmra.mxu2 %v15790_v47  ;;  %8047 = vmatmul.msk.bf16.gmra.mxu0 %vm1555_vm0, %v15791_v63  ;;  %v7434_v29 = vor.u32 %v8444_v49, %v7431_v14  ;;  %v7559_v28 = vld [vmem:[%s14912_s1 + $0x298] sm:$0xf0] }
 0x4e4   :  { %3323 = vmatmul.bf16.gmra.mxu3 %v15792_v1  ;;  %v7562_v48 = vor.u32 %v8476_v59, %v7559_v28  ;;  %v15794_v59 = vld [vmem:[#allocation58_spill] sm:$0xff]  ;;  %v15795_v28 = vld [vmem:[#allocation119_spill] sm:$0xff] }
 0x4e5   :  { %v11542_v16 = vadd.f32 %v3183_v33, %v3095_v36  ;;  %3501 = vmatmul.bf16.gmra.mxu1 %v15725_v56  ;;  %3565 = vmatpush.bf16.msra.mxu2 %v7434_v29  ;;  %v15796_v29 = vld [vmem:[#allocation60_spill] sm:$0xff] }
 0x4e6   :  { %v2919_v38 = vpop.f32.mrf.mxu2  ;;  %3654 = vmatpush.bf16.msra.mxu3 %v7562_v48 }
 0x4e7   :  { %15793 = vst [vmem:[#allocation25_spill] sm:$0xff] %v11542_v16  ;;  %v2920_v30 = vadd.f32 %v2919_v38, %v11275_v26  ;;  %v3008_v43 = vpop.f32.mrf.mxu3 }
 0x4e8   :  { %v3099_v15 = vpop.f32.mrf.mxu0 }
 0x4e9   :  { %v3009_v33 = vadd.f32 %v3008_v43, %v2920_v30 }
 0x4ea   :  { %v3188_v36 = vpop.f32.mrf.mxu1 }
 0x4eb   :  { %v3098_v56 = vadd.f32 %v3097_v24, %v3009_v33 }
 0x4ed   :  { %v11552_v49 = vadd.f32 %v3186_v3, %v3098_v56 }
 0x4ee   :  { %v2921_v14 = vpop.f32.mrf.mxu2 }
 0x4ef   :  { %v2922_v63 = vadd.f32 %v2921_v14, %v11275_v26  ;;  %v3010_v1 = vpop.f32.mrf.mxu3 }
 0x4f0   :  { %v3102_v47 = vpop.f32.mrf.mxu0 }
 0x4f1   :  { %v3011_v16 = vadd.f32 %v3010_v1, %v2922_v63 }
 0x4f2   :  { %v3191_v45 = vpop.f32.mrf.mxu1 }
 0x4f3   :  { %v3100_v41 = vadd.f32 %v3099_v15, %v3011_v16  ;;  %3239 = vmatmul.bf16.gmra.mxu2 %v15794_v59  ;;  %8048 = vmatmul.msk.bf16.gmra.mxu0 %vm1555_vm0, %v15795_v28 }
 0x4f4   :  { %3328 = vmatmul.bf16.gmra.mxu3 %v15796_v29  ;;  %v15798_v29 = vld [vmem:[#allocation63_spill] sm:$0xff] }
 0x4f5   :  { %v11559_v38 = vadd.f32 %v3188_v36, %v3100_v41  ;;  %3506 = vmatmul.bf16.gmra.mxu1 %v15730_v50  ;;  %v15799_v50 = vld [vmem:[#allocation61_spill] sm:$0xff] }
 0x4f6   :  { %v2924_v24 = vpop.f32.mrf.mxu2 }
 0x4f7   :  { %v2925_v3 = vadd.f32 %v2924_v24, %v11275_v26  ;;  %v3013_v48 = vpop.f32.mrf.mxu3  ;;  %v15800_v24 = vld [vmem:[#allocation66_spill] sm:$0xff] }
 0x4f8   :  { %v3104_v30 = vpop.f32.mrf.mxu0 }
 0x4f9   :  { %v3014_v43 = vadd.f32 %v3013_v48, %v2925_v3  ;;  %v8472_v48 = vld [vmem:[%s14912_s1 + $0x26c] sm:$0xf] }
 0x4fa   :  { %v3193_v63 = vpop.f32.mrf.mxu1 }
 0x4fb   :  { %v3103_v1 = vadd.f32 %v3102_v47, %v3014_v43  ;;  %v8440_v47 = vld [vmem:[%s14912_s1 + $0x16c] sm:$0xf] }
 0x4fd   :  { %v11563_v16 = vadd.f32 %v3191_v45, %v3103_v1  ;;  %v7415_v45 = vld [vmem:[%s14912_s1 + $0x178] sm:$0xf0] }
 0x4fe   :  { %v2926_v15 = vpop.f32.mrf.mxu2 }
 0x4ff   :  { %15797 = vst [vmem:[#allocation29_spill] sm:$0xff] %v11563_v16  ;;  %v2927_v33 = vadd.f32 %v2926_v15, %v11275_v26  ;;  %v3015_v56 = vpop.f32.mrf.mxu3 }
 0x500   :  { %v3107_v14 = vpop.f32.mrf.mxu0 }
 0x501   :  { %v3016_v28 = vadd.f32 %v3015_v56, %v2927_v33 }
 0x502   :  { %v3196_v41 = vpop.f32.mrf.mxu1 }
 0x503   :  { %v3105_v36 = vadd.f32 %v3104_v30, %v3016_v28  ;;  %3244 = vmatmul.bf16.gmra.mxu2 %v15798_v29  ;;  %8049 = vmatmul.msk.bf16.gmra.mxu0 %vm1555_vm0, %v15799_v50  ;;  %v7418_v28 = vor.u32 %v8440_v47, %v7415_v45  ;;  %v7543_v30 = vld [vmem:[%s14912_s1 + $0x278] sm:$0xf0] }
 0x504   :  { %3333 = vmatmul.bf16.gmra.mxu3 %v15800_v24  ;;  %v7546_v1 = vor.u32 %v8472_v48, %v7543_v30  ;;  %v15802_v48 = vld [vmem:[#allocation69_spill] sm:$0xff] }
 0x505   :  { %v11576_v3 = vadd.f32 %v3193_v63, %v3105_v36  ;;  %3511 = vmatmul.bf16.gmra.mxu1 %v15735_v60  ;;  %3566 = vmatpush.bf16.msra.mxu2 %v7418_v28  ;;  %v15803_v30 = vld [vmem:[#allocation65_spill] sm:$0xff]  ;;  %v15804_v28 = vld [vmem:[#allocation72_spill] sm:$0xff] }
 0x506   :  { %v2929_v43 = vpop.f32.mrf.mxu2  ;;  %3655 = vmatpush.bf16.msra.mxu3 %v7546_v1 }
 0x507   :  { %15801 = vst [vmem:[#allocation163_spill] sm:$0xff] %v11576_v3  ;;  %v2930_v15 = vadd.f32 %v2929_v43, %v11275_v26  ;;  %v3018_v33 = vpop.f32.mrf.mxu3 }
 0x508   :  { %v3109_v56 = vpop.f32.mrf.mxu0 }
 0x509   :  { %v3019_v63 = vadd.f32 %v3018_v33, %v2930_v15 }
 0x50a   :  { %v3198_v36 = vpop.f32.mrf.mxu1 }
 0x50b   :  { %v3108_v60 = vadd.f32 %v3107_v14, %v3019_v63 }
 0x50d   :  { %v11586_v47 = vadd.f32 %v3196_v41, %v3108_v60 }
 0x50e   :  { %v2931_v45 = vpop.f32.mrf.mxu2 }
 0x50f   :  { %v2932_v50 = vadd.f32 %v2931_v45, %v11275_v26  ;;  %v3020_v24 = vpop.f32.mrf.mxu3 }
 0x510   :  { %v3112_v29 = vpop.f32.mrf.mxu0 }
 0x511   :  { %v3021_v3 = vadd.f32 %v3020_v24, %v2932_v50 }
 0x512   :  { %v3201_v16 = vpop.f32.mrf.mxu1 }
 0x513   :  { %v3110_v59 = vadd.f32 %v3109_v56, %v3021_v3  ;;  %3249 = vmatmul.bf16.gmra.mxu2 %v15802_v48  ;;  %8050 = vmatmul.msk.bf16.gmra.mxu0 %vm1555_vm0, %v15803_v30 }
 0x514   :  { %3338 = vmatmul.bf16.gmra.mxu3 %v15804_v28  ;;  %v15806_v28 = vld [vmem:[#allocation67_spill] sm:$0xff] }
 0x515   :  { %v11593_v43 = vadd.f32 %v3198_v36, %v3110_v59  ;;  %3516 = vmatmul.bf16.gmra.mxu1 %v15740_v39  ;;  %v15805_v39 = vld [vmem:[#allocation75_spill] sm:$0xff] }
 0x516   :  { %v2934_v14 = vpop.f32.mrf.mxu2 }
 0x517   :  { %v2935_v41 = vadd.f32 %v2934_v14, %v11275_v26  ;;  %v3023_v1 = vpop.f32.mrf.mxu3  ;;  %v15807_v14 = vld [vmem:[#allocation78_spill] sm:$0xff] }
 0x518   :  { %v3114_v15 = vpop.f32.mrf.mxu0 }
 0x519   :  { %v3024_v33 = vadd.f32 %v3023_v1, %v2935_v41  ;;  %v8436_v1 = vld [vmem:[%s14912_s1 + $0x14c] sm:$0xf] }
 0x51a   :  { %v3203_v50 = vpop.f32.mrf.mxu1 }
 0x51b   :  { %v3113_v24 = vadd.f32 %v3112_v29, %v3024_v33 }
 0x51d   :  { %v11597_v3 = vadd.f32 %v3201_v16, %v3113_v24 }
 0x51e   :  { %v2936_v56 = vpop.f32.mrf.mxu2 }
 0x51f   :  { %v2937_v63 = vadd.f32 %v2936_v56, %v11275_v26  ;;  %v3025_v60 = vpop.f32.mrf.mxu3 }
 0x520   :  { %v3393_v45 = vpop.f32.mrf.mxu0 }
 0x521   :  { %v3026_v30 = vadd.f32 %v3025_v60, %v2937_v63 }
 0x522   :  { %v11600_v59 = vpop.f32.mrf.mxu1 }
 0x523   :  { %v3115_v36 = vadd.f32 %v3114_v15, %v3026_v30  ;;  %3254 = vmatmul.bf16.gmra.mxu2 %v15805_v39  ;;  %8051 = vmatmul.msk.bf16.gmra.mxu0 %vm1555_vm0, %v15806_v28  ;;  %v7399_v30 = vld [vmem:[%s14912_s1 + $0x158] sm:$0xf0]  ;;  %v8468_v15 = vld [vmem:[%s14912_s1 + $0x24c] sm:$0xf] }
 0x524   :  { %3343 = vmatmul.bf16.gmra.mxu3 %v15807_v14 }
 0x525   :  { %v11606_v41 = vadd.f32 %v3203_v50, %v3115_v36  ;;  %3521 = vmatmul.bf16.gmra.mxu1 %v15747_v4  ;;  %v7402_v50 = vor.u32 %v8436_v1, %v7399_v30  ;;  %v7527_v4 = vld [vmem:[%s14912_s1 + $0x258] sm:$0xf0] }
 0x526   :  { %v3215_v29 = vpop.f32.mrf.mxu2  ;;  %v7530_v24 = vor.u32 %v8468_v15, %v7527_v4 }
 0x527   :  { %v3216_v26 = vadd.f32 %v3215_v29, %v11283_v10  ;;  %v3304_v16 = vpop.f32.mrf.mxu3  ;;  %3567 = vmatpush.bf16.msra.mxu2 %v7402_v50 }
 0x528   :  { %v3395_v33 = vpop.f32.mrf.mxu0  ;;  %3656 = vmatpush.bf16.msra.mxu3 %v7530_v24 }
 0x529   :  { %v3305_v10 = vadd.f32 %v3304_v16, %v3216_v26 }
 0x52a   :  { %v11622_v56 = vpop.f32.mrf.mxu1 }
 0x52b   :  { %v11624_v63 = vadd.f32 %v3393_v45, %v3305_v10 }
 0x52d   :  { %15808 = vst [vmem:[#allocation69_spill] sm:$0xff] %v11624_v63 }
 0x52e   :  { %v3217_v60 = vpop.f32.mrf.mxu2 }
 0x52f   :  { %v3218_v36 = vadd.f32 %v3217_v60, %v11304_v11  ;;  %v3306_v29 = vpop.f32.mrf.mxu3 }
 0x530   :  { %v3398_v28 = vpop.f32.mrf.mxu0 }
 0x531   :  { %v3307_v14 = vadd.f32 %v3306_v29, %v3218_v36  ;;  %v8432_v29 = vld [vmem:[%s14912_s1 + $0x12c] sm:$0xf] }
 0x532   :  { %v11627_v39 = vpop.f32.mrf.mxu1 }
 0x533   :  { %v11629_v1 = vadd.f32 %v3395_v33, %v3307_v14  ;;  %3259 = vmatmul.bf16.gmra.mxu2 %v15670_v2  ;;  %8052 = vmatmul.msk.bf16.gmra.mxu0 %vm1555_vm0, %v10473_v25 }
 0x534   :  { %3348 = vmatmul.bf16.gmra.mxu3 %v15669_v44 }
 0x535   :  { %15809 = vst [vmem:[#allocation164_spill] sm:$0xff] %v11629_v1  ;;  %3526 = vmatmul.bf16.gmra.mxu1 %v15752_v61  ;;  %v15812_v61 = vld [vmem:[#allocation88_spill] sm:$0xff] }
 0x536   :  { %v3220_v45 = vpop.f32.mrf.mxu2 }
 0x537   :  { %v3221_v26 = vadd.f32 %v3220_v45, %v11311_v23  ;;  %v3309_v11 = vpop.f32.mrf.mxu3  ;;  %v7383_v45 = vld [vmem:[%s14912_s1 + $0x138] sm:$0xf0] }
 0x538   :  { %v3400_v16 = vpop.f32.mrf.mxu0 }
 0x539   :  { %v3310_v30 = vadd.f32 %v3309_v11, %v3221_v26  ;;  %v8464_v26 = vld [vmem:[%s14912_s1 + $0x22c] sm:$0xf] }
 0x53a   :  { %v11637_v15 = vpop.f32.mrf.mxu1 }
 0x53b   :  { %v11639_v50 = vadd.f32 %v3398_v28, %v3310_v30 }
 0x53d   :  { %15810 = vst [vmem:[#allocation165_spill] sm:$0xff] %v11639_v50 }
 0x53e   :  { %v3222_v14 = vpop.f32.mrf.mxu2 }
 0x53f   :  { %v3223_v33 = vadd.f32 %v3222_v14, %v11323_v9  ;;  %v3311_v4 = vpop.f32.mrf.mxu3 }
 0x540   :  { %v3403_v10 = vpop.f32.mrf.mxu0 }
 0x541   :  { %v3312_v24 = vadd.f32 %v3311_v4, %v3223_v33 }
 0x542   :  { %v11642_v60 = vpop.f32.mrf.mxu1 }
 0x543   :  { %v11644_v36 = vadd.f32 %v3400_v16, %v3312_v24  ;;  %3264 = vmatmul.bf16.gmra.mxu2 %v15675_v27  ;;  %8053 = vmatmul.msk.bf16.gmra.mxu0 %vm1555_vm0, %v10498_v52  ;;  %v7386_v16 = vor.u32 %v8432_v29, %v7383_v45 }
 0x544   :  { %3353 = vmatmul.bf16.gmra.mxu3 %v15812_v61 }
 0x545   :  { %15811 = vst [vmem:[#allocation166_spill] sm:$0xff] %v11644_v36  ;;  %3531 = vmatmul.bf16.gmra.mxu1 %v15755_v21  ;;  %v7511_v21 = vld [vmem:[%s14912_s1 + $0x238] sm:$0xf0]  ;;  %3568 = vmatpush.bf16.msra.mxu2 %v7386_v16 }
 0x546   :  { %v3225_v23 = vpop.f32.mrf.mxu2  ;;  %v7514_v30 = vor.u32 %v8464_v26, %v7511_v21 }
 0x547   :  { %v3226_v28 = vadd.f32 %v3225_v23, %v11333_v20  ;;  %v3314_v9 = vpop.f32.mrf.mxu3 }
 0x548   :  { %v3405_v11 = vpop.f32.mrf.mxu0  ;;  %3657 = vmatpush.bf16.msra.mxu3 %v7514_v30 }
 0x549   :  { %v3315_v20 = vadd.f32 %v3314_v9, %v3226_v28 }
 0x54a   :  { %v11664_v14 = vpop.f32.mrf.mxu1 }
 0x54b   :  { %v11666_v33 = vadd.f32 %v3403_v10, %v3315_v20 }
 0x54d   :  { %15813 = vst [vmem:[#allocation88_spill] sm:$0xff] %v11666_v33 }
 0x54e   :  { %v3227_v4 = vpop.f32.mrf.mxu2 }
 0x54f   :  { %v3228_v24 = vadd.f32 %v3227_v4, %v11339_v18  ;;  %v3316_v23 = vpop.f32.mrf.mxu3 }
 0x550   :  { %v3408_v36 = vpop.f32.mrf.mxu0 }
 0x551   :  { %v3317_v50 = vadd.f32 %v3316_v23, %v3228_v24  ;;  %v7367_v23 = vld [vmem:[%s14912_s1 + $0x118] sm:$0xf0] }
 0x552   :  { %v11669_v63 = vpop.f32.mrf.mxu1 }
 0x553   :  { %v11671_v29 = vadd.f32 %v3405_v11, %v3317_v50  ;;  %3269 = vmatmul.bf16.gmra.mxu2 %v15680_v35  ;;  %8054 = vmatmul.msk.bf16.gmra.mxu0 %vm1555_vm0, %v10535_v34 }
 0x554   :  { %3358 = vmatmul.bf16.gmra.mxu3 %v15679_v19 }
 0x555   :  { %15814 = vst [vmem:[#allocation167_spill] sm:$0xff] %v11671_v29  ;;  %3536 = vmatmul.bf16.gmra.mxu1 %v15758_v17 }
 0x556   :  { %v3230_v10 = vpop.f32.mrf.mxu2 }
 0x557   :  { %v3231_v28 = vadd.f32 %v3230_v10, %v11343_v54  ;;  %v3319_v18 = vpop.f32.mrf.mxu3  ;;  %v8460_v10 = vld [vmem:[%s14912_s1 + $0x20c] sm:$0xf] }
 0x558   :  { %v3410_v9 = vpop.f32.mrf.mxu0 }
 0x559   :  { %v3320_v45 = vadd.f32 %v3319_v18, %v3231_v28 }
 0x55a   :  { %v11679_v26 = vpop.f32.mrf.mxu1 }
 0x55b   :  { %v11681_v16 = vadd.f32 %v3408_v36, %v3320_v45  ;;  %v8428_v36 = vld [vmem:[%s14912_s1 + $0x10c] sm:$0xf] }
 0x55c   :  { %v7370_v18 = vor.u32 %v8428_v36, %v7367_v23 }
 0x55d   :  { %15815 = vst [vmem:[#allocation168_spill] sm:$0xff] %v11681_v16  ;;  %v7623_v16 = vld [vmem:[%s14912_s1 + $0x318] sm:$0xf0] }
 0x55e   :  { %v3232_v50 = vpop.f32.mrf.mxu2  ;;  %3569 = vmatpush.bf16.msra.mxu2 %v7370_v18  ;;  %v8516_v18 = vld [vmem:[%s14912_s1 + $0x3cc] sm:$0xf] }
 0x55f   :  { %v3233_v11 = vadd.f32 %v3232_v50, %v11355_v5  ;;  %v3321_v21 = vpop.f32.mrf.mxu3 }
 0x560   :  { %v3413_v20 = vpop.f32.mrf.mxu0 }
 0x561   :  { %v3322_v30 = vadd.f32 %v3321_v21, %v3233_v11  ;;  %v8520_v11 = vld [vmem:[%s14912_s1 + $0x3ec] sm:$0xf]  ;;  %v7735_v21 = vld [vmem:[%s14912_s1 + $0x3f8] sm:$0xf0] }
 0x562   :  { %v11684_v4 = vpop.f32.mrf.mxu1 }
 0x563   :  { %v11686_v24 = vadd.f32 %v3410_v9, %v3322_v30  ;;  %3274 = vmatmul.bf16.gmra.mxu2 %v15685_v40  ;;  %8055 = vmatmul.msk.bf16.gmra.mxu0 %vm1555_vm0, %v10560_v46  ;;  %v7738_v30 = vor.u32 %v8520_v11, %v7735_v21  ;;  %v7847_v21 = vld [vmem:[%s14912_s1 + $0x4d8] sm:$0xf0]  ;;  %v15869_v46 = vld [vmem:[#allocation59_spill] sm:$0xff] }
 0x564   :  { %3363 = vmatmul.bf16.gmra.mxu3 %v15684_v37 }
 0x565   :  { %15816 = vst [vmem:[#allocation169_spill] sm:$0xff] %v11686_v24  ;;  %3541 = vmatmul.bf16.gmra.mxu1 %v15761_v6  ;;  %v7495_v6 = vld [vmem:[%s14912_s1 + $0x218] sm:$0xf0]  ;;  %3740 = vmatpush.bf16.msra.mxu0 %v7738_v30 }
 0x566   :  { %v3235_v17 = vpop.f32.mrf.mxu2  ;;  %v7498_v9 = vor.u32 %v8460_v10, %v7495_v6  ;;  %v7719_v6 = vld [vmem:[%s14912_s1 + $0x3d8] sm:$0xf0] }
 0x567   :  { %v3236_v54 = vadd.f32 %v3235_v17, %v11365_v7  ;;  %v3324_v5 = vpop.f32.mrf.mxu3 }
 0x568   :  { %v3415_v28 = vpop.f32.mrf.mxu0  ;;  %3658 = vmatpush.bf16.msra.mxu3 %v7498_v9  ;;  %v7722_v9 = vor.u32 %v8516_v18, %v7719_v6  ;;  %v8544_v6 = vld [vmem:[%s14912_s1 + $0x4ac] sm:$0xf] }
 0x569   :  { %v3325_v7 = vadd.f32 %v3324_v5, %v3236_v54  ;;  %v8552_v54 = vld [vmem:[%s14912_s1 + $0x4ec] sm:$0xf] }
 0x56a   :  { %v11706_v45 = vpop.f32.mrf.mxu1  ;;  %3741 = vmatpush.bf16.msra.mxu0 %v7722_v9 }
 0x56b   :  { %v11708_v50 = vadd.f32 %v3413_v20, %v3325_v7  ;;  %v7863_v20 = vld [vmem:[%s14912_s1 + $0x4f8] sm:$0xf0] }
 0x56c   :  { %v7866_v23 = vor.u32 %v8552_v54, %v7863_v20  ;;  %v15820_v54 = vld [vmem:[#allocation122_spill] sm:$0xff] }
 0x56d   :  { %15817 = vst [vmem:[#allocation170_spill] sm:$0xff] %v11708_v50 }
 0x56e   :  { %v3237_v17 = vpop.f32.mrf.mxu2  ;;  %3829 = vmatpush.bf16.msra.mxu1 %v7866_v23  ;;  %v7703_v23 = vld [vmem:[%s14912_s1 + $0x3b8] sm:$0xf0] }
 0x56f   :  { %v3238_v5 = vadd.f32 %v3237_v17, %v11383_v51  ;;  %v3326_v36 = vpop.f32.mrf.mxu3  ;;  %v8548_v51 = vld [vmem:[%s14912_s1 + $0x4cc] sm:$0xf] }
 0x570   :  { %v3418_v10 = vpop.f32.mrf.mxu0  ;;  %v15819_v17 = vld [vmem:[#allocation102_spill] sm:$0xff]  ;;  %v7850_v20 = vor.u32 %v8548_v51, %v7847_v21 }
 0x571   :  { %v3327_v7 = vadd.f32 %v3326_v36, %v3238_v5  ;;  %v15821_v5 = vld [vmem:[#allocation104_spill] sm:$0xff]  ;;  %v8512_v36 = vld [vmem:[%s14912_s1 + $0x3ac] sm:$0xf] }
 0x572   :  { %v11729_v11 = vpop.f32.mrf.mxu1  ;;  %3830 = vmatpush.bf16.msra.mxu1 %v7850_v20  ;;  %v7687_v20 = vld [vmem:[%s14912_s1 + $0x398] sm:$0xf0] }
 0x573   :  { %v11737_v30 = vadd.f32 %v3415_v28, %v3327_v7  ;;  %3279 = vmatmul.bf16.gmra.mxu2 %v15819_v17  ;;  %8056 = vmatmul.msk.bf16.gmra.mxu0 %vm1555_vm0, %v15820_v54  ;;  %v7706_v28 = vor.u32 %v8512_v36, %v7703_v23  ;;  %v7831_v7 = vld [vmem:[%s14912_s1 + $0x4b8] sm:$0xf0]  ;;  %v15855_v54 = vld [vmem:[#allocation51_spill] sm:$0xff] }
 0x574   :  { %3368 = vmatmul.bf16.gmra.mxu3 %v15821_v5  ;;  %v7834_v21 = vor.u32 %v8544_v6, %v7831_v7  ;;  %v8504_v7 = vld [vmem:[%s14912_s1 + $0x36c] sm:$0xf]  ;;  %v15868_v5 = vld [vmem:[#allocation28_spill] sm:$0xff] }
 0x575   :  { %15818 = vst [vmem:[#allocation171_spill] sm:$0xff] %v11737_v30  ;;  %3546 = vmatmul.bf16.gmra.mxu1 %v15764_v12  ;;  %3742 = vmatpush.bf16.msra.mxu0 %v7706_v28  ;;  %v8508_v12 = vld [vmem:[%s14912_s1 + $0x38c] sm:$0xf]  ;;  %v7815_v28 = vld [vmem:[%s14912_s1 + $0x498] sm:$0xf0] }
 0x576   :  { %v3240_v18 = vpop.f32.mrf.mxu2  ;;  %v7690_v23 = vor.u32 %v8508_v12, %v7687_v20  ;;  %3831 = vmatpush.bf16.msra.mxu1 %v7834_v21  ;;  %v8536_v12 = vld [vmem:[%s14912_s1 + $0x46c] sm:$0xf] }
 0x577   :  { %v3241_v9 = vadd.f32 %v3240_v18, %v11399_v53  ;;  %v3329_v51 = vpop.f32.mrf.mxu3  ;;  %v8540_v53 = vld [vmem:[%s14912_s1 + $0x48c] sm:$0xf] }
 0x578   :  { %v3420_v30 = vpop.f32.mrf.mxu0  ;;  %v7818_v6 = vor.u32 %v8540_v53, %v7815_v28  ;;  %v8500_v28 = vld [vmem:[%s14912_s1 + $0x34c] sm:$0xf] }
 0x579   :  { %v3330_v36 = vadd.f32 %v3329_v51, %v3241_v9  ;;  %3743 = vmatpush.bf16.msra.mxu0 %v7690_v23  ;;  %v7671_v9 = vld [vmem:[%s14912_s1 + $0x378] sm:$0xf0] }
 0x57a   :  { %v11763_v50 = vpop.f32.mrf.mxu1  ;;  %v7674_v51 = vor.u32 %v8504_v7, %v7671_v9  ;;  %3832 = vmatpush.bf16.msra.mxu1 %v7818_v6  ;;  %v7655_v6 = vld [vmem:[%s14912_s1 + $0x358] sm:$0xf0] }
 0x57b   :  { %v11771_v18 = vadd.f32 %v3418_v10, %v3330_v36  ;;  %v7799_v10 = vld [vmem:[%s14912_s1 + $0x478] sm:$0xf0]  ;;  %v7658_v9 = vor.u32 %v8500_v28, %v7655_v6 }
 0x57c   :  { %v7802_v23 = vor.u32 %v8536_v12, %v7799_v10  ;;  %v15824_v12 = vld [vmem:[#allocation107_spill] sm:$0xff]  ;;  %v15825_v10 = vld [vmem:[#allocation125_spill] sm:$0xff]  ;;  %v7639_v28 = vld [vmem:[%s14912_s1 + $0x338] sm:$0xf0] }
 0x57d   :  { %15822 = vst [vmem:[#allocation102_spill] sm:$0xff] %v11771_v18  ;;  %3744 = vmatpush.bf16.msra.mxu0 %v7674_v51  ;;  %v7783_v51 = vld [vmem:[%s14912_s1 + $0x458] sm:$0xf0] }
 0x57e   :  { %v3242_v21 = vpop.f32.mrf.mxu2  ;;  %3833 = vmatpush.bf16.msra.mxu1 %v7802_v23  ;;  %v8496_v23 = vld [vmem:[%s14912_s1 + $0x32c] sm:$0xf] }
 0x57f   :  { %v3243_v20 = vadd.f32 %v3242_v21, %v11423_v57  ;;  %v3331_v36 = vpop.f32.mrf.mxu3  ;;  %v8532_v57 = vld [vmem:[%s14912_s1 + $0x44c] sm:$0xf] }
 0x580   :  { %v3423_v53 = vpop.f32.mrf.mxu0 }
 0x581   :  { %v3332_v7 = vadd.f32 %v3331_v36, %v3243_v20  ;;  %v7786_v20 = vor.u32 %v8532_v57, %v7783_v51  ;;  %v15826_v36 = vld [vmem:[#allocation109_spill] sm:$0xff]  ;;  %3745 = vmatpush.bf16.msra.mxu0 %v7658_v9  ;;  %v7767_v9 = vld [vmem:[%s14912_s1 + $0x438] sm:$0xf0] }
 0x582   :  { %v11792_v18 = vpop.f32.mrf.mxu1 }
 0x583   :  { %v11800_v21 = vadd.f32 %v3420_v30, %v3332_v7  ;;  %3284 = vmatmul.bf16.gmra.mxu2 %v15824_v12  ;;  %8057 = vmatmul.msk.bf16.gmra.mxu0 %vm1555_vm0, %v15825_v10  ;;  %v7642_v30 = vor.u32 %v8496_v23, %v7639_v28  ;;  %v8528_v7 = vld [vmem:[%s14912_s1 + $0x42c] sm:$0xf] }
 0x584   :  { %3373 = vmatmul.bf16.gmra.mxu3 %v15826_v36  ;;  %3834 = vmatpush.bf16.msra.mxu1 %v7786_v20  ;;  %v8588_v20 = vld [vmem:[%s14912_s1 + $0x60c] sm:$0xf]  ;;  %v7770_v23 = vor.u32 %v8528_v7, %v7767_v9  ;;  %v15854_v36 = vld [vmem:[#allocation20_spill] sm:$0xff] }
 0x585   :  { %15823 = vst [vmem:[#allocation172_spill] sm:$0xff] %v11800_v21  ;;  %3551 = vmatmul.bf16.gmra.mxu1 %v15767_v58  ;;  %v8584_v21 = vld [vmem:[%s14912_s1 + $0x5ec] sm:$0xf]  ;;  %v7991_v58 = vld [vmem:[%s14912_s1 + $0x5f8] sm:$0xf0]  ;;  %3746 = vmatpush.bf16.msra.mxu0 %v7642_v30 }
 0x586   :  { %v3245_v6 = vpop.f32.mrf.mxu2  ;;  %v7994_v24 = vor.u32 %v8584_v21, %v7991_v58  ;;  %v8524_v21 = vld [vmem:[%s14912_s1 + $0x40c] sm:$0xf]  ;;  %v7751_v30 = vld [vmem:[%s14912_s1 + $0x418] sm:$0xf0] }
 0x587   :  { %v3246_v57 = vadd.f32 %v3245_v6, %v11451_v32  ;;  %v3334_v51 = vpop.f32.mrf.mxu3  ;;  %v8007_v32 = vld [vmem:[%s14912_s1 + $0x618] sm:$0xf0]  ;;  %v8492_v6 = vld [vmem:[%s14912_s1 + $0x30c] sm:$0xf]  ;;  %v7754_v9 = vor.u32 %v8524_v21, %v7751_v30 }
 0x588   :  { %v3425_v28 = vpop.f32.mrf.mxu0  ;;  %v8010_v33 = vor.u32 %v8588_v20, %v8007_v32  ;;  %v7626_v1 = vor.u32 %v8492_v6, %v7623_v16  ;;  %3918 = vmatpush.bf16.msrb.mxu2 %v7994_v24  ;;  %3835 = vmatpush.bf16.msra.mxu1 %v7770_v23 }
 0x589   :  { %v3335_v29 = vadd.f32 %v3334_v51, %v3246_v57 }
 0x58a   :  { %v11838_v10 = vpop.f32.mrf.mxu1  ;;  %4014 = vmatpush.bf16.msrb.mxu3 %v8010_v33  ;;  %3747 = vmatpush.bf16.msra.mxu0 %v7626_v1  ;;  %v15829_v33 = vld [vmem:[#allocation33_spill] sm:$0xff] }
 0x58b   :  { %v11846_v7 = vadd.f32 %v3423_v53, %v3335_v29  ;;  %v15830_v29 = vld [vmem:[#allocation5_spill] sm:$0xff] }
 0x58c   :  { %3836 = vmatpush.bf16.msra.mxu1 %v7754_v9  ;;  %v15832_v9 = vld [vmem:[#allocation9_spill] sm:$0xff] }
 0x58d   :  { %15827 = vst [vmem:[#allocation107_spill] sm:$0xff] %v11846_v7 }
 0x58e   :  { %v3247_v57 = vpop.f32.mrf.mxu2 }
 0x58f   :  { %v3248_v16 = vadd.f32 %v3247_v57, %v11457_v22  ;;  %v3336_v51 = vpop.f32.mrf.mxu3 }
 0x590   :  { %v3428_v24 = vpop.f32.mrf.mxu0 }
 0x591   :  { %v3337_v58 = vadd.f32 %v3336_v51, %v3248_v16 }
 0x592   :  { %v11849_v20 = vpop.f32.mrf.mxu1 }
 0x593   :  { %v11851_v23 = vadd.f32 %v3425_v28, %v3337_v58  ;;  %3289 = vmatmul.bf16.gmra.mxu2 %v15701_v13  ;;  %8058 = vmatmul.msk.bf16.gmra.mxu0 %vm1555_vm0, %v15703_v31  ;;  %v15840_v31 = vld [vmem:[#allocation12_spill] sm:$0xff] }
 0x594   :  { %3378 = vmatmul.bf16.gmra.mxu3 %v15700_v62  ;;  %v15841_v62 = vld [vmem:[#allocation43_spill] sm:$0xff] }
 0x595   :  { %15828 = vst [vmem:[#allocation173_spill] sm:$0xff] %v11851_v23  ;;  %3556 = vmatmul.bf16.gmra.mxu1 %v15829_v33  ;;  %v15834_v33 = vld [vmem:[#allocation8_spill] sm:$0xff] }
 0x596   :  { %v3250_v1 = vpop.f32.mrf.mxu2 }
 0x597   :  { %v3251_v53 = vadd.f32 %v3250_v1, %v15830_v29  ;;  %v3339_v22 = vpop.f32.mrf.mxu3  ;;  %v15835_v1 = vld [vmem:[#allocation39_spill] sm:$0xff]  ;;  %v15836_v29 = vld [vmem:[#allocation37_spill] sm:$0xff] }
 0x598   :  { %v3430_v32 = vpop.f32.mrf.mxu0 }
 0x599   :  { %v3340_v6 = vadd.f32 %v3339_v22, %v3251_v53  ;;  %v15837_v53 = vld [vmem:[#allocation38_spill] sm:$0xff] }
 0x59a   :  { %v11859_v21 = vpop.f32.mrf.mxu1 }
 0x59b   :  { %v11861_v30 = vadd.f32 %v3428_v24, %v3340_v6 }
 0x59d   :  { %15831 = vst [vmem:[#allocation33_spill] sm:$0xff] %v11861_v30 }
 0x59e   :  { %v3252_v28 = vpop.f32.mrf.mxu2 }
 0x59f   :  { %v3253_v57 = vadd.f32 %v3252_v28, %v15832_v9  ;;  %v3341_v16 = vpop.f32.mrf.mxu3  ;;  %v8580_v28 = vld [vmem:[%s14912_s1 + $0x5cc] sm:$0xf] }
 0x5a0   :  { %v3433_v51 = vpop.f32.mrf.mxu0 }
 0x5a1   :  { %v3342_v58 = vadd.f32 %v3341_v16, %v3253_v57 }
 0x5a2   :  { %v11864_v23 = vpop.f32.mrf.mxu1 }
 0x5a3   :  { %v11866_v7 = vadd.f32 %v3430_v32, %v3342_v58  ;;  %3570 = vmatmul.bf16.vlgmr.msra.gmra.mxu2 %v15834_v33  ;;  %3748 = vmatmul.bf16.vlgmr.msra.gmra.mxu0 %v15835_v1  ;;  %v7975_v32 = vld [vmem:[%s14912_s1 + $0x5d8] sm:$0xf0] }
 0x5a4   :  { %3659 = vmatmul.bf16.vlgmr.msra.gmra.mxu3 %v15836_v29  ;;  %v7978_v57 = vor.u32 %v8580_v28, %v7975_v32  ;;  %v15844_v28 = vld [vmem:[#allocation13_spill] sm:$0xff] }
 0x5a5   :  { %15833 = vst [vmem:[#allocation5_spill] sm:$0xff] %v11866_v7  ;;  %3837 = vmatmul.bf16.vlgmr.msra.gmra.mxu1 %v15837_v53 }
 0x5a6   :  { %v3255_v24 = vpop.f32.mrf.mxu2  ;;  %3919 = vmatpush.bf16.msrb.mxu2 %v7978_v57 }
 0x5a7   :  { %v3256_v22 = vadd.f32 %v3255_v24, %v11484_v0  ;;  %v3344_v6 = vpop.f32.mrf.mxu3 }
 0x5a8   :  { %v3435_v9 = vpop.f32.mrf.mxu0 }
 0x5a9   :  { %v3345_v16 = vadd.f32 %v3344_v6, %v3256_v22  ;;  %v15842_v22 = vld [vmem:[#allocation41_spill] sm:$0xff]  ;;  %v15843_v6 = vld [vmem:[#allocation42_spill] sm:$0xff] }
 0x5aa   :  { %v11879_v58 = vpop.f32.mrf.mxu1 }
 0x5ab   :  { %v11881_v33 = vadd.f32 %v3433_v51, %v3345_v16 }
 0x5ad   :  { %15838 = vst [vmem:[#allocation9_spill] sm:$0xff] %v11881_v33 }
 0x5ae   :  { %v3257_v1 = vpop.f32.mrf.mxu2 }
 0x5af   :  { %v3258_v0 = vadd.f32 %v3257_v1, %v11491_v42  ;;  %v3346_v29 = vpop.f32.mrf.mxu3 }
 0x5b0   :  { %v3438_v53 = vpop.f32.mrf.mxu0 }
 0x5b1   :  { %v3347_v24 = vadd.f32 %v3346_v29, %v3258_v0  ;;  %v15846_v29 = vld [vmem:[#allocation17_spill] sm:$0xff] }
 0x5b2   :  { %v11884_v7 = vpop.f32.mrf.mxu1 }
 0x5b3   :  { %v11886_v30 = vadd.f32 %v3435_v9, %v3347_v24  ;;  %3575 = vmatmul.bf16.gmra.mxu2 %v15840_v31  ;;  %3753 = vmatmul.bf16.gmra.mxu0 %v15841_v62 }
 0x5b4   :  { %3664 = vmatmul.bf16.gmra.mxu3 %v15842_v22 }
 0x5b5   :  { %15839 = vst [vmem:[#allocation8_spill] sm:$0xff] %v11886_v30  ;;  %3842 = vmatmul.bf16.gmra.mxu1 %v15843_v6  ;;  %v15848_v6 = vld [vmem:[#allocation16_spill] sm:$0xff] }
 0x5b6   :  { %v3260_v51 = vpop.f32.mrf.mxu2 }
 0x5b7   :  { %v3261_v32 = vadd.f32 %v3260_v51, %v15844_v28  ;;  %v3349_v57 = vpop.f32.mrf.mxu3  ;;  %v15849_v51 = vld [vmem:[#allocation47_spill] sm:$0xff]  ;;  %v15850_v28 = vld [vmem:[#allocation45_spill] sm:$0xff] }
 0x5b8   :  { %v3440_v42 = vpop.f32.mrf.mxu0 }
 0x5b9   :  { %v3350_v16 = vadd.f32 %v3349_v57, %v3261_v32  ;;  %v15851_v32 = vld [vmem:[#allocation46_spill] sm:$0xff] }
 0x5ba   :  { %v11893_v1 = vpop.f32.mrf.mxu1 }
 0x5bb   :  { %v11895_v0 = vadd.f32 %v3438_v53, %v3350_v16 }
 0x5bd   :  { %15845 = vst [vmem:[#allocation39_spill] sm:$0xff] %v11895_v0 }
 0x5be   :  { %v3262_v9 = vpop.f32.mrf.mxu2 }
 0x5bf   :  { %v3263_v24 = vadd.f32 %v3262_v9, %v15846_v29  ;;  %v3351_v31 = vpop.f32.mrf.mxu3  ;;  %v8576_v9 = vld [vmem:[%s14912_s1 + $0x5ac] sm:$0xf] }
 0x5c0   :  { %v3443_v30 = vpop.f32.mrf.mxu0 }
 0x5c1   :  { %v3352_v62 = vadd.f32 %v3351_v31, %v3263_v24 }
 0x5c2   :  { %v11898_v33 = vpop.f32.mrf.mxu1 }
 0x5c3   :  { %v11900_v22 = vadd.f32 %v3440_v42, %v3352_v62  ;;  %3580 = vmatmul.bf16.gmra.mxu2 %v15848_v6  ;;  %3758 = vmatmul.bf16.gmra.mxu0 %v15849_v51  ;;  %v7959_v42 = vld [vmem:[%s14912_s1 + $0x5b8] sm:$0xf0] }
 0x5c4   :  { %3669 = vmatmul.bf16.gmra.mxu3 %v15850_v28  ;;  %v7962_v24 = vor.u32 %v8576_v9, %v7959_v42  ;;  %v15858_v9 = vld [vmem:[#allocation21_spill] sm:$0xff] }
 0x5c5   :  { %15847 = vst [vmem:[#allocation37_spill] sm:$0xff] %v11900_v22  ;;  %3847 = vmatmul.bf16.gmra.mxu1 %v15851_v32 }
 0x5c6   :  { %v3265_v53 = vpop.f32.mrf.mxu2  ;;  %3920 = vmatpush.bf16.msrb.mxu2 %v7962_v24 }
 0x5c7   :  { %v3266_v57 = vadd.f32 %v3265_v53, %v11518_v55  ;;  %v3354_v16 = vpop.f32.mrf.mxu3 }
 0x5c8   :  { %v3445_v29 = vpop.f32.mrf.mxu0 }
 0x5c9   :  { %v3355_v31 = vadd.f32 %v3354_v16, %v3266_v57  ;;  %v15856_v57 = vld [vmem:[#allocation49_spill] sm:$0xff]  ;;  %v15857_v16 = vld [vmem:[#allocation50_spill] sm:$0xff] }
 0x5ca   :  { %v11913_v62 = vpop.f32.mrf.mxu1 }
 0x5cb   :  { %v11915_v6 = vadd.f32 %v3443_v30, %v3355_v31 }
 0x5cd   :  { %15852 = vst [vmem:[#allocation38_spill] sm:$0xff] %v11915_v6 }
 0x5ce   :  { %v3267_v51 = vpop.f32.mrf.mxu2 }
 0x5cf   :  { %v3268_v55 = vadd.f32 %v3267_v51, %v11525_v8  ;;  %v3356_v28 = vpop.f32.mrf.mxu3 }
 0x5d0   :  { %v3448_v32 = vpop.f32.mrf.mxu0 }
 0x5d1   :  { %v3357_v53 = vadd.f32 %v3356_v28, %v3268_v55  ;;  %v15860_v28 = vld [vmem:[#allocation25_spill] sm:$0xff] }
 0x5d2   :  { %v11918_v22 = vpop.f32.mrf.mxu1 }
 0x5d3   :  { %v11920_v0 = vadd.f32 %v3445_v29, %v3357_v53  ;;  %3585 = vmatmul.bf16.gmra.mxu2 %v15854_v36  ;;  %3763 = vmatmul.bf16.gmra.mxu0 %v15855_v54 }
 0x5d4   :  { %3674 = vmatmul.bf16.gmra.mxu3 %v15856_v57 }
 0x5d5   :  { %15853 = vst [vmem:[#allocation12_spill] sm:$0xff] %v11920_v0  ;;  %3852 = vmatmul.bf16.gmra.mxu1 %v15857_v16  ;;  %v15862_v16 = vld [vmem:[#allocation24_spill] sm:$0xff] }
 0x5d6   :  { %v3270_v30 = vpop.f32.mrf.mxu2 }
 0x5d7   :  { %v3271_v42 = vadd.f32 %v3270_v30, %v15858_v9  ;;  %v3359_v24 = vpop.f32.mrf.mxu3  ;;  %v15863_v30 = vld [vmem:[#allocation55_spill] sm:$0xff]  ;;  %v15864_v9 = vld [vmem:[#allocation53_spill] sm:$0xff] }
 0x5d8   :  { %v3450_v8 = vpop.f32.mrf.mxu0 }
 0x5d9   :  { %v3360_v31 = vadd.f32 %v3359_v24, %v3271_v42  ;;  %v15865_v42 = vld [vmem:[#allocation54_spill] sm:$0xff] }
 0x5da   :  { %v11927_v51 = vpop.f32.mrf.mxu1 }
 0x5db   :  { %v11929_v55 = vadd.f32 %v3448_v32, %v3360_v31 }
 0x5dd   :  { %15859 = vst [vmem:[#allocation43_spill] sm:$0xff] %v11929_v55 }
 0x5de   :  { %v3272_v29 = vpop.f32.mrf.mxu2 }
 0x5df   :  { %v3273_v53 = vadd.f32 %v3272_v29, %v15860_v28  ;;  %v3361_v36 = vpop.f32.mrf.mxu3  ;;  %v8572_v29 = vld [vmem:[%s14912_s1 + $0x58c] sm:$0xf] }
 0x5e0   :  { %v3453_v0 = vpop.f32.mrf.mxu0 }
 0x5e1   :  { %v3362_v54 = vadd.f32 %v3361_v36, %v3273_v53 }
 0x5e2   :  { %v11932_v6 = vpop.f32.mrf.mxu1 }
 0x5e3   :  { %v11934_v57 = vadd.f32 %v3450_v8, %v3362_v54  ;;  %3590 = vmatmul.bf16.gmra.mxu2 %v15862_v16  ;;  %3768 = vmatmul.bf16.gmra.mxu0 %v15863_v30  ;;  %v7943_v8 = vld [vmem:[%s14912_s1 + $0x598] sm:$0xf0] }
 0x5e4   :  { %3679 = vmatmul.bf16.gmra.mxu3 %v15864_v9  ;;  %v7946_v53 = vor.u32 %v8572_v29, %v7943_v8  ;;  %v15872_v29 = vld [vmem:[#allocation29_spill] sm:$0xff] }
 0x5e5   :  { %15861 = vst [vmem:[#allocation41_spill] sm:$0xff] %v11934_v57  ;;  %3857 = vmatmul.bf16.gmra.mxu1 %v15865_v42 }
 0x5e6   :  { %v3275_v32 = vpop.f32.mrf.mxu2  ;;  %3921 = vmatpush.bf16.msrb.mxu2 %v7946_v53 }
 0x5e7   :  { %v3276_v24 = vadd.f32 %v3275_v32, %v11552_v49  ;;  %v3364_v31 = vpop.f32.mrf.mxu3 }
 0x5e8   :  { %v3455_v28 = vpop.f32.mrf.mxu0 }
 0x5e9   :  { %v3365_v36 = vadd.f32 %v3364_v31, %v3276_v24  ;;  %v15870_v24 = vld [vmem:[#allocation57_spill] sm:$0xff]  ;;  %v15871_v31 = vld [vmem:[#allocation58_spill] sm:$0xff] }
 0x5ea   :  { %v11947_v54 = vpop.f32.mrf.mxu1 }
 0x5eb   :  { %v11949_v16 = vadd.f32 %v3453_v0, %v3365_v36 }
 0x5ed   :  { %15866 = vst [vmem:[#allocation42_spill] sm:$0xff] %v11949_v16 }
 0x5ee   :  { %v3277_v30 = vpop.f32.mrf.mxu2 }
 0x5ef   :  { %v3278_v49 = vadd.f32 %v3277_v30, %v11559_v38  ;;  %v3366_v9 = vpop.f32.mrf.mxu3 }
 0x5f0   :  { %v3458_v42 = vpop.f32.mrf.mxu0 }
 0x5f1   :  { %v3367_v32 = vadd.f32 %v3366_v9, %v3278_v49  ;;  %v15874_v9 = vld [vmem:[#allocation163_spill] sm:$0xff] }
 0x5f2   :  { %v11952_v57 = vpop.f32.mrf.mxu1 }
 0x5f3   :  { %v11954_v55 = vadd.f32 %v3455_v28, %v3367_v32  ;;  %3595 = vmatmul.bf16.gmra.mxu2 %v15868_v5  ;;  %3773 = vmatmul.bf16.gmra.mxu0 %v15869_v46 }
 0x5f4   :  { %3684 = vmatmul.bf16.gmra.mxu3 %v15870_v24 }
 0x5f5   :  { %15867 = vst [vmem:[#allocation13_spill] sm:$0xff] %v11954_v55  ;;  %3862 = vmatmul.bf16.gmra.mxu1 %v15871_v31  ;;  %v15876_v31 = vld [vmem:[#allocation32_spill] sm:$0xff] }
 0x5f6   :  { %v3280_v0 = vpop.f32.mrf.mxu2 }
 0x5f7   :  { %v3281_v8 = vadd.f32 %v3280_v0, %v15872_v29  ;;  %v3369_v53 = vpop.f32.mrf.mxu3  ;;  %v15877_v0 = vld [vmem:[#allocation64_spill] sm:$0xff]  ;;  %v15878_v29 = vld [vmem:[#allocation62_spill] sm:$0xff] }
 0x5f8   :  { %v3460_v38 = vpop.f32.mrf.mxu0 }
 0x5f9   :  { %v3370_v36 = vadd.f32 %v3369_v53, %v3281_v8  ;;  %v15879_v8 = vld [vmem:[#allocation63_spill] sm:$0xff] }
 0x5fa   :  { %v11961_v30 = vpop.f32.mrf.mxu1 }
 0x5fb   :  { %v11963_v49 = vadd.f32 %v3458_v42, %v3370_v36 }
 0x5fd   :  { %15873 = vst [vmem:[#allocation17_spill] sm:$0xff] %v11963_v49 }
 0x5fe   :  { %v3282_v28 = vpop.f32.mrf.mxu2 }
 0x5ff   :  { %v3283_v32 = vadd.f32 %v3282_v28, %v15874_v9  ;;  %v3371_v5 = vpop.f32.mrf.mxu3 }
 0x600   :  { %v3463_v55 = vpop.f32.mrf.mxu0 }
 0x601   :  { %v3372_v46 = vadd.f32 %v3371_v5, %v3283_v32 }
 0x602   :  { %v11966_v16 = vpop.f32.mrf.mxu1 }
 0x603   :  { %v11968_v24 = vadd.f32 %v3460_v38, %v3372_v46  ;;  %3600 = vmatmul.bf16.gmra.mxu2 %v15876_v31  ;;  %3778 = vmatmul.bf16.gmra.mxu0 %v15877_v0 }
 0x604   :  { %3689 = vmatmul.bf16.gmra.mxu3 %v15878_v29 }
 0x605   :  { %15875 = vst [vmem:[#allocation16_spill] sm:$0xff] %v11968_v24  ;;  %3867 = vmatmul.bf16.gmra.mxu1 %v15879_v8  ;;  %v15882_v8 = vld [vmem:[#allocation36_spill] sm:$0xff] }
 0x606   :  { %v3285_v42 = vpop.f32.mrf.mxu2 }
 0x607   :  { %v3286_v53 = vadd.f32 %v3285_v42, %v11586_v47  ;;  %v3374_v36 = vpop.f32.mrf.mxu3  ;;  %v15883_v47 = vld [vmem:[#allocation70_spill] sm:$0xff]  ;;  %v15884_v42 = vld [vmem:[#allocation68_spill] sm:$0xff] }
 0x608   :  { %v3465_v28 = vpop.f32.mrf.mxu0 }
 0x609   :  { %v3375_v9 = vadd.f32 %v3374_v36, %v3286_v53 }
 0x60a   :  { %v11975_v49 = vpop.f32.mrf.mxu1 }
 0x60b   :  { %v11977_v32 = vadd.f32 %v3463_v55, %v3375_v9 }
 0x60d   :  { %15880 = vst [vmem:[#allocation47_spill] sm:$0xff] %v11977_v32 }
 0x60e   :  { %v3287_v38 = vpop.f32.mrf.mxu2 }
 0x60f   :  { %v3288_v5 = vadd.f32 %v3287_v38, %v11593_v43  ;;  %v3376_v46 = vpop.f32.mrf.mxu3 }
 0x610   :  { %v3468_v31 = vpop.f32.mrf.mxu0 }
 0x611   :  { %v3377_v0 = vadd.f32 %v3376_v46, %v3288_v5  ;;  %v8704_v46 = vld [vmem:[%s14915_s4] ss:$8 sm:$0xf] }
 0x612   :  { %v11980_v24 = vpop.f32.mrf.mxu1 }
 0x613   :  { %v11982_v29 = vadd.f32 %v3465_v28, %v3377_v0  ;;  %3605 = vmatmul.bf16.gmra.mxu2 %v15882_v8  ;;  %3783 = vmatmul.bf16.gmra.mxu0 %v15883_v47  ;;  %v11996_v0 = vperm.slane %v8704_v46, 3 }
 0x614   :  { %3694 = vmatmul.bf16.gmra.mxu3 %v15884_v42 }
 0x615   :  { %15881 = vst [vmem:[#allocation45_spill] sm:$0xff] %v11982_v29  ;;  %3872 = vmatmul.bf16.gmra.mxu1 %v15802_v48 }
 0x616   :  { %v3290_v55 = vpop.f32.mrf.mxu2 }
 0x617   :  { %v3291_v53 = vadd.f32 %v3290_v55, %v11597_v3  ;;  %v3379_v36 = vpop.f32.mrf.mxu3  ;;  %v3483_v55 = vadd.f32 %v11600_v59, %v11996_v0  ;;  %v3485_v59 = vadd.f32 %v11622_v56, %v11996_v0  ;;  %v7911_v56 = vld [vmem:[%s14912_s1 + $0x558] sm:$0xf0] }
 0x618   :  { %v3470_v43 = vpop.f32.mrf.mxu0 }
 0x619   :  { %v3380_v9 = vadd.f32 %v3379_v36, %v3291_v53  ;;  %v15888_v36 = vld [vmem:[#allocation76_spill] sm:$0xff] }
 0x61a   :  { %v11989_v38 = vpop.f32.mrf.mxu1 }
 0x61b   :  { %v11991_v5 = vadd.f32 %v3468_v31, %v3380_v9  ;;  %v15887_v31 = vld [vmem:[#allocation7_spill] sm:$0xff]  ;;  %v15889_v9 = vld [vmem:[#allocation74_spill] sm:$0xff] }
 0x61d   :  { %15885 = vst [vmem:[#allocation46_spill] sm:$0xff] %v11991_v5  ;;  %v15890_v5 = vld [vmem:[#allocation75_spill] sm:$0xff] }
 0x61e   :  { %v3292_v28 = vpop.f32.mrf.mxu2 }
 0x61f   :  { %v3293_v8 = vadd.f32 %v3292_v28, %v11606_v41  ;;  %v3381_v48 = vpop.f32.mrf.mxu3 }
 0x620   :  { %v3749_v47 = vpop.f32.mrf.mxu0 }
 0x621   :  { %v3382_v42 = vadd.f32 %v3381_v48, %v3293_v8 }
 0x622   :  { %v3838_v3 = vpop.f32.mrf.mxu1 }
 0x623   :  { %v12001_v53 = vadd.f32 %v3470_v43, %v3382_v42  ;;  %3610 = vmatmul.bf16.gmra.mxu2 %v15887_v31  ;;  %3788 = vmatmul.bf16.gmra.mxu0 %v15888_v36  ;;  %v8568_v31 = vld [vmem:[%s14912_s1 + $0x56c] sm:$0xf] }
 0x624   :  { %3699 = vmatmul.bf16.gmra.mxu3 %v15889_v9 }
 0x625   :  { %15886 = vst [vmem:[#allocation20_spill] sm:$0xff] %v12001_v53  ;;  %3877 = vmatmul.bf16.gmra.mxu1 %v15890_v5  ;;  %v7927_v5 = vld [vmem:[%s14912_s1 + $0x578] sm:$0xf0] }
 0x626   :  { %v3571_v46 = vpop.f32.mrf.mxu2  ;;  %v7930_v9 = vor.u32 %v8568_v31, %v7927_v5  ;;  %v15893_v31 = vld [vmem:[#allocation80_spill] sm:$0xff] }
 0x627   :  { %v3572_v29 = vadd.f32 %v3571_v46, %v3483_v55  ;;  %v3660_v41 = vpop.f32.mrf.mxu3 }
 0x628   :  { %v3751_v28 = vpop.f32.mrf.mxu0  ;;  %3922 = vmatpush.bf16.msrb.mxu2 %v7930_v9 }
 0x629   :  { %v3661_v32 = vadd.f32 %v3660_v41, %v3572_v29  ;;  %v3488_v41 = vadd.f32 %v11627_v39, %v11996_v0  ;;  %v3490_v39 = vadd.f32 %v11637_v15, %v11996_v0  ;;  %v7895_v15 = vld [vmem:[%s14912_s1 + $0x538] sm:$0xf0] }
 0x62a   :  { %v3840_v8 = vpop.f32.mrf.mxu1 }
 0x62b   :  { %v3750_v48 = vadd.f32 %v3749_v47, %v3661_v32  ;;  %v8564_v32 = vld [vmem:[%s14912_s1 + $0x54c] sm:$0xf] }
 0x62c   :  { %v7914_v46 = vor.u32 %v8564_v32, %v7911_v56 }
 0x62d   :  { %v12009_v43 = vadd.f32 %v3838_v3, %v3750_v48 }
 0x62e   :  { %v3573_v42 = vpop.f32.mrf.mxu2  ;;  %3923 = vmatpush.bf16.msrb.mxu2 %v7914_v46  ;;  %v15894_v46 = vld [vmem:[#allocation15_spill] sm:$0xff] }
 0x62f   :  { %v3574_v55 = vadd.f32 %v3573_v42, %v3485_v59  ;;  %v3662_v36 = vpop.f32.mrf.mxu3  ;;  %v15891_v59 = vld [vmem:[#allocation11_spill] sm:$0xff]  ;;  %v15892_v42 = vld [vmem:[#allocation82_spill] sm:$0xff] }
 0x630   :  { %v3754_v29 = vpop.f32.mrf.mxu0 }
 0x631   :  { %v3663_v47 = vadd.f32 %v3662_v36, %v3574_v55 }
 0x632   :  { %v3843_v3 = vpop.f32.mrf.mxu1 }
 0x633   :  { %v3752_v48 = vadd.f32 %v3751_v28, %v3663_v47  ;;  %3615 = vmatmul.bf16.gmra.mxu2 %v15891_v59  ;;  %3793 = vmatmul.bf16.gmra.mxu0 %v15892_v42 }
 0x634   :  { %3704 = vmatmul.bf16.gmra.mxu3 %v15893_v31 }
 0x635   :  { %v12028_v5 = vadd.f32 %v3840_v8, %v3752_v48  ;;  %3882 = vmatmul.bf16.gmra.mxu1 %v15670_v2  ;;  %v3493_v2 = vadd.f32 %v11642_v60, %v11996_v0 }
 0x636   :  { %v3576_v53 = vpop.f32.mrf.mxu2 }
 0x637   :  { %v3577_v55 = vadd.f32 %v3576_v53, %v3488_v41  ;;  %v3665_v36 = vpop.f32.mrf.mxu3  ;;  %v15895_v41 = vld [vmem:[#allocation87_spill] sm:$0xff] }
 0x638   :  { %v3756_v9 = vpop.f32.mrf.mxu0 }
 0x639   :  { %v3666_v32 = vadd.f32 %v3665_v36, %v3577_v55 }
 0x63a   :  { %v3845_v56 = vpop.f32.mrf.mxu1 }
 0x63b   :  { %v3755_v37 = vadd.f32 %v3754_v29, %v3666_v32  ;;  %v15896_v29 = vld [vmem:[#allocation85_spill] sm:$0xff] }
 0x63d   :  { %v12033_v28 = vadd.f32 %v3843_v3, %v3755_v37  ;;  %v8560_v37 = vld [vmem:[%s14912_s1 + $0x52c] sm:$0xf] }
 0x63e   :  { %v3578_v47 = vpop.f32.mrf.mxu2  ;;  %v7898_v60 = vor.u32 %v8560_v37, %v7895_v15  ;;  %v15897_v15 = vld [vmem:[#allocation19_spill] sm:$0xff] }
 0x63f   :  { %v3579_v59 = vadd.f32 %v3578_v47, %v3490_v39  ;;  %v3667_v42 = vpop.f32.mrf.mxu3 }
 0x640   :  { %v3759_v8 = vpop.f32.mrf.mxu0  ;;  %3924 = vmatpush.bf16.msrb.mxu2 %v7898_v60  ;;  %v15898_v60 = vld [vmem:[#allocation92_spill] sm:$0xff] }
 0x641   :  { %v3668_v48 = vadd.f32 %v3667_v42, %v3579_v59  ;;  %v3495_v42 = vadd.f32 %v11664_v14, %v11996_v0 }
 0x642   :  { %v3848_v31 = vpop.f32.mrf.mxu1 }
 0x643   :  { %v3757_v53 = vadd.f32 %v3756_v9, %v3668_v48  ;;  %3620 = vmatmul.bf16.gmra.mxu2 %v15894_v46  ;;  %3798 = vmatmul.bf16.gmra.mxu0 %v15895_v41 }
 0x644   :  { %3709 = vmatmul.bf16.gmra.mxu3 %v15896_v29 }
 0x645   :  { %v12046_v3 = vadd.f32 %v3845_v56, %v3757_v53  ;;  %3887 = vmatmul.bf16.gmra.mxu1 %v15675_v27 }
 0x646   :  { %v3581_v55 = vpop.f32.mrf.mxu2 }
 0x647   :  { %v3582_v36 = vadd.f32 %v3581_v55, %v3493_v2  ;;  %v3670_v9 = vpop.f32.mrf.mxu3  ;;  %v3498_v2 = vadd.f32 %v11669_v63, %v11996_v0  ;;  %v3500_v63 = vadd.f32 %v11679_v26, %v11996_v0  ;;  %v8556_v26 = vld [vmem:[%s14912_s1 + $0x50c] sm:$0xf] }
 0x648   :  { %v3761_v32 = vpop.f32.mrf.mxu0 }
 0x649   :  { %v3671_v39 = vadd.f32 %v3670_v9, %v3582_v36 }
 0x64a   :  { %v3850_v47 = vpop.f32.mrf.mxu1 }
 0x64b   :  { %v3760_v59 = vadd.f32 %v3759_v8, %v3671_v39  ;;  %v15899_v8 = vld [vmem:[#allocation90_spill] sm:$0xff] }
 0x64d   :  { %v12051_v48 = vadd.f32 %v3848_v31, %v3760_v59 }
 0x64e   :  { %v3583_v46 = vpop.f32.mrf.mxu2 }
 0x64f   :  { %v3584_v41 = vadd.f32 %v3583_v46, %v3495_v42  ;;  %v3672_v56 = vpop.f32.mrf.mxu3 }
 0x650   :  { %v3764_v53 = vpop.f32.mrf.mxu0 }
 0x651   :  { %v3673_v29 = vadd.f32 %v3672_v56, %v3584_v41 }
 0x652   :  { %v3853_v27 = vpop.f32.mrf.mxu1 }
 0x653   :  { %v3762_v37 = vadd.f32 %v3761_v32, %v3673_v29  ;;  %3625 = vmatmul.bf16.gmra.mxu2 %v15897_v15  ;;  %3803 = vmatmul.bf16.gmra.mxu0 %v15898_v60  ;;  %v15900_v15 = vld [vmem:[#allocation23_spill] sm:$0xff]  ;;  %v15901_v60 = vld [vmem:[#allocation97_spill] sm:$0xff] }
 0x654   :  { %3714 = vmatmul.bf16.gmra.mxu3 %v15899_v8 }
 0x655   :  { %v12058_v55 = vadd.f32 %v3850_v47, %v3762_v37  ;;  %3892 = vmatmul.bf16.gmra.mxu1 %v15680_v35  ;;  %v3503_v35 = vadd.f32 %v11684_v4, %v11996_v0 }
 0x656   :  { %v3586_v14 = vpop.f32.mrf.mxu2 }
 0x657   :  { %v3587_v31 = vadd.f32 %v3586_v14, %v3498_v2  ;;  %v3675_v36 = vpop.f32.mrf.mxu3 }
 0x658   :  { %v3766_v9 = vpop.f32.mrf.mxu0 }
 0x659   :  { %v3676_v39 = vadd.f32 %v3675_v36, %v3587_v31 }
 0x65a   :  { %v3855_v59 = vpop.f32.mrf.mxu1 }
 0x65b   :  { %v3765_v42 = vadd.f32 %v3764_v53, %v3676_v39  ;;  %v15902_v53 = vld [vmem:[#allocation95_spill] sm:$0xff] }
 0x65d   :  { %v12063_v32 = vadd.f32 %v3853_v27, %v3765_v42  ;;  %v7879_v27 = vld [vmem:[%s14912_s1 + $0x518] sm:$0xf0] }
 0x65e   :  { %v3588_v46 = vpop.f32.mrf.mxu2  ;;  %v7882_v4 = vor.u32 %v8556_v26, %v7879_v27 }
 0x65f   :  { %v3589_v41 = vadd.f32 %v3588_v46, %v3500_v63  ;;  %v3677_v56 = vpop.f32.mrf.mxu3  ;;  %v3505_v46 = vadd.f32 %v11706_v45, %v11996_v0 }
 0x660   :  { %v3769_v29 = vpop.f32.mrf.mxu0  ;;  %3925 = vmatpush.bf16.msrb.mxu2 %v7882_v4 }
 0x661   :  { %v3678_v47 = vadd.f32 %v3677_v56, %v3589_v41 }
 0x662   :  { %v3858_v37 = vpop.f32.mrf.mxu1 }
 0x663   :  { %v3767_v2 = vadd.f32 %v3766_v9, %v3678_v47  ;;  %3630 = vmatmul.bf16.gmra.mxu2 %v15900_v15  ;;  %3808 = vmatmul.bf16.gmra.mxu0 %v15901_v60  ;;  %v3508_v15 = vadd.f32 %v11729_v11, %v11996_v0  ;;  %v15903_v60 = vld [vmem:[#allocation27_spill] sm:$0xff]  ;;  %v3510_v11 = vadd.f32 %v11763_v50, %v11996_v0 }
 0x664   :  { %3719 = vmatmul.bf16.gmra.mxu3 %v15902_v53  ;;  %v15904_v53 = vld [vmem:[#allocation103_spill] sm:$0xff] }
 0x665   :  { %v12076_v8 = vadd.f32 %v3855_v59, %v3767_v2  ;;  %3897 = vmatmul.bf16.gmra.mxu1 %v15685_v40 }
 0x666   :  { %v3591_v14 = vpop.f32.mrf.mxu2 }
 0x667   :  { %v3592_v31 = vadd.f32 %v3591_v14, %v3503_v35  ;;  %v3680_v36 = vpop.f32.mrf.mxu3 }
 0x668   :  { %v12079_v9 = vpop.f32.mrf.mxu0 }
 0x669   :  { %v3681_v39 = vadd.f32 %v3680_v36, %v3592_v31 }
 0x66a   :  { %v12081_v42 = vpop.f32.mrf.mxu1 }
 0x66b   :  { %v3770_v63 = vadd.f32 %v3769_v29, %v3681_v39  ;;  %v15905_v29 = vld [vmem:[#allocation101_spill] sm:$0xff] }
 0x66d   :  { %v12085_v41 = vadd.f32 %v3858_v37, %v3770_v63 }
 0x66e   :  { %v3593_v59 = vpop.f32.mrf.mxu2 }
 0x66f   :  { %v3594_v56 = vadd.f32 %v3593_v59, %v3505_v46  ;;  %v3682_v47 = vpop.f32.mrf.mxu3 }
 0x670   :  { %v3774_v40 = vpop.f32.mrf.mxu0 }
 0x671   :  { %v12087_v2 = vadd.f32 %v3682_v47, %v3594_v56  ;;  %v3513_v47 = vadd.f32 %v11792_v18, %v11996_v0  ;;  %v3515_v18 = vadd.f32 %v11838_v10, %v11996_v0 }
 0x672   :  { %v3863_v35 = vpop.f32.mrf.mxu1 }
 0x673   :  { %3635 = vmatmul.bf16.gmra.mxu2 %v15903_v60  ;;  %3813 = vmatmul.bf16.gmra.mxu0 %v15904_v53  ;;  %v15907_v60 = vld [vmem:[#allocation108_spill] sm:$0xff] }
 0x674   :  { %3724 = vmatmul.bf16.gmra.mxu3 %v15905_v29 }
 0x675   :  { %3902 = vmatmul.bf16.gmra.mxu1 %v15819_v17 }
 0x676   :  { %v3596_v45 = vpop.f32.mrf.mxu2 }
 0x677   :  { %v3597_v37 = vadd.f32 %v3596_v45, %v3508_v15  ;;  %v3685_v26 = vpop.f32.mrf.mxu3  ;;  %v15906_v15 = vld [vmem:[#allocation31_spill] sm:$0xff] }
 0x678   :  { %v12095_v27 = vpop.f32.mrf.mxu0 }
 0x679   :  { %v3686_v4 = vadd.f32 %v3685_v26, %v3597_v37 }
 0x67a   :  { %v12097_v14 = vpop.f32.mrf.mxu1 }
 0x67b   :  { %v3775_v31 = vadd.f32 %v3774_v40, %v3686_v4  ;;  %v15908_v40 = vld [vmem:[#allocation106_spill] sm:$0xff] }
 0x67d   :  { %v12101_v36 = vadd.f32 %v3863_v35, %v3775_v31 }
 0x67e   :  { %v3598_v39 = vpop.f32.mrf.mxu2 }
 0x67f   :  { %v3599_v63 = vadd.f32 %v3598_v39, %v3510_v11  ;;  %v3687_v46 = vpop.f32.mrf.mxu3 }
 0x680   :  { %v3779_v59 = vpop.f32.mrf.mxu0 }
 0x681   :  { %v12103_v56 = vadd.f32 %v3687_v46, %v3599_v63 }
 0x682   :  { %v3868_v17 = vpop.f32.mrf.mxu1 }
 0x683   :  { %3640 = vmatmul.bf16.gmra.mxu2 %v15906_v15  ;;  %3818 = vmatmul.bf16.gmra.mxu0 %v15907_v60  ;;  %v15909_v15 = vld [vmem:[#allocation35_spill] sm:$0xff]  ;;  %v15910_v60 = vld [vmem:[#allocation112_spill] sm:$0xff] }
 0x684   :  { %3729 = vmatmul.bf16.gmra.mxu3 %v15908_v40 }
 0x685   :  { %3907 = vmatmul.bf16.gmra.mxu1 %v15824_v12 }
 0x686   :  { %v3601_v50 = vpop.f32.mrf.mxu2 }
 0x687   :  { %v3602_v35 = vadd.f32 %v3601_v50, %v3513_v47  ;;  %v3690_v53 = vpop.f32.mrf.mxu3  ;;  %v3518_v47 = vadd.f32 %v11849_v20, %v11996_v0  ;;  %v3520_v20 = vadd.f32 %v11859_v21, %v11996_v0 }
 0x688   :  { %v12111_v29 = vpop.f32.mrf.mxu0 }
 0x689   :  { %v3691_v45 = vadd.f32 %v3690_v53, %v3602_v35 }
 0x68a   :  { %v12113_v37 = vpop.f32.mrf.mxu1 }
 0x68b   :  { %v3780_v26 = vadd.f32 %v3779_v59, %v3691_v45  ;;  %v15911_v59 = vld [vmem:[#allocation110_spill] sm:$0xff] }
 0x68d   :  { %v12117_v4 = vadd.f32 %v3868_v17, %v3780_v26 }
 0x68e   :  { %v3603_v31 = vpop.f32.mrf.mxu2 }
 0x68f   :  { %v3604_v11 = vadd.f32 %v3603_v31, %v3515_v18  ;;  %v3692_v39 = vpop.f32.mrf.mxu3 }
 0x690   :  { %v3784_v63 = vpop.f32.mrf.mxu0 }
 0x691   :  { %v12119_v46 = vadd.f32 %v3692_v39, %v3604_v11 }
 0x692   :  { %v3873_v12 = vpop.f32.mrf.mxu1 }
 0x693   :  { %3645 = vmatmul.bf16.gmra.mxu2 %v15909_v15  ;;  %3823 = vmatmul.bf16.gmra.mxu0 %v15910_v60  ;;  %v15912_v60 = vld [vmem:[#allocation40_spill] sm:$0xff] }
 0x694   :  { %3734 = vmatmul.bf16.gmra.mxu3 %v15911_v59  ;;  %v15913_v59 = vld [vmem:[#allocation114_spill] sm:$0xff] }
 0x695   :  { %3912 = vmatmul.bf16.gmra.mxu1 %v15701_v13 }
 0x696   :  { %v3606_v10 = vpop.f32.mrf.mxu2 }
 0x697   :  { %v3607_v17 = vadd.f32 %v3606_v10, %v3518_v47  ;;  %v3695_v40 = vpop.f32.mrf.mxu3  ;;  %v3523_v47 = vadd.f32 %v11864_v23, %v11996_v0 }
 0x698   :  { %v12127_v50 = vpop.f32.mrf.mxu0 }
 0x699   :  { %v3696_v35 = vadd.f32 %v3695_v40, %v3607_v17 }
 0x69a   :  { %v12129_v53 = vpop.f32.mrf.mxu1 }
 0x69b   :  { %v3785_v45 = vadd.f32 %v3784_v63, %v3696_v35 }
 0x69d   :  { %v12133_v26 = vadd.f32 %v3873_v12, %v3785_v45  ;;  %v3525_v45 = vadd.f32 %v11879_v58, %v11996_v0 }
 0x69e   :  { %v3608_v18 = vpop.f32.mrf.mxu2 }
 0x69f   :  { %v3609_v31 = vadd.f32 %v3608_v18, %v3520_v20  ;;  %v3697_v11 = vpop.f32.mrf.mxu3 }
 0x6a0   :  { %v3789_v39 = vpop.f32.mrf.mxu0 }
 0x6a1   :  { %v12135_v15 = vadd.f32 %v3697_v11, %v3609_v31 }
 0x6a2   :  { %v3878_v13 = vpop.f32.mrf.mxu1 }
 0x6a3   :  { %3926 = vmatmul.bf16.vlgmr.msrb.gmra.mxu2 %v15912_v60  ;;  %v15915_v60 = vld [vmem:[#allocation44_spill] sm:$0xff] }
 0x6a4   :  { %8059 = vmatmul.msk.bf16.vlgmr.msrb.gmra.mxu3 %vm1555_vm0, %v15913_v59  ;;  %v15916_v59 = vld [vmem:[#allocation115_spill] sm:$0xff] }
 0x6a6   :  { %v3611_v63 = vpop.f32.mrf.mxu2 }
 0x6a7   :  { %v3612_v10 = vadd.f32 %v3611_v63, %v3523_v47  ;;  %v3700_v21 = vpop.f32.mrf.mxu3  ;;  %v3528_v47 = vadd.f32 %v11884_v7, %v11996_v0 }
 0x6a8   :  { %v12142_v17 = vpop.f32.mrf.mxu0 }
 0x6a9   :  { %v3701_v12 = vadd.f32 %v3700_v21, %v3612_v10 }
 0x6aa   :  { %v12144_v35 = vpop.f32.mrf.mxu1 }
 0x6ab   :  { %v3790_v40 = vadd.f32 %v3789_v39, %v3701_v12  ;;  %15914 = vst [vmem:[#allocation51_spill] sm:$0xff] %v12144_v35  ;;  %v16041_v35 = vld [vmem:[#allocation173_spill] sm:$0xff] }
 0x6ad   :  { %v12148_v20 = vadd.f32 %v3878_v13, %v3790_v40  ;;  %v3530_v40 = vadd.f32 %v11893_v1, %v11996_v0 }
 0x6ae   :  { %v3613_v23 = vpop.f32.mrf.mxu2 }
 0x6af   :  { %v3614_v18 = vadd.f32 %v3613_v23, %v3525_v45  ;;  %v3702_v31 = vpop.f32.mrf.mxu3 }
 0x6b0   :  { %v3794_v39 = vpop.f32.mrf.mxu0 }
 0x6b1   :  { %v12150_v11 = vadd.f32 %v3702_v31, %v3614_v18 }
 0x6b2   :  { %v3883_v10 = vpop.f32.mrf.mxu1 }
 0x6b3   :  { %3931 = vmatmul.bf16.gmra.mxu2 %v15915_v60 }
 0x6b4   :  { %8060 = vmatmul.msk.bf16.gmra.mxu3 %vm1555_vm0, %v15916_v59 }
 0x6b6   :  { %v3616_v63 = vpop.f32.mrf.mxu2 }
 0x6b7   :  { %v3617_v21 = vadd.f32 %v3616_v63, %v3528_v47  ;;  %v3705_v58 = vpop.f32.mrf.mxu3  ;;  %v3533_v47 = vadd.f32 %v11898_v33, %v11996_v0  ;;  %v15920_v63 = vld [vmem:[#allocation48_spill] sm:$0xff] }
 0x6b8   :  { %v12161_v18 = vpop.f32.mrf.mxu0 }
 0x6b9   :  { %v3706_v13 = vadd.f32 %v3705_v58, %v3617_v21  ;;  %15917 = vst [vmem:[#allocation49_spill] sm:$0xff] %v12161_v18 }
 0x6ba   :  { %v12163_v60 = vpop.f32.mrf.mxu1 }
 0x6bb   :  { %v3795_v12 = vadd.f32 %v3794_v39, %v3706_v13  ;;  %15918 = vst [vmem:[#allocation50_spill] sm:$0xff] %v12163_v60  ;;  %v15921_v39 = vld [vmem:[#allocation116_spill] sm:$0xff] }
 0x6bd   :  { %v12159_v45 = vadd.f32 %v3883_v10, %v3795_v12 }
 0x6be   :  { %v3618_v23 = vpop.f32.mrf.mxu2 }
 0x6bf   :  { %v3619_v7 = vadd.f32 %v3618_v23, %v3530_v40  ;;  %v3707_v31 = vpop.f32.mrf.mxu3  ;;  %v3535_v23 = vadd.f32 %v11913_v62, %v11996_v0  ;;  %v3540_v62 = vadd.f32 %v11927_v51, %v11996_v0  ;;  %v3545_v51 = vadd.f32 %v11947_v54, %v11996_v0 }
 0x6c0   :  { %v3799_v58 = vpop.f32.mrf.mxu0  ;;  %v3550_v54 = vadd.f32 %v11961_v30, %v11996_v0  ;;  %v3555_v30 = vadd.f32 %v11975_v49, %v11996_v0  ;;  %v3560_v49 = vadd.f32 %v11989_v38, %v11996_v0 }
 0x6c1   :  { %v12165_v59 = vadd.f32 %v3707_v31, %v3619_v7 }
 0x6c2   :  { %v3888_v12 = vpop.f32.mrf.mxu1 }
 0x6c3   :  { %15919 = vst [vmem:[#allocation21_spill] sm:$0xff] %v12165_v59  ;;  %3936 = vmatmul.bf16.gmra.mxu2 %v15920_v63  ;;  %v3538_v63 = vadd.f32 %v11918_v22, %v11996_v0  ;;  %v3543_v22 = vadd.f32 %v11932_v6, %v11996_v0  ;;  %v3548_v6 = vadd.f32 %v11952_v57, %v11996_v0 }
 0x6c4   :  { %8061 = vmatmul.msk.bf16.gmra.mxu3 %vm1555_vm0, %v15921_v39  ;;  %v15923_v39 = vld [vmem:[#allocation52_spill] sm:$0xff]  ;;  %v3553_v57 = vadd.f32 %v11966_v16, %v11996_v0  ;;  %v3558_v16 = vadd.f32 %v11980_v24, %v11996_v0  ;;  %v15944_v24 = vld [vmem:[#allocation67_spill] sm:$0xff] }
 0x6c6   :  { %v3621_v1 = vpop.f32.mrf.mxu2 }
 0x6c7   :  { %v3622_v10 = vadd.f32 %v3621_v1, %v3533_v47  ;;  %v3710_v21 = vpop.f32.mrf.mxu3  ;;  %v15924_v47 = vld [vmem:[#allocation117_spill] sm:$0xff] }
 0x6c9   :  { %v3711_v13 = vadd.f32 %v3710_v21, %v3622_v10 }
 0x6cb   :  { %v3800_v40 = vadd.f32 %v3799_v58, %v3711_v13 }
 0x6cd   :  { %v12174_v7 = vadd.f32 %v3888_v12, %v3800_v40 }
 0x6ce   :  { %v3623_v31 = vpop.f32.mrf.mxu2 }
 0x6cf   :  { %v3624_v60 = vadd.f32 %v3623_v31, %v3535_v23  ;;  %v3712_v33 = vpop.f32.mrf.mxu3  ;;  %v15927_v23 = vld [vmem:[#allocation56_spill] sm:$0xff]  ;;  %v15928_v31 = vld [vmem:[#allocation118_spill] sm:$0xff] }
 0x6d1   :  { %v12176_v18 = vadd.f32 %v3712_v33, %v3624_v60 }
 0x6d3   :  { %15922 = vst [vmem:[#allocation25_spill] sm:$0xff] %v12176_v18  ;;  %3941 = vmatmul.bf16.gmra.mxu2 %v15923_v39  ;;  %v15987_v18 = vld [vmem:[#allocation93_spill] sm:$0xff] }
 0x6d4   :  { %8062 = vmatmul.msk.bf16.gmra.mxu3 %vm1555_vm0, %v15924_v47 }
 0x6d6   :  { %v3626_v1 = vpop.f32.mrf.mxu2 }
 0x6d7   :  { %v3627_v10 = vadd.f32 %v3626_v1, %v3538_v63  ;;  %v3715_v21 = vpop.f32.mrf.mxu3 }
 0x6d9   :  { %v12183_v58 = vadd.f32 %v3715_v21, %v3627_v10 }
 0x6db   :  { %15925 = vst [vmem:[#allocation24_spill] sm:$0xff] %v12183_v58 }
 0x6de   :  { %v3628_v13 = vpop.f32.mrf.mxu2 }
 0x6df   :  { %v3629_v12 = vadd.f32 %v3628_v13, %v3540_v62  ;;  %v3717_v60 = vpop.f32.mrf.mxu3  ;;  %v15931_v13 = vld [vmem:[#allocation60_spill] sm:$0xff] }
 0x6e1   :  { %v12187_v40 = vadd.f32 %v3717_v60, %v3629_v12  ;;  %v15932_v12 = vld [vmem:[#allocation119_spill] sm:$0xff] }
 0x6e3   :  { %15926 = vst [vmem:[#allocation55_spill] sm:$0xff] %v12187_v40  ;;  %3946 = vmatmul.bf16.gmra.mxu2 %v15927_v23  ;;  %v8616_v40 = vld [vmem:[%s14913_s2 + $0xc4] sm:$0xf0] }
 0x6e4   :  { %8063 = vmatmul.msk.bf16.gmra.mxu3 %vm1555_vm0, %v15928_v31 }
 0x6e6   :  { %v3631_v33 = vpop.f32.mrf.mxu2 }
 0x6e7   :  { %v3632_v63 = vadd.f32 %v3631_v33, %v3543_v22  ;;  %v3720_v39 = vpop.f32.mrf.mxu3 }
 0x6e9   :  { %v12194_v47 = vadd.f32 %v3720_v39, %v3632_v63 }
 0x6eb   :  { %15929 = vst [vmem:[#allocation53_spill] sm:$0xff] %v12194_v47 }
 0x6ee   :  { %v3633_v1 = vpop.f32.mrf.mxu2 }
 0x6ef   :  { %v3634_v10 = vadd.f32 %v3633_v1, %v3545_v51  ;;  %v3722_v21 = vpop.f32.mrf.mxu3  ;;  %v15935_v1 = vld [vmem:[#allocation66_spill] sm:$0xff] }
 0x6f1   :  { %v12198_v62 = vadd.f32 %v3722_v21, %v3634_v10  ;;  %v15936_v10 = vld [vmem:[#allocation61_spill] sm:$0xff] }
 0x6f3   :  { %15930 = vst [vmem:[#allocation54_spill] sm:$0xff] %v12198_v62  ;;  %3951 = vmatmul.bf16.gmra.mxu2 %v15931_v13  ;;  %v15979_v62 = vld [vmem:[#allocation149_spill] sm:$0xff] }
 0x6f4   :  { %8064 = vmatmul.msk.bf16.gmra.mxu3 %vm1555_vm0, %v15932_v12 }
 0x6f6   :  { %v3636_v60 = vpop.f32.mrf.mxu2 }
 0x6f7   :  { %v3637_v22 = vadd.f32 %v3636_v60, %v3548_v6  ;;  %v3725_v23 = vpop.f32.mrf.mxu3 }
 0x6f9   :  { %v12205_v31 = vadd.f32 %v3725_v23, %v3637_v22 }
 0x6fb   :  { %15933 = vst [vmem:[#allocation28_spill] sm:$0xff] %v12205_v31  ;;  %v15963_v31 = vld [vmem:[#allocation128_spill] sm:$0xff] }
 0x6fe   :  { %v3638_v33 = vpop.f32.mrf.mxu2 }
 0x6ff   :  { %v3639_v63 = vadd.f32 %v3638_v33, %v3550_v54  ;;  %v3727_v39 = vpop.f32.mrf.mxu3  ;;  %v15939_v33 = vld [vmem:[#allocation72_spill] sm:$0xff] }
 0x701   :  { %v12209_v51 = vadd.f32 %v3727_v39, %v3639_v63  ;;  %v15940_v63 = vld [vmem:[#allocation65_spill] sm:$0xff] }
 0x703   :  { %15934 = vst [vmem:[#allocation59_spill] sm:$0xff] %v12209_v51  ;;  %3956 = vmatmul.bf16.gmra.mxu2 %v15935_v1 }
 0x704   :  { %8065 = vmatmul.msk.bf16.gmra.mxu3 %vm1555_vm0, %v15936_v10 }
 0x706   :  { %v3641_v21 = vpop.f32.mrf.mxu2 }
 0x707   :  { %v3642_v6 = vadd.f32 %v3641_v21, %v3553_v57  ;;  %v3730_v13 = vpop.f32.mrf.mxu3 }
 0x709   :  { %v12216_v12 = vadd.f32 %v3730_v13, %v3642_v6 }
 0x70b   :  { %15937 = vst [vmem:[#allocation57_spill] sm:$0xff] %v12216_v12 }
 0x70e   :  { %v3643_v60 = vpop.f32.mrf.mxu2 }
 0x70f   :  { %v3644_v22 = vadd.f32 %v3643_v60, %v3555_v30  ;;  %v3732_v23 = vpop.f32.mrf.mxu3  ;;  %v15943_v60 = vld [vmem:[#allocation78_spill] sm:$0xff] }
 0x711   :  { %v12220_v54 = vadd.f32 %v3732_v23, %v3644_v22 }
 0x713   :  { %15938 = vst [vmem:[#allocation58_spill] sm:$0xff] %v12220_v54  ;;  %3961 = vmatmul.bf16.gmra.mxu2 %v15939_v33 }
 0x714   :  { %8066 = vmatmul.msk.bf16.gmra.mxu3 %vm1555_vm0, %v15940_v63 }
 0x716   :  { %v3646_v39 = vpop.f32.mrf.mxu2 }
 0x717   :  { %v3647_v57 = vadd.f32 %v3646_v39, %v3558_v16  ;;  %v3735_v1 = vpop.f32.mrf.mxu3 }
 0x719   :  { %v12227_v10 = vadd.f32 %v3735_v1, %v3647_v57 }
 0x71b   :  { %15941 = vst [vmem:[#allocation29_spill] sm:$0xff] %v12227_v10  ;;  %v15959_v10 = vld [vmem:[#allocation89_spill] sm:$0xff] }
 0x71c   :  { %v4268_v54 = vmul.f32 %v15959_v10, %v15959_v10 }
 0x71e   :  { %v3648_v21 = vpop.f32.mrf.mxu2 }
 0x71f   :  { %v3649_v6 = vadd.f32 %v3648_v21, %v3560_v49  ;;  %v3737_v13 = vpop.f32.mrf.mxu3 }
 0x721   :  { %v12231_v30 = vadd.f32 %v3737_v13, %v3649_v6 }
 0x723   :  { %15942 = vst [vmem:[#allocation163_spill] sm:$0xff] %v12231_v30  ;;  %3966 = vmatmul.bf16.gmra.mxu2 %v15943_v60 }
 0x724   :  { %8067 = vmatmul.msk.bf16.gmra.mxu3 %vm1555_vm0, %v15944_v24 }
 0x726   :  { %v3927_v22 = vpop.f32.mrf.mxu2 }
 0x727   :  { %v3928_v23 = vadd.f32 %v3927_v22, %v12009_v43  ;;  %v4016_v16 = vpop.f32.mrf.mxu3 }
 0x729   :  { %v12237_v33 = vadd.f32 %v4016_v16, %v3928_v23  ;;  %v8325_v23 = vld [vmem:[%s14913_s2 + $0x1f0] sm:$0xf]  ;;  %v8654_v16 = vld [vmem:[%s14913_s2 + $0x1f4] sm:$0xf0] }
 0x72b   :  { %15945 = vst [vmem:[#allocation32_spill] sm:$0xff] %v12237_v33 }
 0x72e   :  { %v3929_v63 = vpop.f32.mrf.mxu2 }
 0x72f   :  { %v3930_v39 = vadd.f32 %v3929_v63, %v12028_v5  ;;  %v4018_v38 = vpop.f32.mrf.mxu3 }
 0x731   :  { %v12240_v0 = vadd.f32 %v4018_v38, %v3930_v39 }
 0x733   :  { %15946 = vst [vmem:[#allocation64_spill] sm:$0xff] %v12240_v0  ;;  %3971 = vmatmul.bf16.gmra.mxu2 %v15669_v44 }
 0x734   :  { %8068 = vmatmul.msk.bf16.gmra.mxu3 %vm1555_vm0, %v10473_v25 }
 0x736   :  { %v3932_v57 = vpop.f32.mrf.mxu2 }
 0x737   :  { %v3933_v1 = vadd.f32 %v3932_v57, %v12033_v28  ;;  %v4021_v49 = vpop.f32.mrf.mxu3  ;;  %v8261_v28 = vld [vmem:[%s14913_s2 + $0x170] sm:$0xf]  ;;  %v8326_v57 = vor.u32 %v8654_v16, %v8325_v23  ;;  %v8125_v16 = vld [vmem:[%s14913_s2 + $0x60] sm:$0xf] }
 0x739   :  { %v12246_v21 = vadd.f32 %v4021_v49, %v3933_v1  ;;  %v8197_v1 = vld [vmem:[%s14913_s2 + $0xf0] sm:$0xf]  ;;  %v8622_v49 = vld [vmem:[%s14913_s2 + $0xf4] sm:$0xf0]  ;;  %5865 = vmatpush.bf16.msra.mxu3 %v8326_v57  ;;  %v8652_v57 = vld [vmem:[%s14913_s2 + $0x1e4] sm:$0xf0] }
 0x73e   :  { %v3934_v43 = vpop.f32.mrf.mxu2 }
 0x73f   :  { %v3935_v6 = vadd.f32 %v3934_v43, %v12046_v3  ;;  %v4023_v13 = vpop.f32.mrf.mxu3  ;;  %v8638_v3 = vld [vmem:[%s14913_s2 + $0x174] sm:$0xf0]  ;;  %v8198_v43 = vor.u32 %v8622_v49, %v8197_v1 }
 0x741   :  { %v12249_v60 = vadd.f32 %v4023_v13, %v3935_v6  ;;  %5687 = vmatpush.bf16.msrb.mxu1 %v8198_v43 }
 0x743   :  { %3976 = vmatmul.bf16.gmra.mxu2 %v15812_v61  ;;  %v8133_v61 = vld [vmem:[%s14913_s2 + $0x70] sm:$0xf] }
 0x744   :  { %8069 = vmatmul.msk.bf16.gmra.mxu3 %vm1555_vm0, %v10498_v52  ;;  %v8262_v52 = vor.u32 %v8638_v3, %v8261_v28 }
 0x746   :  { %v3937_v44 = vpop.f32.mrf.mxu2  ;;  %5776 = vmatpush.bf16.msra.mxu2 %v8262_v52  ;;  %v15948_v52 = vld [vmem:[#allocation120_spill] sm:$0xff] }
 0x747   :  { %v3938_v25 = vadd.f32 %v3937_v44, %v12051_v48  ;;  %v4026_v5 = vpop.f32.mrf.mxu3  ;;  %v8606_v48 = vld [vmem:[%s14913_s2 + $0x74] sm:$0xf0] }
 0x748   :  { %v8134_v38 = vor.u32 %v8606_v48, %v8133_v61 }
 0x749   :  { %v12255_v24 = vadd.f32 %v4026_v5, %v3938_v25 }
 0x74a   :  { %5598 = vmatpush.bf16.msrb.mxu0 %v8134_v38  ;;  %v8317_v38 = vld [vmem:[%s14913_s2 + $0x1e0] sm:$0xf] }
 0x74b   :  { %v8318_v43 = vor.u32 %v8652_v57, %v8317_v38  ;;  %v15953_v38 = vld [vmem:[#allocation73_spill] sm:$0xff] }
 0x74c   :  { %v4252_v57 = vmul.f32 %v15953_v38, %v15953_v38 }
 0x74d   :  { %5866 = vmatpush.bf16.msra.mxu3 %v8318_v43 }
 0x74e   :  { %v3939_v22 = vpop.f32.mrf.mxu2 }
 0x74f   :  { %v3940_v63 = vadd.f32 %v3939_v22, %v12058_v55  ;;  %v4028_v39 = vpop.f32.mrf.mxu3  ;;  %v15947_v22 = vld [vmem:[#allocation98_spill] sm:$0xff] }
 0x751   :  { %v12282_v6 = vadd.f32 %v4028_v39, %v3940_v63 }
 0x753   :  { %3981 = vmatmul.bf16.gmra.mxu2 %v15679_v19 }
 0x754   :  { %8070 = vmatmul.msk.bf16.gmra.mxu3 %vm1555_vm0, %v10535_v34 }
 0x756   :  { %v3942_v55 = vpop.f32.mrf.mxu2 }
 0x757   :  { %v3943_v13 = vadd.f32 %v3942_v55, %v12063_v32  ;;  %v4031_v44 = vpop.f32.mrf.mxu3  ;;  %v8253_v32 = vld [vmem:[%s14913_s2 + $0x160] sm:$0xf] }
 0x758   :  { %v8189_v55 = vld [vmem:[%s14913_s2 + $0xe0] sm:$0xf] }
 0x759   :  { %v12288_v25 = vadd.f32 %v4031_v44, %v3943_v13  ;;  %v8620_v13 = vld [vmem:[%s14913_s2 + $0xe4] sm:$0xf0] }
 0x75a   :  { %v8190_v44 = vor.u32 %v8620_v13, %v8189_v55  ;;  %v15956_v55 = vld [vmem:[#allocation77_spill] sm:$0xff] }
 0x75b   :  { %v4256_v13 = vmul.f32 %v15956_v55, %v15956_v55 }
 0x75c   :  { %5688 = vmatpush.bf16.msrb.mxu1 %v8190_v44 }
 0x75e   :  { %v3944_v5 = vpop.f32.mrf.mxu2 }
 0x75f   :  { %v3945_v28 = vadd.f32 %v3944_v5, %v12076_v8  ;;  %v4033_v3 = vpop.f32.mrf.mxu3  ;;  %v8636_v8 = vld [vmem:[%s14913_s2 + $0x164] sm:$0xf0]  ;;  %v15949_v5 = vld [vmem:[#allocation104_spill] sm:$0xff] }
 0x760   :  { %v8254_v39 = vor.u32 %v8636_v8, %v8253_v32  ;;  %v15951_v32 = vld [vmem:[#allocation109_spill] sm:$0xff] }
 0x761   :  { %v12291_v61 = vadd.f32 %v4033_v3, %v3945_v28  ;;  %v15950_v28 = vld [vmem:[#allocation122_spill] sm:$0xff]  ;;  %v15952_v8 = vld [vmem:[#allocation125_spill] sm:$0xff] }
 0x762   :  { %5777 = vmatpush.bf16.msra.mxu2 %v8254_v39 }
 0x763   :  { %3986 = vmatmul.bf16.gmra.mxu2 %v15947_v22 }
 0x764   :  { %8071 = vmatmul.msk.bf16.gmra.mxu3 %vm1555_vm0, %v15948_v52 }
 0x766   :  { %v3947_v19 = vpop.f32.mrf.mxu2 }
 0x767   :  { %v3948_v34 = vadd.f32 %v3947_v19, %v12085_v41  ;;  %v4036_v48 = vpop.f32.mrf.mxu3  ;;  %v8604_v41 = vld [vmem:[%s14913_s2 + $0x64] sm:$0xf0] }
 0x768   :  { %v8126_v49 = vor.u32 %v8604_v41, %v8125_v16 }
 0x769   :  { %v12297_v23 = vadd.f32 %v4036_v48, %v3948_v34 }
 0x76a   :  { %5599 = vmatpush.bf16.msrb.mxu0 %v8126_v49  ;;  %v15955_v49 = vld [vmem:[#allocation71_spill] sm:$0xff] }
 0x76b   :  { %v4248_v43 = vmul.f32 %v15955_v49, %v15955_v49  ;;  %v4096_v44 = vadd.f32 %v15953_v38, %v15955_v49 }
 0x76e   :  { %v12308_v63 = vpop.f32.mrf.mxu2 }
 0x76f   :  { %v12319_v1 = vpop.f32.mrf.mxu3 }
 0x773   :  { %3991 = vmatmul.bf16.gmra.mxu2 %v15949_v5  ;;  %v4376_v5 = vadd.f32 %v4252_v57, %v4248_v43  ;;  %v8602_v43 = vld [vmem:[%s14913_s2 + $0x54] sm:$0xf0] }
 0x774   :  { %8072 = vmatmul.msk.bf16.gmra.mxu3 %vm1555_vm0, %v15950_v28  ;;  %v15957_v28 = vld [vmem:[#allocation79_spill] sm:$0xff] }
 0x776   :  { %v3952_v3 = vpop.f32.mrf.mxu2 }
 0x777   :  { %v3953_v22 = vadd.f32 %v3952_v3, %v12101_v36  ;;  %v4041_v52 = vpop.f32.mrf.mxu3  ;;  %v4260_v3 = vmul.f32 %v15957_v28, %v15957_v28 }
 0x779   :  { %v12331_v19 = vadd.f32 %v4041_v52, %v3953_v22  ;;  %v8245_v22 = vld [vmem:[%s14913_s2 + $0x150] sm:$0xf]  ;;  %v8634_v52 = vld [vmem:[%s14913_s2 + $0x154] sm:$0xf0] }
 0x77a   :  { %v8246_v57 = vor.u32 %v8634_v52, %v8245_v22  ;;  %v8181_v22 = vld [vmem:[%s14913_s2 + $0xd0] sm:$0xf]  ;;  %v8618_v52 = vld [vmem:[%s14913_s2 + $0xd4] sm:$0xf0] }
 0x77b   :  { %v8182_v12 = vor.u32 %v8618_v52, %v8181_v22 }
 0x77c   :  { %5778 = vmatpush.bf16.msra.mxu2 %v8246_v57 }
 0x77d   :  { %5689 = vmatpush.bf16.msrb.mxu1 %v8182_v12 }
 0x77e   :  { %v12333_v34 = vpop.f32.mrf.mxu2 }
 0x77f   :  { %v12335_v48 = vpop.f32.mrf.mxu3 }
 0x783   :  { %3996 = vmatmul.bf16.gmra.mxu2 %v15951_v32  ;;  %v8117_v32 = vld [vmem:[%s14913_s2 + $0x50] sm:$0xf] }
 0x784   :  { %8073 = vmatmul.msk.bf16.gmra.mxu3 %vm1555_vm0, %v15952_v8  ;;  %v4377_v8 = vadd.f32 %v4376_v5, %v4256_v13  ;;  %v8118_v38 = vor.u32 %v8602_v43, %v8117_v32 }
 0x786   :  { %v3957_v16 = vpop.f32.mrf.mxu2  ;;  %v4378_v30 = vadd.f32 %v4377_v8, %v4260_v3  ;;  %5600 = vmatpush.bf16.msrb.mxu0 %v8118_v38  ;;  %v15962_v3 = vld [vmem:[#allocation99_spill] sm:$0xff] }
 0x787   :  { %v3958_v39 = vadd.f32 %v3957_v16, %v12117_v4  ;;  %v4046_v41 = vpop.f32.mrf.mxu3  ;;  %v4097_v4 = vadd.f32 %v4096_v44, %v15956_v55  ;;  %v15958_v16 = vld [vmem:[#allocation84_spill] sm:$0xff]  ;;  %v8309_v44 = vld [vmem:[%s14913_s2 + $0x1d0] sm:$0xf]  ;;  %v4276_v8 = vmul.f32 %v15962_v3, %v15962_v3 }
 0x788   :  { %v8650_v55 = vld [vmem:[%s14913_s2 + $0x1d4] sm:$0xf0] }
 0x789   :  { %v12343_v36 = vadd.f32 %v4046_v41, %v3958_v39  ;;  %v4264_v39 = vmul.f32 %v15958_v16, %v15958_v16  ;;  %v4098_v13 = vadd.f32 %v4097_v4, %v15957_v28  ;;  %v8310_v49 = vor.u32 %v8650_v55, %v8309_v44  ;;  %v15960_v55 = vld [vmem:[#allocation94_spill] sm:$0xff]  ;;  %v15961_v28 = vld [vmem:[#allocation113_spill] sm:$0xff] }
 0x78a   :  { %v4272_v43 = vmul.f32 %v15960_v55, %v15960_v55 }
 0x78b   :  { %15954 = vst [vmem:[#allocation62_spill] sm:$0xff] %v12343_v36  ;;  %v4099_v4 = vadd.f32 %v4098_v13, %v15958_v16  ;;  %5867 = vmatpush.bf16.msra.mxu3 %v8310_v49  ;;  %v4379_v32 = vadd.f32 %v4378_v30, %v4264_v39  ;;  %v15964_v49 = vld [vmem:[#allocation100_spill] sm:$0xff]  ;;  %v16039_v36 = vld [vmem:[#allocation107_spill] sm:$0xff] }
 0x78c   :  { %v4280_v30 = vmul.f32 %v15964_v49, %v15964_v49 }
 0x78d   :  { %v4100_v44 = vadd.f32 %v4099_v4, %v15959_v10  ;;  %v4380_v51 = vadd.f32 %v4379_v32, %v4268_v54  ;;  %v15965_v54 = vld [vmem:[#allocation121_spill] sm:$0xff]  ;;  %v15968_v10 = vld [vmem:[#allocation124_spill] sm:$0xff] }
 0x78e   :  { %v12365_v41 = vpop.f32.mrf.mxu2  ;;  %v4284_v52 = vmul.f32 %v15965_v54, %v15965_v54 }
 0x78f   :  { %v12377_v5 = vpop.f32.mrf.mxu3  ;;  %v4101_v57 = vadd.f32 %v4100_v44, %v15960_v55  ;;  %v4381_v38 = vadd.f32 %v4380_v51, %v4272_v43  ;;  %v15967_v44 = vld [vmem:[#allocation105_spill] sm:$0xff] }
 0x790   :  { %v4288_v51 = vmul.f32 %v15967_v44, %v15967_v44 }
 0x791   :  { %v4102_v12 = vadd.f32 %v4101_v57, %v15962_v3  ;;  %v4292_v57 = vmul.f32 %v15968_v10, %v15968_v10 }
 0x793   :  { %4001 = vmatmul.bf16.gmra.mxu2 %v15961_v28  ;;  %v4382_v28 = vadd.f32 %v4381_v38, %v4276_v8  ;;  %v4103_v4 = vadd.f32 %v4102_v12, %v15964_v49  ;;  %v15969_v38 = vld [vmem:[#allocation126_spill] sm:$0xff]  ;;  %v15974_v49 = vld [vmem:[#allocation131_spill] sm:$0xff] }
 0x794   :  { %8074 = vmatmul.msk.bf16.gmra.mxu3 %vm1555_vm0, %v15963_v31 }
 0x795   :  { %v4383_v31 = vadd.f32 %v4382_v28, %v4280_v30  ;;  %v4104_v43 = vadd.f32 %v4103_v4, %v15965_v54 }
 0x796   :  { %v3962_v39 = vpop.f32.mrf.mxu2 }
 0x797   :  { %v3963_v13 = vadd.f32 %v3962_v39, %v12133_v26  ;;  %v4051_v22 = vpop.f32.mrf.mxu3  ;;  %v4384_v55 = vadd.f32 %v4383_v31, %v4284_v52  ;;  %v4105_v26 = vadd.f32 %v4104_v43, %v15967_v44  ;;  %v4296_v39 = vmul.f32 %v15969_v38, %v15969_v38  ;;  %v15972_v31 = vld [vmem:[#allocation129_spill] sm:$0xff]  ;;  %v15973_v44 = vld [vmem:[#allocation130_spill] sm:$0xff] }
 0x798   :  { %v4304_v43 = vmul.f32 %v15972_v31, %v15972_v31  ;;  %v4308_v54 = vmul.f32 %v15973_v44, %v15973_v44 }
 0x799   :  { %v12404_v32 = vadd.f32 %v4051_v22, %v3963_v13  ;;  %v4385_v8 = vadd.f32 %v4384_v55, %v4288_v51  ;;  %v4106_v12 = vadd.f32 %v4105_v26, %v15968_v10  ;;  %v15971_v22 = vld [vmem:[#allocation127_spill] sm:$0xff] }
 0x79a   :  { %v4300_v28 = vmul.f32 %v15971_v22, %v15971_v22 }
 0x79b   :  { %15966 = vst [vmem:[#allocation63_spill] sm:$0xff] %v12404_v32  ;;  %v4386_v13 = vadd.f32 %v4385_v8, %v4292_v57  ;;  %v4107_v52 = vadd.f32 %v4106_v12, %v15969_v38  ;;  %v4312_v57 = vmul.f32 %v15974_v49, %v15974_v49  ;;  %v15975_v38 = vld [vmem:[#allocation132_spill] sm:$0xff] }
 0x79d   :  { %v4387_v4 = vadd.f32 %v4386_v13, %v4296_v39  ;;  %v4108_v55 = vadd.f32 %v4107_v52, %v15971_v22  ;;  %v4316_v52 = vmul.f32 %v15975_v38, %v15975_v38 }
 0x79e   :  { %v12414_v3 = vpop.f32.mrf.mxu2 }
 0x79f   :  { %v12417_v30 = vpop.f32.mrf.mxu3  ;;  %v4388_v51 = vadd.f32 %v4387_v4, %v4300_v28  ;;  %v4109_v26 = vadd.f32 %v4108_v55, %v15972_v31  ;;  %v15976_v28 = vld [vmem:[#allocation83_spill] sm:$0xff] }
 0x7a0   :  { %15970 = vst [vmem:[#allocation36_spill] sm:$0xff] %v12417_v30  ;;  %v4253_v4 = vmul.f32 %v15976_v28, %v15976_v28 }
 0x7a1   :  { %v4389_v10 = vadd.f32 %v4388_v51, %v4304_v43  ;;  %v4110_v16 = vadd.f32 %v4109_v26, %v15973_v44  ;;  %v15978_v51 = vld [vmem:[#allocation133_spill] sm:$0xff]  ;;  %v4249_v26 = vmul.f32 %v15979_v62, %v15979_v62 }
 0x7a2   :  { %v4320_v31 = vmul.f32 %v15978_v51, %v15978_v51 }
 0x7a3   :  { %v4390_v13 = vadd.f32 %v4389_v10, %v4308_v54  ;;  %v4111_v22 = vadd.f32 %v4110_v16, %v15974_v49  ;;  %v4413_v47 = vadd.f32 %v4253_v4, %v4249_v26  ;;  %v15981_v16 = vld [vmem:[#allocation86_spill] sm:$0xff] }
 0x7a4   :  { %v15983_v26 = vld [vmem:[#allocation150_spill] sm:$0xff] }
 0x7a5   :  { %v4391_v43 = vadd.f32 %v4390_v13, %v4312_v57  ;;  %v4112_v54 = vadd.f32 %v4111_v22, %v15975_v38  ;;  %v8632_v22 = vld [vmem:[%s14913_s2 + $0x144] sm:$0xf0] }
 0x7a6   :  { %v3967_v8 = vpop.f32.mrf.mxu2  ;;  %v8600_v38 = vld [vmem:[%s14913_s2 + $0x44] sm:$0xf0] }
 0x7a7   :  { %v3968_v39 = vadd.f32 %v3967_v8, %v12148_v20  ;;  %v4056_v12 = vpop.f32.mrf.mxu3  ;;  %v15980_v20 = vld [vmem:[#allocation81_spill] sm:$0xff]  ;;  %v4133_v8 = vadd.f32 %v15976_v28, %v15979_v62  ;;  %v4392_v44 = vadd.f32 %v4391_v43, %v4316_v52  ;;  %v4113_v57 = vadd.f32 %v4112_v54, %v15978_v51  ;;  %v8648_v28 = vld [vmem:[%s14913_s2 + $0x1c4] sm:$0xf0] }
 0x7a8   :  { %v4257_v10 = vmul.f32 %v15980_v20, %v15980_v20  ;;  %v8109_v52 = vld [vmem:[%s14913_s2 + $0x40] sm:$0xf]  ;;  %v4265_v54 = vmul.f32 %v15983_v26, %v15983_v26 }
 0x7a9   :  { %v12437_v55 = vadd.f32 %v4056_v12, %v3968_v39  ;;  %v4261_v39 = vmul.f32 %v15981_v16, %v15981_v16  ;;  %v15982_v12 = vld [vmem:[#allocation134_spill] sm:$0xff]  ;;  %v4134_v49 = vadd.f32 %v4133_v8, %v15980_v20  ;;  %v4393_v4 = vadd.f32 %v4392_v44, %v4320_v31  ;;  %v8301_v20 = vld [vmem:[%s14913_s2 + $0x1c0] sm:$0xf]  ;;  %v15985_v44 = vld [vmem:[#allocation135_spill] sm:$0xff] }
 0x7aa   :  { %v4324_v13 = vmul.f32 %v15982_v12, %v15982_v12  ;;  %v4414_v43 = vadd.f32 %v4413_v47, %v4257_v10  ;;  %v4328_v47 = vmul.f32 %v15985_v44, %v15985_v44  ;;  %v8173_v62 = vld [vmem:[%s14913_s2 + $0xc0] sm:$0xf]  ;;  %v4114_v58 = vadd.f32 %v4113_v57, %v15982_v12  ;;  %v15990_v57 = vld [vmem:[#allocation91_spill] sm:$0xff]  ;;  %v15993_v12 = vld [vmem:[#allocation138_spill] sm:$0xff] }
 0x7ab   :  { %15977 = vst [vmem:[#allocation70_spill] sm:$0xff] %v12437_v55  ;;  %v8237_v55 = vld [vmem:[%s14913_s2 + $0x140] sm:$0xf]  ;;  %v4135_v31 = vadd.f32 %v4134_v49, %v15981_v16  ;;  %v8174_v49 = vor.u32 %v8616_v40, %v8173_v62 }
 0x7ac   :  { %v8238_v8 = vor.u32 %v8632_v22, %v8237_v55  ;;  %v8110_v55 = vor.u32 %v8600_v38, %v8109_v52  ;;  %v8302_v22 = vor.u32 %v8648_v28, %v8301_v20  ;;  %v4415_v32 = vadd.f32 %v4414_v43, %v4261_v39  ;;  %v12493_v20 = vpop.f32.mrf.mxu0 }
 0x7ad   :  { %v4394_v16 = vadd.f32 %v4393_v4, %v4324_v13  ;;  %v4136_v28 = vadd.f32 %v4135_v31, %v15983_v26  ;;  %15989 = vst [vmem:[#allocation76_spill] sm:$0xff] %v12493_v20  ;;  %v4115_v52 = vadd.f32 %v4114_v58, %v15985_v44  ;;  %v4273_v39 = vmul.f32 %v15990_v57, %v15990_v57  ;;  %v15992_v31 = vld [vmem:[#allocation96_spill] sm:$0xff]  ;;  %v12510_v44 = vpop.f32.mrf.mxu1  ;;  %v15999_v26 = vld [vmem:[#allocation123_spill] sm:$0xff] }
 0x7ae   :  { %v12465_v51 = vpop.f32.mrf.mxu2  ;;  %5779 = vmatpush.bf16.msra.mxu2 %v8238_v8  ;;  %5601 = vmatpush.bf16.msrb.mxu0 %v8110_v55  ;;  %v4416_v30 = vadd.f32 %v4415_v32, %v4265_v54  ;;  %v15991_v8 = vld [vmem:[#allocation137_spill] sm:$0xff]  ;;  %v4277_v55 = vmul.f32 %v15992_v31, %v15992_v31  ;;  %v4340_v58 = vmul.f32 %v15993_v12, %v15993_v12 }
 0x7af   :  { %15984 = vst [vmem:[#allocation68_spill] sm:$0xff] %v12465_v51  ;;  %v12479_v10 = vpop.f32.mrf.mxu3  ;;  %v4269_v51 = vmul.f32 %v15987_v18, %v15987_v18  ;;  %5868 = vmatpush.bf16.msra.mxu3 %v8302_v22  ;;  %5690 = vmatpush.bf16.msrb.mxu1 %v8174_v49  ;;  %v4395_v43 = vadd.f32 %v4394_v16, %v4328_v47  ;;  %v15994_v47 = vld [vmem:[#allocation151_spill] sm:$0xff] }
 0x7b0   :  { %15986 = vst [vmem:[#allocation7_spill] sm:$0xff] %v12479_v10  ;;  %v15988_v10 = vld [vmem:[#allocation136_spill] sm:$0xff]  ;;  %v4336_v40 = vmul.f32 %v15991_v8, %v15991_v8  ;;  %v4137_v62 = vadd.f32 %v4136_v28, %v15987_v18  ;;  %v4281_v49 = vmul.f32 %v15994_v47, %v15994_v47 }
 0x7b1   :  { %v4332_v38 = vmul.f32 %v15988_v10, %v15988_v10  ;;  %v4116_v13 = vadd.f32 %v4115_v52, %v15988_v10  ;;  %v4417_v4 = vadd.f32 %v4416_v30, %v4269_v51  ;;  %15995 = vst [vmem:[#allocation74_spill] sm:$0xff] %v12510_v44  ;;  %v15996_v30 = vld [vmem:[#allocation139_spill] sm:$0xff] }
 0x7b2   :  { %v4138_v32 = vadd.f32 %v4137_v62, %v15990_v57  ;;  %v4344_v51 = vmul.f32 %v15996_v30, %v15996_v30 }
 0x7b3   :  { %v4396_v22 = vadd.f32 %v4395_v43, %v4332_v38  ;;  %v4117_v54 = vadd.f32 %v4116_v13, %v15991_v8  ;;  %v4418_v16 = vadd.f32 %v4417_v4, %v4273_v39  ;;  %v15997_v13 = vld [vmem:[#allocation152_spill] sm:$0xff] }
 0x7b4   :  { %v4139_v38 = vadd.f32 %v4138_v32, %v15992_v31  ;;  %v4285_v39 = vmul.f32 %v15997_v13, %v15997_v13  ;;  %v4289_v32 = vmul.f32 %v15999_v26, %v15999_v26  ;;  %v16000_v31 = vld [vmem:[#allocation164_spill] sm:$0xff] }
 0x7b5   :  { %v4397_v52 = vadd.f32 %v4396_v22, %v4336_v40  ;;  %v4118_v62 = vadd.f32 %v4117_v54, %v15993_v12  ;;  %v4419_v57 = vadd.f32 %v4418_v16, %v4277_v55  ;;  %v16001_v54 = vld [vmem:[#allocation140_spill] sm:$0xff] }
 0x7b6   :  { %v3972_v28 = vpop.f32.mrf.mxu2  ;;  %v4140_v8 = vadd.f32 %v4139_v38, %v15994_v47  ;;  %v4348_v55 = vmul.f32 %v16001_v54, %v16001_v54 }
 0x7b7   :  { %v3973_v43 = vadd.f32 %v3972_v28, %v12159_v45  ;;  %v4061_v10 = vpop.f32.mrf.mxu3  ;;  %v4398_v4 = vadd.f32 %v4397_v52, %v4340_v58  ;;  %v4119_v40 = vadd.f32 %v4118_v62, %v15996_v30  ;;  %v4420_v22 = vadd.f32 %v4419_v57, %v4281_v49  ;;  %v16002_v58 = vld [vmem:[#allocation69_spill] sm:$0xff] }
 0x7b8   :  { %v4254_v45 = vmul.f32 %v16000_v31, %v16000_v31  ;;  %v4141_v16 = vadd.f32 %v4140_v8, %v15997_v13  ;;  %v4170_v52 = vadd.f32 %v16000_v31, %v16002_v58  ;;  %v4250_v49 = vmul.f32 %v16002_v58, %v16002_v58  ;;  %v16005_v62 = vld [vmem:[#allocation165_spill] sm:$0xff] }
 0x7b9   :  { %v12520_v18 = vadd.f32 %v4061_v10, %v3973_v43  ;;  %v4399_v28 = vadd.f32 %v4398_v4, %v4344_v51  ;;  %v12532_v10 = vpop.f32.mrf.mxu0  ;;  %v4421_v38 = vadd.f32 %v4420_v22, %v4285_v39  ;;  %v16004_v43 = vld [vmem:[#allocation153_spill] sm:$0xff]  ;;  %v4258_v51 = vmul.f32 %v16005_v62, %v16005_v62  ;;  %v16007_v39 = vld [vmem:[#allocation154_spill] sm:$0xff] }
 0x7ba   :  { %16003 = vst [vmem:[#allocation11_spill] sm:$0xff] %v12532_v10  ;;  %v4293_v57 = vmul.f32 %v16004_v43, %v16004_v43  ;;  %v4120_v4 = vadd.f32 %v4119_v40, %v16001_v54  ;;  %v16006_v30 = vld [vmem:[#allocation141_spill] sm:$0xff]  ;;  %v4142_v12 = vadd.f32 %v4141_v16, %v15999_v26  ;;  %v4171_v13 = vadd.f32 %v4170_v52, %v16005_v62  ;;  %v12560_v62 = vpop.f32.mrf.mxu1 }
 0x7bb   :  { %15998 = vst [vmem:[#allocation75_spill] sm:$0xff] %v12520_v18  ;;  %v4352_v8 = vmul.f32 %v16006_v30, %v16006_v30  ;;  %v4422_v47 = vadd.f32 %v4421_v38, %v4289_v32  ;;  %v4297_v22 = vmul.f32 %v16007_v39, %v16007_v39  ;;  %v4450_v31 = vadd.f32 %v4254_v45, %v4250_v49  ;;  %v16008_v18 = vld [vmem:[#allocation166_spill] sm:$0xff]  ;;  %v16011_v32 = vld [vmem:[#allocation111_spill] sm:$0xff]  ;;  %v16012_v45 = vld [vmem:[#allocation88_spill] sm:$0xff] }
 0x7bc   :  { %v4262_v58 = vmul.f32 %v16008_v18, %v16008_v18  ;;  %v4400_v10 = vadd.f32 %v4399_v28, %v4348_v55  ;;  %v4121_v40 = vadd.f32 %v4120_v4, %v16006_v30  ;;  %v4143_v54 = vadd.f32 %v4142_v12, %v16004_v43  ;;  %16013 = vst [vmem:[#allocation15_spill] sm:$0xff] %v12560_v62  ;;  %v16014_v28 = vld [vmem:[#allocation142_spill] sm:$0xff]  ;;  %v16015_v30 = vld [vmem:[#allocation155_spill] sm:$0xff] }
 0x7bd   :  { %v4172_v20 = vadd.f32 %v4171_v13, %v16008_v18  ;;  %v4423_v52 = vadd.f32 %v4422_v47, %v4293_v57  ;;  %v4301_v38 = vmul.f32 %v16011_v32, %v16011_v32  ;;  %v4451_v26 = vadd.f32 %v4450_v31, %v4258_v51  ;;  %v16016_v43 = vld [vmem:[#allocation167_spill] sm:$0xff] }
 0x7be   :  { %v12549_v44 = vpop.f32.mrf.mxu2  ;;  %v4266_v49 = vmul.f32 %v16012_v45, %v16012_v45  ;;  %v4356_v55 = vmul.f32 %v16014_v28, %v16014_v28  ;;  %v4144_v12 = vadd.f32 %v4143_v54, %v16007_v39  ;;  %v4305_v47 = vmul.f32 %v16015_v30, %v16015_v30  ;;  %v16017_v18 = vld [vmem:[#allocation143_spill] sm:$0xff]  ;;  %v16018_v39 = vld [vmem:[#allocation6_spill] sm:$0xff] }
 0x7bf   :  { %16009 = vst [vmem:[#allocation82_spill] sm:$0xff] %v12549_v44  ;;  %v12554_v16 = vpop.f32.mrf.mxu3  ;;  %v4401_v44 = vadd.f32 %v4400_v10, %v4352_v8  ;;  %v4173_v13 = vadd.f32 %v4172_v20, %v16012_v45  ;;  %v4424_v4 = vadd.f32 %v4423_v52, %v4297_v22  ;;  %v4452_v57 = vadd.f32 %v4451_v26, %v4262_v58  ;;  %v16019_v52 = vld [vmem:[#allocation168_spill] sm:$0xff] }
 0x7c0   :  { %16010 = vst [vmem:[#allocation80_spill] sm:$0xff] %v12554_v16  ;;  %v4270_v31 = vmul.f32 %v16016_v43, %v16016_v43  ;;  %v4122_v51 = vadd.f32 %v4121_v40, %v16014_v28  ;;  %v4360_v10 = vmul.f32 %v16017_v18, %v16017_v18  ;;  %v4145_v8 = vadd.f32 %v4144_v12, %v16011_v32  ;;  %v16021_v32 = vld [vmem:[#allocation156_spill] sm:$0xff] }
 0x7c1   :  { %v4174_v16 = vadd.f32 %v4173_v13, %v16016_v43  ;;  %v4425_v54 = vadd.f32 %v4424_v4, %v4301_v38  ;;  %v4309_v20 = vmul.f32 %v16018_v39, %v16018_v39  ;;  %v4453_v22 = vadd.f32 %v4452_v57, %v4266_v49  ;;  %v12582_v62 = vpop.f32.mrf.mxu0  ;;  %v16022_v4 = vld [vmem:[#allocation169_spill] sm:$0xff] }
 0x7c2   :  { %v4274_v26 = vmul.f32 %v16019_v52, %v16019_v52  ;;  %v4402_v58 = vadd.f32 %v4401_v44, %v4356_v55  ;;  %v4123_v45 = vadd.f32 %v4122_v51, %v16017_v18  ;;  %v4146_v40 = vadd.f32 %v4145_v8, %v16015_v30  ;;  %16020 = vst [vmem:[#allocation87_spill] sm:$0xff] %v12582_v62  ;;  %v16023_v18 = vld [vmem:[#allocation10_spill] sm:$0xff] }
 0x7c3   :  { %v4175_v28 = vadd.f32 %v4174_v16, %v16019_v52  ;;  %v4426_v12 = vadd.f32 %v4425_v54, %v4305_v47  ;;  %v4313_v38 = vmul.f32 %v16021_v32, %v16021_v32  ;;  %v4454_v13 = vadd.f32 %v4453_v22, %v4270_v31  ;;  %v16024_v30 = vld [vmem:[#allocation170_spill] sm:$0xff]  ;;  %v16025_v22 = vld [vmem:[#allocation144_spill] sm:$0xff] }
 0x7c4   :  { %v4278_v49 = vmul.f32 %v16022_v4, %v16022_v4  ;;  %v4403_v43 = vadd.f32 %v4402_v58, %v4360_v10  ;;  %v4147_v44 = vadd.f32 %v4146_v40, %v16018_v39  ;;  %v4317_v47 = vmul.f32 %v16023_v18, %v16023_v18  ;;  %v16027_v40 = vld [vmem:[#allocation157_spill] sm:$0xff] }
 0x7c5   :  { %v4176_v55 = vadd.f32 %v4175_v28, %v16022_v4  ;;  %v4427_v16 = vadd.f32 %v4426_v12, %v4309_v20  ;;  %v4455_v54 = vadd.f32 %v4454_v13, %v4274_v26  ;;  %v4282_v31 = vmul.f32 %v16024_v30, %v16024_v30  ;;  %v16028_v12 = vld [vmem:[#allocation171_spill] sm:$0xff]  ;;  %v12604_v26 = vpop.f32.mrf.mxu1  ;;  %v16033_v4 = vld [vmem:[#allocation14_spill] sm:$0xff] }
 0x7c6   :  { %v3977_v57 = vpop.f32.mrf.mxu2  ;;  %v4124_v52 = vadd.f32 %v4123_v45, %v16025_v22  ;;  %v4148_v62 = vadd.f32 %v4147_v44, %v16021_v32  ;;  %16029 = vst [vmem:[#allocation19_spill] sm:$0xff] %v12604_v26  ;;  %v4364_v13 = vmul.f32 %v16025_v22, %v16025_v22  ;;  %v16030_v45 = vld [vmem:[#allocation145_spill] sm:$0xff]  ;;  %v4325_v22 = vmul.f32 %v16033_v4, %v16033_v4 }
 0x7c7   :  { %v3978_v51 = vadd.f32 %v3977_v57, %v12174_v7  ;;  %v4066_v8 = vpop.f32.mrf.mxu3  ;;  %v4177_v10 = vadd.f32 %v4176_v55, %v16024_v30  ;;  %v4428_v28 = vadd.f32 %v4427_v16, %v4313_v38  ;;  %v4321_v7 = vmul.f32 %v16027_v40, %v16027_v40 }
 0x7c8   :  { %v4456_v20 = vadd.f32 %v4455_v54, %v4278_v49  ;;  %v4286_v57 = vmul.f32 %v16028_v12, %v16028_v12  ;;  %v4125_v39 = vadd.f32 %v4124_v52, %v16030_v45  ;;  %v4149_v44 = vadd.f32 %v4148_v62, %v16023_v18  ;;  %v16031_v49 = vld [vmem:[#allocation102_spill] sm:$0xff]  ;;  %v16032_v54 = vld [vmem:[#allocation147_spill] sm:$0xff]  ;;  %v8646_v18 = vld [vmem:[%s14913_s2 + $0x1b4] sm:$0xf0] }
 0x7c9   :  { %v12598_v58 = vadd.f32 %v4066_v8, %v3978_v51  ;;  %v4178_v55 = vadd.f32 %v4177_v10, %v16028_v12  ;;  %v4368_v38 = vmul.f32 %v16030_v45, %v16030_v45  ;;  %v4429_v51 = vadd.f32 %v4428_v28, %v4317_v47  ;;  %v8229_v62 = vld [vmem:[%s14913_s2 + $0x130] sm:$0xf]  ;;  %v8630_v47 = vld [vmem:[%s14913_s2 + $0x134] sm:$0xf0] }
 0x7ca   :  { %v4457_v8 = vadd.f32 %v4456_v20, %v4282_v31  ;;  %v4290_v16 = vmul.f32 %v16031_v49, %v16031_v49  ;;  %v4126_v32 = vadd.f32 %v4125_v39, %v16032_v54  ;;  %v4150_v30 = vadd.f32 %v4149_v44, %v16027_v40  ;;  %v8101_v31 = vld [vmem:[%s14913_s2 + $0x30] sm:$0xf]  ;;  %v16034_v28 = vld [vmem:[#allocation172_spill] sm:$0xff] }
 0x7cb   :  { %16026 = vst [vmem:[#allocation85_spill] sm:$0xff] %v12598_v58  ;;  %v4179_v52 = vadd.f32 %v4178_v55, %v16031_v49  ;;  %v4430_v39 = vadd.f32 %v4429_v51, %v4321_v7  ;;  %v4294_v20 = vmul.f32 %v16034_v28, %v16034_v28  ;;  %v8230_v55 = vor.u32 %v8630_v47, %v8229_v62  ;;  %v8598_v45 = vld [vmem:[%s14913_s2 + $0x34] sm:$0xf0]  ;;  %v8293_v40 = vld [vmem:[%s14913_s2 + $0x1b0] sm:$0xf]  ;;  %v16036_v7 = vld [vmem:[#allocation158_spill] sm:$0xff] }
 0x7cc   :  { %v4458_v10 = vadd.f32 %v4457_v8, %v4286_v57  ;;  %v4329_v57 = vmul.f32 %v16036_v7, %v16036_v7  ;;  %v12645_v8 = vpop.f32.mrf.mxu0  ;;  %v8102_v47 = vor.u32 %v8598_v45, %v8101_v31  ;;  %v8294_v49 = vor.u32 %v8646_v18, %v8293_v40  ;;  %v8165_v12 = vld [vmem:[%s14913_s2 + $0xb0] sm:$0xf]  ;;  %v8614_v58 = vld [vmem:[%s14913_s2 + $0xb4] sm:$0xf0] }
 0x7cd   :  { %v4180_v51 = vadd.f32 %v4179_v52, %v16034_v28  ;;  %16037 = vst [vmem:[#allocation90_spill] sm:$0xff] %v12645_v8  ;;  %v4151_v26 = vadd.f32 %v4150_v30, %v16033_v4  ;;  %v4298_v52 = vmul.f32 %v16039_v36, %v16039_v36  ;;  %5780 = vmatpush.bf16.msra.mxu2 %v8230_v55  ;;  %v16044_v55 = vld [vmem:[#allocation22_spill] sm:$0xff] }
 0x7ce   :  { %v12631_v44 = vpop.f32.mrf.mxu2  ;;  %v8166_v28 = vor.u32 %v8614_v58, %v8165_v12  ;;  %v4431_v8 = vadd.f32 %v4430_v39, %v4325_v22  ;;  %5602 = vmatpush.bf16.msrb.mxu0 %v8102_v47  ;;  %5869 = vmatpush.bf16.msra.mxu3 %v8294_v49  ;;  %v4404_v45 = vadd.f32 %v4403_v43, %v4364_v13  ;;  %v16042_v22 = vld [vmem:[#allocation159_spill] sm:$0xff]  ;;  %v16043_v13 = vld [vmem:[#allocation33_spill] sm:$0xff] }
 0x7cf   :  { %16035 = vst [vmem:[#allocation92_spill] sm:$0xff] %v12631_v44  ;;  %v12647_v62 = vpop.f32.mrf.mxu3  ;;  %v4459_v44 = vadd.f32 %v4458_v10, %v4290_v16  ;;  %v4181_v40 = vadd.f32 %v4180_v51, %v16039_v36  ;;  %v4152_v31 = vadd.f32 %v4151_v26, %v16036_v7  ;;  %v4302_v30 = vmul.f32 %v16041_v35, %v16041_v35  ;;  %v16057_v36 = vld [vmem:[#allocation34_spill] sm:$0xff] }
 0x7d0   :  { %16038 = vst [vmem:[#allocation23_spill] sm:$0xff] %v12647_v62  ;;  %v16040_v62 = vld [vmem:[#allocation18_spill] sm:$0xff]  ;;  %5691 = vmatpush.bf16.msrb.mxu1 %v8166_v28  ;;  %v4372_v16 = vmul.f32 %v16032_v54, %v16032_v54  ;;  %v4432_v58 = vadd.f32 %v4431_v8, %v4329_v57  ;;  %v4337_v12 = vmul.f32 %v16042_v22, %v16042_v22  ;;  %v4127_v10 = vrot.slane %v4126_v32, 4 }
 0x7d1   :  { %v4333_v18 = vmul.f32 %v16040_v62, %v16040_v62  ;;  %v4460_v59 = vadd.f32 %v4459_v44, %v4294_v20  ;;  %v4182_v39 = vadd.f32 %v4181_v40, %v16041_v35  ;;  %v4153_v49 = vadd.f32 %v4152_v31, %v16040_v62  ;;  %v12672_v20 = vpop.f32.mrf.mxu1  ;;  %v16045_v40 = vld [vmem:[#allocation5_spill] sm:$0xff]  ;;  %v16046_v62 = vld [vmem:[#allocation160_spill] sm:$0xff] }
 0x7d2   :  { %v4306_v26 = vmul.f32 %v16043_v13, %v16043_v13  ;;  %v4405_v44 = vadd.f32 %v4404_v45, %v4368_v38  ;;  %v4341_v51 = vmul.f32 %v16044_v55, %v16044_v55  ;;  %v4310_v54 = vmul.f32 %v16045_v40, %v16045_v40 }
 0x7d3   :  { %v4461_v43 = vadd.f32 %v4460_v59, %v4298_v52  ;;  %v4433_v28 = vadd.f32 %v4432_v58, %v4333_v18  ;;  %v4183_v57 = vadd.f32 %v4182_v39, %v16043_v13  ;;  %v4154_v8 = vadd.f32 %v4153_v49, %v16042_v22  ;;  %v16047_v49 = vld [vmem:[#allocation9_spill] sm:$0xff]  ;;  %v16048_v22 = vld [vmem:[#allocation26_spill] sm:$0xff] }
 0x7d4   :  { %v4406_v59 = vadd.f32 %v4405_v44, %v4372_v16  ;;  %v4345_v7 = vmul.f32 %v16046_v62, %v16046_v62  ;;  %v4128_v45 = vadd.f32 %v4127_v10, %v4126_v32  ;;  %v4349_v4 = vmul.f32 %v16048_v22, %v16048_v22 }
 0x7d5   :  { %v4462_v47 = vadd.f32 %v4461_v43, %v4302_v30  ;;  %v4434_v52 = vadd.f32 %v4433_v28, %v4337_v12  ;;  %v4184_v38 = vadd.f32 %v4183_v57, %v16045_v40  ;;  %v4155_v58 = vadd.f32 %v4154_v8, %v16044_v55  ;;  %v12693_v12 = vpop.f32.mrf.mxu0  ;;  %v16049_v57 = vld [vmem:[#allocation8_spill] sm:$0xff] }
 0x7d6   :  { %v12680_v31 = vpop.f32.mrf.mxu2  ;;  %v4314_v30 = vmul.f32 %v16047_v49, %v16047_v49  ;;  %v4318_v32 = vmul.f32 %v16049_v57, %v16049_v57  ;;  %v4407_v10 = vrot.slane %v4406_v59, 4 }
 0x7d7   :  { %v12685_v18 = vpop.f32.mrf.mxu3  ;;  %v4463_v39 = vadd.f32 %v4462_v47, %v4306_v26  ;;  %v4435_v43 = vadd.f32 %v4434_v52, %v4341_v51  ;;  %v4185_v16 = vadd.f32 %v4184_v38, %v16047_v49  ;;  %v4156_v44 = vadd.f32 %v4155_v58, %v16046_v62  ;;  %v16050_v26 = vld [vmem:[#allocation161_spill] sm:$0xff]  ;;  %v16051_v38 = vld [vmem:[#allocation39_spill] sm:$0xff]  ;;  %v16052_v58 = vld [vmem:[#allocation30_spill] sm:$0xff] }
 0x7d8   :  { %v4353_v47 = vmul.f32 %v16050_v26, %v16050_v26  ;;  %v4129_v52 = vrot.slane %v4128_v45, 2  ;;  %v4322_v49 = vmul.f32 %v16051_v38, %v16051_v38  ;;  %v16053_v62 = vld [vmem:[#allocation37_spill] sm:$0xff] }
 0x7d9   :  { %v4464_v28 = vadd.f32 %v4463_v39, %v4310_v54  ;;  %v4436_v8 = vadd.f32 %v4435_v43, %v4345_v7  ;;  %v4186_v51 = vadd.f32 %v4185_v16, %v16049_v57  ;;  %v4157_v55 = vadd.f32 %v4156_v44, %v16048_v22  ;;  %v12710_v16 = vpop.f32.mrf.mxu1 }
 0x7da   :  { %v4357_v54 = vmul.f32 %v16052_v58, %v16052_v58  ;;  %v4326_v35 = vmul.f32 %v16053_v62, %v16053_v62 }
 0x7db   :  { %v4465_v40 = vadd.f32 %v4464_v28, %v4314_v30  ;;  %v4437_v13 = vadd.f32 %v4436_v8, %v4349_v4  ;;  %v4187_v39 = vadd.f32 %v4186_v51, %v16051_v38  ;;  %v4158_v7 = vadd.f32 %v4157_v55, %v16050_v26  ;;  %v16054_v28 = vld [vmem:[#allocation162_spill] sm:$0xff] }
 0x7dc   :  { %v12714_v30 = vadd.f32 %v4407_v10, %v4406_v59  ;;  %v4361_v4 = vmul.f32 %v16054_v28, %v16054_v28  ;;  %v12721_v51 = vadd.f32 %v4129_v52, %v4128_v45  ;;  %v4365_v59 = vmul.f32 %v16057_v36, %v16057_v36 }
 0x7dd   :  { %v4466_v43 = vadd.f32 %v4465_v40, %v4318_v32  ;;  %v4438_v44 = vadd.f32 %v4437_v13, %v4353_v47  ;;  %v4188_v8 = vadd.f32 %v4187_v39, %v16053_v62  ;;  %v4159_v55 = vadd.f32 %v4158_v7, %v16052_v58  ;;  %v16056_v32 = vld [vmem:[#allocation38_spill] sm:$0xff]  ;;  %v16058_v39 = vld [vmem:[#allocation12_spill] sm:$0xff]  ;;  %v12734_v7 = vpop.f32.mrf.mxu0 }
 0x7de   :  { %v12712_v57 = vpop.f32.mrf.mxu2  ;;  %16055 = vst [vmem:[#allocation97_spill] sm:$0xff] %v12721_v51  ;;  %v4330_v26 = vmul.f32 %v16056_v32, %v16056_v32  ;;  %v4334_v62 = vmul.f32 %v16058_v39, %v16058_v39 }
 0x7df   :  { %v12719_v22 = vpop.f32.mrf.mxu3  ;;  %v4467_v40 = vadd.f32 %v4466_v43, %v4322_v49  ;;  %v4439_v38 = vadd.f32 %v4438_v44, %v4357_v54  ;;  %v4189_v13 = vadd.f32 %v4188_v8, %v16056_v32  ;;  %v4160_v10 = vadd.f32 %v4159_v55, %v16054_v28  ;;  %v16059_v55 = vld [vmem:[#allocation43_spill] sm:$0xff]  ;;  %v16061_v43 = vld [vmem:[#allocation41_spill] sm:$0xff] }
 0x7e0   :  { %v4255_v54 = vmul.f32 %v12240_v0, %v12240_v0 }
 0x7e1   :  { %v4468_v47 = vadd.f32 %v4467_v40, %v4326_v35  ;;  %v4440_v52 = vadd.f32 %v4439_v38, %v4361_v4  ;;  %v4190_v49 = vadd.f32 %v4189_v13, %v16058_v39  ;;  %v4161_v44 = vadd.f32 %v4160_v10, %v16057_v36  ;;  %v16060_v13 = vld [vmem:[#allocation146_spill] sm:$0xff]  ;;  %v12767_v51 = vpop.f32.mrf.mxu1 }
 0x7e2   :  { %v4338_v35 = vmul.f32 %v16059_v55, %v16059_v55  ;;  %v4251_v38 = vmul.f32 %v12237_v33, %v12237_v33  ;;  %v4259_v4 = vmul.f32 %v12246_v21, %v12246_v21  ;;  %v4369_v45 = vmul.f32 %v16060_v13, %v16060_v13  ;;  %16065 = vst [vmem:[#allocation27_spill] sm:$0xff] %v12767_v51 }
 0x7e3   :  { %v4469_v8 = vadd.f32 %v4468_v47, %v4330_v26  ;;  %v4441_v40 = vadd.f32 %v4440_v52, %v4365_v59  ;;  %v4191_v28 = vadd.f32 %v4190_v49, %v16059_v55  ;;  %v4342_v10 = vmul.f32 %v16061_v43, %v16061_v43 }
 0x7e4   :  { %v3772_v26 = vadd.f32 %v12079_v9, %v12087_v2  ;;  %v4207_v52 = vadd.f32 %v12240_v0, %v12237_v33  ;;  %v4487_v49 = vadd.f32 %v4255_v54, %v4251_v38  ;;  %v4263_v36 = vmul.f32 %v12249_v60, %v12249_v60  ;;  %v16064_v9 = vld [vmem:[#allocation42_spill] sm:$0xff] }
 0x7e5   :  { %v4470_v58 = vadd.f32 %v4469_v8, %v4334_v62  ;;  %v4192_v59 = vadd.f32 %v4191_v28, %v16061_v43  ;;  %v4162_v62 = vadd.f32 %v4161_v44, %v16060_v13  ;;  %v16063_v8 = vld [vmem:[#allocation148_spill] sm:$0xff]  ;;  %v4346_v2 = vmul.f32 %v16064_v9, %v16064_v9 }
 0x7e6   :  { %v12753_v47 = vpop.f32.mrf.mxu2  ;;  %v4373_v39 = vmul.f32 %v16063_v8, %v16063_v8  ;;  %v4208_v54 = vadd.f32 %v4207_v52, %v12246_v21  ;;  %v4488_v38 = vadd.f32 %v4487_v49, %v4259_v4  ;;  %v4267_v43 = vmul.f32 %v12255_v24, %v12255_v24  ;;  %v8285_v49 = vld [vmem:[%s14913_s2 + $0x1a0] sm:$0xf] }
 0x7e7   :  { %v12760_v55 = vpop.f32.mrf.mxu3  ;;  %v4471_v32 = vadd.f32 %v4470_v58, %v4338_v35  ;;  %v4193_v28 = vadd.f32 %v4192_v59, %v16064_v9  ;;  %v4442_v0 = vadd.f32 %v4441_v40, %v4369_v45  ;;  %v3861_v44 = vadd.f32 %v12081_v42, %v3772_v26  ;;  %v16066_v35 = vld [vmem:[#allocation13_spill] sm:$0xff]  ;;  %v12789_v40 = vpop.f32.mrf.mxu0  ;;  %v16094_v9 = vld [vmem:[#allocation70_spill] sm:$0xff] }
 0x7e8   :  { %16062 = vst [vmem:[#allocation95_spill] sm:$0xff] %v12760_v55  ;;  %v3777_v58 = vadd.f32 %v12095_v27, %v12103_v56  ;;  %v4209_v55 = vadd.f32 %v4208_v54, %v12249_v60  ;;  %v4489_v51 = vadd.f32 %v4488_v38, %v4263_v36  ;;  %v4271_v59 = vmul.f32 %v12282_v6, %v12282_v6  ;;  %v16067_v27 = vld [vmem:[#allocation17_spill] sm:$0xff]  ;;  %v8612_v38 = vld [vmem:[%s14913_s2 + $0xa4] sm:$0xf0] }
 0x7e9   :  { %v4472_v33 = vadd.f32 %v4471_v32, %v4342_v10  ;;  %v4194_v13 = vadd.f32 %v4193_v28, %v16066_v35  ;;  %v12781_v4 = vadd.f32 %v4162_v62, %v16063_v8  ;;  %v12783_v52 = vadd.f32 %v4442_v0, %v4373_v39  ;;  %v8221_v26 = vld [vmem:[%s14913_s2 + $0x120] sm:$0xf]  ;;  %v16078_v8 = vld [vmem:[#allocation62_spill] sm:$0xff] }
 0x7ea   :  { %v3950_v32 = vadd.f32 %v12308_v63, %v3861_v44  ;;  %v4350_v42 = vmul.f32 %v16066_v35, %v16066_v35  ;;  %v4210_v36 = vadd.f32 %v4209_v55, %v12255_v24  ;;  %v4490_v10 = vadd.f32 %v4489_v51, %v4267_v43  ;;  %v8093_v0 = vld [vmem:[%s14913_s2 + $0x20] sm:$0xf]  ;;  %v16093_v35 = vld [vmem:[#allocation87_spill] sm:$0xff] }
 0x7eb   :  { %v4473_v45 = vadd.f32 %v4472_v33, %v4346_v2  ;;  %v4195_v56 = vadd.f32 %v4194_v13, %v16067_v27  ;;  %v8628_v33 = vld [vmem:[%s14913_s2 + $0x124] sm:$0xf0]  ;;  %v3866_v63 = vadd.f32 %v12097_v14, %v3777_v58  ;;  %v3782_v39 = vadd.f32 %v12111_v29, %v12119_v46  ;;  %v8157_v54 = vld [vmem:[%s14913_s2 + $0xa0] sm:$0xf] }
 0x7ec   :  { %v4275_v51 = vmul.f32 %v12288_v25, %v12288_v25  ;;  %v8222_v55 = vor.u32 %v8628_v33, %v8221_v26  ;;  %v8596_v13 = vld [vmem:[%s14913_s2 + $0x24] sm:$0xf0]  ;;  %v4211_v29 = vadd.f32 %v4210_v36, %v12282_v6  ;;  %v4491_v46 = vadd.f32 %v4490_v10, %v4271_v59  ;;  %v16068_v33 = vld [vmem:[#allocation16_spill] sm:$0xff] }
 0x7ed   :  { %v8644_v14 = vld [vmem:[%s14913_s2 + $0x1a4] sm:$0xf0]  ;;  %v8094_v2 = vor.u32 %v8596_v13, %v8093_v0  ;;  %v4279_v44 = vmul.f32 %v12291_v61, %v12291_v61  ;;  %v12829_v58 = vadd.f32 %v12319_v1, %v3950_v32  ;;  %v3955_v59 = vadd.f32 %v12333_v34, %v3866_v63  ;;  %v12840_v32 = vpop.f32.mrf.mxu1 }
 0x7ee   :  { %v12806_v43 = vpop.f32.mrf.mxu2  ;;  %v8286_v28 = vor.u32 %v8644_v14, %v8285_v49  ;;  %5781 = vmatpush.bf16.msra.mxu2 %v8222_v55  ;;  %v8158_v36 = vor.u32 %v8612_v38, %v8157_v54  ;;  %v4164_v10 = vrot.slane %v12781_v4, 4  ;;  %v4354_v26 = vmul.f32 %v16067_v27, %v16067_v27  ;;  %v16069_v14 = vld [vmem:[#allocation47_spill] sm:$0xff] }
 0x7ef   :  { %v12818_v62 = vpop.f32.mrf.mxu3  ;;  %v4196_v0 = vadd.f32 %v4195_v56, %v16068_v33  ;;  %v4212_v13 = vadd.f32 %v4211_v29, %v12288_v25  ;;  %5603 = vmatpush.bf16.msrb.mxu0 %v8094_v2  ;;  %v3871_v49 = vadd.f32 %v12113_v37, %v3782_v39  ;;  %v3787_v1 = vadd.f32 %v12127_v50, %v12135_v15 }
 0x7f0   :  { %5870 = vmatpush.bf16.msra.mxu3 %v8286_v28  ;;  %v4492_v34 = vadd.f32 %v4491_v46, %v4275_v51  ;;  %v4283_v63 = vmul.f32 %v12297_v23, %v12297_v23  ;;  %5692 = vmatpush.bf16.msrb.mxu1 %v8158_v36  ;;  %v4474_v55 = vadd.f32 %v4473_v45, %v4350_v42  ;;  %v16071_v42 = vld [vmem:[#allocation45_spill] sm:$0xff] }
 0x7f1   :  { %v4358_v56 = vmul.f32 %v16068_v33, %v16068_v33  ;;  %v4197_v29 = vadd.f32 %v4196_v0, %v16069_v14  ;;  %v4213_v2 = vadd.f32 %v4212_v13, %v12291_v61  ;;  %v4287_v37 = vmul.f32 %v12829_v58, %v12829_v58  ;;  %v12868_v13 = vpop.f32.mrf.mxu0 }
 0x7f2   :  { %v4493_v28 = vadd.f32 %v4492_v34, %v4279_v44  ;;  %v12851_v50 = vadd.f32 %v12335_v48, %v3955_v59  ;;  %v3960_v15 = vadd.f32 %v12365_v41, %v3871_v49  ;;  %v4475_v39 = vadd.f32 %v4474_v55, %v4354_v26  ;;  %v16072_v26 = vld [vmem:[#allocation46_spill] sm:$0xff] }
 0x7f3   :  { %v4362_v45 = vmul.f32 %v16069_v14, %v16069_v14  ;;  %v4198_v51 = vadd.f32 %v4197_v29, %v16071_v42  ;;  %v4214_v46 = vadd.f32 %v4213_v2, %v12297_v23  ;;  %v3876_v54 = vadd.f32 %v12129_v53, %v3787_v1 }
 0x7f4   :  { %16070 = vst [vmem:[#allocation103_spill] sm:$0xff] %v12851_v50  ;;  %v3792_v38 = vadd.f32 %v12142_v17, %v12150_v11  ;;  %v4494_v44 = vadd.f32 %v4493_v28, %v4283_v63  ;;  %v4291_v48 = vmul.f32 %v12331_v19, %v12331_v19  ;;  %v4476_v41 = vadd.f32 %v4475_v39, %v4358_v56  ;;  %v16074_v56 = vld [vmem:[#allocation20_spill] sm:$0xff]  ;;  %v16075_v28 = vld [vmem:[#allocation51_spill] sm:$0xff] }
 0x7f5   :  { %v4366_v36 = vmul.f32 %v16071_v42, %v16071_v42  ;;  %v4199_v0 = vadd.f32 %v4198_v51, %v16072_v26  ;;  %v4215_v49 = vadd.f32 %v4214_v46, %v12829_v58  ;;  %v4295_v17 = vmul.f32 %v12851_v50, %v12851_v50  ;;  %v16076_v51 = vld [vmem:[#allocation21_spill] sm:$0xff] }
 0x7f6   :  { %v12863_v59 = vpop.f32.mrf.mxu2  ;;  %v4495_v1 = vadd.f32 %v4494_v44, %v4287_v37  ;;  %v12876_v11 = vadd.f32 %v12377_v5, %v3960_v15  ;;  %v3965_v34 = vadd.f32 %v12414_v3, %v3876_v54  ;;  %v4477_v63 = vadd.f32 %v4476_v41, %v4362_v45  ;;  %v16077_v37 = vld [vmem:[#allocation49_spill] sm:$0xff]  ;;  %v12892_v41 = vpop.f32.mrf.mxu1 }
 0x7f7   :  { %v12871_v53 = vpop.f32.mrf.mxu3  ;;  %v4370_v55 = vmul.f32 %v16072_v26, %v16072_v26  ;;  %v4200_v29 = vadd.f32 %v4199_v0, %v16074_v56  ;;  %v4216_v2 = vadd.f32 %v4215_v49, %v12331_v19  ;;  %v3881_v39 = vadd.f32 %v16075_v28, %v3792_v38  ;;  %v16079_v49 = vld [vmem:[#allocation36_spill] sm:$0xff] }
 0x7f8   :  { %16073 = vst [vmem:[#allocation101_spill] sm:$0xff] %v12876_v11  ;;  %v3797_v46 = vadd.f32 %v16077_v37, %v16076_v51  ;;  %v4496_v44 = vadd.f32 %v4495_v1, %v4291_v48  ;;  %v4299_v5 = vmul.f32 %v16078_v8, %v16078_v8  ;;  %v4165_v15 = vadd.f32 %v4164_v10, %v12781_v4  ;;  %v16081_v48 = vld [vmem:[#allocation68_spill] sm:$0xff] }
 0x7f9   :  { %v4478_v3 = vadd.f32 %v4477_v63, %v4366_v36  ;;  %v4374_v45 = vmul.f32 %v16074_v56, %v16074_v56  ;;  %v4217_v54 = vadd.f32 %v4216_v2, %v12851_v50  ;;  %v4303_v38 = vmul.f32 %v12876_v11, %v12876_v11  ;;  %v16082_v63 = vld [vmem:[#allocation50_spill] sm:$0xff]  ;;  %v16083_v2 = vld [vmem:[#allocation25_spill] sm:$0xff]  ;;  %v16084_v56 = vld [vmem:[#allocation76_spill] sm:$0xff] }
 0x7fa   :  { %v4497_v0 = vadd.f32 %v4496_v44, %v4295_v17  ;;  %v12897_v28 = vadd.f32 %v16079_v49, %v3965_v34  ;;  %v3970_v1 = vadd.f32 %v16081_v48, %v3881_v39  ;;  %v4444_v51 = vrot.slane %v12783_v52, 4  ;;  %v16085_v44 = vld [vmem:[#allocation63_spill] sm:$0xff] }
 0x7fb   :  { %v4479_v4 = vadd.f32 %v4478_v3, %v4370_v55  ;;  %v4201_v10 = vrot.slane %v4200_v29, 4  ;;  %v4218_v36 = vadd.f32 %v4217_v54, %v16078_v8  ;;  %v3886_v37 = vadd.f32 %v16082_v63, %v3797_v46  ;;  %v16087_v3 = vld [vmem:[#allocation24_spill] sm:$0xff]  ;;  %v16088_v49 = vld [vmem:[#allocation11_spill] sm:$0xff] }
 0x7fc   :  { %16080 = vst [vmem:[#allocation31_spill] sm:$0xff] %v12897_v28  ;;  %v3802_v26 = vadd.f32 %v16084_v56, %v16083_v2  ;;  %v4498_v17 = vadd.f32 %v4497_v0, %v4299_v5  ;;  %v4307_v42 = vmul.f32 %v16085_v44, %v16085_v44  ;;  %v16086_v34 = vrot.slane %v12714_v30, 2  ;;  %v16089_v0 = vld [vmem:[#allocation7_spill] sm:$0xff]  ;;  %v16090_v2 = vld [vmem:[#allocation82_spill] sm:$0xff] }
 0x7fd   :  { %v4480_v55 = vadd.f32 %v4479_v4, %v4374_v45  ;;  %v3805_v54 = vadd.f32 %v16088_v49, %v16087_v3  ;;  %v4219_v46 = vadd.f32 %v4218_v36, %v12876_v11  ;;  %v4311_v5 = vmul.f32 %v12897_v28, %v12897_v28  ;;  %v3821_v4 = vpop.f32.mrf.mxu0  ;;  %v16091_v3 = vld [vmem:[#allocation74_spill] sm:$0xff]  ;;  %v16092_v49 = vld [vmem:[#allocation55_spill] sm:$0xff] }
 0x7fe   :  { %v12907_v14 = vpop.f32.mrf.mxu2  ;;  %v12912_v39 = vadd.f32 %v16086_v34, %v12714_v30  ;;  %v4499_v56 = vadd.f32 %v4498_v17, %v4303_v38  ;;  %v12922_v63 = vadd.f32 %v16089_v0, %v3970_v1  ;;  %v3975_v33 = vadd.f32 %v16090_v2, %v3886_v37  ;;  %v16095_v0 = vld [vmem:[#allocation15_spill] sm:$0xff]  ;;  %v16096_v37 = vld [vmem:[#allocation53_spill] sm:$0xff]  ;;  %v16097_v2 = vld [vmem:[#allocation90_spill] sm:$0xff] }
 0x7ff   :  { %v12917_v48 = vpop.f32.mrf.mxu3  ;;  %v4166_v27 = vrot.slane %v4165_v15, 2  ;;  %v4445_v30 = vadd.f32 %v4444_v51, %v12783_v52  ;;  %v4202_v45 = vadd.f32 %v4201_v10, %v4200_v29  ;;  %v4220_v34 = vadd.f32 %v4219_v46, %v16085_v44  ;;  %v3910_v44 = vpop.f32.mrf.mxu1 }
 0x800   :  { %v3891_v36 = vadd.f32 %v16091_v3, %v3802_v26  ;;  %v3807_v38 = vadd.f32 %v16093_v35, %v16092_v49  ;;  %v4500_v17 = vadd.f32 %v4499_v56, %v4307_v42  ;;  %v4315_v11 = vmul.f32 %v16094_v9, %v16094_v9  ;;  %v16098_v26 = vld [vmem:[#allocation80_spill] sm:$0xff] }
 0x801   :  { %v4481_v1 = vrot.slane %v4480_v55, 4  ;;  %v3894_v8 = vadd.f32 %v16095_v0, %v3805_v54  ;;  %v3810_v50 = vadd.f32 %v16097_v2, %v16096_v37  ;;  %v4221_v52 = vadd.f32 %v4220_v34, %v12897_v28  ;;  %v16099_v35 = vld [vmem:[#allocation92_spill] sm:$0xff]  ;;  %v16100_v54 = vld [vmem:[#allocation19_spill] sm:$0xff] }
 0x802   :  { %v4501_v29 = vadd.f32 %v4500_v17, %v4311_v5  ;;  %v4319_v51 = vmul.f32 %v12922_v63, %v12922_v63  ;;  %v12939_v10 = vadd.f32 %v16098_v26, %v3975_v33  ;;  %v3980_v42 = vadd.f32 %v16099_v35, %v3891_v36  ;;  %v16101_v2 = vld [vmem:[#allocation75_spill] sm:$0xff]  ;;  %v16102_v26 = vld [vmem:[#allocation54_spill] sm:$0xff]  ;;  %v16105_v35 = vld [vmem:[#allocation85_spill] sm:$0xff] }
 0x803   :  { %v4167_v46 = vadd.f32 %v4166_v27, %v4165_v15  ;;  %v4446_v56 = vrot.slane %v4445_v30, 2  ;;  %v4203_v3 = vrot.slane %v4202_v45, 2  ;;  %v4222_v49 = vadd.f32 %v4221_v52, %v16094_v9 }
 0x804   :  { %v3896_v0 = vadd.f32 %v16100_v54, %v3807_v38  ;;  %v4502_v37 = vadd.f32 %v4501_v29, %v4315_v11  ;;  %v4323_v5 = vmul.f32 %v16101_v2, %v16101_v2  ;;  %v3983_v34 = vadd.f32 %v12680_v31, %v3894_v8  ;;  %v16103_v38 = vld [vmem:[#allocation23_spill] sm:$0xff] }
 0x805   :  { %v4482_v28 = vadd.f32 %v4481_v1, %v4480_v55  ;;  %v3899_v33 = vadd.f32 %v12672_v20, %v3810_v50  ;;  %v3812_v27 = vadd.f32 %v12693_v12, %v16102_v26  ;;  %v4223_v15 = vadd.f32 %v4222_v49, %v12922_v63  ;;  %v16104_v1 = vld [vmem:[#allocation28_spill] sm:$0xff] }
 0x806   :  { %v3997_v17 = vpop.f32.mrf.mxu2  ;;  %v4503_v52 = vadd.f32 %v4502_v37, %v4319_v51  ;;  %v4327_v11 = vmul.f32 %v12939_v10, %v12939_v10  ;;  %v12956_v29 = vadd.f32 %v16103_v38, %v3980_v42  ;;  %v3985_v31 = vadd.f32 %v12712_v57, %v3896_v0  ;;  %v16106_v57 = vld [vmem:[#allocation59_spill] sm:$0xff] }
 0x807   :  { %v12951_v36 = vpop.f32.mrf.mxu3  ;;  %v4168_v8 = vrot.slane %v4167_v46, 1  ;;  %v4204_v55 = vadd.f32 %v4203_v3, %v4202_v45  ;;  %v3815_v20 = vadd.f32 %v12734_v7, %v16104_v1  ;;  %v4224_v12 = vadd.f32 %v4223_v15, %v16101_v2  ;;  %v3824_v3 = vpop.f32.mrf.mxu0 }
 0x808   :  { %v4504_v50 = vadd.f32 %v4503_v52, %v4323_v5  ;;  %v4331_v49 = vmul.f32 %v16105_v35, %v16105_v35  ;;  %v12965_v51 = vadd.f32 %v12685_v18, %v3983_v34  ;;  %v3988_v54 = vadd.f32 %v12753_v47, %v3899_v33  ;;  %v16108_v18 = vld [vmem:[#allocation27_spill] sm:$0xff]  ;;  %v16109_v47 = vld [vmem:[#allocation57_spill] sm:$0xff] }
 0x809   :  { %v4447_v42 = vadd.f32 %v4446_v56, %v4445_v30  ;;  %v3901_v37 = vadd.f32 %v12710_v16, %v3812_v27  ;;  %v3817_v45 = vadd.f32 %v12789_v40, %v16106_v57  ;;  %v4225_v7 = vadd.f32 %v4224_v12, %v12939_v10  ;;  %v16110_v52 = vld [vmem:[#allocation95_spill] sm:$0xff] }
 0x80a   :  { %v4483_v0 = vrot.slane %v4482_v28, 2  ;;  %v4505_v26 = vadd.f32 %v4504_v50, %v4327_v11  ;;  %v4335_v5 = vmul.f32 %v12956_v29, %v12956_v29  ;;  %v12975_v15 = vadd.f32 %v12719_v22, %v3985_v31  ;;  %v16112_v31 = vld [vmem:[#allocation58_spill] sm:$0xff] }
 0x80b   :  { %v3904_v34 = vadd.f32 %v16108_v18, %v3815_v20  ;;  %v3820_v30 = vadd.f32 %v12868_v13, %v16109_v47  ;;  %v4226_v16 = vadd.f32 %v4225_v7, %v16105_v35  ;;  %v3990_v40 = vadd.f32 %v12806_v43, %v3901_v37  ;;  %v16113_v43 = vld [vmem:[#allocation29_spill] sm:$0xff] }
 0x80c   :  { %16107 = vst [vmem:[#allocation108_spill] sm:$0xff] %v12975_v15  ;;  %v4205_v56 = vrot.slane %v4204_v55, 1  ;;  %v4506_v33 = vadd.f32 %v4505_v26, %v4331_v49  ;;  %v4339_v27 = vmul.f32 %v12965_v51, %v12965_v51  ;;  %v12985_v11 = vadd.f32 %v16110_v52, %v3988_v54  ;;  %v3913_v49 = vpop.f32.mrf.mxu1 }
 0x80d   :  { %v3906_v22 = vadd.f32 %v12840_v32, %v3817_v45  ;;  %v3822_v1 = vadd.f32 %v3821_v4, %v16112_v31  ;;  %v4227_v20 = vadd.f32 %v4226_v16, %v12956_v29  ;;  %v3993_v13 = vadd.f32 %v12863_v59, %v3904_v34 }
 0x80e   :  { %16111 = vst [vmem:[#allocation106_spill] sm:$0xff] %v12985_v11  ;;  %v3999_v38 = vpop.f32.mrf.mxu2  ;;  %v4484_v50 = vadd.f32 %v4483_v0, %v4482_v28  ;;  %v3825_v37 = vadd.f32 %v3824_v3, %v16113_v43  ;;  %v4507_v57 = vadd.f32 %v4506_v33, %v4335_v5  ;;  %v4343_v7 = vmul.f32 %v12975_v15, %v12975_v15  ;;  %v16120_v43 = vld [vmem:[#allocation163_spill] sm:$0xff] }
 0x80f   :  { %v4088_v12 = vpop.f32.mrf.mxu3  ;;  %v3909_v54 = vadd.f32 %v12892_v41, %v3820_v30  ;;  %v4228_v26 = vadd.f32 %v4227_v20, %v12965_v51  ;;  %v12997_v32 = vadd.f32 %v12818_v62, %v3990_v40  ;;  %v3995_v4 = vadd.f32 %v12907_v14, %v3906_v22  ;;  %v3826_v16 = vpop.f32.mrf.mxu0  ;;  %v16117_v40 = vld [vmem:[#allocation97_spill] sm:$0xff] }
 0x810   :  { %v4169_v45 = vadd.f32 %v4168_v8, %v4167_v46  ;;  %v4448_v59 = vrot.slane %v4447_v42, 1  ;;  %v4508_v18 = vadd.f32 %v4507_v57, %v4339_v27  ;;  %v4347_v28 = vmul.f32 %v12985_v11, %v12985_v11 }
 0x811   :  { %16114 = vst [vmem:[#allocation35_spill] sm:$0xff] %v12997_v32  ;;  %v3911_v3 = vadd.f32 %v3910_v44, %v3822_v1  ;;  %v4229_v0 = vadd.f32 %v4228_v26, %v12975_v15  ;;  %v13004_v5 = vadd.f32 %v12871_v53, %v3993_v13  ;;  %v3998_v41 = vadd.f32 %v3997_v17, %v3909_v54 }
 0x812   :  { %v4206_v34 = vadd.f32 %v4205_v56, %v4204_v55  ;;  %v4485_v47 = vrot.slane %v4484_v50, 1  ;;  %v3914_v30 = vadd.f32 %v3913_v49, %v3825_v37  ;;  %v4509_v62 = vadd.f32 %v4508_v18, %v4343_v7 }
 0x813   :  { %16115 = vst [vmem:[#allocation112_spill] sm:$0xff] %v13004_v5  ;;  %v4230_v14 = vadd.f32 %v4229_v0, %v12985_v11  ;;  %v4351_v46 = vmul.f32 %v12997_v32, %v12997_v32  ;;  %v13010_v8 = vadd.f32 %v12917_v48, %v3995_v4  ;;  %v4000_v44 = vadd.f32 %v3999_v38, %v3911_v3 }
 0x814   :  { %v16118_v33 = vrot.slane %v16117_v40, 1  ;;  %v13015_v27 = vmul.f32 0.00390625, %v4169_v45  ;;  %v4449_v17 = vadd.f32 %v4448_v59, %v4447_v42  ;;  %v4510_v55 = vadd.f32 %v4509_v62, %v4347_v28  ;;  %v3915_v26 = vpop.f32.mrf.mxu1 }
 0x815   :  { %16116 = vst [vmem:[#allocation110_spill] sm:$0xff] %v13010_v8  ;;  %v4231_v52 = vadd.f32 %v4230_v14, %v12997_v32  ;;  %v4355_v22 = vmul.f32 %v13004_v5, %v13004_v5  ;;  %v13021_v31 = vadd.f32 %v12951_v36, %v3998_v41  ;;  %v4411_v38 = vrot.slane %v12912_v39, 1 }
 0x816   :  { %v4132_v53 = vadd.f32 %v16118_v33, %v16117_v40  ;;  %v4002_v56 = vpop.f32.mrf.mxu2  ;;  %v13024_v20 = vmul.f32 0.00390625, %v4206_v34  ;;  %v4486_v13 = vadd.f32 %v4485_v47, %v4484_v50  ;;  %v3827_v37 = vadd.f32 %v3826_v16, %v16120_v43 }
 0x817   :  { %16119 = vst [vmem:[#allocation40_spill] sm:$0xff] %v13021_v31  ;;  %v4003_v48 = vadd.f32 %v4002_v56, %v3914_v30  ;;  %v4091_v1 = vpop.f32.mrf.mxu3  ;;  %v4511_v42 = vadd.f32 %v4510_v55, %v4351_v46  ;;  %v4232_v49 = vadd.f32 %v4231_v52, %v13004_v5  ;;  %v4359_v57 = vmul.f32 %v13010_v8, %v13010_v8 }
 0x818   :  { %v13030_v7 = vadd.f32 %v4088_v12, %v4000_v44  ;;  %v4525_v54 = vmul.f32 0.00390625, %v4449_v17  ;;  %v4529_v36 = vmul.f32 %v13015_v27, %v13015_v27  ;;  %v4363_v50 = vmul.f32 %v13021_v31, %v13021_v31 }
 0x819   :  { %v4512_v4 = vadd.f32 %v4511_v42, %v4355_v22  ;;  %v4233_v45 = vadd.f32 %v4232_v49, %v13010_v8  ;;  %v13037_v59 = vadd.f32 %v4091_v1, %v4003_v48  ;;  %v13039_v18 = vmul.f32 0.00390625, %v4132_v53  ;;  %v16132_v8 = vld [vmem:[#allocation166_spill] sm:$0xff] }
 0x81a   :  { %16121 = vst [vmem:[#allocation114_spill] sm:$0xff] %v13030_v7  ;;  %v4412_v28 = vadd.f32 %v4411_v38, %v12912_v39  ;;  %v4526_v3 = vmul.f32 0.00390625, %v4486_v13  ;;  %v4530_v12 = vmul.f32 %v13024_v20, %v13024_v20  ;;  %v3916_v0 = vadd.f32 %v3915_v26, %v3827_v37 }
 0x81b   :  { %v4513_v41 = vadd.f32 %v4512_v4, %v4359_v57  ;;  %v4234_v34 = vadd.f32 %v4233_v45, %v13021_v31  ;;  %v4367_v47 = vmul.f32 %v13030_v7, %v13030_v7  ;;  %v4533_v30 = vsub.f32 %v4525_v54, %v4529_v36  ;;  %v8141_v31 = vld [vmem:[%s14913_s2 + $0x80] sm:$0xf] }
 0x81c   :  { %v4371_v46 = vmul.f32 %v13037_v59, %v13037_v59  ;;  %v4524_v44 = vmul.f32 0.00390625, %v4412_v28  ;;  %v4528_v40 = vmul.f32 %v13039_v18, %v13039_v18  ;;  %v4534_v53 = vsub.f32 %v4526_v3, %v4530_v12 }
 0x81d   :  { %v4514_v16 = vadd.f32 %v4513_v41, %v4363_v50  ;;  %v4235_v14 = vadd.f32 %v4234_v34, %v13030_v7  ;;  %v4537_v52 = vmax.f32 %v4533_v30, 0.0 }
 0x81e   :  { %v4004_v62 = vpop.f32.mrf.mxu2  ;;  %v4532_v38 = vsub.f32 %v4524_v44, %v4528_v40  ;;  %v4538_v13 = vmax.f32 %v4534_v53, 0.0 }
 0x81f   :  { %v4005_v39 = vadd.f32 %v4004_v62, %v3916_v0  ;;  %v4093_v33 = vpop.f32.mrf.mxu3  ;;  %v4515_v17 = vadd.f32 %v4514_v16, %v4367_v47  ;;  %v4236_v55 = vadd.f32 %v4235_v14, %v13037_v59  ;;  %v4541_v42 = vadd.f32 1e-05, %v4537_v52 }
 0x820   :  { %v4536_v54 = vmax.f32 %v4532_v38, 0.0  ;;  %v4542_v36 = vadd.f32 1e-05, %v4538_v13 }
 0x821   :  { %v13053_v56 = vadd.f32 %v4093_v33, %v4005_v39  ;;  %v4516_v22 = vadd.f32 %v4515_v17, %v4371_v46  ;;  %8690 = vrsqrt.f32 %v4541_v42  ;;  %vm4560_vm2 = vweird.f32 %v4541_v42 }
 0x822   :  { %v4540_v28 = vadd.f32 1e-05, %v4536_v54  ;;  %8692 = vrsqrt.f32 %v4542_v36  ;;  %vm4570_vm5 = vweird.f32 %v4542_v36 }
 0x823   :  { %v4237_v48 = vadd.f32 %v4236_v55, %v13053_v56  ;;  %v4375_v1 = vmul.f32 %v13053_v56, %v13053_v56 }
 0x824   :  { %8694 = vrsqrt.f32 %v4540_v28  ;;  %vm4550_vm11 = vweird.f32 %v4540_v28 }
 0x825   :  { %v4238_v43 = vrot.slane %v4237_v48, 4  ;;  %v4517_v37 = vadd.f32 %v4516_v22, %v4375_v1 }
 0x827   :  { %v4239_v49 = vadd.f32 %v4238_v43, %v4237_v48  ;;  %v4518_v57 = vrot.slane %v4517_v37, 4  ;;  %v8691_v34 = vpop.eup %8690 }
 0x828   :  { %v8693_v62 = vpop.eup %8692  ;;  %v4555_v46 = vmul.f32 %v8691_v34, %v4541_v42  ;;  %vm4561_vm1 = vweird.f32 %v8691_v34 }
 0x829   :  { %v4240_v26 = vrot.slane %v4239_v49, 2  ;;  %v4519_v4 = vadd.f32 %v4518_v57, %v4517_v37  ;;  %v4565_v40 = vmul.f32 %v8693_v62, %v4542_v36  ;;  %vm4571_vm3 = vweird.f32 %v8693_v62  ;;  %vm4562_vm4 = vmor %vm4560_vm2, %vm4561_vm1  ;;  %v7222_v36 = vld [vmem:[%s14915_s4 + $0x1] ss:$8 sm:$0xf] }
 0x82a   :  { %v8695_v44 = vpop.eup %8694  ;;  %v4556_v53 = vmul.f32 %v8691_v34, %v4555_v46  ;;  %vm4572_vm8 = vmor %vm4570_vm5, %vm4571_vm3 }
 0x82b   :  { %v4241_v45 = vadd.f32 %v4240_v26, %v4239_v49  ;;  %v4520_v50 = vrot.slane %v4519_v4, 2  ;;  %v4545_v17 = vmul.f32 %v8695_v44, %v4540_v28  ;;  %v4566_v52 = vmul.f32 %v8693_v62, %v4565_v40 }
 0x82c   :  { %v4557_v22 = vmul.f32 0.5, %v4556_v53  ;;  %vm4551_vm7 = vweird.f32 %v8695_v44 }
 0x82d   :  { %v4242_v3 = vrot.slane %v4241_v45, 1  ;;  %v4521_v12 = vadd.f32 %v4520_v50, %v4519_v4  ;;  %v4546_v48 = vmul.f32 %v8695_v44, %v4545_v17  ;;  %v4567_v1 = vmul.f32 0.5, %v4566_v52  ;;  %vm4552_vm14 = vmor %vm4550_vm11, %vm4551_vm7 }
 0x82e   :  { %v4558_v38 = vsub.f32 1.5, %v4557_v22 }
 0x82f   :  { %v4243_v0 = vadd.f32 %v4242_v3, %v4241_v45  ;;  %v4522_v41 = vrot.slane %v4521_v12, 1  ;;  %v4547_v43 = vmul.f32 0.5, %v4546_v48  ;;  %v4568_v37 = vsub.f32 1.5, %v4567_v1 }
 0x830   :  { %v4559_v57 = vmul.f32 %v8691_v34, %v4558_v38 }
 0x831   :  { %v13058_v47 = vmul.f32 0.00390625, %v4243_v0  ;;  %v4523_v30 = vadd.f32 %v4522_v41, %v4521_v12  ;;  %v4548_v26 = vsub.f32 1.5, %v4547_v43  ;;  %v4569_v4 = vmul.f32 %v8693_v62, %v4568_v37  ;;  %v7223_v37 = vld [vmem:[%s14915_s4 + $0x2] ss:$8 sm:$0xf] }
 0x832   :  { %v4563_v50 = vsel %vm4562_vm4, %v8691_v34, %v4559_v57 }
 0x833   :  { %v4527_v16 = vmul.f32 0.00390625, %v4523_v30  ;;  %v4531_v14 = vmul.f32 %v13058_v47, %v13058_v47  ;;  %v4549_v12 = vmul.f32 %v8695_v44, %v4548_v26  ;;  %v4573_v0 = vsel %vm4572_vm8, %v8693_v62, %v4569_v4 }
 0x834   :  { %v4588_v30 = vrot.slane %v4563_v50, 7  ;;  %v4589_v42 = vrot.slane %v4573_v0, 6  ;;  %v16124_v0 = vld [vmem:[#allocation69_spill] sm:$0xff] }
 0x835   :  { %v4535_v39 = vsub.f32 %v4527_v16, %v4531_v14  ;;  %v4553_v34 = vsel %vm4552_vm14, %v8695_v44, %v4549_v12 }
 0x836   :  { %v4592_v46 = vsel %vm4591_vm12, %v4553_v34, %v4588_v30  ;;  %v16125_v30 = vld [vmem:[#allocation32_spill] sm:$0xff]  ;;  %v16127_v34 = vld [vmem:[#allocation83_spill] sm:$0xff] }
 0x837   :  { %v4539_v33 = vmax.f32 %v4535_v39, 0.0 }
 0x839   :  { %v4543_v55 = vadd.f32 1e-05, %v4539_v33 }
 0x83b   :  { %8696 = vrsqrt.f32 %v4543_v55  ;;  %vm4580_vm9 = vweird.f32 %v4543_v55 }
 0x841   :  { %v8697_v13 = vpop.eup %8696 }
 0x842   :  { %v4575_v49 = vmul.f32 %v8697_v13, %v4543_v55  ;;  %vm4581_vm6 = vweird.f32 %v8697_v13 }
 0x843   :  { %vm4582_vm10 = vmor %vm4580_vm9, %vm4581_vm6 }
 0x844   :  { %v4576_v54 = vmul.f32 %v8697_v13, %v4575_v49 }
 0x846   :  { %v4577_v45 = vmul.f32 0.5, %v4576_v54 }
 0x848   :  { %v4578_v3 = vsub.f32 1.5, %v4577_v45  ;;  %v16122_v45 = vld [vmem:[#allocation71_spill] sm:$0xff] }
 0x84a   :  { %v4579_v41 = vmul.f32 %v8697_v13, %v4578_v3  ;;  %v16123_v3 = vld [vmem:[#allocation149_spill] sm:$0xff] }
 0x84c   :  { %v4583_v16 = vsel %vm4582_vm10, %v8697_v13, %v4579_v41  ;;  %v8626_v13 = vld [vmem:[%s14913_s2 + $0x114] sm:$0xf0] }
 0x84d   :  { %v4590_v14 = vrot.slane %v4583_v16, 5 }
 0x84f   :  { %v4594_v62 = vsel %vm4593_vm13, %v4589_v42, %v4590_v14  ;;  %v16126_v42 = vld [vmem:[#allocation73_spill] sm:$0xff] }
 0x850   :  { %v4596_v39 = vsel %vm4595_vm15, %v4592_v46, %v4594_v62  ;;  %v16128_v46 = vld [vmem:[#allocation164_spill] sm:$0xff] }
 0x851   :  { %v4598_v40 = vmul.f32 %v7222_v36, %v4596_v39  ;;  %v16129_v39 = vld [vmem:[#allocation64_spill] sm:$0xff] }
 0x853   :  { %v13068_v28 = vperm.slane %v4598_v40, 3  ;;  %v13074_v53 = vperm.slane %v4598_v40, 1  ;;  %v13076_v44 = vperm.slane %v4598_v40, 2  ;;  %v13084_v22 = vperm.slane %v4598_v40, 0 }
 0x855   :  { %v13072_v33 = vmul.f32 %v13068_v28, %v13053_v56  ;;  %v4609_v17 = vmul.f32 %v13074_v53, %v13015_v27  ;;  %v4610_v55 = vmul.f32 %v13076_v44, %v13024_v20  ;;  %v4611_v52 = vmul.f32 %v13068_v28, %v13058_v47  ;;  %v8213_v56 = vld [vmem:[%s14913_s2 + $0x110] sm:$0xf] }
 0x856   :  { %v4608_v27 = vmul.f32 %v13084_v22, %v13039_v18  ;;  %v8214_v43 = vor.u32 %v8626_v13, %v8213_v56  ;;  %v4624_v50 = vmul.f32 %v13084_v22, %v16122_v45  ;;  %v4625_v12 = vmul.f32 %v13074_v53, %v16123_v3  ;;  %v8085_v56 = vld [vmem:[%s14913_s2 + $0x10] sm:$0xf]  ;;  %v8594_v13 = vld [vmem:[%s14913_s2 + $0x14] sm:$0xf0]  ;;  %v8624_v3 = vld [vmem:[%s14913_s2 + $0x104] sm:$0xf0] }
 0x857   :  { %v4616_v48 = vrot.slane %v4609_v17, 7  ;;  %v4617_v1 = vrot.slane %v4610_v55, 6  ;;  %v4618_v38 = vrot.slane %v4611_v52, 5  ;;  %v4626_v41 = vmul.f32 %v13076_v44, %v16124_v0  ;;  %v8610_v45 = vld [vmem:[%s14913_s2 + $0x94] sm:$0xf0] }
 0x858   :  { %5782 = vmatpush.bf16.msra.mxu2 %v8214_v43  ;;  %v4627_v16 = vmul.f32 %v13068_v28, %v16125_v30  ;;  %v4628_v14 = vmul.f32 %v13084_v22, %v16126_v42  ;;  %v4629_v36 = vmul.f32 %v13074_v53, %v16127_v34  ;;  %v4630_v62 = vmul.f32 %v13076_v44, %v16128_v46  ;;  %v8642_v43 = vld [vmem:[%s14913_s2 + $0x194] sm:$0xf0]  ;;  %v8592_v42 = vld [vmem:[%s14913_s2 + $0x4] sm:$0xf0] }
 0x859   :  { %v4619_v20 = vsel %vm4591_vm12, %v4608_v27, %v4616_v48  ;;  %v4620_v47 = vsel %vm4593_vm13, %v4617_v1, %v4618_v38  ;;  %v4631_v40 = vmul.f32 %v13068_v28, %v16129_v39  ;;  %v8086_v30 = vor.u32 %v8594_v13, %v8085_v56  ;;  %v8640_v34 = vld [vmem:[%s14913_s2 + $0x184] sm:$0xf0] }
 0x85a   :  { %v4621_v49 = vsel %vm4595_vm15, %v4619_v20, %v4620_v47  ;;  %v8277_v47 = vld [vmem:[%s14913_s2 + $0x190] sm:$0xf]  ;;  %v4638_v5 = vmul.f32 %v13076_v44, %v16132_v8 }
 0x85b   :  { %v4623_v57 = vsub.f32 %v7223_v37, %v4621_v49  ;;  %v16130_v37 = vld [vmem:[#allocation77_spill] sm:$0xff]  ;;  %v8278_v39 = vor.u32 %v8642_v43, %v8277_v47  ;;  %5604 = vmatpush.bf16.msrb.mxu0 %v8086_v30  ;;  %v8608_v47 = vld [vmem:[%s14913_s2 + $0x84] sm:$0xf0]  ;;  %v8263_v43 = vld [vmem:[%s14913_s2 + $0x178] sm:$0xf0] }
 0x85c   :  { %v4632_v49 = vmul.f32 %v13084_v22, %v16130_v37 }
 0x85d   :  { %v13100_v54 = vperm.slane %v4623_v57, 0  ;;  %v13102_v26 = vperm.slane %v4623_v57, 1  ;;  %v13104_v4 = vperm.slane %v4623_v57, 2  ;;  %v13106_v18 = vperm.slane %v4623_v57, 3  ;;  %v8149_v57 = vld [vmem:[%s14913_s2 + $0x90] sm:$0xf]  ;;  %5871 = vmatpush.bf16.msra.mxu3 %v8278_v39 }
 0x85f   :  { %v4761_v17 = vadd.f32 %v13100_v54, %v4624_v50  ;;  %v13126_v55 = vadd.f32 %v13102_v26, %v4625_v12  ;;  %v4763_v52 = vadd.f32 %v13104_v4, %v4626_v41  ;;  %v4764_v48 = vadd.f32 %v13106_v18, %v4627_v16  ;;  %v8205_v50 = vld [vmem:[%s14913_s2 + $0x100] sm:$0xf] }
 0x860   :  { %v4765_v1 = vadd.f32 %v13100_v54, %v4628_v14  ;;  %v13132_v38 = vadd.f32 %v13102_v26, %v4629_v36  ;;  %v4767_v27 = vadd.f32 %v13104_v4, %v4630_v62  ;;  %v4768_v20 = vadd.f32 %v13106_v18, %v4631_v40  ;;  %v8077_v16 = vld [vmem:[%s14913_s2] sm:$0xf] }
 0x861   :  { %v4889_v12 = vmul.f32 0.01, %v4761_v17  ;;  %v4890_v0 = vmul.f32 0.01, %v13126_v55  ;;  %v4891_v41 = vmul.f32 0.01, %v4763_v52  ;;  %v8206_v8 = vor.u32 %v8624_v3, %v8205_v50 }
 0x862   :  { %v8269_v14 = vld [vmem:[%s14913_s2 + $0x180] sm:$0xf]  ;;  %v4892_v36 = vmul.f32 0.01, %v4764_v48  ;;  %v4893_v46 = vmul.f32 0.01, %v4765_v1  ;;  %v8142_v3 = vor.u32 %v8608_v47, %v8141_v31 }
 0x863   :  { %v4894_v62 = vmul.f32 0.01, %v13132_v38  ;;  %v16131_v40 = vld [vmem:[#allocation165_spill] sm:$0xff]  ;;  %v4895_v13 = vmul.f32 0.01, %v4767_v27  ;;  %v5017_v7 = vmax.f32 %v4761_v17, %v4889_v12  ;;  %v5019_v32 = vmax.f32 %v4763_v52, %v4891_v41  ;;  %5783 = vmatpush.bf16.msra.mxu2 %v8206_v8 }
 0x864   :  { %v4634_v56 = vmul.f32 %v13076_v44, %v16131_v40  ;;  %v4896_v37 = vmul.f32 0.01, %v4768_v20  ;;  %v5020_v11 = vmax.f32 %v4764_v48, %v4892_v36  ;;  %v5021_v15 = vmax.f32 %v4765_v1, %v4893_v46  ;;  %v8637_v17 = vld [vmem:[%s14913_s2 + $0x174] sm:$0xf]  ;;  %v8135_v48 = vld [vmem:[%s14913_s2 + $0x78] sm:$0xf0] }
 0x865   :  { %v5023_v12 = vmax.f32 %v4767_v27, %v4895_v13  ;;  %v8150_v40 = vor.u32 %v8610_v45, %v8149_v57  ;;  %v8605_v52 = vld [vmem:[%s14913_s2 + $0x74] sm:$0xf]  ;;  %v5018_v41 = vmax.f32 %v13126_v55, %v4890_v0  ;;  %v5022_v36 = vmax.f32 %v13132_v38, %v4894_v62  ;;  %v8327_v57 = vld [vmem:[%s14913_s2 + $0x1f8] sm:$0xf0]  ;;  %v16136_v13 = vld [vmem:[#allocation86_spill] sm:$0xff] }
 0x866   :  { %v5024_v30 = vmax.f32 %v4768_v20, %v4896_v37  ;;  %v8653_v1 = vld [vmem:[%s14913_s2 + $0x1f4] sm:$0xf]  ;;  %v8078_v27 = vor.u32 %v8592_v42, %v8077_v16  ;;  %v8270_v20 = vor.u32 %v8640_v34, %v8269_v14  ;;  %v8199_v50 = vld [vmem:[%s14913_s2 + $0xf8] sm:$0xf0]  ;;  %v13212_v55 = vpack.c.bf16 %v5021_v15, %v5017_v7  ;;  %v16135_v7 = vld [vmem:[#allocation81_spill] sm:$0xff] }
 0x867   :  { %v8621_v45 = vld [vmem:[%s14913_s2 + $0xf4] sm:$0xf]  ;;  %5693 = vmatpush.bf16.msrb.mxu1 %v8150_v40  ;;  %v13214_v38 = vpack.c.bf16 %v5023_v12, %v5019_v32  ;;  %v8266_v16 = vor.u32 %v8637_v17, %v8263_v43  ;;  %v8138_v42 = vor.u32 %v8605_v52, %v8135_v48  ;;  %v4769_v14 = vadd.f32 %v13100_v54, %v4632_v49  ;;  %v8255_v40 = vld [vmem:[%s14913_s2 + $0x168] sm:$0xf0]  ;;  %v8603_v8 = vld [vmem:[%s14913_s2 + $0x64] sm:$0xf] }
 0x868   :  { %5605 = vmatpush.bf16.msrb.mxu0 %v8078_v27  ;;  %5872 = vmatpush.bf16.msra.mxu3 %v8270_v20  ;;  %v13216_v0 = vpack.c.bf16 %v5024_v30, %v5020_v11  ;;  %v8330_v34 = vor.u32 %v8653_v1, %v8327_v57  ;;  %v8202_v46 = vor.u32 %v8621_v45, %v8199_v50  ;;  %v16134_v11 = vld [vmem:[#allocation79_spill] sm:$0xff]  ;;  %v8635_v30 = vld [vmem:[%s14913_s2 + $0x164] sm:$0xf]  ;;  %v8127_v48 = vld [vmem:[%s14913_s2 + $0x68] sm:$0xf0] }
 0x869   :  { %v4771_v62 = vadd.f32 %v13104_v4, %v4634_v56  ;;  %v13220_v39 = vpack.c.bf16 %v5022_v36, %v5018_v41  ;;  %5784 = vmatmul.bf16.vlgmr.msra.gmra.mxu2 %v13214_v38  ;;  %v4775_v15 = vadd.f32 %v13104_v4, %v4638_v5  ;;  %v4635_v32 = vmul.f32 %v13068_v28, %v12246_v21  ;;  %v8651_v1 = vld [vmem:[%s14913_s2 + $0x1e4] sm:$0xf]  ;;  %v8319_v41 = vld [vmem:[%s14913_s2 + $0x1e8] sm:$0xf0] }
 0x86a   :  { %v4636_v31 = vmul.f32 %v13084_v22, %v16134_v11  ;;  %v4633_v49 = vmul.f32 %v13074_v53, %v16135_v7  ;;  %v4639_v56 = vmul.f32 %v13068_v28, %v12249_v60  ;;  %6132 = vmatpush.bf16.msrb.mxu2 %v8266_v16  ;;  %v4637_v5 = vmul.f32 %v13074_v53, %v16136_v13  ;;  %v8619_v27 = vld [vmem:[%s14913_s2 + $0xe4] sm:$0xf]  ;;  %v8191_v20 = vld [vmem:[%s14913_s2 + $0xe8] sm:$0xf0] }
 0x86b   :  { %16133 = vst [vmem:[#allocation44_spill] sm:$0xff] %v13220_v39  ;;  %5694 = vmatpush.bf16.msrb.mxu1 %v8142_v3  ;;  %5606 = vmatmul.bf16.vlgmr.msrb.gmra.mxu0 %v13212_v55  ;;  %v4772_v21 = vadd.f32 %v13106_v18, %v4635_v32  ;;  %v4897_v47 = vmul.f32 0.01, %v4769_v14  ;;  %v4899_v17 = vmul.f32 0.01, %v4771_v62  ;;  %v8258_v50 = vor.u32 %v8635_v30, %v8255_v40  ;;  %v16137_v40 = vld [vmem:[#allocation88_spill] sm:$0xff] }
 0x86c   :  { %5954 = vmatpush.bf16.msra.mxu0 %v8138_v42  ;;  %5873 = vmatmul.bf16.vlgmr.msra.gmra.mxu3 %v13216_v0  ;;  %v4773_v37 = vadd.f32 %v13100_v54, %v4636_v31  ;;  %v4903_v43 = vmul.f32 0.01, %v4775_v15  ;;  %v4776_v12 = vadd.f32 %v13106_v18, %v4639_v56  ;;  %v4770_v60 = vadd.f32 %v13102_v26, %v4633_v49 }
 0x86d   :  { %6221 = vmatpush.bf16.msrb.mxu3 %v8330_v34  ;;  %v4774_v52 = vadd.f32 %v13102_v26, %v4637_v5  ;;  %v4900_v57 = vmul.f32 0.01, %v4772_v21  ;;  %v8130_v16 = vor.u32 %v8603_v8, %v8127_v48  ;;  %v8322_v42 = vor.u32 %v8651_v1, %v8319_v41  ;;  %v16141_v41 = vld [vmem:[#allocation150_spill] sm:$0xff] }
 0x86e   :  { %5695 = vmatmul.bf16.vlgmr.msrb.gmra.mxu1 %v13220_v39  ;;  %v4901_v36 = vmul.f32 0.01, %v4773_v37  ;;  %v4904_v45 = vmul.f32 0.01, %v4776_v12  ;;  %v4898_v3 = vmul.f32 0.01, %v4770_v60  ;;  %v5031_v32 = vmax.f32 %v4775_v15, %v4903_v43  ;;  %6133 = vmatpush.bf16.msrb.mxu2 %v8258_v50 }
 0x86f   :  { %6043 = vmatpush.bf16.msra.mxu1 %v8202_v46  ;;  %v4902_v34 = vmul.f32 0.01, %v4774_v52  ;;  %v5027_v46 = vmax.f32 %v4771_v62, %v4899_v17  ;;  %v8194_v11 = vor.u32 %v8619_v27, %v8191_v20  ;;  %v5025_v31 = vmax.f32 %v4769_v14, %v4897_v47  ;;  %v16138_v62 = vld [vmem:[#allocation167_spill] sm:$0xff]  ;;  %v16140_v17 = vld [vmem:[#allocation89_spill] sm:$0xff] }
 0x870   :  { %v5029_v7 = vmax.f32 %v4773_v37, %v4901_v36  ;;  %5955 = vmatpush.bf16.msra.mxu0 %v8130_v16  ;;  %v5028_v49 = vmax.f32 %v4772_v21, %v4900_v57  ;;  %v5032_v56 = vmax.f32 %v4776_v12, %v4904_v45  ;;  %v5026_v13 = vmax.f32 %v4770_v60, %v4898_v3  ;;  %v16139_v37 = vld [vmem:[#allocation84_spill] sm:$0xff]  ;;  %v16142_v27 = vld [vmem:[#allocation93_spill] sm:$0xff] }
 0x871   :  { %6222 = vmatpush.bf16.msrb.mxu3 %v8322_v42  ;;  %v5030_v5 = vmax.f32 %v4774_v52, %v4902_v34  ;;  %v13266_v39 = vpack.c.bf16 %v5031_v32, %v5027_v46  ;;  %v4642_v8 = vmul.f32 %v13076_v44, %v16137_v40  ;;  %v4646_v15 = vmul.f32 %v13076_v44, %v16138_v62 }
 0x872   :  { %v13268_v30 = vpack.c.bf16 %v5029_v7, %v5025_v31  ;;  %v13275_v14 = vpack.c.bf16 %v5032_v56, %v5028_v49  ;;  %v4640_v21 = vmul.f32 %v13084_v22, %v16139_v37  ;;  %v4643_v47 = vmul.f32 %v13068_v28, %v12255_v24 }
 0x873   :  { %6044 = vmatpush.bf16.msra.mxu1 %v8194_v11  ;;  %v4644_v43 = vmul.f32 %v13084_v22, %v16140_v17  ;;  %v4647_v12 = vmul.f32 %v13068_v28, %v12282_v6  ;;  %v4779_v60 = vadd.f32 %v13104_v4, %v4642_v8  ;;  %v13287_v52 = vpack.c.bf16 %v5030_v5, %v5026_v13  ;;  %v16143_v8 = vld [vmem:[#allocation168_spill] sm:$0xff] }
 0x874   :  { %v4783_v48 = vadd.f32 %v13104_v4, %v4646_v15  ;;  %v4777_v1 = vadd.f32 %v13100_v54, %v4640_v21  ;;  %v4641_v36 = vmul.f32 %v13074_v53, %v16141_v41  ;;  %v4645_v20 = vmul.f32 %v13074_v53, %v16142_v27 }
 0x875   :  { %v4781_v24 = vadd.f32 %v13100_v54, %v4644_v43  ;;  %v4780_v6 = vadd.f32 %v13106_v18, %v4643_v47  ;;  %v4784_v57 = vadd.f32 %v13106_v18, %v4647_v12  ;;  %v4907_v3 = vmul.f32 0.01, %v4779_v60  ;;  %v16144_v43 = vld [vmem:[#allocation169_spill] sm:$0xff] }
 0x876   :  { %v4778_v45 = vadd.f32 %v13102_v26, %v4641_v36  ;;  %v4782_v50 = vadd.f32 %v13102_v26, %v4645_v20  ;;  %v4911_v16 = vmul.f32 0.01, %v4783_v48  ;;  %v4905_v42 = vmul.f32 0.01, %v4777_v1 }
 0x877   :  { %v4909_v34 = vmul.f32 0.01, %v4781_v24  ;;  %v4908_v46 = vmul.f32 0.01, %v4780_v6  ;;  %v4912_v32 = vmul.f32 0.01, %v4784_v57  ;;  %v5035_v7 = vmax.f32 %v4779_v60, %v4907_v3 }
 0x878   :  { %v4906_v11 = vmul.f32 0.01, %v4778_v45  ;;  %v4910_v31 = vmul.f32 0.01, %v4782_v50  ;;  %v5039_v49 = vmax.f32 %v4783_v48, %v4911_v16  ;;  %v5033_v56 = vmax.f32 %v4777_v1, %v4905_v42  ;;  %v16145_v48 = vld [vmem:[#allocation94_spill] sm:$0xff]  ;;  %v16148_v42 = vld [vmem:[#allocation96_spill] sm:$0xff] }
 0x879   :  { %5789 = vmatmul.bf16.gmra.mxu2 %v13266_v39  ;;  %v5037_v13 = vmax.f32 %v4781_v24, %v4909_v34  ;;  %v5036_v5 = vmax.f32 %v4780_v6, %v4908_v46  ;;  %v5040_v40 = vmax.f32 %v4784_v57, %v4912_v32  ;;  %v4650_v62 = vmul.f32 %v13076_v44, %v16143_v8  ;;  %v16146_v24 = vld [vmem:[#allocation99_spill] sm:$0xff]  ;;  %v8247_v32 = vld [vmem:[%s14913_s2 + $0x158] sm:$0xf0] }
 0x87a   :  { %v5034_v15 = vmax.f32 %v4778_v45, %v4906_v11  ;;  %v5038_v37 = vmax.f32 %v4782_v50, %v4910_v31  ;;  %v13304_v21 = vpack.c.bf16 %v5039_v49, %v5035_v7  ;;  %v4654_v12 = vmul.f32 %v13076_v44, %v16144_v43  ;;  %v16147_v57 = vld [vmem:[#allocation91_spill] sm:$0xff]  ;;  %v8119_v49 = vld [vmem:[%s14913_s2 + $0x58] sm:$0xf0] }
 0x87b   :  { %5611 = vmatmul.bf16.gmra.mxu0 %v13268_v30  ;;  %v4787_v47 = vadd.f32 %v13104_v4, %v4650_v62  ;;  %v13307_v17 = vpack.c.bf16 %v5037_v13, %v5033_v56  ;;  %v13312_v60 = vpack.c.bf16 %v5040_v40, %v5036_v5  ;;  %v4648_v1 = vmul.f32 %v13084_v22, %v16145_v48  ;;  %v8633_v46 = vld [vmem:[%s14913_s2 + $0x154] sm:$0xf]  ;;  %v8311_v13 = vld [vmem:[%s14913_s2 + $0x1d8] sm:$0xf0] }
 0x87c   :  { %5878 = vmatmul.bf16.gmra.mxu3 %v13275_v14  ;;  %v4652_v41 = vmul.f32 %v13084_v22, %v16146_v24  ;;  %v4651_v36 = vmul.f32 %v13068_v28, %v12288_v25  ;;  %v4655_v27 = vmul.f32 %v13068_v28, %v12291_v61  ;;  %v13323_v20 = vpack.c.bf16 %v5038_v37, %v5034_v15  ;;  %v8601_v11 = vld [vmem:[%s14913_s2 + $0x54] sm:$0xf]  ;;  %v8183_v37 = vld [vmem:[%s14913_s2 + $0xd8] sm:$0xf0] }
 0x87d   :  { %v4791_v6 = vadd.f32 %v13104_v4, %v4654_v12  ;;  %v4649_v45 = vmul.f32 %v13074_v53, %v16147_v57  ;;  %v4785_v50 = vadd.f32 %v13100_v54, %v4648_v1  ;;  %v4915_v16 = vmul.f32 0.01, %v4787_v47  ;;  %v8649_v56 = vld [vmem:[%s14913_s2 + $0x1d4] sm:$0xf] }
 0x87e   :  { %5700 = vmatmul.bf16.gmra.mxu1 %v13287_v52  ;;  %v4789_v3 = vadd.f32 %v13100_v54, %v4652_v41  ;;  %v4653_v25 = vmul.f32 %v13074_v53, %v16148_v42  ;;  %v4788_v34 = vadd.f32 %v13106_v18, %v4651_v36  ;;  %v4792_v61 = vadd.f32 %v13106_v18, %v4655_v27  ;;  %v8617_v15 = vld [vmem:[%s14913_s2 + $0xd4] sm:$0xf] }
 0x87f   :  { %v4786_v31 = vadd.f32 %v13102_v26, %v4649_v45  ;;  %v8250_v7 = vor.u32 %v8633_v46, %v8247_v32  ;;  %v4919_v40 = vmul.f32 0.01, %v4791_v6  ;;  %v8122_v8 = vor.u32 %v8601_v11, %v8119_v49 }
 0x880   :  { %v4790_v5 = vadd.f32 %v13102_v26, %v4653_v25  ;;  %v8314_v62 = vor.u32 %v8649_v56, %v8311_v13  ;;  %v4913_v43 = vmul.f32 0.01, %v4785_v50  ;;  %v4917_v12 = vmul.f32 0.01, %v4789_v3 }
 0x881   :  { %6134 = vmatpush.bf16.msrb.mxu2 %v8250_v7  ;;  %v8186_v48 = vor.u32 %v8617_v15, %v8183_v37  ;;  %v4916_v1 = vmul.f32 0.01, %v4788_v34  ;;  %v4920_v24 = vmul.f32 0.01, %v4792_v61  ;;  %5956 = vmatpush.bf16.msra.mxu0 %v8122_v8  ;;  %v4914_v41 = vmul.f32 0.01, %v4786_v31 }
 0x882   :  { %6223 = vmatpush.bf16.msrb.mxu3 %v8314_v62  ;;  %v4918_v36 = vmul.f32 0.01, %v4790_v5  ;;  %v5043_v27 = vmax.f32 %v4787_v47, %v4915_v16  ;;  %v5047_v57 = vmax.f32 %v4791_v6, %v4919_v40  ;;  %v5041_v45 = vmax.f32 %v4785_v50, %v4913_v43  ;;  %v16149_v7 = vld [vmem:[#allocation170_spill] sm:$0xff]  ;;  %v16150_v8 = vld [vmem:[#allocation171_spill] sm:$0xff]  ;;  %v16151_v6 = vld [vmem:[#allocation100_spill] sm:$0xff] }
 0x883   :  { %6045 = vmatpush.bf16.msra.mxu1 %v8186_v48  ;;  %v5045_v42 = vmax.f32 %v4789_v3, %v4917_v12  ;;  %v5044_v25 = vmax.f32 %v4788_v34, %v4916_v1  ;;  %v5048_v46 = vmax.f32 %v4792_v61, %v4920_v24  ;;  %v5042_v32 = vmax.f32 %v4786_v31, %v4914_v41  ;;  %v16152_v16 = vld [vmem:[#allocation121_spill] sm:$0xff]  ;;  %v16154_v37 = vld [vmem:[#allocation151_spill] sm:$0xff]  ;;  %v16155_v12 = vld [vmem:[#allocation152_spill] sm:$0xff] }
 0x884   :  { %v5046_v11 = vmax.f32 %v4790_v5, %v4918_v36  ;;  %v13362_v49 = vpack.c.bf16 %v5047_v57, %v5043_v27  ;;  %v4658_v13 = vmul.f32 %v13076_v44, %v16149_v7  ;;  %v4662_v62 = vmul.f32 %v13076_v44, %v16150_v8 }
 0x885   :  { %v13364_v56 = vpack.c.bf16 %v5045_v42, %v5041_v45  ;;  %v13371_v47 = vpack.c.bf16 %v5048_v46, %v5044_v25  ;;  %v4656_v50 = vmul.f32 %v13084_v22, %v16151_v6  ;;  %v4659_v3 = vmul.f32 %v13068_v28, %v12297_v23 }
 0x886   :  { %v4660_v34 = vmul.f32 %v13084_v22, %v16152_v16  ;;  %v4663_v61 = vmul.f32 %v13068_v28, %v12829_v58  ;;  %v4795_v31 = vadd.f32 %v13104_v4, %v4658_v13  ;;  %v13383_v5 = vpack.c.bf16 %v5046_v11, %v5042_v32 }
 0x887   :  { %v4799_v40 = vadd.f32 %v13104_v4, %v4662_v62  ;;  %v4793_v15 = vadd.f32 %v13100_v54, %v4656_v50  ;;  %v4657_v43 = vmul.f32 %v13074_v53, %v16154_v37  ;;  %v4661_v48 = vmul.f32 %v13074_v53, %v16155_v12  ;;  %v16156_v50 = vld [vmem:[#allocation102_spill] sm:$0xff]  ;;  %v16159_v12 = vld [vmem:[#allocation172_spill] sm:$0xff] }
 0x888   :  { %16153 = vst [vmem:[#allocation115_spill] sm:$0xff] %v13383_v5  ;;  %v4797_v23 = vadd.f32 %v13100_v54, %v4660_v34  ;;  %v4796_v58 = vadd.f32 %v13106_v18, %v4659_v3  ;;  %v4800_v1 = vadd.f32 %v13106_v18, %v4663_v61  ;;  %v4923_v36 = vmul.f32 0.01, %v4795_v31 }
 0x889   :  { %5794 = vmatmul.bf16.gmra.mxu2 %v13304_v21  ;;  %v4794_v24 = vadd.f32 %v13102_v26, %v4657_v43  ;;  %v4798_v41 = vadd.f32 %v13102_v26, %v4661_v48  ;;  %v4927_v27 = vmul.f32 0.01, %v4799_v40  ;;  %v4921_v57 = vmul.f32 0.01, %v4793_v15 }
 0x88a   :  { %v4925_v45 = vmul.f32 0.01, %v4797_v23  ;;  %v4924_v42 = vmul.f32 0.01, %v4796_v58  ;;  %v4928_v25 = vmul.f32 0.01, %v4800_v1  ;;  %v5051_v11 = vmax.f32 %v4795_v31, %v4923_v36 }
 0x88b   :  { %5616 = vmatmul.bf16.gmra.mxu0 %v13307_v17  ;;  %v4922_v46 = vmul.f32 0.01, %v4794_v24  ;;  %v4926_v32 = vmul.f32 0.01, %v4798_v41  ;;  %v5055_v7 = vmax.f32 %v4799_v40, %v4927_v27  ;;  %v5049_v13 = vmax.f32 %v4793_v15, %v4921_v57  ;;  %v16161_v40 = vld [vmem:[#allocation105_spill] sm:$0xff]  ;;  %v16165_v57 = vld [vmem:[#allocation123_spill] sm:$0xff] }
 0x88c   :  { %5883 = vmatmul.bf16.gmra.mxu3 %v13312_v60  ;;  %v5053_v8 = vmax.f32 %v4797_v23, %v4925_v45  ;;  %v5052_v62 = vmax.f32 %v4796_v58, %v4924_v42  ;;  %v5056_v6 = vmax.f32 %v4800_v1, %v4928_v25  ;;  %v4666_v3 = vmul.f32 %v13076_v44, %v16156_v50  ;;  %v16162_v23 = vld [vmem:[#allocation124_spill] sm:$0xff] }
 0x88d   :  { %v5050_v16 = vmax.f32 %v4794_v24, %v4922_v46  ;;  %v5054_v34 = vmax.f32 %v4798_v41, %v4926_v32  ;;  %v13400_v61 = vpack.c.bf16 %v5055_v7, %v5051_v11  ;;  %v4670_v48 = vmul.f32 %v13076_v44, %v16159_v12  ;;  %v16163_v24 = vld [vmem:[#allocation103_spill] sm:$0xff]  ;;  %v16166_v32 = vld [vmem:[#allocation153_spill] sm:$0xff] }
 0x88e   :  { %5705 = vmatmul.bf16.gmra.mxu1 %v13323_v20  ;;  %v4803_v37 = vadd.f32 %v13104_v4, %v4666_v3  ;;  %v13403_v43 = vpack.c.bf16 %v5053_v8, %v5049_v13  ;;  %v13408_v31 = vpack.c.bf16 %v5056_v6, %v5052_v62  ;;  %v4664_v15 = vmul.f32 %v13084_v22, %v16161_v40  ;;  %v8631_v13 = vld [vmem:[%s14913_s2 + $0x144] sm:$0xf]  ;;  %v8239_v8 = vld [vmem:[%s14913_s2 + $0x148] sm:$0xf0] }
 0x88f   :  { %16157 = vst [vmem:[#allocation48_spill] sm:$0xff] %v13400_v61  ;;  %v4668_v58 = vmul.f32 %v13084_v22, %v16162_v23  ;;  %v4667_v1 = vmul.f32 %v13068_v28, %v12331_v19  ;;  %v4671_v41 = vmul.f32 %v13068_v28, %v16163_v24  ;;  %v13419_v36 = vpack.c.bf16 %v5054_v34, %v5050_v16  ;;  %v8599_v62 = vld [vmem:[%s14913_s2 + $0x44] sm:$0xf]  ;;  %v8111_v3 = vld [vmem:[%s14913_s2 + $0x48] sm:$0xf0] }
 0x890   :  { %16158 = vst [vmem:[#allocation116_spill] sm:$0xff] %v13403_v43  ;;  %v4807_v27 = vadd.f32 %v13104_v4, %v4670_v48  ;;  %v4665_v45 = vmul.f32 %v13074_v53, %v16165_v57  ;;  %v4801_v42 = vadd.f32 %v13100_v54, %v4664_v15  ;;  %v4931_v46 = vmul.f32 0.01, %v4803_v37  ;;  %v8647_v16 = vld [vmem:[%s14913_s2 + $0x1c4] sm:$0xf] }
 0x891   :  { %16160 = vst [vmem:[#allocation52_spill] sm:$0xff] %v13408_v31  ;;  %v4805_v25 = vadd.f32 %v13100_v54, %v4668_v58  ;;  %v4669_v19 = vmul.f32 %v13074_v53, %v16166_v32  ;;  %v4804_v11 = vadd.f32 %v13106_v18, %v4667_v1  ;;  %v4808_v7 = vadd.f32 %v13106_v18, %v4671_v41  ;;  %v8303_v34 = vld [vmem:[%s14913_s2 + $0x1c8] sm:$0xf0]  ;;  %v8615_v23 = vld [vmem:[%s14913_s2 + $0xc4] sm:$0xf] }
 0x892   :  { %16164 = vst [vmem:[#allocation117_spill] sm:$0xff] %v13419_v36  ;;  %v4802_v6 = vadd.f32 %v13102_v26, %v4665_v45  ;;  %v8242_v50 = vor.u32 %v8631_v13, %v8239_v8  ;;  %v4935_v48 = vmul.f32 0.01, %v4807_v27  ;;  %v8114_v40 = vor.u32 %v8599_v62, %v8111_v3  ;;  %v8175_v58 = vld [vmem:[%s14913_s2 + $0xc8] sm:$0xf0] }
 0x893   :  { %v4806_v12 = vadd.f32 %v13102_v26, %v4669_v19  ;;  %v8306_v15 = vor.u32 %v8647_v16, %v8303_v34  ;;  %v4929_v1 = vmul.f32 0.01, %v4801_v42  ;;  %v4933_v24 = vmul.f32 0.01, %v4805_v25 }
 0x894   :  { %6135 = vmatpush.bf16.msrb.mxu2 %v8242_v50  ;;  %v8178_v41 = vor.u32 %v8615_v23, %v8175_v58  ;;  %v4932_v57 = vmul.f32 0.01, %v4804_v11  ;;  %v4936_v45 = vmul.f32 0.01, %v4808_v7  ;;  %5957 = vmatpush.bf16.msra.mxu0 %v8114_v40  ;;  %v4930_v32 = vmul.f32 0.01, %v4802_v6 }
 0x895   :  { %6224 = vmatpush.bf16.msrb.mxu3 %v8306_v15  ;;  %v4934_v19 = vmul.f32 0.01, %v4806_v12  ;;  %v5059_v13 = vmax.f32 %v4803_v37, %v4931_v46  ;;  %v5063_v8 = vmax.f32 %v4807_v27, %v4935_v48  ;;  %v5057_v62 = vmax.f32 %v4801_v42, %v4929_v1  ;;  %v16169_v50 = vld [vmem:[#allocation107_spill] sm:$0xff]  ;;  %v16170_v40 = vld [vmem:[#allocation173_spill] sm:$0xff]  ;;  %v16172_v27 = vld [vmem:[#allocation126_spill] sm:$0xff] }
 0x896   :  { %6046 = vmatpush.bf16.msra.mxu1 %v8178_v41  ;;  %v5061_v3 = vmax.f32 %v4805_v25, %v4933_v24  ;;  %v5060_v16 = vmax.f32 %v4804_v11, %v4932_v57  ;;  %v5064_v34 = vmax.f32 %v4808_v7, %v4936_v45  ;;  %v4674_v23 = vmul.f32 %v13076_v44, %v16169_v50  ;;  %v16173_v25 = vld [vmem:[#allocation62_spill] sm:$0xff]  ;;  %v16174_v11 = vld [vmem:[#allocation127_spill] sm:$0xff] }
 0x897   :  { %v4678_v15 = vmul.f32 %v13076_v44, %v16170_v40  ;;  %v4672_v42 = vmul.f32 %v13084_v22, %v16172_v27  ;;  %v4675_v46 = vmul.f32 %v13068_v28, %v16173_v25  ;;  %v4676_v7 = vmul.f32 %v13084_v22, %v16174_v11  ;;  %v16177_v45 = vld [vmem:[#allocation154_spill] sm:$0xff] }
 0x898   :  { %v13467_v37 = vpack.c.bf16 %v5064_v34, %v5060_v16  ;;  %v4811_v48 = vadd.f32 %v13104_v4, %v4674_v23  ;;  %v4747_v24 = vmul.f32 %v13068_v28, %v13037_v59 }
 0x899   :  { %5799 = vmatmul.bf16.gmra.mxu2 %v13362_v49  ;;  %v4815_v1 = vadd.f32 %v13104_v4, %v4678_v15  ;;  %v4809_v41 = vadd.f32 %v13100_v54, %v4672_v42  ;;  %v4813_v57 = vadd.f32 %v13100_v54, %v4676_v7  ;;  %v4888_v15 = vadd.f32 %v13106_v18, %v13072_v33  ;;  %v16179_v33 = vld [vmem:[#allocation33_spill] sm:$0xff] }
 0x89a   :  { %16171 = vst [vmem:[#allocation60_spill] sm:$0xff] %v13467_v37 }
 0x89b   :  { %5621 = vmatmul.bf16.gmra.mxu0 %v13364_v56  ;;  %v4943_v16 = vmul.f32 0.01, %v4815_v1  ;;  %v4937_v34 = vmul.f32 0.01, %v4809_v41  ;;  %v4941_v50 = vmul.f32 0.01, %v4813_v57 }
 0x89c   :  { %5888 = vmatmul.bf16.gmra.mxu3 %v13371_v47 }
 0x89d   :  { %v5071_v11 = vmax.f32 %v4815_v1, %v4943_v16  ;;  %v5065_v7 = vmax.f32 %v4809_v41, %v4937_v34  ;;  %v16186_v34 = vld [vmem:[#allocation31_spill] sm:$0xff] }
 0x89e   :  { %5710 = vmatmul.bf16.gmra.mxu1 %v13383_v5  ;;  %v4682_v5 = vmul.f32 %v13076_v44, %v16179_v33 }
 0x8a9   :  { %5804 = vmatmul.bf16.gmra.mxu2 %v13400_v61  ;;  %v13460_v61 = vpack.c.bf16 %v5061_v3, %v5057_v62  ;;  %v4939_v3 = vmul.f32 0.01, %v4811_v48 }
 0x8ab   :  { %5626 = vmatmul.bf16.gmra.mxu0 %v13403_v43  ;;  %v13458_v43 = vpack.c.bf16 %v5063_v8, %v5059_v13  ;;  %16168 = vst [vmem:[#allocation118_spill] sm:$0xff] %v13460_v61  ;;  %v4884_v8 = vadd.f32 %v13106_v18, %v4747_v24 }
 0x8ac   :  { %5893 = vmatmul.bf16.gmra.mxu3 %v13408_v31  ;;  %v5062_v31 = vmax.f32 %v4806_v12, %v4934_v19  ;;  %v16178_v19 = vld [vmem:[#allocation111_spill] sm:$0xff] }
 0x8ad   :  { %16167 = vst [vmem:[#allocation56_spill] sm:$0xff] %v13458_v43  ;;  %v4677_v13 = vmul.f32 %v13074_v53, %v16178_v19  ;;  %v5012_v27 = vmul.f32 0.01, %v4884_v8 }
 0x8ae   :  { %5715 = vmatmul.bf16.gmra.mxu1 %v13419_v36  ;;  %v5058_v36 = vmax.f32 %v4802_v6, %v4930_v32  ;;  %v16175_v6 = vld [vmem:[#allocation101_spill] sm:$0xff]  ;;  %v4673_v32 = vmul.f32 %v13074_v53, %v16177_v45 }
 0x8af   :  { %v4679_v12 = vmul.f32 %v13068_v28, %v16175_v6  ;;  %v4814_v62 = vadd.f32 %v13102_v26, %v4677_v13  ;;  %v5069_v6 = vmax.f32 %v4813_v57, %v4941_v50  ;;  %v5140_v24 = vmax.f32 %v4884_v8, %v5012_v27  ;;  %v16182_v57 = vld [vmem:[#allocation129_spill] sm:$0xff]  ;;  %v16188_v27 = vld [vmem:[#allocation6_spill] sm:$0xff] }
 0x8b0   :  { %v13479_v58 = vpack.c.bf16 %v5062_v31, %v5058_v36  ;;  %v4812_v31 = vadd.f32 %v13106_v18, %v4675_v46  ;;  %v4810_v59 = vadd.f32 %v13102_v26, %v4673_v32  ;;  %v5067_v46 = vmax.f32 %v4811_v48, %v4939_v3  ;;  %v16180_v48 = vld [vmem:[#allocation5_spill] sm:$0xff]  ;;  %v16185_v3 = vld [vmem:[#allocation130_spill] sm:$0xff] }
 0x8b1   :  { %v4816_v36 = vadd.f32 %v13106_v18, %v4679_v12  ;;  %v4942_v25 = vmul.f32 0.01, %v4814_v62  ;;  %v5016_v12 = vmul.f32 0.01, %v4888_v15  ;;  %v4686_v1 = vmul.f32 %v13076_v44, %v16180_v48 }
 0x8b2   :  { %16176 = vst [vmem:[#allocation119_spill] sm:$0xff] %v13479_v58  ;;  %v4940_v23 = vmul.f32 0.01, %v4812_v31  ;;  %v4938_v42 = vmul.f32 0.01, %v4810_v59  ;;  %v4684_v16 = vmul.f32 %v13084_v22, %v16185_v3  ;;  %v4687_v50 = vmul.f32 %v13068_v28, %v16186_v34 }
 0x8b3   :  { %v4944_v40 = vmul.f32 0.01, %v4816_v36  ;;  %v5144_v19 = vmax.f32 %v4888_v15, %v5016_v12  ;;  %v4823_v15 = vadd.f32 %v13104_v4, %v4686_v1  ;;  %v8167_v3 = vld [vmem:[%s14913_s2 + $0xb8] sm:$0xf0] }
 0x8b4   :  { %v5068_v45 = vmax.f32 %v4812_v31, %v4940_v23  ;;  %v5066_v13 = vmax.f32 %v4810_v59, %v4938_v42  ;;  %v4680_v31 = vmul.f32 %v13084_v22, %v16182_v57  ;;  %v16184_v59 = vld [vmem:[#allocation63_spill] sm:$0xff]  ;;  %v4819_v23 = vadd.f32 %v13104_v4, %v4682_v5 }
 0x8b5   :  { %v5072_v32 = vmax.f32 %v4816_v36, %v4944_v40  ;;  %v16183_v36 = vld [vmem:[#allocation155_spill] sm:$0xff]  ;;  %v4685_v42 = vmul.f32 %v13074_v53, %v16188_v27  ;;  %v4951_v48 = vmul.f32 0.01, %v4823_v15 }
 0x8b6   :  { %v4681_v8 = vmul.f32 %v13074_v53, %v16183_v36  ;;  %v8629_v5 = vld [vmem:[%s14913_s2 + $0x134] sm:$0xf]  ;;  %v4947_v33 = vmul.f32 0.01, %v4819_v23 }
 0x8b7   :  { %v13510_v41 = vpack.c.bf16 %v5072_v32, %v5068_v45  ;;  %v8103_v32 = vld [vmem:[%s14913_s2 + $0x38] sm:$0xf0] }
 0x8b8   :  { %v4818_v12 = vadd.f32 %v13102_v26, %v4681_v8  ;;  %v5075_v27 = vmax.f32 %v4819_v23, %v4947_v33 }
 0x8b9   :  { %5809 = vmatmul.bf16.gmra.mxu2 %v13458_v43  ;;  %v13503_v43 = vpack.c.bf16 %v5144_v19, %v5140_v24  ;;  %16181 = vst [vmem:[#allocation66_spill] sm:$0xff] %v13510_v41  ;;  %v4822_v24 = vadd.f32 %v13102_v26, %v4685_v42  ;;  %v8645_v19 = vld [vmem:[%s14913_s2 + $0x1b4] sm:$0xf]  ;;  %v5079_v42 = vmax.f32 %v4823_v15, %v4951_v48 }
 0x8ba   :  { %v4946_v34 = vmul.f32 0.01, %v4818_v12  ;;  %v16192_v15 = vld [vmem:[#allocation131_spill] sm:$0xff] }
 0x8bb   :  { %5631 = vmatmul.bf16.gmra.mxu0 %v13460_v61  ;;  %v13501_v61 = vpack.c.bf16 %v5069_v6, %v5065_v7  ;;  %v4824_v7 = vadd.f32 %v13106_v18, %v4687_v50  ;;  %v8597_v6 = vld [vmem:[%s14913_s2 + $0x34] sm:$0xf]  ;;  %v4950_v50 = vmul.f32 0.01, %v4822_v24 }
 0x8bc   :  { %5898 = vmatmul.bf16.gmra.mxu3 %v13467_v37  ;;  %v13499_v37 = vpack.c.bf16 %v5071_v11, %v5067_v46  ;;  %v4821_v11 = vadd.f32 %v13100_v54, %v4684_v16  ;;  %v8106_v1 = vor.u32 %v8597_v6, %v8103_v32  ;;  %v5074_v32 = vmax.f32 %v4818_v12, %v4946_v34 }
 0x8bd   :  { %v4695_v12 = vmul.f32 %v13068_v28, %v12922_v63 }
 0x8be   :  { %5720 = vmatmul.bf16.gmra.mxu1 %v13479_v58  ;;  %v5070_v58 = vmax.f32 %v4814_v62, %v4942_v25  ;;  %v4683_v62 = vmul.f32 %v13068_v28, %v16184_v59  ;;  %v4817_v25 = vadd.f32 %v13100_v54, %v4680_v31  ;;  %v4949_v36 = vmul.f32 0.01, %v4821_v11  ;;  %5958 = vmatpush.bf16.msra.mxu0 %v8106_v1 }
 0x8bf   :  { %v4952_v59 = vmul.f32 0.01, %v4824_v7 }
 0x8c0   :  { %v13524_v40 = vpack.c.bf16 %v5070_v58, %v5066_v13  ;;  %v4820_v46 = vadd.f32 %v13106_v18, %v4683_v62  ;;  %v8231_v58 = vld [vmem:[%s14913_s2 + $0x138] sm:$0xf0]  ;;  %v4945_v31 = vmul.f32 0.01, %v4817_v25  ;;  %v8613_v62 = vld [vmem:[%s14913_s2 + $0xb4] sm:$0xf] }
 0x8c1   :  { %v8234_v45 = vor.u32 %v8629_v5, %v8231_v58  ;;  %v8295_v13 = vld [vmem:[%s14913_s2 + $0x1b8] sm:$0xf0]  ;;  %v8170_v16 = vor.u32 %v8613_v62, %v8167_v3  ;;  %v5077_v58 = vmax.f32 %v4821_v11, %v4949_v36 }
 0x8c2   :  { %16187 = vst [vmem:[#allocation61_spill] sm:$0xff] %v13524_v40  ;;  %v8298_v57 = vor.u32 %v8645_v19, %v8295_v13  ;;  %v4948_v8 = vmul.f32 0.01, %v4820_v46  ;;  %v5073_v5 = vmax.f32 %v4817_v25, %v4945_v31  ;;  %v5078_v19 = vmax.f32 %v4822_v24, %v4950_v50  ;;  %v16193_v11 = vld [vmem:[#allocation132_spill] sm:$0xff] }
 0x8c3   :  { %6136 = vmatpush.bf16.msrb.mxu2 %v8234_v45  ;;  %6047 = vmatpush.bf16.msra.mxu1 %v8170_v16  ;;  %v5080_v45 = vmax.f32 %v4824_v7, %v4952_v59  ;;  %v13561_v13 = vpack.c.bf16 %v5079_v42, %v5075_v27  ;;  %v4688_v25 = vmul.f32 %v13084_v22, %v16192_v15  ;;  %v16195_v36 = vld [vmem:[#allocation156_spill] sm:$0xff]  ;;  %v16196_v59 = vld [vmem:[#allocation10_spill] sm:$0xff] }
 0x8c4   :  { %6225 = vmatpush.bf16.msrb.mxu3 %v8298_v57  ;;  %v5076_v6 = vmax.f32 %v4820_v46, %v4948_v8  ;;  %v13563_v1 = vpack.c.bf16 %v5077_v58, %v5073_v5  ;;  %v16189_v57 = vld [vmem:[#allocation9_spill] sm:$0xff]  ;;  %v4691_v46 = vmul.f32 %v13068_v28, %v16094_v9  ;;  %v4692_v7 = vmul.f32 %v13084_v22, %v16193_v11 }
 0x8c5   :  { %v13582_v24 = vpack.c.bf16 %v5078_v19, %v5074_v32  ;;  %v4825_v48 = vadd.f32 %v13100_v54, %v4688_v25  ;;  %v4689_v8 = vmul.f32 %v13074_v53, %v16195_v36  ;;  %v4693_v63 = vmul.f32 %v13074_v53, %v16196_v59  ;;  %v7224_v58 = vld [vmem:[%s14915_s4 + $0x3] ss:$8 sm:$0x3] }
 0x8c6   :  { %v13570_v23 = vpack.c.bf16 %v5080_v45, %v5076_v6  ;;  %v4828_v9 = vadd.f32 %v13106_v18, %v4691_v46  ;;  %v4829_v31 = vadd.f32 %v13100_v54, %v4692_v7  ;;  %v16197_v7 = vld [vmem:[#allocation39_spill] sm:$0xff] }
 0x8c7   :  { %16194 = vst [vmem:[#allocation65_spill] sm:$0xff] %v13582_v24  ;;  %v4826_v3 = vadd.f32 %v13102_v26, %v4689_v8  ;;  %v4830_v16 = vadd.f32 %v13102_v26, %v4693_v63  ;;  %v4953_v27 = vmul.f32 0.01, %v4825_v48 }
 0x8c8   :  { %16191 = vst [vmem:[#allocation72_spill] sm:$0xff] %v13570_v23  ;;  %v4957_v42 = vmul.f32 0.01, %v4829_v31  ;;  %v4956_v5 = vmul.f32 0.01, %v4828_v9 }
 0x8c9   :  { %5814 = vmatmul.bf16.gmra.mxu2 %v13499_v37  ;;  %v4954_v45 = vmul.f32 0.01, %v4826_v3  ;;  %v4958_v32 = vmul.f32 0.01, %v4830_v16  ;;  %v5081_v15 = vmax.f32 %v4825_v48, %v4953_v27  ;;  %v16204_v27 = vld [vmem:[#allocation134_spill] sm:$0xff] }
 0x8ca   :  { %v5085_v25 = vmax.f32 %v4829_v31, %v4957_v42  ;;  %v5084_v46 = vmax.f32 %v4828_v9, %v4956_v5  ;;  %v16202_v31 = vld [vmem:[#allocation133_spill] sm:$0xff]  ;;  %v4700_v42 = vmul.f32 %v13084_v22, %v16204_v27 }
 0x8cb   :  { %5636 = vmatmul.bf16.gmra.mxu0 %v13501_v61  ;;  %v5082_v8 = vmax.f32 %v4826_v3, %v4954_v45  ;;  %v5086_v59 = vmax.f32 %v4830_v16, %v4958_v32  ;;  %v16203_v3 = vld [vmem:[#allocation157_spill] sm:$0xff] }
 0x8cc   :  { %5903 = vmatmul.bf16.gmra.mxu3 %v13510_v41  ;;  %v16190_v41 = vld [vmem:[#allocation8_spill] sm:$0xff]  ;;  %v4697_v16 = vmul.f32 %v13074_v53, %v16203_v3  ;;  %v8287_v3 = vld [vmem:[%s14913_s2 + $0x1a8] sm:$0xf0] }
 0x8cd   :  { %v4694_v62 = vmul.f32 %v13076_v44, %v16190_v41  ;;  %v13628_v45 = vpack.c.bf16 %v5086_v59, %v5082_v8  ;;  %v8595_v8 = vld [vmem:[%s14913_s2 + $0x24] sm:$0xf] }
 0x8ce   :  { %5725 = vmatmul.bf16.gmra.mxu1 %v13524_v40  ;;  %v4690_v40 = vmul.f32 %v13076_v44, %v16189_v57  ;;  %v4834_v59 = vadd.f32 %v13102_v26, %v4697_v16 }
 0x8cf   :  { %v4831_v33 = vadd.f32 %v13104_v4, %v4694_v62  ;;  %v13600_v62 = vperm.slane %v7224_v58, 0  ;;  %v4703_v58 = vmul.f32 %v13068_v28, %v12939_v10  ;;  %16205 = vst [vmem:[#allocation120_spill] sm:$0xff] %v13628_v45 }
 0x8d0   :  { %v4827_v41 = vadd.f32 %v13104_v4, %v4690_v40  ;;  %v4832_v40 = vadd.f32 %v13106_v18, %v4695_v12  ;;  %v4698_v12 = vmul.f32 %v13076_v44, %v16197_v7 }
 0x8d1   :  { %v4959_v50 = vmul.f32 0.01, %v4831_v33  ;;  %v4840_v7 = vadd.f32 %v13106_v18, %v4703_v58 }
 0x8d2   :  { %v4955_v34 = vmul.f32 0.01, %v4827_v41  ;;  %v4960_v6 = vmul.f32 0.01, %v4832_v40 }
 0x8d3   :  { %v5087_v57 = vmax.f32 %v4831_v33, %v4959_v50  ;;  %v13610_v33 = vpack.c.bf16 %v5085_v25, %v5081_v15  ;;  %v4699_v50 = vmul.f32 %v13068_v28, %v16101_v2  ;;  %v4837_v25 = vadd.f32 %v13100_v54, %v4700_v42 }
 0x8d4   :  { %v5083_v19 = vmax.f32 %v4827_v41, %v4955_v34  ;;  %v5088_v11 = vmax.f32 %v4832_v40, %v4960_v6  ;;  %v16200_v34 = vld [vmem:[#allocation37_spill] sm:$0xff]  ;;  %v4696_v40 = vmul.f32 %v13084_v22, %v16202_v31  ;;  %v8095_v31 = vld [vmem:[%s14913_s2 + $0x28] sm:$0xf0] }
 0x8d5   :  { %16199 = vst [vmem:[#allocation67_spill] sm:$0xff] %v13610_v33  ;;  %v4702_v48 = vmul.f32 %v13076_v44, %v16200_v34  ;;  %v8098_v42 = vor.u32 %v8595_v8, %v8095_v31  ;;  %v8611_v8 = vld [vmem:[%s14913_s2 + $0xa4] sm:$0xf]  ;;  %v8159_v31 = vld [vmem:[%s14913_s2 + $0xa8] sm:$0xf0] }
 0x8d6   :  { %v13604_v63 = vpack.c.bf16 %v5087_v57, %v5083_v19  ;;  %v13615_v9 = vpack.c.bf16 %v5088_v11, %v5084_v46  ;;  %v16206_v19 = vld [vmem:[#allocation14_spill] sm:$0xff]  ;;  %v4833_v2 = vadd.f32 %v13100_v54, %v4696_v40  ;;  %v4836_v11 = vadd.f32 %v13106_v18, %v4699_v50  ;;  %v8643_v40 = vld [vmem:[%s14913_s2 + $0x1a4] sm:$0xf] }
 0x8d7   :  { %v4839_v32 = vadd.f32 %v13104_v4, %v4702_v48  ;;  %v4701_v57 = vmul.f32 %v13074_v53, %v16206_v19  ;;  %v4965_v19 = vmul.f32 0.01, %v4837_v25  ;;  %5959 = vmatpush.bf16.msra.mxu0 %v8098_v42 }
 0x8d8   :  { %16198 = vst [vmem:[#allocation78_spill] sm:$0xff] %v13604_v63 }
 0x8d9   :  { %5819 = vmatmul.bf16.gmra.mxu2 %v13561_v13  ;;  %16201 = vst [vmem:[#allocation98_spill] sm:$0xff] %v13615_v9  ;;  %v4838_v34 = vadd.f32 %v13102_v26, %v4701_v57  ;;  %v4967_v16 = vmul.f32 0.01, %v4839_v32  ;;  %v4964_v57 = vmul.f32 0.01, %v4836_v11 }
 0x8db   :  { %5641 = vmatmul.bf16.gmra.mxu0 %v13563_v1 }
 0x8dc   :  { %5908 = vmatmul.bf16.gmra.mxu3 %v13570_v23  ;;  %v16211_v23 = vld [vmem:[#allocation38_spill] sm:$0xff] }
 0x8de   :  { %5730 = vmatmul.bf16.gmra.mxu1 %v13582_v24  ;;  %v13607_v24 = vadd.f32 %v13104_v4, %v4698_v12  ;;  %v8627_v12 = vld [vmem:[%s14913_s2 + $0x124] sm:$0xf] }
 0x8e0   :  { %v4963_v46 = vmul.f32 0.01, %v13607_v24 }
 0x8e8   :  { %v5607_v36 = vpop.f32.mrf.mxu0 }
 0x8e9   :  { %v5608_v41 = vadd.f32 %v5607_v36, %v13600_v62  ;;  %5824 = vmatmul.bf16.gmra.mxu2 %v13604_v63  ;;  %v8223_v36 = vld [vmem:[%s14913_s2 + $0x128] sm:$0xf0] }
 0x8ea   :  { %v8226_v48 = vor.u32 %v8627_v12, %v8223_v36  ;;  %v4962_v36 = vmul.f32 0.01, %v4834_v59 }
 0x8eb   :  { %v5696_v5 = vpop.f32.mrf.mxu1  ;;  %5646 = vmatmul.bf16.gmra.mxu0 %v13610_v33 }
 0x8ec   :  { %v5697_v6 = vadd.f32 %v5696_v5, %v5608_v41  ;;  %5913 = vmatmul.bf16.gmra.mxu3 %v13615_v9  ;;  %v5785_v15 = vpop.f32.mrf.mxu2  ;;  %v8290_v5 = vor.u32 %v8643_v40, %v8287_v3  ;;  %6137 = vmatpush.bf16.msrb.mxu2 %v8226_v48  ;;  %v4966_v9 = vmul.f32 0.01, %v4838_v34  ;;  %v5093_v3 = vmax.f32 %v4837_v25, %v4965_v19  ;;  %v16212_v25 = vld [vmem:[#allocation12_spill] sm:$0xff] }
 0x8ed   :  { %v4711_v19 = vmul.f32 %v13068_v28, %v12956_v29 }
 0x8ee   :  { %5735 = vmatmul.bf16.gmra.mxu1 %v13628_v45  ;;  %v5786_v10 = vadd.f32 %v5785_v15, %v5697_v6  ;;  %v4961_v6 = vmul.f32 0.01, %v4833_v2  ;;  %v4968_v15 = vmul.f32 0.01, %v4840_v7  ;;  %6226 = vmatpush.bf16.msrb.mxu3 %v8290_v5  ;;  %v5092_v5 = vmax.f32 %v4836_v11, %v4964_v57 }
 0x8ef   :  { %v5874_v41 = vpop.f32.mrf.mxu3 }
 0x8f0   :  { %v13660_v50 = vadd.f32 %v5874_v41, %v5786_v10  ;;  %v5609_v27 = vpop.f32.mrf.mxu0  ;;  %v5091_v10 = vmax.f32 %v13607_v24, %v4963_v46  ;;  %v5095_v41 = vmax.f32 %v4839_v32, %v4967_v16  ;;  %v5089_v40 = vmax.f32 %v4833_v2, %v4961_v6 }
 0x8f1   :  { %v5610_v58 = vadd.f32 %v5609_v27, %v13600_v62  ;;  %v8162_v27 = vor.u32 %v8611_v8, %v8159_v31  ;;  %v5090_v32 = vmax.f32 %v4834_v59, %v4962_v36  ;;  %v5094_v46 = vmax.f32 %v4838_v34, %v4966_v9  ;;  %v16215_v34 = vld [vmem:[#allocation136_spill] sm:$0xff]  ;;  %v16218_v31 = vld [vmem:[#allocation18_spill] sm:$0xff] }
 0x8f2   :  { %16207 = vst [vmem:[#allocation104_spill] sm:$0xff] %v13660_v50  ;;  %v5096_v50 = vmax.f32 %v4840_v7, %v4968_v15  ;;  %v13672_v16 = vpack.c.bf16 %v5095_v41, %v5091_v10  ;;  %v13675_v63 = vpack.c.bf16 %v5093_v3, %v5089_v40  ;;  %v4706_v2 = vmul.f32 %v13076_v44, %v16211_v23  ;;  %v16214_v7 = vld [vmem:[#allocation135_spill] sm:$0xff]  ;;  %v16217_v10 = vld [vmem:[#allocation158_spill] sm:$0xff] }
 0x8f3   :  { %v5698_v12 = vpop.f32.mrf.mxu1  ;;  %6048 = vmatpush.bf16.msra.mxu1 %v8162_v27  ;;  %v4704_v59 = vmul.f32 %v13084_v22, %v16214_v7  ;;  %v4707_v9 = vmul.f32 %v13068_v28, %v16105_v35  ;;  %v4708_v6 = vmul.f32 %v13084_v22, %v16215_v34  ;;  %v4705_v35 = vmul.f32 %v13074_v53, %v16217_v10 }
 0x8f4   :  { %v5699_v45 = vadd.f32 %v5698_v12, %v5610_v58  ;;  %v5787_v48 = vpop.f32.mrf.mxu2  ;;  %16209 = vst [vmem:[#allocation109_spill] sm:$0xff] %v13672_v16  ;;  %v13682_v11 = vpack.c.bf16 %v5096_v50, %v5092_v5  ;;  %v4843_v57 = vadd.f32 %v13104_v4, %v4706_v2  ;;  %v13694_v50 = vpack.c.bf16 %v5094_v46, %v5090_v32 }
 0x8f5   :  { %16210 = vst [vmem:[#allocation125_spill] sm:$0xff] %v13675_v63  ;;  %v4841_v41 = vadd.f32 %v13100_v54, %v4704_v59  ;;  %v4845_v29 = vadd.f32 %v13100_v54, %v4708_v6  ;;  %v4844_v40 = vadd.f32 %v13106_v18, %v4707_v9  ;;  %v4848_v3 = vadd.f32 %v13106_v18, %v4711_v19 }
 0x8f6   :  { %v5788_v42 = vadd.f32 %v5787_v48, %v5699_v45  ;;  %v4710_v45 = vmul.f32 %v13076_v44, %v16212_v25  ;;  %16213 = vst [vmem:[#allocation113_spill] sm:$0xff] %v13682_v11  ;;  %v4709_v48 = vmul.f32 %v13074_v53, %v16218_v31  ;;  %v4842_v27 = vadd.f32 %v13102_v26, %v4705_v35 }
 0x8f7   :  { %v5876_v58 = vpop.f32.mrf.mxu3  ;;  %16216 = vst [vmem:[#allocation128_spill] sm:$0xff] %v13694_v50  ;;  %v4971_v32 = vmul.f32 0.01, %v4843_v57  ;;  %v4969_v25 = vmul.f32 0.01, %v4841_v41 }
 0x8f8   :  { %v13670_v12 = vadd.f32 %v5876_v58, %v5788_v42  ;;  %v5612_v24 = vpop.f32.mrf.mxu0  ;;  %v4847_v36 = vadd.f32 %v13104_v4, %v4710_v45  ;;  %v4973_v45 = vmul.f32 0.01, %v4845_v29  ;;  %v4972_v7 = vmul.f32 0.01, %v4844_v40 }
 0x8f9   :  { %v5613_v33 = vadd.f32 %v5612_v24, %v13600_v62  ;;  %5829 = vmatmul.bf16.gmra.mxu2 %v13672_v16  ;;  %v4846_v24 = vadd.f32 %v13102_v26, %v4709_v48  ;;  %v4976_v59 = vmul.f32 0.01, %v4848_v3  ;;  %v4970_v34 = vmul.f32 0.01, %v4842_v27 }
 0x8fa   :  { %16208 = vst [vmem:[#allocation122_spill] sm:$0xff] %v13670_v12  ;;  %v4975_v46 = vmul.f32 0.01, %v4847_v36  ;;  %v5097_v35 = vmax.f32 %v4841_v41, %v4969_v25 }
 0x8fb   :  { %v5701_v23 = vpop.f32.mrf.mxu1  ;;  %5651 = vmatmul.bf16.gmra.mxu0 %v13675_v63  ;;  %v4974_v19 = vmul.f32 0.01, %v4846_v24  ;;  %v5104_v48 = vmax.f32 %v4848_v3, %v4976_v59 }
 0x8fc   :  { %v5702_v15 = vadd.f32 %v5701_v23, %v5613_v33  ;;  %5918 = vmatmul.bf16.gmra.mxu3 %v13682_v11  ;;  %v5790_v8 = vpop.f32.mrf.mxu2  ;;  %v5099_v23 = vmax.f32 %v4843_v57, %v4971_v32  ;;  %v5098_v11 = vmax.f32 %v4842_v27, %v4970_v34  ;;  %v16225_v32 = vld [vmem:[#allocation137_spill] sm:$0xff] }
 0x8fd   :  { %v5102_v63 = vmax.f32 %v4846_v24, %v4974_v19  ;;  %v4712_v27 = vmul.f32 %v13084_v22, %v16225_v32  ;;  %v16226_v24 = vld [vmem:[#allocation159_spill] sm:$0xff]  ;;  %v8279_v32 = vld [vmem:[%s14913_s2 + $0x198] sm:$0xf0] }
 0x8fe   :  { %5740 = vmatmul.bf16.gmra.mxu1 %v13694_v50  ;;  %v5791_v33 = vadd.f32 %v5790_v8, %v5702_v15  ;;  %v5103_v15 = vmax.f32 %v4847_v36, %v4975_v46  ;;  %v5101_v8 = vmax.f32 %v4845_v29, %v4973_v45  ;;  %v16223_v29 = vld [vmem:[#allocation41_spill] sm:$0xff]  ;;  %v4713_v46 = vmul.f32 %v13074_v53, %v16226_v24  ;;  %v16228_v45 = vld [vmem:[#allocation108_spill] sm:$0xff] }
 0x8ff   :  { %v5879_v42 = vpop.f32.mrf.mxu3 }
 0x900   :  { %v13708_v5 = vadd.f32 %v5879_v42, %v5791_v33  ;;  %v5614_v58 = vpop.f32.mrf.mxu0  ;;  %v5100_v33 = vmax.f32 %v4844_v40, %v4972_v7  ;;  %v16220_v42 = vld [vmem:[#allocation43_spill] sm:$0xff]  ;;  %v13716_v16 = vpack.c.bf16 %v5103_v15, %v5099_v23  ;;  %v13722_v41 = vpack.c.bf16 %v5101_v8, %v5097_v35 }
 0x901   :  { %v5615_v2 = vadd.f32 %v5614_v58, %v13600_v62  ;;  %v4718_v40 = vmul.f32 %v13076_v44, %v16223_v29  ;;  %v4719_v7 = vmul.f32 %v13068_v28, %v16228_v45  ;;  %v8625_v8 = vld [vmem:[%s14913_s2 + $0x114] sm:$0xf]  ;;  %v8087_v29 = vld [vmem:[%s14913_s2 + $0x18] sm:$0xf0] }
 0x902   :  { %16219 = vst [vmem:[#allocation51_spill] sm:$0xff] %v13708_v5  ;;  %v4714_v5 = vmul.f32 %v13076_v44, %v16220_v42  ;;  %v13727_v3 = vpack.c.bf16 %v5104_v48, %v5100_v33  ;;  %v8593_v33 = vld [vmem:[%s14913_s2 + $0x14] sm:$0xf]  ;;  %v4850_v48 = vadd.f32 %v13102_v26, %v4713_v46 }
 0x903   :  { %v5703_v9 = vpop.f32.mrf.mxu1  ;;  %16222 = vst [vmem:[#allocation49_spill] sm:$0xff] %v13722_v41  ;;  %v4855_v34 = vadd.f32 %v13104_v4, %v4718_v40  ;;  %v8641_v40 = vld [vmem:[%s14913_s2 + $0x194] sm:$0xf] }
 0x904   :  { %v5704_v6 = vadd.f32 %v5703_v9, %v5615_v2  ;;  %v5792_v10 = vpop.f32.mrf.mxu2  ;;  %v13719_v57 = vadd.f32 %v13104_v4, %v4714_v5  ;;  %16224 = vst [vmem:[#allocation36_spill] sm:$0xff] %v13727_v3  ;;  %v4715_v5 = vmul.f32 %v13068_v28, %v12965_v51  ;;  %v16227_v2 = vld [vmem:[#allocation138_spill] sm:$0xff]  ;;  %v13740_v9 = vpack.c.bf16 %v5102_v63, %v5098_v11 }
 0x905   :  { %v4849_v51 = vadd.f32 %v13100_v54, %v4712_v27  ;;  %v4856_v11 = vadd.f32 %v13106_v18, %v4719_v7  ;;  %v4983_v46 = vmul.f32 0.01, %v4855_v34 }
 0x906   :  { %v5793_v31 = vadd.f32 %v5792_v10, %v5704_v6  ;;  %16229 = vst [vmem:[#allocation68_spill] sm:$0xff] %v13740_v9  ;;  %v16230_v6 = vld [vmem:[#allocation22_spill] sm:$0xff]  ;;  %v4979_v10 = vmul.f32 0.01, %v13719_v57  ;;  %v4852_v35 = vadd.f32 %v13106_v18, %v4715_v5  ;;  %v8090_v5 = vor.u32 %v8593_v33, %v8087_v29  ;;  %v8609_v33 = vld [vmem:[%s14913_s2 + $0x94] sm:$0xf] }
 0x907   :  { %v5881_v58 = vpop.f32.mrf.mxu3  ;;  %v4717_v19 = vmul.f32 %v13074_v53, %v16230_v6 }
 0x908   :  { %v13714_v12 = vadd.f32 %v5881_v58, %v5793_v31  ;;  %v5617_v50 = vpop.f32.mrf.mxu0  ;;  %v8215_v31 = vld [vmem:[%s14913_s2 + $0x118] sm:$0xf0]  ;;  %v4980_v7 = vmul.f32 0.01, %v4852_v35  ;;  %5960 = vmatpush.bf16.msra.mxu0 %v8090_v5 }
 0x909   :  { %v5618_v36 = vadd.f32 %v5617_v50, %v13600_v62  ;;  %5834 = vmatmul.bf16.gmra.mxu2 %v13716_v16  ;;  %v4716_v50 = vmul.f32 %v13084_v22, %v16227_v2  ;;  %v4854_v58 = vadd.f32 %v13102_v26, %v4717_v19  ;;  %v8282_v2 = vor.u32 %v8641_v40, %v8279_v32 }
 0x90a   :  { %16221 = vst [vmem:[#allocation21_spill] sm:$0xff] %v13714_v12  ;;  %v4978_v19 = vmul.f32 0.01, %v4850_v48  ;;  %v5108_v5 = vmax.f32 %v4852_v35, %v4980_v7  ;;  %v16240_v7 = vld [vmem:[#allocation140_spill] sm:$0xff] }
 0x90b   :  { %v5706_v25 = vpop.f32.mrf.mxu1  ;;  %5656 = vmatmul.bf16.gmra.mxu0 %v13722_v41  ;;  %v4853_v15 = vadd.f32 %v13100_v54, %v4716_v50  ;;  %6227 = vmatpush.bf16.msrb.mxu3 %v8282_v2 }
 0x90c   :  { %v5707_v59 = vadd.f32 %v5706_v25, %v5618_v36  ;;  %5923 = vmatmul.bf16.gmra.mxu3 %v13727_v3  ;;  %v5795_v23 = vpop.f32.mrf.mxu2  ;;  %v8218_v36 = vor.u32 %v8625_v8, %v8215_v31  ;;  %v4977_v25 = vmul.f32 0.01, %v4849_v51  ;;  %v4982_v8 = vmul.f32 0.01, %v4854_v58 }
 0x90d   :  { %v4981_v45 = vmul.f32 0.01, %v4853_v15  ;;  %v5111_v31 = vmax.f32 %v4855_v34, %v4983_v46  ;;  %v5106_v34 = vmax.f32 %v4850_v48, %v4978_v19  ;;  %v16241_v19 = vld [vmem:[#allocation35_spill] sm:$0xff] }
 0x90e   :  { %5745 = vmatmul.bf16.gmra.mxu1 %v13740_v9  ;;  %v5796_v63 = vadd.f32 %v5795_v23, %v5707_v59  ;;  %6138 = vmatpush.bf16.msrb.mxu2 %v8218_v36  ;;  %v4984_v59 = vmul.f32 0.01, %v4856_v11  ;;  %v5105_v29 = vmax.f32 %v4849_v51, %v4977_v25  ;;  %v16235_v9 = vld [vmem:[#allocation42_spill] sm:$0xff]  ;;  %v16238_v25 = vld [vmem:[#allocation139_spill] sm:$0xff] }
 0x90f   :  { %v5884_v42 = vpop.f32.mrf.mxu3  ;;  %v5109_v40 = vmax.f32 %v4853_v15, %v4981_v45  ;;  %v4722_v51 = vmul.f32 %v13076_v44, %v16235_v9  ;;  %v16236_v15 = vld [vmem:[#allocation13_spill] sm:$0xff]  ;;  %v4720_v48 = vmul.f32 %v13084_v22, %v16238_v25 }
 0x910   :  { %v13772_v27 = vadd.f32 %v5884_v42, %v5796_v63  ;;  %v5619_v24 = vpop.f32.mrf.mxu0  ;;  %v5107_v63 = vmax.f32 %v13719_v57, %v4979_v10  ;;  %v8151_v42 = vld [vmem:[%s14913_s2 + $0x98] sm:$0xf0]  ;;  %v5112_v2 = vmax.f32 %v4856_v11, %v4984_v59  ;;  %v5110_v10 = vmax.f32 %v4854_v58, %v4982_v8  ;;  %v16239_v58 = vld [vmem:[#allocation106_spill] sm:$0xff] }
 0x911   :  { %v5620_v50 = vadd.f32 %v5619_v24, %v13600_v62  ;;  %v8154_v32 = vor.u32 %v8609_v33, %v8151_v42  ;;  %v13787_v12 = vpack.c.bf16 %v5109_v40, %v5105_v29  ;;  %v4726_v35 = vmul.f32 %v13076_v44, %v16236_v15  ;;  %v16243_v42 = vld [vmem:[#allocation160_spill] sm:$0xff] }
 0x912   :  { %16231 = vst [vmem:[#allocation50_spill] sm:$0xff] %v13772_v27  ;;  %v13784_v46 = vpack.c.bf16 %v5111_v31, %v5107_v63  ;;  %v13794_v11 = vpack.c.bf16 %v5112_v2, %v5108_v5  ;;  %v4723_v45 = vmul.f32 %v13068_v28, %v16239_v58  ;;  %v4724_v59 = vmul.f32 %v13084_v22, %v16240_v7 }
 0x913   :  { %v5708_v6 = vpop.f32.mrf.mxu1  ;;  %6049 = vmatpush.bf16.msra.mxu1 %v8154_v32  ;;  %16234 = vst [vmem:[#allocation24_spill] sm:$0xff] %v13787_v12  ;;  %v4859_v8 = vadd.f32 %v13104_v4, %v4722_v51  ;;  %v13806_v31 = vpack.c.bf16 %v5110_v10, %v5106_v34  ;;  %v4863_v33 = vadd.f32 %v13104_v4, %v4726_v35 }
 0x914   :  { %v5709_v23 = vadd.f32 %v5708_v6, %v5620_v50  ;;  %v5797_v36 = vpop.f32.mrf.mxu2  ;;  %16233 = vst [vmem:[#allocation76_spill] sm:$0xff] %v13784_v46  ;;  %v4857_v29 = vadd.f32 %v13100_v54, %v4720_v48  ;;  %v4861_v32 = vadd.f32 %v13100_v54, %v4724_v59  ;;  %v4860_v2 = vadd.f32 %v13106_v18, %v4723_v45 }
 0x915   :  { %16237 = vst [vmem:[#allocation11_spill] sm:$0xff] %v13794_v11  ;;  %v4987_v35 = vmul.f32 0.01, %v4859_v8  ;;  %v4991_v25 = vmul.f32 0.01, %v4863_v33 }
 0x916   :  { %v5798_v24 = vadd.f32 %v5797_v36, %v5709_v23  ;;  %v4727_v23 = vmul.f32 %v13068_v28, %v16241_v19  ;;  %16242 = vst [vmem:[#allocation7_spill] sm:$0xff] %v13806_v31  ;;  %v4721_v36 = vmul.f32 %v13074_v53, %v16243_v42  ;;  %v4985_v58 = vmul.f32 0.01, %v4857_v29 }
 0x917   :  { %v5886_v50 = vpop.f32.mrf.mxu3  ;;  %v4989_v7 = vmul.f32 0.01, %v4861_v32  ;;  %v4988_v45 = vmul.f32 0.01, %v4860_v2  ;;  %v5115_v42 = vmax.f32 %v4859_v8, %v4987_v35 }
 0x918   :  { %v13782_v6 = vadd.f32 %v5886_v50, %v5798_v24  ;;  %v5622_v57 = vpop.f32.mrf.mxu0  ;;  %v16244_v24 = vld [vmem:[#allocation26_spill] sm:$0xff]  ;;  %v4864_v50 = vadd.f32 %v13106_v18, %v4727_v23 }
 0x919   :  { %v5623_v27 = vadd.f32 %v5622_v57, %v13600_v62  ;;  %5839 = vmatmul.bf16.gmra.mxu2 %v13784_v46  ;;  %v4725_v5 = vmul.f32 %v13074_v53, %v16244_v24  ;;  %v4858_v57 = vadd.f32 %v13102_v26, %v4721_v36  ;;  %v5119_v36 = vmax.f32 %v4863_v33, %v4991_v25  ;;  %v16252_v25 = vld [vmem:[#allocation112_spill] sm:$0xff] }
 0x91a   :  { %16232 = vst [vmem:[#allocation25_spill] sm:$0xff] %v13782_v6  ;;  %v4992_v59 = vmul.f32 0.01, %v4864_v50  ;;  %v5113_v24 = vmax.f32 %v4857_v29, %v4985_v58  ;;  %v16246_v6 = vld [vmem:[#allocation17_spill] sm:$0xff] }
 0x91b   :  { %v5711_v9 = vpop.f32.mrf.mxu1  ;;  %5661 = vmatmul.bf16.gmra.mxu0 %v13787_v12  ;;  %v4862_v15 = vadd.f32 %v13102_v26, %v4725_v5  ;;  %v13828_v41 = vpack.c.bf16 %v5119_v36, %v5115_v42 }
 0x91c   :  { %v5712_v63 = vadd.f32 %v5711_v9, %v5623_v27  ;;  %5928 = vmatmul.bf16.gmra.mxu3 %v13794_v11  ;;  %v5800_v40 = vpop.f32.mrf.mxu2  ;;  %v4986_v9 = vmul.f32 0.01, %v4858_v57  ;;  %v5120_v5 = vmax.f32 %v4864_v50, %v4992_v59  ;;  %v16250_v50 = vld [vmem:[#allocation141_spill] sm:$0xff] }
 0x91d   :  { %v4990_v23 = vmul.f32 0.01, %v4862_v15 }
 0x91e   :  { %5750 = vmatmul.bf16.gmra.mxu1 %v13806_v31  ;;  %v5801_v27 = vadd.f32 %v5800_v40, %v5712_v63  ;;  %v4730_v31 = vmul.f32 %v13076_v44, %v16246_v6  ;;  %v5114_v46 = vmax.f32 %v4858_v57, %v4986_v9  ;;  %v4728_v57 = vmul.f32 %v13084_v22, %v16250_v50  ;;  %v16256_v9 = vld [vmem:[#allocation30_spill] sm:$0xff] }
 0x91f   :  { %v5889_v34 = vpop.f32.mrf.mxu3  ;;  %v5118_v3 = vmax.f32 %v4862_v15, %v4990_v23  ;;  %v16251_v15 = vld [vmem:[#allocation161_spill] sm:$0xff]  ;;  %v8079_v50 = vld [vmem:[%s14913_s2 + $0x8] sm:$0xf0] }
 0x920   :  { %v13820_v10 = vadd.f32 %v5889_v34, %v5801_v27  ;;  %v5624_v51 = vpop.f32.mrf.mxu0  ;;  %v5117_v27 = vmax.f32 %v4861_v32, %v4989_v7  ;;  %v13831_v8 = vadd.f32 %v13104_v4, %v4730_v31  ;;  %v16248_v32 = vld [vmem:[#allocation16_spill] sm:$0xff]  ;;  %v4729_v35 = vmul.f32 %v13074_v53, %v16251_v15  ;;  %v16254_v7 = vld [vmem:[#allocation110_spill] sm:$0xff] }
 0x921   :  { %v5625_v48 = vadd.f32 %v5624_v51, %v13600_v62  ;;  %v4731_v31 = vmul.f32 %v13068_v28, %v16252_v25  ;;  %v13852_v59 = vpack.c.bf16 %v5118_v3, %v5114_v46  ;;  %v4865_v23 = vadd.f32 %v13100_v54, %v4728_v57  ;;  %v8639_v57 = vld [vmem:[%s14913_s2 + $0x184] sm:$0xf]  ;;  %v8271_v15 = vld [vmem:[%s14913_s2 + $0x188] sm:$0xf0] }
 0x922   :  { %16245 = vst [vmem:[#allocation82_spill] sm:$0xff] %v13820_v10  ;;  %v5116_v10 = vmax.f32 %v4860_v2, %v4988_v45  ;;  %v13834_v29 = vpack.c.bf16 %v5117_v27, %v5113_v24  ;;  %v4734_v2 = vmul.f32 %v13076_v44, %v16248_v32  ;;  %v4735_v45 = vmul.f32 %v13068_v28, %v16254_v7  ;;  %v8623_v27 = vld [vmem:[%s14913_s2 + $0x104] sm:$0xf] }
 0x923   :  { %v5713_v19 = vpop.f32.mrf.mxu1  ;;  %16255 = vst [vmem:[#allocation87_spill] sm:$0xff] %v13852_v59  ;;  %v4868_v24 = vadd.f32 %v13106_v18, %v4731_v31  ;;  %v4993_v7 = vmul.f32 0.01, %v4865_v23 }
 0x924   :  { %v5714_v63 = vadd.f32 %v5713_v19, %v5625_v48  ;;  %v5802_v40 = vpop.f32.mrf.mxu2  ;;  %v13839_v6 = vpack.c.bf16 %v5120_v5, %v5116_v10  ;;  %v16253_v48 = vld [vmem:[#allocation142_spill] sm:$0xff]  ;;  %v4871_v19 = vadd.f32 %v13104_v4, %v4734_v2  ;;  %v4872_v46 = vadd.f32 %v13106_v18, %v4735_v45  ;;  %v8591_v5 = vld [vmem:[%s14913_s2 + $0x4] sm:$0xf] }
 0x926   :  { %v5803_v34 = vadd.f32 %v5802_v40, %v5714_v63  ;;  %16249 = vst [vmem:[#allocation55_spill] sm:$0xff] %v13839_v6  ;;  %v4733_v63 = vmul.f32 %v13074_v53, %v16256_v9  ;;  %v4995_v40 = vmul.f32 0.01, %v13831_v8  ;;  %v5000_v9 = vmul.f32 0.01, %v4872_v46 }
 0x927   :  { %v5891_v51 = vpop.f32.mrf.mxu3 }
 0x928   :  { %v13826_v11 = vadd.f32 %v5891_v51, %v5803_v34  ;;  %v5627_v12 = vpop.f32.mrf.mxu0  ;;  %v8207_v34 = vld [vmem:[%s14913_s2 + $0x108] sm:$0xf0]  ;;  %v4866_v51 = vadd.f32 %v13102_v26, %v4729_v35  ;;  %v4870_v32 = vadd.f32 %v13102_v26, %v4733_v63  ;;  %v4999_v35 = vmul.f32 0.01, %v4871_v19 }
 0x929   :  { %v5628_v33 = vadd.f32 %v5627_v12, %v13600_v62  ;;  %5844 = vmatmul.bf16.gmra.mxu2 %v13828_v41  ;;  %v4732_v12 = vmul.f32 %v13084_v22, %v16253_v48  ;;  %v8210_v2 = vor.u32 %v8623_v27, %v8207_v34  ;;  %v8082_v48 = vor.u32 %v8591_v5, %v8079_v50  ;;  %v8607_v5 = vld [vmem:[%s14913_s2 + $0x84] sm:$0xf]  ;;  %v8143_v50 = vld [vmem:[%s14913_s2 + $0x88] sm:$0xf0] }
 0x92a   :  { %16247 = vst [vmem:[#allocation74_spill] sm:$0xff] %v13826_v11  ;;  %v4998_v34 = vmul.f32 0.01, %v4870_v32 }
 0x92b   :  { %v5716_v58 = vpop.f32.mrf.mxu1  ;;  %5666 = vmatmul.bf16.gmra.mxu0 %v13834_v29  ;;  %v4869_v36 = vadd.f32 %v13100_v54, %v4732_v12  ;;  %v8274_v12 = vor.u32 %v8639_v57, %v8271_v15  ;;  %6139 = vmatpush.bf16.msrb.mxu2 %v8210_v2  ;;  %v5121_v57 = vmax.f32 %v4865_v23, %v4993_v7  ;;  %v16263_v7 = vld [vmem:[#allocation143_spill] sm:$0xff] }
 0x92c   :  { %v5717_v10 = vadd.f32 %v5716_v58, %v5628_v33  ;;  %5933 = vmatmul.bf16.gmra.mxu3 %v13839_v6  ;;  %v5805_v42 = vpop.f32.mrf.mxu2  ;;  %5961 = vmatpush.bf16.msra.mxu0 %v8082_v48  ;;  %v16260_v6 = vld [vmem:[#allocation47_spill] sm:$0xff] }
 0x92d   :  { %v4997_v45 = vmul.f32 0.01, %v4869_v36  ;;  %6228 = vmatpush.bf16.msrb.mxu3 %v8274_v12  ;;  %v4738_v23 = vmul.f32 %v13076_v44, %v16260_v6 }
 0x92e   :  { %5755 = vmatmul.bf16.gmra.mxu1 %v13852_v59  ;;  %v5806_v3 = vadd.f32 %v5805_v42, %v5717_v10  ;;  %v4996_v10 = vmul.f32 0.01, %v4868_v24  ;;  %v4994_v42 = vmul.f32 0.01, %v4866_v51 }
 0x92f   :  { %v5894_v33 = vpop.f32.mrf.mxu3  ;;  %v5125_v15 = vmax.f32 %v4869_v36, %v4997_v45  ;;  %v16261_v36 = vld [vmem:[#allocation45_spill] sm:$0xff] }
 0x930   :  { %v13884_v25 = vadd.f32 %v5894_v33, %v5806_v3  ;;  %v5629_v31 = vpop.f32.mrf.mxu0  ;;  %v5123_v3 = vmax.f32 %v13831_v8, %v4995_v40  ;;  %v5127_v33 = vmax.f32 %v4871_v19, %v4999_v35  ;;  %v5124_v12 = vmax.f32 %v4868_v24, %v4996_v10  ;;  %v16265_v10 = vld [vmem:[#allocation144_spill] sm:$0xff] }
 0x931   :  { %v5630_v58 = vadd.f32 %v5629_v31, %v13600_v62  ;;  %v8146_v31 = vor.u32 %v8607_v5, %v8143_v50  ;;  %v5122_v19 = vmax.f32 %v4866_v51, %v4994_v42  ;;  %v5126_v40 = vmax.f32 %v4870_v32, %v4998_v34  ;;  %v16264_v32 = vld [vmem:[#allocation40_spill] sm:$0xff]  ;;  %v16266_v42 = vld [vmem:[#allocation114_spill] sm:$0xff] }
 0x932   :  { %16257 = vst [vmem:[#allocation70_spill] sm:$0xff] %v13884_v25  ;;  %v5128_v25 = vmax.f32 %v4872_v46, %v5000_v9  ;;  %v13896_v35 = vpack.c.bf16 %v5127_v33, %v5123_v3  ;;  %v13899_v59 = vpack.c.bf16 %v5125_v15, %v5121_v57  ;;  %v4742_v24 = vmul.f32 %v13076_v44, %v16261_v36  ;;  %v16268_v5 = vld [vmem:[#allocation162_spill] sm:$0xff] }
 0x933   :  { %v5718_v63 = vpop.f32.mrf.mxu1  ;;  %6050 = vmatpush.bf16.msra.mxu1 %v8146_v31  ;;  %v4736_v51 = vmul.f32 %v13084_v22, %v16263_v7  ;;  %v4739_v45 = vmul.f32 %v13068_v28, %v16264_v32  ;;  %v4740_v9 = vmul.f32 %v13084_v22, %v16265_v10  ;;  %v4875_v34 = vadd.f32 %v13104_v4, %v4738_v23  ;;  %v16269_v15 = vld [vmem:[#allocation34_spill] sm:$0xff] }
 0x934   :  { %v5719_v27 = vadd.f32 %v5718_v63, %v5630_v58  ;;  %v5807_v2 = vpop.f32.mrf.mxu2  ;;  %16259 = vst [vmem:[#allocation53_spill] sm:$0xff] %v13899_v59  ;;  %v13906_v46 = vpack.c.bf16 %v5128_v25, %v5124_v12  ;;  %v13918_v25 = vpack.c.bf16 %v5126_v40, %v5122_v19  ;;  %v4879_v33 = vadd.f32 %v13104_v4, %v4742_v24 }
 0x935   :  { %v4737_v50 = vmul.f32 %v13074_v53, %v16268_v5  ;;  %v4741_v31 = vmul.f32 %v13074_v53, %v16269_v15  ;;  %v5003_v36 = vmul.f32 0.01, %v4875_v34 }
 0x936   :  { %v5808_v48 = vadd.f32 %v5807_v2, %v5719_v27  ;;  %16262 = vst [vmem:[#allocation90_spill] sm:$0xff] %v13906_v46  ;;  %v4743_v27 = vmul.f32 %v13068_v28, %v16266_v42  ;;  %v4873_v2 = vadd.f32 %v13100_v54, %v4736_v51  ;;  %v4877_v28 = vadd.f32 %v13100_v54, %v4740_v9 }
 0x937   :  { %v5896_v58 = vpop.f32.mrf.mxu3  ;;  %16267 = vst [vmem:[#allocation80_spill] sm:$0xff] %v13918_v25  ;;  %v4878_v23 = vadd.f32 %v13102_v26, %v4741_v31  ;;  %v5007_v24 = vmul.f32 0.01, %v4879_v33 }
 0x938   :  { %v13894_v63 = vadd.f32 %v5896_v58, %v5808_v48  ;;  %v5632_v8 = vpop.f32.mrf.mxu0  ;;  %v4876_v48 = vadd.f32 %v13106_v18, %v4739_v45  ;;  %v4880_v12 = vadd.f32 %v13106_v18, %v4743_v27  ;;  %v4874_v58 = vadd.f32 %v13102_v26, %v4737_v50 }
 0x939   :  { %v5633_v11 = vadd.f32 %v5632_v8, %v13600_v62  ;;  %5849 = vmatmul.bf16.gmra.mxu2 %v13896_v35  ;;  %v5001_v51 = vmul.f32 0.01, %v4873_v2  ;;  %v5005_v32 = vmul.f32 0.01, %v4877_v28  ;;  %v5006_v18 = vmul.f32 0.01, %v4878_v23 }
 0x93a   :  { %16258 = vst [vmem:[#allocation15_spill] sm:$0xff] %v13894_v63  ;;  %v5004_v45 = vmul.f32 0.01, %v4876_v48  ;;  %v5008_v10 = vmul.f32 0.01, %v4880_v12  ;;  %v5131_v27 = vmax.f32 %v4875_v34, %v5003_v36  ;;  %v16272_v34 = vld [vmem:[#allocation46_spill] sm:$0xff] }
 0x93b   :  { %v5721_v6 = vpop.f32.mrf.mxu1  ;;  %5671 = vmatmul.bf16.gmra.mxu0 %v13899_v59  ;;  %v5002_v42 = vmul.f32 0.01, %v4874_v58  ;;  %v5129_v50 = vmax.f32 %v4873_v2, %v5001_v51  ;;  %v16273_v2 = vld [vmem:[#allocation20_spill] sm:$0xff] }
 0x93c   :  { %v5722_v3 = vadd.f32 %v5721_v6, %v5633_v11  ;;  %5938 = vmatmul.bf16.gmra.mxu3 %v13906_v46  ;;  %v5810_v57 = vpop.f32.mrf.mxu2  ;;  %v5136_v31 = vmax.f32 %v4880_v12, %v5008_v10  ;;  %v16274_v12 = vld [vmem:[#allocation145_spill] sm:$0xff]  ;;  %v16276_v10 = vld [vmem:[#allocation146_spill] sm:$0xff] }
 0x93d   :  { %v5130_v63 = vmax.f32 %v4874_v58, %v5002_v42  ;;  %v4744_v58 = vmul.f32 %v13084_v22, %v16274_v12 }
 0x93e   :  { %5760 = vmatmul.bf16.gmra.mxu1 %v13918_v25  ;;  %v5811_v11 = vadd.f32 %v5810_v57, %v5722_v3  ;;  %v5135_v3 = vmax.f32 %v4879_v33, %v5007_v24  ;;  %v5133_v57 = vmax.f32 %v4877_v28, %v5005_v32  ;;  %v5134_v25 = vmax.f32 %v4878_v23, %v5006_v18  ;;  %v16275_v23 = vld [vmem:[#allocation147_spill] sm:$0xff]  ;;  %v16277_v18 = vld [vmem:[#allocation148_spill] sm:$0xff] }
 0x93f   :  { %v5899_v8 = vpop.f32.mrf.mxu3  ;;  %v4746_v33 = vmul.f32 %v13076_v44, %v16272_v34  ;;  %v4750_v28 = vmul.f32 %v13076_v44, %v16273_v2  ;;  %v4748_v36 = vmul.f32 %v13084_v22, %v16275_v23  ;;  %v4881_v42 = vadd.f32 %v13100_v54, %v4744_v58 }
 0x940   :  { %v13932_v19 = vadd.f32 %v5899_v8, %v5811_v11  ;;  %v5634_v40 = vpop.f32.mrf.mxu0  ;;  %v5132_v11 = vmax.f32 %v4876_v48, %v5004_v45  ;;  %v13938_v46 = vpack.c.bf16 %v5135_v3, %v5131_v27  ;;  %v13956_v45 = vpack.c.bf16 %v5134_v25, %v5130_v63 }
 0x941   :  { %v5635_v7 = vadd.f32 %v5634_v40, %v13600_v62  ;;  %v4883_v51 = vadd.f32 %v13104_v4, %v4746_v33  ;;  %v4887_v44 = vadd.f32 %v13104_v4, %v4750_v28  ;;  %v4885_v22 = vadd.f32 %v13100_v54, %v4748_v36 }
 0x942   :  { %16270 = vst [vmem:[#allocation92_spill] sm:$0xff] %v13932_v19  ;;  %v13948_v48 = vpack.c.bf16 %v5136_v31, %v5132_v11  ;;  %v4749_v27 = vmul.f32 %v13074_v53, %v16277_v18  ;;  %v5009_v11 = vmul.f32 0.01, %v4881_v42 }
 0x943   :  { %v5723_v9 = vpop.f32.mrf.mxu1  ;;  %v5013_v54 = vmul.f32 0.01, %v4885_v22 }
 0x944   :  { %v5724_v6 = vadd.f32 %v5723_v9, %v5635_v7  ;;  %v5812_v5 = vpop.f32.mrf.mxu2  ;;  %v13941_v7 = vpack.c.bf16 %v5133_v57, %v5129_v50  ;;  %v4745_v9 = vmul.f32 %v13074_v53, %v16276_v10  ;;  %v5011_v50 = vmul.f32 0.01, %v4883_v51 }
 0x945   :  { %v5015_v57 = vmul.f32 0.01, %v4887_v44  ;;  %v5137_v28 = vmax.f32 %v4881_v42, %v5009_v11  ;;  %v5141_v12 = vmax.f32 %v4885_v22, %v5013_v54 }
 0x946   :  { %v5813_v15 = vadd.f32 %v5812_v5, %v5724_v6  ;;  %v4882_v63 = vadd.f32 %v13102_v26, %v4745_v9  ;;  %v4886_v5 = vadd.f32 %v13102_v26, %v4749_v27  ;;  %v5139_v34 = vmax.f32 %v4883_v51, %v5011_v50 }
 0x947   :  { %v5901_v8 = vpop.f32.mrf.mxu3  ;;  %v5143_v33 = vmax.f32 %v4887_v44, %v5015_v57 }
 0x948   :  { %v13936_v19 = vadd.f32 %v5901_v8, %v5813_v15  ;;  %v5637_v40 = vpop.f32.mrf.mxu0  ;;  %v5010_v8 = vmul.f32 0.01, %v4882_v63 }
 0x949   :  { %v5638_v59 = vadd.f32 %v5637_v40, %v13600_v62  ;;  %5854 = vmatmul.bf16.gmra.mxu2 %v13938_v46  ;;  %v5014_v40 = vmul.f32 0.01, %v4886_v5  ;;  %v13974_v10 = vpack.c.bf16 %v5143_v33, %v5139_v34  ;;  %v16282_v34 = vld [vmem:[#allocation44_spill] sm:$0xff] }
 0x94a   :  { %16271 = vst [vmem:[#allocation19_spill] sm:$0xff] %v13936_v19 }
 0x94b   :  { %v5726_v24 = vpop.f32.mrf.mxu1  ;;  %5676 = vmatmul.bf16.gmra.mxu0 %v13941_v7 }
 0x94c   :  { %v5727_v32 = vadd.f32 %v5726_v24, %v5638_v59  ;;  %5943 = vmatmul.bf16.gmra.mxu3 %v13948_v48  ;;  %v5815_v6 = vpop.f32.mrf.mxu2  ;;  %v5138_v24 = vmax.f32 %v4882_v63, %v5010_v8 }
 0x94e   :  { %5765 = vmatmul.bf16.gmra.mxu1 %v13956_v45  ;;  %v5816_v59 = vadd.f32 %v5815_v6, %v5727_v32  ;;  %v5142_v32 = vmax.f32 %v4886_v5, %v5014_v40  ;;  %v13977_v6 = vpack.c.bf16 %v5141_v12, %v5137_v28 }
 0x94f   :  { %v5904_v25 = vpop.f32.mrf.mxu3 }
 0x950   :  { %v13968_v3 = vadd.f32 %v5904_v25, %v5816_v59  ;;  %v5639_v4 = vpop.f32.mrf.mxu0  ;;  %v13981_v42 = vpack.c.bf16 %v5142_v32, %v5138_v24 }
 0x951   :  { %v5640_v15 = vadd.f32 %v5639_v4, %v13600_v62 }
 0x952   :  { %16278 = vst [vmem:[#allocation75_spill] sm:$0xff] %v13968_v3 }
 0x953   :  { %v5728_v31 = vpop.f32.mrf.mxu1 }
 0x954   :  { %v5729_v53 = vadd.f32 %v5728_v31, %v5640_v15  ;;  %v5817_v2 = vpop.f32.mrf.mxu2 }
 0x956   :  { %v5818_v58 = vadd.f32 %v5817_v2, %v5729_v53 }
 0x957   :  { %v5906_v23 = vpop.f32.mrf.mxu3 }
 0x958   :  { %v13972_v36 = vadd.f32 %v5906_v23, %v5818_v58  ;;  %v5642_v26 = vpop.f32.mrf.mxu0 }
 0x959   :  { %v5643_v9 = vadd.f32 %v5642_v26, %v13600_v62  ;;  %5859 = vmatmul.bf16.gmra.mxu2 %v13974_v10 }
 0x95a   :  { %16279 = vst [vmem:[#allocation54_spill] sm:$0xff] %v13972_v36 }
 0x95b   :  { %v5731_v51 = vpop.f32.mrf.mxu1  ;;  %5681 = vmatmul.bf16.gmra.mxu0 %v13977_v6 }
 0x95c   :  { %v5732_v44 = vadd.f32 %v5731_v51, %v5643_v9  ;;  %5948 = vmatmul.bf16.gmra.mxu3 %v13503_v43  ;;  %v5820_v22 = vpop.f32.mrf.mxu2 }
 0x95e   :  { %5770 = vmatmul.bf16.gmra.mxu1 %v13981_v42  ;;  %v5821_v18 = vadd.f32 %v5820_v22, %v5732_v44 }
 0x95f   :  { %v5909_v27 = vpop.f32.mrf.mxu3 }
 0x960   :  { %v13985_v59 = vadd.f32 %v5909_v27, %v5821_v18  ;;  %v5644_v63 = vpop.f32.mrf.mxu0 }
 0x961   :  { %v5645_v25 = vadd.f32 %v5644_v63, %v13600_v62 }
 0x962   :  { %16280 = vst [vmem:[#allocation23_spill] sm:$0xff] %v13985_v59 }
 0x963   :  { %v5733_v4 = vpop.f32.mrf.mxu1 }
 0x964   :  { %v5734_v5 = vadd.f32 %v5733_v4, %v5645_v25  ;;  %v5822_v50 = vpop.f32.mrf.mxu2 }
 0x966   :  { %v5823_v57 = vadd.f32 %v5822_v50, %v5734_v5 }
 0x967   :  { %v5911_v15 = vpop.f32.mrf.mxu3 }
 0x968   :  { %v13988_v11 = vadd.f32 %v5911_v15, %v5823_v57  ;;  %v5647_v54 = vpop.f32.mrf.mxu0 }
 0x969   :  { %v5648_v31 = vadd.f32 %v5647_v54, %v13600_v62  ;;  %6140 = vmatmul.bf16.vlgmr.msrb.gmra.mxu2 %v13214_v38 }
 0x96a   :  { %16281 = vst [vmem:[#allocation28_spill] sm:$0xff] %v13988_v11 }
 0x96b   :  { %v5736_v8 = vpop.f32.mrf.mxu1  ;;  %5962 = vmatmul.bf16.vlgmr.msra.gmra.mxu0 %v13212_v55 }
 0x96c   :  { %v5737_v53 = vadd.f32 %v5736_v8, %v5648_v31  ;;  %6229 = vmatmul.bf16.vlgmr.msrb.gmra.mxu3 %v13216_v0  ;;  %v5825_v40 = vpop.f32.mrf.mxu2 }
 0x96e   :  { %6051 = vmatmul.bf16.vlgmr.msra.gmra.mxu1 %v16282_v34  ;;  %v5826_v33 = vadd.f32 %v5825_v40, %v5737_v53 }
 0x96f   :  { %v5914_v2 = vpop.f32.mrf.mxu3 }
 0x970   :  { %v13995_v28 = vadd.f32 %v5914_v2, %v5826_v33  ;;  %v5649_v12 = vpop.f32.mrf.mxu0 }
 0x971   :  { %v5650_v58 = vadd.f32 %v5649_v12, %v13600_v62 }
 0x972   :  { %16283 = vst [vmem:[#allocation85_spill] sm:$0xff] %v13995_v28 }
 0x973   :  { %v5738_v23 = vpop.f32.mrf.mxu1 }
 0x974   :  { %v5739_v26 = vadd.f32 %v5738_v23, %v5650_v58  ;;  %v5827_v24 = vpop.f32.mrf.mxu2 }
 0x976   :  { %v5828_v38 = vadd.f32 %v5827_v24, %v5739_v26 }
 0x977   :  { %v5916_v32 = vpop.f32.mrf.mxu3 }
 0x978   :  { %v13998_v9 = vadd.f32 %v5916_v32, %v5828_v38  ;;  %v5652_v55 = vpop.f32.mrf.mxu0 }
 0x979   :  { %v5653_v0 = vadd.f32 %v5652_v55, %v13600_v62  ;;  %6145 = vmatmul.bf16.gmra.mxu2 %v13266_v39  ;;  %v16289_v55 = vld [vmem:[#allocation115_spill] sm:$0xff] }
 0x97a   :  { %16284 = vst [vmem:[#allocation59_spill] sm:$0xff] %v13998_v9 }
 0x97b   :  { %v5741_v51 = vpop.f32.mrf.mxu1  ;;  %5967 = vmatmul.bf16.gmra.mxu0 %v13268_v30 }
 0x97c   :  { %v5742_v44 = vadd.f32 %v5741_v51, %v5653_v0  ;;  %6234 = vmatmul.bf16.gmra.mxu3 %v13275_v14  ;;  %v5830_v22 = vpop.f32.mrf.mxu2 }
 0x97e   :  { %6056 = vmatmul.bf16.gmra.mxu1 %v13287_v52  ;;  %v5831_v18 = vadd.f32 %v5830_v22, %v5742_v44 }
 0x97f   :  { %v5919_v27 = vpop.f32.mrf.mxu3 }
 0x980   :  { %v14005_v63 = vadd.f32 %v5919_v27, %v5831_v18  ;;  %v5654_v25 = vpop.f32.mrf.mxu0 }
 0x981   :  { %v5655_v4 = vadd.f32 %v5654_v25, %v13600_v62 }
 0x982   :  { %16285 = vst [vmem:[#allocation27_spill] sm:$0xff] %v14005_v63 }
 0x983   :  { %v5743_v5 = vpop.f32.mrf.mxu1 }
 0x984   :  { %v5744_v50 = vadd.f32 %v5743_v5, %v5655_v4  ;;  %v5832_v57 = vpop.f32.mrf.mxu2 }
 0x986   :  { %v5833_v39 = vadd.f32 %v5832_v57, %v5744_v50  ;;  %v16292_v57 = vld [vmem:[#allocation48_spill] sm:$0xff] }
 0x987   :  { %v5921_v15 = vpop.f32.mrf.mxu3 }
 0x988   :  { %v14008_v54 = vadd.f32 %v5921_v15, %v5833_v39  ;;  %v5657_v30 = vpop.f32.mrf.mxu0  ;;  %v16293_v15 = vld [vmem:[#allocation116_spill] sm:$0xff] }
 0x989   :  { %v5658_v14 = vadd.f32 %v5657_v30, %v13600_v62  ;;  %6150 = vmatmul.bf16.gmra.mxu2 %v13304_v21 }
 0x98a   :  { %16286 = vst [vmem:[#allocation57_spill] sm:$0xff] %v14008_v54 }
 0x98b   :  { %v5746_v52 = vpop.f32.mrf.mxu1  ;;  %5972 = vmatmul.bf16.gmra.mxu0 %v13307_v17 }
 0x98c   :  { %v5747_v31 = vadd.f32 %v5746_v52, %v5658_v14  ;;  %6239 = vmatmul.bf16.gmra.mxu3 %v13312_v60  ;;  %v5835_v8 = vpop.f32.mrf.mxu2  ;;  %v16294_v14 = vld [vmem:[#allocation52_spill] sm:$0xff] }
 0x98e   :  { %6061 = vmatmul.bf16.gmra.mxu1 %v13323_v20  ;;  %v5836_v53 = vadd.f32 %v5835_v8, %v5747_v31  ;;  %v16295_v31 = vld [vmem:[#allocation117_spill] sm:$0xff] }
 0x98f   :  { %v5924_v40 = vpop.f32.mrf.mxu3 }
 0x990   :  { %v14015_v34 = vadd.f32 %v5924_v40, %v5836_v53  ;;  %v5659_v33 = vpop.f32.mrf.mxu0 }
 0x991   :  { %v5660_v2 = vadd.f32 %v5659_v33, %v13600_v62 }
 0x992   :  { %16287 = vst [vmem:[#allocation95_spill] sm:$0xff] %v14015_v34 }
 0x993   :  { %v5748_v12 = vpop.f32.mrf.mxu1 }
 0x994   :  { %v5749_v58 = vadd.f32 %v5748_v12, %v5660_v2  ;;  %v5837_v23 = vpop.f32.mrf.mxu2 }
 0x996   :  { %v5838_v21 = vadd.f32 %v5837_v23, %v5749_v58 }
 0x997   :  { %v5926_v26 = vpop.f32.mrf.mxu3 }
 0x998   :  { %v14018_v24 = vadd.f32 %v5926_v26, %v5838_v21  ;;  %v5662_v17 = vpop.f32.mrf.mxu0 }
 0x999   :  { %v5663_v60 = vadd.f32 %v5662_v17, %v13600_v62  ;;  %6155 = vmatmul.bf16.gmra.mxu2 %v13362_v49 }
 0x99a   :  { %16288 = vst [vmem:[#allocation58_spill] sm:$0xff] %v14018_v24 }
 0x99b   :  { %v5751_v20 = vpop.f32.mrf.mxu1  ;;  %5977 = vmatmul.bf16.gmra.mxu0 %v13364_v56 }
 0x99c   :  { %v5752_v38 = vadd.f32 %v5751_v20, %v5663_v60  ;;  %6244 = vmatmul.bf16.gmra.mxu3 %v13371_v47  ;;  %v5840_v32 = vpop.f32.mrf.mxu2 }
 0x99e   :  { %6066 = vmatmul.bf16.gmra.mxu1 %v16289_v55  ;;  %v5841_v0 = vadd.f32 %v5840_v32, %v5752_v38  ;;  %v16298_v38 = vld [vmem:[#allocation56_spill] sm:$0xff]  ;;  %v16299_v55 = vld [vmem:[#allocation118_spill] sm:$0xff] }
 0x99f   :  { %v5929_v51 = vpop.f32.mrf.mxu3 }
 0x9a0   :  { %v14025_v44 = vadd.f32 %v5929_v51, %v5841_v0  ;;  %v5664_v22 = vpop.f32.mrf.mxu0  ;;  %v16300_v51 = vld [vmem:[#allocation60_spill] sm:$0xff] }
 0x9a1   :  { %v5665_v18 = vadd.f32 %v5664_v22, %v13600_v62 }
 0x9a2   :  { %16290 = vst [vmem:[#allocation29_spill] sm:$0xff] %v14025_v44 }
 0x9a3   :  { %v5753_v27 = vpop.f32.mrf.mxu1 }
 0x9a4   :  { %v5754_v25 = vadd.f32 %v5753_v27, %v5665_v18  ;;  %v5842_v4 = vpop.f32.mrf.mxu2  ;;  %v16301_v18 = vld [vmem:[#allocation119_spill] sm:$0xff] }
 0x9a6   :  { %v5843_v49 = vadd.f32 %v5842_v4, %v5754_v25 }
 0x9a7   :  { %v5931_v5 = vpop.f32.mrf.mxu3 }
 0x9a8   :  { %v14028_v50 = vadd.f32 %v5931_v5, %v5843_v49  ;;  %v5667_v56 = vpop.f32.mrf.mxu0 }
 0x9a9   :  { %v5668_v47 = vadd.f32 %v5667_v56, %v13600_v62  ;;  %6160 = vmatmul.bf16.gmra.mxu2 %v16292_v57 }
 0x9aa   :  { %16291 = vst [vmem:[#allocation97_spill] sm:$0xff] %v14028_v50 }
 0x9ab   :  { %v5756_v39 = vpop.f32.mrf.mxu1  ;;  %5982 = vmatmul.bf16.gmra.mxu0 %v16293_v15 }
 0x9ac   :  { %v5757_v30 = vadd.f32 %v5756_v39, %v5668_v47  ;;  %6249 = vmatmul.bf16.gmra.mxu3 %v16294_v14  ;;  %v5845_v52 = vpop.f32.mrf.mxu2 }
 0x9ae   :  { %6071 = vmatmul.bf16.gmra.mxu1 %v16295_v31  ;;  %v5846_v8 = vadd.f32 %v5845_v52, %v5757_v30 }
 0x9af   :  { %v5934_v53 = vpop.f32.mrf.mxu3 }
 0x9b0   :  { %v14035_v40 = vadd.f32 %v5934_v53, %v5846_v8  ;;  %v5669_v33 = vpop.f32.mrf.mxu0  ;;  %v16304_v53 = vld [vmem:[#allocation66_spill] sm:$0xff] }
 0x9b1   :  { %v5670_v2 = vadd.f32 %v5669_v33, %v13600_v62 }
 0x9b2   :  { %16296 = vst [vmem:[#allocation163_spill] sm:$0xff] %v14035_v40 }
 0x9b3   :  { %v5758_v12 = vpop.f32.mrf.mxu1 }
 0x9b4   :  { %v5759_v58 = vadd.f32 %v5758_v12, %v5670_v2  ;;  %v5847_v23 = vpop.f32.mrf.mxu2  ;;  %v16305_v2 = vld [vmem:[#allocation61_spill] sm:$0xff] }
 0x9b6   :  { %v5848_v21 = vadd.f32 %v5847_v23, %v5759_v58 }
 0x9b7   :  { %v5936_v26 = vpop.f32.mrf.mxu3 }
 0x9b8   :  { %v14038_v17 = vadd.f32 %v5936_v26, %v5848_v21  ;;  %v5672_v60 = vpop.f32.mrf.mxu0 }
 0x9b9   :  { %v5673_v20 = vadd.f32 %v5672_v60, %v13600_v62  ;;  %6165 = vmatmul.bf16.gmra.mxu2 %v16298_v38 }
 0x9ba   :  { %16297 = vst [vmem:[#allocation71_spill] sm:$0xff] %v14038_v17 }
 0x9bb   :  { %v5761_v32 = vpop.f32.mrf.mxu1  ;;  %5987 = vmatmul.bf16.gmra.mxu0 %v16299_v55 }
 0x9bc   :  { %v5762_v0 = vadd.f32 %v5761_v32, %v5673_v20  ;;  %6254 = vmatmul.bf16.gmra.mxu3 %v16300_v51  ;;  %v5850_v22 = vpop.f32.mrf.mxu2 }
 0x9be   :  { %6076 = vmatmul.bf16.gmra.mxu1 %v16301_v18  ;;  %v5851_v27 = vadd.f32 %v5850_v22, %v5762_v0  ;;  %v16308_v18 = vld [vmem:[#allocation72_spill] sm:$0xff] }
 0x9bf   :  { %v5939_v25 = vpop.f32.mrf.mxu3 }
 0x9c0   :  { %v14045_v4 = vadd.f32 %v5939_v25, %v5851_v27  ;;  %v5674_v49 = vpop.f32.mrf.mxu0  ;;  %v16309_v25 = vld [vmem:[#allocation65_spill] sm:$0xff] }
 0x9c1   :  { %v5675_v5 = vadd.f32 %v5674_v49, %v13600_v62 }
 0x9c2   :  { %16302 = vst [vmem:[#allocation149_spill] sm:$0xff] %v14045_v4 }
 0x9c3   :  { %v5763_v56 = vpop.f32.mrf.mxu1 }
 0x9c4   :  { %v5764_v47 = vadd.f32 %v5763_v56, %v5675_v5  ;;  %v5852_v57 = vpop.f32.mrf.mxu2 }
 0x9c6   :  { %v5853_v39 = vadd.f32 %v5852_v57, %v5764_v47 }
 0x9c7   :  { %v5941_v15 = vpop.f32.mrf.mxu3 }
 0x9c8   :  { %v14048_v30 = vadd.f32 %v5941_v15, %v5853_v39  ;;  %v5677_v14 = vpop.f32.mrf.mxu0 }
 0x9c9   :  { %v5678_v52 = vadd.f32 %v5677_v14, %v13600_v62  ;;  %6170 = vmatmul.bf16.gmra.mxu2 %v13499_v37 }
 0x9ca   :  { %16303 = vst [vmem:[#allocation69_spill] sm:$0xff] %v14048_v30 }
 0x9cb   :  { %v5766_v31 = vpop.f32.mrf.mxu1  ;;  %5992 = vmatmul.bf16.gmra.mxu0 %v13501_v61 }
 0x9cc   :  { %v5767_v8 = vadd.f32 %v5766_v31, %v5678_v52  ;;  %6259 = vmatmul.bf16.gmra.mxu3 %v16304_v53  ;;  %v5855_v33 = vpop.f32.mrf.mxu2  ;;  %v16314_v53 = vld [vmem:[#allocation98_spill] sm:$0xff] }
 0x9ce   :  { %6081 = vmatmul.bf16.gmra.mxu1 %v16305_v2  ;;  %v5856_v12 = vadd.f32 %v5855_v33, %v5767_v8  ;;  %v16313_v8 = vld [vmem:[#allocation67_spill] sm:$0xff]  ;;  %v16315_v33 = vld [vmem:[#allocation120_spill] sm:$0xff]  ;;  %v8705_v2 = vld [vmem:[%s14915_s4 + $0x3] ss:$8 sm:$0x3] }
 0x9cf   :  { %v5944_v58 = vpop.f32.mrf.mxu3 }
 0x9d0   :  { %v14055_v23 = vadd.f32 %v5944_v58, %v5856_v12  ;;  %v5679_v21 = vpop.f32.mrf.mxu0 }
 0x9d1   :  { %v5680_v26 = vadd.f32 %v5679_v21, %v13600_v62 }
 0x9d2   :  { %16306 = vst [vmem:[#allocation32_spill] sm:$0xff] %v14055_v23 }
 0x9d3   :  { %v5768_v60 = vpop.f32.mrf.mxu1 }
 0x9d4   :  { %v5769_v20 = vadd.f32 %v5768_v60, %v5680_v26  ;;  %v5857_v38 = vpop.f32.mrf.mxu2 }
 0x9d6   :  { %v5858_v37 = vadd.f32 %v5857_v38, %v5769_v20 }
 0x9d7   :  { %v5946_v32 = vpop.f32.mrf.mxu3 }
 0x9d8   :  { %v14058_v55 = vadd.f32 %v5946_v32, %v5858_v37  ;;  %v5682_v61 = vpop.f32.mrf.mxu0  ;;  %v16316_v37 = vld [vmem:[#allocation109_spill] sm:$0xff] }
 0x9d9   :  { %v5683_v0 = vadd.f32 %v5682_v61, %v13600_v62  ;;  %6175 = vmatmul.bf16.gmra.mxu2 %v13561_v13 }
 0x9da   :  { %16307 = vst [vmem:[#allocation73_spill] sm:$0xff] %v14058_v55 }
 0x9db   :  { %v5771_v51 = vpop.f32.mrf.mxu1  ;;  %5997 = vmatmul.bf16.gmra.mxu0 %v13563_v1  ;;  %v16312_v1 = vld [vmem:[#allocation78_spill] sm:$0xff] }
 0x9dc   :  { %v5772_v22 = vadd.f32 %v5771_v51, %v5683_v0  ;;  %6264 = vmatmul.bf16.gmra.mxu3 %v16308_v18  ;;  %v5860_v27 = vpop.f32.mrf.mxu2  ;;  %v16317_v51 = vld [vmem:[#allocation125_spill] sm:$0xff] }
 0x9de   :  { %6086 = vmatmul.bf16.gmra.mxu1 %v16309_v25  ;;  %v5861_v49 = vadd.f32 %v5860_v27, %v5772_v22  ;;  %v16318_v25 = vld [vmem:[#allocation113_spill] sm:$0xff] }
 0x9df   :  { %v5949_v5 = vpop.f32.mrf.mxu3 }
 0x9e0   :  { %v14065_v56 = vadd.f32 %v5949_v5, %v5861_v49  ;;  %v5684_v47 = vpop.f32.mrf.mxu0  ;;  %v16319_v5 = vld [vmem:[#allocation128_spill] sm:$0xff] }
 0x9e1   :  { %v5685_v57 = vadd.f32 %v5684_v47, %v13600_v62  ;;  %v14077_v62 = vperm.slane %v8705_v2, 1 }
 0x9e2   :  { %16310 = vst [vmem:[#allocation83_spill] sm:$0xff] %v14065_v56 }
 0x9e3   :  { %v5773_v39 = vpop.f32.mrf.mxu1 }
 0x9e4   :  { %v5774_v15 = vadd.f32 %v5773_v39, %v5685_v57  ;;  %v5862_v14 = vpop.f32.mrf.mxu2 }
 0x9e6   :  { %v5863_v13 = vadd.f32 %v5862_v14, %v5774_v15 }
 0x9e7   :  { %v5951_v52 = vpop.f32.mrf.mxu3 }
 0x9e8   :  { %v14068_v31 = vadd.f32 %v5951_v52, %v5863_v13  ;;  %v5963_v12 = vpop.f32.mrf.mxu0 }
 0x9e9   :  { %6180 = vmatmul.bf16.gmra.mxu2 %v16312_v1  ;;  %v5964_v60 = vadd.f32 %v5963_v12, %v14077_v62  ;;  %v16321_v12 = vld [vmem:[#allocation49_spill] sm:$0xff] }
 0x9ea   :  { %16311 = vst [vmem:[#allocation164_spill] sm:$0xff] %v14068_v31 }
 0x9eb   :  { %6002 = vmatmul.bf16.gmra.mxu0 %v16313_v8  ;;  %v6052_v58 = vpop.f32.mrf.mxu1 }
 0x9ec   :  { %6269 = vmatmul.bf16.gmra.mxu3 %v16314_v53  ;;  %v6141_v21 = vpop.f32.mrf.mxu2  ;;  %v6053_v20 = vadd.f32 %v6052_v58, %v5964_v60  ;;  %v16322_v60 = vld [vmem:[#allocation36_spill] sm:$0xff] }
 0x9ee   :  { %6091 = vmatmul.bf16.gmra.mxu1 %v16315_v33  ;;  %v6142_v38 = vadd.f32 %v6141_v21, %v6053_v20 }
 0x9ef   :  { %v6230_v26 = vpop.f32.mrf.mxu3 }
 0x9f0   :  { %v14081_v32 = vadd.f32 %v6230_v26, %v6142_v38  ;;  %v5965_v61 = vpop.f32.mrf.mxu0  ;;  %v16323_v38 = vld [vmem:[#allocation68_spill] sm:$0xff] }
 0x9f1   :  { %v5966_v22 = vadd.f32 %v5965_v61, %v14077_v62 }
 0x9f3   :  { %v6054_v0 = vpop.f32.mrf.mxu1 }
 0x9f4   :  { %v6143_v18 = vpop.f32.mrf.mxu2  ;;  %v6055_v49 = vadd.f32 %v6054_v0, %v5966_v22 }
 0x9f6   :  { %v6144_v47 = vadd.f32 %v6143_v18, %v6055_v49 }
 0x9f7   :  { %v6232_v27 = vpop.f32.mrf.mxu3 }
 0x9f8   :  { %v14087_v57 = vadd.f32 %v6232_v27, %v6144_v47  ;;  %v5968_v39 = vpop.f32.mrf.mxu0  ;;  %v16324_v47 = vld [vmem:[#allocation76_spill] sm:$0xff] }
 0x9f9   :  { %6185 = vmatmul.bf16.gmra.mxu2 %v16316_v37  ;;  %v5969_v14 = vadd.f32 %v5968_v39, %v14077_v62 }
 0x9fa   :  { %16320 = vst [vmem:[#allocation64_spill] sm:$0xff] %v14087_v57 }
 0x9fb   :  { %6007 = vmatmul.bf16.gmra.mxu0 %v16317_v51  ;;  %v6057_v15 = vpop.f32.mrf.mxu1 }
 0x9fc   :  { %6274 = vmatmul.bf16.gmra.mxu3 %v16318_v25  ;;  %v6146_v13 = vpop.f32.mrf.mxu2  ;;  %v6058_v1 = vadd.f32 %v6057_v15, %v5969_v14  ;;  %v8662_v25 = vld [vmem:[%s14914_s3 + $0x38] sm:$0xff] }
 0x9fd   :  { %6994 = vmatpush.bf16.msrb.mxu0 %v8662_v25  ;;  %v16325_v14 = vld [vmem:[#allocation24_spill] sm:$0xff] }
 0x9fe   :  { %6096 = vmatmul.bf16.gmra.mxu1 %v16319_v5  ;;  %v6147_v8 = vadd.f32 %v6146_v13, %v6058_v1 }
 0x9ff   :  { %v6235_v52 = vpop.f32.mrf.mxu3 }
 0xa00   :  { %v14090_v53 = vadd.f32 %v6235_v52, %v6147_v8  ;;  %v5970_v33 = vpop.f32.mrf.mxu0  ;;  %v16326_v8 = vld [vmem:[#allocation11_spill] sm:$0xff] }
 0xa01   :  { %v5971_v58 = vadd.f32 %v5970_v33, %v14077_v62 }
 0xa03   :  { %v6059_v2 = vpop.f32.mrf.mxu1 }
 0xa04   :  { %v6148_v21 = vpop.f32.mrf.mxu2  ;;  %v6060_v20 = vadd.f32 %v6059_v2, %v5971_v58  ;;  %v16327_v2 = vld [vmem:[#allocation7_spill] sm:$0xff] }
 0xa06   :  { %v6149_v37 = vadd.f32 %v6148_v21, %v6060_v20 }
 0xa07   :  { %v6237_v26 = vpop.f32.mrf.mxu3 }
 0xa08   :  { %v14097_v61 = vadd.f32 %v6237_v26, %v6149_v37  ;;  %v5973_v0 = vpop.f32.mrf.mxu0 }
 0xa09   :  { %6190 = vmatmul.bf16.gmra.mxu2 %v13716_v16  ;;  %v5974_v16 = vadd.f32 %v5973_v0, %v14077_v62 }
 0xa0b   :  { %6012 = vmatmul.bf16.gmra.mxu0 %v16321_v12  ;;  %v6062_v51 = vpop.f32.mrf.mxu1  ;;  %v8670_v12 = vld [vmem:[%s14914_s3 + $0x78] sm:$0xff] }
 0xa0c   :  { %6279 = vmatmul.bf16.gmra.mxu3 %v16322_v60  ;;  %v6151_v22 = vpop.f32.mrf.mxu2  ;;  %v6063_v27 = vadd.f32 %v6062_v51, %v5974_v16  ;;  %7083 = vmatpush.bf16.msrb.mxu1 %v8670_v12 }
 0xa0e   :  { %6101 = vmatmul.bf16.gmra.mxu1 %v16323_v38  ;;  %v6152_v49 = vadd.f32 %v6151_v22, %v6063_v27 }
 0xa0f   :  { %v6240_v18 = vpop.f32.mrf.mxu3 }
 0xa10   :  { %v14103_v5 = vadd.f32 %v6240_v18, %v6152_v49  ;;  %v5975_v39 = vpop.f32.mrf.mxu0 }
 0xa11   :  { %v5976_v13 = vadd.f32 %v5975_v39, %v14077_v62 }
 0xa13   :  { %v6064_v15 = vpop.f32.mrf.mxu1 }
 0xa14   :  { %v6153_v52 = vpop.f32.mrf.mxu2  ;;  %v6065_v33 = vadd.f32 %v6064_v15, %v5976_v13  ;;  %v16329_v15 = vld [vmem:[#allocation87_spill] sm:$0xff] }
 0xa16   :  { %v6154_v58 = vadd.f32 %v6153_v52, %v6065_v33 }
 0xa17   :  { %v6242_v1 = vpop.f32.mrf.mxu3 }
 0xa18   :  { %v14113_v21 = vadd.f32 %v6242_v1, %v6154_v58  ;;  %v5978_v26 = vpop.f32.mrf.mxu0 }
 0xa19   :  { %6195 = vmatmul.bf16.gmra.mxu2 %v16324_v47  ;;  %v5979_v20 = vadd.f32 %v5978_v26, %v14077_v62  ;;  %v16328_v47 = vld [vmem:[#allocation55_spill] sm:$0xff] }
 0xa1b   :  { %6017 = vmatmul.bf16.gmra.mxu0 %v16325_v14  ;;  %v6067_v60 = vpop.f32.mrf.mxu1 }
 0xa1c   :  { %6284 = vmatmul.bf16.gmra.mxu3 %v16326_v8  ;;  %v6156_v38 = vpop.f32.mrf.mxu2  ;;  %v6068_v0 = vadd.f32 %v6067_v60, %v5979_v20  ;;  %v16331_v20 = vld [vmem:[#allocation53_spill] sm:$0xff] }
 0xa1e   :  { %6106 = vmatmul.bf16.gmra.mxu1 %v16327_v2  ;;  %v6157_v51 = vadd.f32 %v6156_v38, %v6068_v0 }
 0xa1f   :  { %v6245_v37 = vpop.f32.mrf.mxu3 }
 0xa20   :  { %v14116_v16 = vadd.f32 %v6245_v37, %v6157_v51  ;;  %v5980_v22 = vpop.f32.mrf.mxu0  ;;  %v16332_v51 = vld [vmem:[#allocation90_spill] sm:$0xff] }
 0xa21   :  { %v5981_v27 = vadd.f32 %v5980_v22, %v14077_v62 }
 0xa23   :  { %v6069_v18 = vpop.f32.mrf.mxu1 }
 0xa24   :  { %v6158_v25 = vpop.f32.mrf.mxu2  ;;  %v6070_v39 = vadd.f32 %v6069_v18, %v5981_v27  ;;  %v16333_v18 = vld [vmem:[#allocation80_spill] sm:$0xff]  ;;  %v8669_v27 = vld [vmem:[%s14914_s3 + $0x70] sm:$0xff] }
 0xa25   :  { %7084 = vmatpush.bf16.msrb.mxu1 %v8669_v27 }
 0xa26   :  { %v6159_v14 = vadd.f32 %v6158_v25, %v6070_v39 }
 0xa27   :  { %v6247_v49 = vpop.f32.mrf.mxu3 }
 0xa28   :  { %v14123_v13 = vadd.f32 %v6247_v49, %v6159_v14  ;;  %v5983_v52 = vpop.f32.mrf.mxu0 }
 0xa29   :  { %6200 = vmatmul.bf16.gmra.mxu2 %v13828_v41  ;;  %v5984_v41 = vadd.f32 %v5983_v52, %v14077_v62 }
 0xa2a   :  { %16330 = vst [vmem:[#allocation77_spill] sm:$0xff] %v14123_v13 }
 0xa2b   :  { %6022 = vmatmul.bf16.gmra.mxu0 %v13834_v29  ;;  %v6072_v1 = vpop.f32.mrf.mxu1  ;;  %v8661_v29 = vld [vmem:[%s14914_s3 + $0x30] sm:$0xff] }
 0xa2c   :  { %6289 = vmatmul.bf16.gmra.mxu3 %v16328_v47  ;;  %v6161_v8 = vpop.f32.mrf.mxu2  ;;  %v6073_v2 = vadd.f32 %v6072_v1, %v5984_v41  ;;  %6995 = vmatpush.bf16.msrb.mxu0 %v8661_v29 }
 0xa2e   :  { %6111 = vmatmul.bf16.gmra.mxu1 %v16329_v15  ;;  %v6162_v12 = vadd.f32 %v6161_v8, %v6073_v2 }
 0xa2f   :  { %v6250_v33 = vpop.f32.mrf.mxu3 }
 0xa30   :  { %v14129_v58 = vadd.f32 %v6250_v33, %v6162_v12  ;;  %v5985_v26 = vpop.f32.mrf.mxu0 }
 0xa31   :  { %v5986_v38 = vadd.f32 %v5985_v26, %v14077_v62 }
 0xa33   :  { %v6074_v60 = vpop.f32.mrf.mxu1 }
 0xa34   :  { %v6163_v37 = vpop.f32.mrf.mxu2  ;;  %v6075_v22 = vadd.f32 %v6074_v60, %v5986_v38 }
 0xa36   :  { %v6164_v25 = vadd.f32 %v6163_v37, %v6075_v22 }
 0xa37   :  { %v6252_v0 = vpop.f32.mrf.mxu3 }
 0xa38   :  { %v5988_v49 = vpop.f32.mrf.mxu0 }
 0xa39   :  { %6205 = vmatmul.bf16.gmra.mxu2 %v13896_v35  ;;  %v14139_v35 = vadd.f32 %v6252_v0, %v6164_v25  ;;  %v5989_v39 = vadd.f32 %v5988_v49, %v14077_v62 }
 0xa3b   :  { %6027 = vmatmul.bf16.gmra.mxu0 %v16331_v20  ;;  %v6077_v47 = vpop.f32.mrf.mxu1 }
 0xa3c   :  { %6294 = vmatmul.bf16.gmra.mxu3 %v16332_v51  ;;  %v6166_v15 = vpop.f32.mrf.mxu2  ;;  %v6078_v52 = vadd.f32 %v6077_v47, %v5989_v39 }
 0xa3e   :  { %6116 = vmatmul.bf16.gmra.mxu1 %v16333_v18  ;;  %v6167_v1 = vadd.f32 %v6166_v15, %v6078_v52  ;;  %v8668_v15 = vld [vmem:[%s14914_s3 + $0x68] sm:$0xff] }
 0xa3f   :  { %v6255_v14 = vpop.f32.mrf.mxu3  ;;  %7085 = vmatpush.bf16.msrb.mxu1 %v8668_v15 }
 0xa40   :  { %v14142_v41 = vadd.f32 %v6255_v14, %v6167_v1  ;;  %v5990_v8 = vpop.f32.mrf.mxu0 }
 0xa41   :  { %v5991_v2 = vadd.f32 %v5990_v8, %v14077_v62 }
 0xa43   :  { %v6079_v33 = vpop.f32.mrf.mxu1 }
 0xa44   :  { %v6168_v29 = vpop.f32.mrf.mxu2  ;;  %v6080_v26 = vadd.f32 %v6079_v33, %v5991_v2 }
 0xa46   :  { %v6169_v60 = vadd.f32 %v6168_v29, %v6080_v26 }
 0xa47   :  { %v6257_v12 = vpop.f32.mrf.mxu3 }
 0xa48   :  { %v14149_v20 = vadd.f32 %v6257_v12, %v6169_v60  ;;  %v5993_v38 = vpop.f32.mrf.mxu0 }
 0xa49   :  { %6210 = vmatmul.bf16.gmra.mxu2 %v13938_v46  ;;  %v5994_v46 = vadd.f32 %v5993_v38, %v14077_v62 }
 0xa4b   :  { %6032 = vmatmul.bf16.gmra.mxu0 %v13941_v7  ;;  %v6082_v37 = vpop.f32.mrf.mxu1  ;;  %v8660_v7 = vld [vmem:[%s14914_s3 + $0x28] sm:$0xff] }
 0xa4c   :  { %6299 = vmatmul.bf16.gmra.mxu3 %v13948_v48  ;;  %v6171_v0 = vpop.f32.mrf.mxu2  ;;  %v6083_v22 = vadd.f32 %v6082_v37, %v5994_v46  ;;  %6996 = vmatpush.bf16.msrb.mxu0 %v8660_v7 }
 0xa4e   :  { %6121 = vmatmul.bf16.gmra.mxu1 %v13956_v45  ;;  %v6172_v18 = vadd.f32 %v6171_v0, %v6083_v22 }
 0xa4f   :  { %v6260_v51 = vpop.f32.mrf.mxu3 }
 0xa50   :  { %v14155_v48 = vadd.f32 %v6260_v51, %v6172_v18  ;;  %v5995_v45 = vpop.f32.mrf.mxu0 }
 0xa51   :  { %v5996_v25 = vadd.f32 %v5995_v45, %v14077_v62 }
 0xa53   :  { %v6084_v27 = vpop.f32.mrf.mxu1 }
 0xa54   :  { %v6173_v49 = vpop.f32.mrf.mxu2  ;;  %v6085_v39 = vadd.f32 %v6084_v27, %v5996_v25  ;;  %v8659_v25 = vld [vmem:[%s14914_s3 + $0x20] sm:$0xff] }
 0xa55   :  { %6997 = vmatpush.bf16.msrb.mxu0 %v8659_v25 }
 0xa56   :  { %v6174_v14 = vadd.f32 %v6173_v49, %v6085_v39 }
 0xa57   :  { %v6262_v47 = vpop.f32.mrf.mxu3 }
 0xa58   :  { %v5998_v52 = vpop.f32.mrf.mxu0 }
 0xa59   :  { %6215 = vmatmul.bf16.gmra.mxu2 %v13974_v10  ;;  %v14165_v10 = vadd.f32 %v6262_v47, %v6174_v14 }
 0xa5b   :  { %6037 = vmatmul.bf16.gmra.mxu0 %v13977_v6  ;;  %v6087_v1 = vpop.f32.mrf.mxu1  ;;  %v5999_v6 = vadd.f32 %v5998_v52, %v14077_v62 }
 0xa5c   :  { %6304 = vmatmul.bf16.gmra.mxu3 %v13503_v43  ;;  %v6176_v8 = vpop.f32.mrf.mxu2 }
 0xa5d   :  { %v6088_v2 = vadd.f32 %v6087_v1, %v5999_v6 }
 0xa5e   :  { %6126 = vmatmul.bf16.gmra.mxu1 %v13981_v42 }
 0xa5f   :  { %v6265_v33 = vpop.f32.mrf.mxu3  ;;  %v6177_v29 = vadd.f32 %v6176_v8, %v6088_v2  ;;  %v8667_v8 = vld [vmem:[%s14914_s3 + $0x60] sm:$0xff] }
 0xa60   :  { %v6000_v12 = vpop.f32.mrf.mxu0  ;;  %7086 = vmatpush.bf16.msrb.mxu1 %v8667_v8  ;;  %v16336_v8 = vld [vmem:[#allocation51_spill] sm:$0xff] }
 0xa61   :  { %v14168_v43 = vadd.f32 %v6265_v33, %v6177_v29  ;;  %v6001_v26 = vadd.f32 %v6000_v12, %v14077_v62 }
 0xa63   :  { %v6089_v42 = vpop.f32.mrf.mxu1 }
 0xa64   :  { %v6178_v60 = vpop.f32.mrf.mxu2  ;;  %v6090_v37 = vadd.f32 %v6089_v42, %v6001_v26 }
 0xa66   :  { %v6179_v46 = vadd.f32 %v6178_v60, %v6090_v37 }
 0xa67   :  { %v6267_v38 = vpop.f32.mrf.mxu3 }
 0xa68   :  { %v14171_v0 = vadd.f32 %v6267_v38, %v6179_v46  ;;  %v6003_v51 = vpop.f32.mrf.mxu0 }
 0xa69   :  { %v6004_v7 = vadd.f32 %v6003_v51, %v14077_v62 }
 0xa6b   :  { %v6092_v22 = vpop.f32.mrf.mxu1 }
 0xa6c   :  { %v6181_v18 = vpop.f32.mrf.mxu2  ;;  %v6093_v27 = vadd.f32 %v6092_v22, %v6004_v7 }
 0xa6e   :  { %v6182_v49 = vadd.f32 %v6181_v18, %v6093_v27 }
 0xa6f   :  { %v6270_v45 = vpop.f32.mrf.mxu3 }
 0xa70   :  { %v14177_v47 = vadd.f32 %v6270_v45, %v6182_v49  ;;  %v6005_v39 = vpop.f32.mrf.mxu0  ;;  %v16334_v49 = vld [vmem:[#allocation104_spill] sm:$0xff] }
 0xa71   :  { %v6006_v14 = vadd.f32 %v6005_v39, %v14077_v62  ;;  %v16335_v39 = vld [vmem:[#allocation122_spill] sm:$0xff] }
 0xa73   :  { %v6094_v15 = vpop.f32.mrf.mxu1 }
 0xa74   :  { %v6183_v52 = vpop.f32.mrf.mxu2  ;;  %v6095_v6 = vadd.f32 %v6094_v15, %v6006_v14  ;;  %v6310_v15 = vadd.f32 %v16335_v39, %v16334_v49 }
 0xa76   :  { %v6184_v33 = vadd.f32 %v6183_v52, %v6095_v6  ;;  %v6388_v52 = vmul.f32 %v16335_v39, %v16335_v39 }
 0xa77   :  { %v6272_v1 = vpop.f32.mrf.mxu3 }
 0xa78   :  { %v14183_v2 = vadd.f32 %v6272_v1, %v6184_v33  ;;  %v6008_v29 = vpop.f32.mrf.mxu0  ;;  %v6311_v33 = vadd.f32 %v6310_v15, %v16336_v8 }
 0xa79   :  { %v6009_v42 = vadd.f32 %v6008_v29, %v14077_v62 }
 0xa7b   :  { %v6097_v12 = vpop.f32.mrf.mxu1 }
 0xa7c   :  { %v6186_v26 = vpop.f32.mrf.mxu2  ;;  %v6098_v38 = vadd.f32 %v6097_v12, %v6009_v42 }
 0xa7e   :  { %v6187_v37 = vadd.f32 %v6186_v26, %v6098_v38  ;;  %v6386_v26 = vmul.f32 %v16334_v49, %v16334_v49  ;;  %v16337_v38 = vld [vmem:[#allocation21_spill] sm:$0xff] }
 0xa7f   :  { %v6275_v60 = vpop.f32.mrf.mxu3 }
 0xa80   :  { %v14186_v46 = vadd.f32 %v6275_v60, %v6187_v37  ;;  %v6010_v51 = vpop.f32.mrf.mxu0  ;;  %v6390_v60 = vmul.f32 %v16336_v8, %v16336_v8  ;;  %v6312_v37 = vadd.f32 %v6311_v33, %v16337_v38  ;;  %v16339_v8 = vld [vmem:[#allocation25_spill] sm:$0xff] }
 0xa81   :  { %v6011_v7 = vadd.f32 %v6010_v51, %v14077_v62 }
 0xa83   :  { %v6099_v22 = vpop.f32.mrf.mxu1 }
 0xa84   :  { %v6188_v18 = vpop.f32.mrf.mxu2  ;;  %v6100_v27 = vadd.f32 %v6099_v22, %v6011_v7  ;;  %v8658_v22 = vld [vmem:[%s14914_s3 + $0x18] sm:$0xff]  ;;  %v6450_v7 = vadd.f32 %v6388_v52, %v6386_v26 }
 0xa85   :  { %6998 = vmatpush.bf16.msrb.mxu0 %v8658_v22 }
 0xa86   :  { %v6189_v25 = vadd.f32 %v6188_v18, %v6100_v27  ;;  %v6392_v18 = vmul.f32 %v16337_v38, %v16337_v38  ;;  %v6451_v15 = vadd.f32 %v6450_v7, %v6390_v60  ;;  %v16341_v38 = vld [vmem:[#allocation82_spill] sm:$0xff] }
 0xa87   :  { %v6277_v45 = vpop.f32.mrf.mxu3  ;;  %v6398_v22 = vmul.f32 %v16341_v38, %v16341_v38 }
 0xa88   :  { %v14191_v14 = vadd.f32 %v6277_v45, %v6189_v25  ;;  %v6013_v1 = vpop.f32.mrf.mxu0  ;;  %v16338_v45 = vld [vmem:[#allocation50_spill] sm:$0xff] }
 0xa89   :  { %v6014_v29 = vadd.f32 %v6013_v1, %v14077_v62  ;;  %v6313_v27 = vadd.f32 %v6312_v37, %v16338_v45  ;;  %v6394_v1 = vmul.f32 %v16338_v45, %v16338_v45 }
 0xa8b   :  { %v6102_v6 = vpop.f32.mrf.mxu1  ;;  %v6314_v39 = vadd.f32 %v6313_v27, %v16339_v8 }
 0xa8c   :  { %v6191_v12 = vpop.f32.mrf.mxu2  ;;  %v6103_v51 = vadd.f32 %v6102_v6, %v6014_v29  ;;  %v6452_v6 = vadd.f32 %v6451_v15, %v6392_v18  ;;  %v6396_v29 = vmul.f32 %v16339_v8, %v16339_v8  ;;  %v8666_v18 = vld [vmem:[%s14914_s3 + $0x58] sm:$0xff]  ;;  %v16344_v15 = vld [vmem:[#allocation70_spill] sm:$0xff] }
 0xa8d   :  { %v6315_v37 = vadd.f32 %v6314_v39, %v16341_v38  ;;  %7087 = vmatpush.bf16.msrb.mxu1 %v8666_v18 }
 0xa8e   :  { %v6192_v25 = vadd.f32 %v6191_v12, %v6103_v51  ;;  %v6453_v51 = vadd.f32 %v6452_v6, %v6394_v1  ;;  %v6402_v1 = vmul.f32 %v16344_v15, %v16344_v15  ;;  %v16345_v6 = vld [vmem:[#allocation15_spill] sm:$0xff] }
 0xa8f   :  { %v6280_v42 = vpop.f32.mrf.mxu3 }
 0xa90   :  { %v14211_v33 = vadd.f32 %v6280_v42, %v6192_v25  ;;  %v14215_v52 = vpop.f32.mrf.mxu0  ;;  %v16343_v42 = vld [vmem:[#allocation74_spill] sm:$0xff]  ;;  %v6454_v27 = vadd.f32 %v6453_v51, %v6396_v29  ;;  %v16346_v29 = vld [vmem:[#allocation92_spill] sm:$0xff] }
 0xa91   :  { %v6316_v7 = vadd.f32 %v6315_v37, %v16343_v42  ;;  %v6400_v25 = vmul.f32 %v16343_v42, %v16343_v42  ;;  %v6404_v37 = vmul.f32 %v16345_v6, %v16345_v6  ;;  %v6406_v18 = vmul.f32 %v16346_v29, %v16346_v29 }
 0xa92   :  { %16340 = vst [vmem:[#allocation165_spill] sm:$0xff] %v14211_v33  ;;  %v6455_v8 = vadd.f32 %v6454_v27, %v6398_v22 }
 0xa93   :  { %v14217_v26 = vpop.f32.mrf.mxu1  ;;  %v6317_v39 = vadd.f32 %v6316_v7, %v16344_v15 }
 0xa94   :  { %v14220_v12 = vpop.f32.mrf.mxu2  ;;  %v6456_v38 = vadd.f32 %v6455_v8, %v6400_v25  ;;  %v6408_v25 = vmul.f32 %v13936_v19, %v13936_v19 }
 0xa95   :  { %v6318_v45 = vadd.f32 %v6317_v39, %v16345_v6 }
 0xa96   :  { %v6457_v22 = vadd.f32 %v6456_v38, %v6402_v1  ;;  %v6412_v38 = vmul.f32 %v13972_v36, %v13972_v36 }
 0xa97   :  { %v14222_v60 = vpop.f32.mrf.mxu3  ;;  %v6319_v51 = vadd.f32 %v6318_v45, %v16346_v29  ;;  %v6410_v45 = vmul.f32 %v13968_v3, %v13968_v3 }
 0xa98   :  { %16342 = vst [vmem:[#allocation166_spill] sm:$0xff] %v14222_v60  ;;  %v14238_v49 = vpop.f32.mrf.mxu0  ;;  %v6458_v8 = vadd.f32 %v6457_v22, %v6404_v37 }
 0xa99   :  { %v6320_v27 = vadd.f32 %v6319_v51, %v13936_v19 }
 0xa9a   :  { %v6459_v6 = vadd.f32 %v6458_v8, %v6406_v18 }
 0xa9b   :  { %v14240_v33 = vpop.f32.mrf.mxu1  ;;  %v6321_v39 = vadd.f32 %v6320_v27, %v13968_v3  ;;  %v6414_v27 = vmul.f32 %v13985_v59, %v13985_v59 }
 0xa9c   :  { %v14243_v42 = vpop.f32.mrf.mxu2  ;;  %v6460_v60 = vadd.f32 %v6459_v6, %v6408_v25  ;;  %v6416_v25 = vmul.f32 %v13988_v11, %v13988_v11 }
 0xa9d   :  { %v6322_v15 = vadd.f32 %v6321_v39, %v13972_v36 }
 0xa9e   :  { %v6461_v18 = vadd.f32 %v6460_v60, %v6410_v45  ;;  %v6420_v60 = vmul.f32 %v13998_v9, %v13998_v9 }
 0xa9f   :  { %v14245_v7 = vpop.f32.mrf.mxu3  ;;  %v6323_v37 = vadd.f32 %v6322_v15, %v13985_v59  ;;  %v6418_v15 = vmul.f32 %v13995_v28, %v13995_v28 }
 0xaa0   :  { %v14258_v1 = vpop.f32.mrf.mxu0  ;;  %v6462_v6 = vadd.f32 %v6461_v18, %v6412_v38 }
 0xaa1   :  { %v6324_v8 = vadd.f32 %v6323_v37, %v13988_v11  ;;  %v6389_v37 = vmul.f32 %v14087_v57, %v14087_v57 }
 0xaa2   :  { %v6463_v36 = vadd.f32 %v6462_v6, %v6414_v27 }
 0xaa3   :  { %v14260_v29 = vpop.f32.mrf.mxu1  ;;  %v6325_v39 = vadd.f32 %v6324_v8, %v13995_v28  ;;  %v6424_v28 = vmul.f32 %v14008_v54, %v14008_v54 }
 0xaa4   :  { %v14263_v51 = vpop.f32.mrf.mxu2  ;;  %v6464_v19 = vadd.f32 %v6463_v36, %v6416_v25  ;;  %v6422_v36 = vmul.f32 %v14005_v63, %v14005_v63  ;;  %v6387_v25 = vmul.f32 %v14081_v32, %v14081_v32 }
 0xaa5   :  { %v6326_v3 = vadd.f32 %v6325_v39, %v13998_v9  ;;  %v6391_v39 = vmul.f32 %v14090_v53, %v14090_v53 }
 0xaa6   :  { %v6465_v8 = vadd.f32 %v6464_v19, %v6418_v15  ;;  %v6347_v15 = vadd.f32 %v14087_v57, %v14081_v32 }
 0xaa7   :  { %v14265_v22 = vpop.f32.mrf.mxu3  ;;  %v6327_v38 = vadd.f32 %v6326_v3, %v14005_v63  ;;  %v8657_v3 = vld [vmem:[%s14914_s3 + $0x10] sm:$0xff]  ;;  %v6393_v63 = vmul.f32 %v14097_v61, %v14097_v61 }
 0xaa8   :  { %16347 = vst [vmem:[#allocation79_spill] sm:$0xff] %v14265_v22  ;;  %v14278_v45 = vpop.f32.mrf.mxu0  ;;  %v6466_v9 = vadd.f32 %v6465_v8, %v6420_v60  ;;  %6999 = vmatpush.bf16.msrb.mxu0 %v8657_v3  ;;  %v6348_v60 = vadd.f32 %v6347_v15, %v14090_v53 }
 0xaa9   :  { %v6328_v6 = vadd.f32 %v6327_v38, %v14008_v54  ;;  %v6487_v38 = vadd.f32 %v6389_v37, %v6387_v25  ;;  %v6428_v37 = vmul.f32 %v14018_v24, %v14018_v24 }
 0xaaa   :  { %v6467_v11 = vadd.f32 %v6466_v9, %v6422_v36  ;;  %v6349_v36 = vadd.f32 %v6348_v60, %v14097_v61 }
 0xaab   :  { %v14280_v59 = vpop.f32.mrf.mxu1  ;;  %v6329_v19 = vadd.f32 %v6328_v6, %v14015_v34  ;;  %v6488_v8 = vadd.f32 %v6487_v38, %v6391_v39  ;;  %v6395_v6 = vmul.f32 %v14103_v5, %v14103_v5 }
 0xaac   :  { %v14285_v18 = vpop.f32.mrf.mxu2  ;;  %v6468_v54 = vadd.f32 %v6467_v11, %v6424_v28  ;;  %v6430_v28 = vmul.f32 %v14025_v44, %v14025_v44 }
 0xaad   :  { %v6330_v22 = vadd.f32 %v6329_v19, %v14018_v24  ;;  %v6489_v3 = vadd.f32 %v6488_v8, %v6393_v63  ;;  %v6397_v19 = vmul.f32 %v14113_v21, %v14113_v21  ;;  %v6350_v24 = vadd.f32 %v6349_v36, %v14103_v5  ;;  %v8665_v63 = vld [vmem:[%s14914_s3 + $0x50] sm:$0xff] }
 0xaae   :  { %v6432_v8 = vmul.f32 %v14028_v50, %v14028_v50  ;;  %7088 = vmatpush.bf16.msrb.mxu1 %v8665_v63  ;;  %v6434_v36 = vmul.f32 %v14035_v40, %v14035_v40 }
 0xaaf   :  { %v14287_v27 = vpop.f32.mrf.mxu3  ;;  %v6331_v9 = vadd.f32 %v6330_v22, %v14025_v44  ;;  %v6399_v22 = vmul.f32 %v14116_v16, %v14116_v16 }
 0xab0   :  { %16348 = vst [vmem:[#allocation81_spill] sm:$0xff] %v14287_v27  ;;  %v6426_v27 = vmul.f32 %v14015_v34, %v14015_v34  ;;  %v14314_v25 = vpop.f32.mrf.mxu0  ;;  %v6490_v34 = vadd.f32 %v6489_v3, %v6395_v6 }
 0xab1   :  { %v6332_v38 = vadd.f32 %v6331_v9, %v14028_v50  ;;  %v6401_v9 = vmul.f32 %v14123_v13, %v14123_v13  ;;  %v6403_v50 = vmul.f32 %v14129_v58, %v14129_v58 }
 0xab2   :  { %v6469_v11 = vadd.f32 %v6468_v54, %v6426_v27  ;;  %v6351_v27 = vadd.f32 %v6350_v24, %v14113_v21  ;;  %v6491_v44 = vadd.f32 %v6490_v34, %v6397_v19  ;;  %v6436_v34 = vmul.f32 %v14038_v17, %v14038_v17 }
 0xab3   :  { %v14316_v57 = vpop.f32.mrf.mxu1  ;;  %v6333_v54 = vadd.f32 %v6332_v38, %v14035_v40 }
 0xab4   :  { %v14322_v39 = vpop.f32.mrf.mxu2  ;;  %v6470_v60 = vadd.f32 %v6469_v11, %v6428_v37  ;;  %v6352_v37 = vadd.f32 %v6351_v27, %v14116_v16  ;;  %v6492_v11 = vadd.f32 %v6491_v44, %v6399_v22  ;;  %v6438_v27 = vmul.f32 %v14045_v4, %v14045_v4 }
 0xab5   :  { %v6334_v3 = vadd.f32 %v6333_v54, %v14038_v17  ;;  %v6405_v54 = vmul.f32 %v14139_v35, %v14139_v35 }
 0xab6   :  { %v6471_v6 = vadd.f32 %v6470_v60, %v6430_v28  ;;  %v6353_v63 = vadd.f32 %v6352_v37, %v14123_v13  ;;  %v6493_v60 = vadd.f32 %v6492_v11, %v6401_v9  ;;  %v6440_v37 = vmul.f32 %v14048_v30, %v14048_v30 }
 0xab7   :  { %v14324_v15 = vpop.f32.mrf.mxu3  ;;  %v6335_v28 = vadd.f32 %v6334_v3, %v14045_v4  ;;  %v6407_v3 = vmul.f32 %v14142_v41, %v14142_v41 }
 0xab8   :  { %v6472_v38 = vadd.f32 %v6471_v6, %v6432_v8  ;;  %v14349_v24 = vpop.f32.mrf.mxu0  ;;  %v6354_v17 = vadd.f32 %v6353_v63, %v14129_v58  ;;  %v6494_v40 = vadd.f32 %v6493_v60, %v6403_v50  ;;  %v6411_v60 = vmul.f32 %v14155_v48, %v14155_v48 }
 0xab9   :  { %v6336_v6 = vadd.f32 %v6335_v28, %v14048_v30  ;;  %v6442_v28 = vmul.f32 %v14055_v23, %v14055_v23 }
 0xaba   :  { %v6473_v8 = vadd.f32 %v6472_v38, %v6434_v36  ;;  %v6355_v13 = vadd.f32 %v6354_v17, %v14139_v35  ;;  %v6495_v36 = vadd.f32 %v6494_v40, %v6405_v54  ;;  %v6409_v38 = vmul.f32 %v14149_v20, %v14149_v20 }
 0xabb   :  { %v14351_v19 = vpop.f32.mrf.mxu1  ;;  %v6337_v11 = vadd.f32 %v6336_v6, %v14055_v23  ;;  %v6444_v17 = vmul.f32 %v14058_v55, %v14058_v55 }
 0xabc   :  { %v14357_v44 = vpop.f32.mrf.mxu2  ;;  %v6474_v9 = vadd.f32 %v6473_v8, %v6436_v34  ;;  %v6356_v63 = vadd.f32 %v6355_v13, %v14142_v41  ;;  %v6496_v34 = vadd.f32 %v6495_v36, %v6407_v3  ;;  %v6413_v13 = vmul.f32 %v14165_v10, %v14165_v10 }
 0xabd   :  { %v6338_v50 = vadd.f32 %v6337_v11, %v14058_v55 }
 0xabe   :  { %v6475_v4 = vadd.f32 %v6474_v9, %v6438_v27  ;;  %v6357_v6 = vadd.f32 %v6356_v63, %v14149_v20  ;;  %v6497_v9 = vadd.f32 %v6496_v34, %v6409_v38  ;;  %v6016_v63 = vadd.f32 %v14215_v52, %v14077_v62 }
 0xabf   :  { %v14359_v22 = vpop.f32.mrf.mxu3  ;;  %v6339_v27 = vadd.f32 %v6338_v50, %v14065_v56  ;;  %v6415_v50 = vmul.f32 %v14168_v43, %v14168_v43  ;;  %v6448_v34 = vmul.f32 %v14068_v31, %v14068_v31  ;;  %v6419_v52 = vmul.f32 %v14177_v47, %v14177_v47 }
 0xac0   :  { %v6476_v8 = vadd.f32 %v6475_v4, %v6440_v37  ;;  %v14381_v40 = vpop.f32.mrf.mxu0  ;;  %v6446_v37 = vmul.f32 %v14065_v56, %v14065_v56  ;;  %v6358_v55 = vadd.f32 %v6357_v6, %v14155_v48  ;;  %v6498_v23 = vadd.f32 %v6497_v9, %v6411_v60 }
 0xac1   :  { %v6340_v36 = vadd.f32 %v6339_v27, %v14068_v31  ;;  %v6417_v56 = vmul.f32 %v14171_v0, %v14171_v0  ;;  %v6019_v60 = vadd.f32 %v14238_v49, %v14077_v62  ;;  %v6421_v49 = vmul.f32 %v14183_v2, %v14183_v2 }
 0xac2   :  { %v6477_v4 = vadd.f32 %v6476_v8, %v6442_v28  ;;  %v6359_v28 = vadd.f32 %v6358_v55, %v14165_v10  ;;  %v6499_v8 = vadd.f32 %v6498_v23, %v6413_v13  ;;  %v6021_v55 = vadd.f32 %v14258_v1, %v14077_v62 }
 0xac3   :  { %v14383_v54 = vpop.f32.mrf.mxu1  ;;  %v6341_v6 = vrot.slane %v6340_v36, 4 }
 0xac4   :  { %v14389_v3 = vpop.f32.mrf.mxu2  ;;  %v6478_v38 = vadd.f32 %v6477_v4, %v6444_v17  ;;  %v6360_v9 = vadd.f32 %v6359_v28, %v14168_v43  ;;  %v6500_v17 = vadd.f32 %v6499_v8, %v6415_v50  ;;  %v6105_v4 = vadd.f32 %v14217_v26, %v6016_v63 }
 0xac5   :  { %v6108_v8 = vadd.f32 %v14240_v33, %v6019_v60  ;;  %v6024_v26 = vadd.f32 %v14278_v45, %v14077_v62  ;;  %v6342_v1 = vadd.f32 %v6341_v6, %v6340_v36  ;;  %v6425_v45 = vmul.f32 %v14191_v14, %v14191_v14  ;;  %v16349_v36 = vld [vmem:[#allocation166_spill] sm:$0xff] }
 0xac6   :  { %v6479_v27 = vadd.f32 %v6478_v38, %v6446_v37  ;;  %v6361_v37 = vadd.f32 %v6360_v9, %v14171_v0  ;;  %v6501_v38 = vadd.f32 %v6500_v17, %v6417_v56  ;;  %v6194_v50 = vadd.f32 %v14220_v12, %v6105_v4 }
 0xac7   :  { %v14391_v11 = vpop.f32.mrf.mxu3  ;;  %v6423_v56 = vmul.f32 %v14186_v46, %v14186_v46  ;;  %v6110_v9 = vadd.f32 %v14260_v29, %v6021_v55  ;;  %v6026_v17 = vadd.f32 %v14314_v25, %v14077_v62  ;;  %v6113_v4 = vadd.f32 %v14280_v59, %v6024_v26 }
 0xac8   :  { %v6033_v23 = vpop.f32.mrf.mxu0  ;;  %v6480_v31 = vadd.f32 %v6479_v27, %v6448_v34  ;;  %v6362_v63 = vadd.f32 %v6361_v37, %v14177_v47  ;;  %v6502_v34 = vadd.f32 %v6501_v38, %v6419_v52  ;;  %v6197_v27 = vadd.f32 %v14243_v42, %v6108_v8  ;;  %v16350_v37 = vld [vmem:[#allocation165_spill] sm:$0xff] }
 0xac9   :  { %v14434_v6 = vadd.f32 %v16349_v36, %v6194_v50  ;;  %v6199_v52 = vadd.f32 %v14263_v51, %v6110_v9  ;;  %v6029_v42 = vadd.f32 %v14349_v24, %v14077_v62  ;;  %v6343_v29 = vrot.slane %v6342_v1, 2 }
 0xaca   :  { %v6481_v12 = vrot.slane %v6480_v31, 4  ;;  %v6363_v33 = vadd.f32 %v6362_v63, %v14183_v2  ;;  %v6503_v60 = vadd.f32 %v6502_v34, %v6421_v49  ;;  %v6427_v38 = vmul.f32 %v16350_v37, %v16350_v37 }
 0xacb   :  { %v6122_v13 = vpop.f32.mrf.mxu1  ;;  %v14444_v49 = vadd.f32 %v14245_v7, %v6197_v27  ;;  %v6202_v50 = vadd.f32 %v14285_v18, %v6113_v4  ;;  %v6115_v8 = vadd.f32 %v14316_v57, %v6026_v17  ;;  %v6031_v34 = vadd.f32 %v14381_v40, %v14077_v62 }
 0xacc   :  { %v6211_v30 = vpop.f32.mrf.mxu2  ;;  %v6364_v25 = vadd.f32 %v6363_v33, %v14186_v46  ;;  %v6504_v55 = vadd.f32 %v6503_v60, %v6423_v56  ;;  %v6482_v59 = vadd.f32 %v6481_v12, %v6480_v31  ;;  %v6429_v9 = vmul.f32 %v14434_v6, %v14434_v6  ;;  %v16351_v33 = vld [vmem:[#allocation79_spill] sm:$0xff]  ;;  %v16352_v60 = vld [vmem:[#allocation81_spill] sm:$0xff] }
 0xacd   :  { %v14454_v7 = vadd.f32 %v16351_v33, %v6199_v52  ;;  %v6204_v18 = vadd.f32 %v14322_v39, %v6115_v8  ;;  %v6118_v57 = vadd.f32 %v14351_v19, %v6029_v42  ;;  %v6034_v17 = vadd.f32 %v6033_v23, %v14077_v62 }
 0xace   :  { %v6365_v26 = vadd.f32 %v6364_v25, %v14191_v14  ;;  %v6505_v24 = vadd.f32 %v6504_v55, %v6425_v45  ;;  %v6431_v40 = vmul.f32 %v14444_v49, %v14444_v49  ;;  %v14463_v45 = vadd.f32 %v16352_v60, %v6202_v50 }
 0xacf   :  { %v14417_v28 = vpop.f32.mrf.mxu3  ;;  %v6207_v36 = vadd.f32 %v14357_v44, %v6118_v57  ;;  %v6344_v52 = vadd.f32 %v6343_v29, %v6342_v1  ;;  %v6120_v39 = vadd.f32 %v14383_v54, %v6031_v34  ;;  %v6483_v42 = vrot.slane %v6482_v59, 2 }
 0xad0   :  { %v6035_v51 = vpop.f32.mrf.mxu0  ;;  %v6366_v31 = vadd.f32 %v6365_v26, %v16350_v37  ;;  %v6506_v12 = vadd.f32 %v6505_v24, %v6427_v38  ;;  %v6433_v23 = vmul.f32 %v14454_v7, %v14454_v7  ;;  %v14472_v55 = vadd.f32 %v14324_v15, %v6204_v18 }
 0xad1   :  { %v6036_v19 = vadd.f32 %v6035_v51, %v14077_v62  ;;  %v6209_v50 = vadd.f32 %v14389_v3, %v6120_v39  ;;  %v6123_v44 = vadd.f32 %v6122_v13, %v6034_v17  ;;  %v6435_v29 = vmul.f32 %v14463_v45, %v14463_v45 }
 0xad2   :  { %v6367_v4 = vadd.f32 %v6366_v31, %v14434_v6  ;;  %v6507_v25 = vadd.f32 %v6506_v12, %v6429_v9  ;;  %v14479_v54 = vadd.f32 %v14359_v22, %v6207_v36  ;;  %v6345_v33 = vrot.slane %v6344_v52, 1 }
 0xad3   :  { %v6124_v63 = vpop.f32.mrf.mxu1  ;;  %v6212_v24 = vadd.f32 %v6211_v30, %v6123_v44  ;;  %v6484_v18 = vadd.f32 %v6483_v42, %v6482_v59  ;;  %v6437_v13 = vmul.f32 %v14472_v55, %v14472_v55  ;;  %v14487_v22 = vadd.f32 %v14391_v11, %v6209_v50 }
 0xad4   :  { %v6213_v56 = vpop.f32.mrf.mxu2  ;;  %v6368_v38 = vadd.f32 %v6367_v4, %v14444_v49  ;;  %v6508_v1 = vadd.f32 %v6507_v25, %v6431_v40  ;;  %v6125_v34 = vadd.f32 %v6124_v63, %v6036_v19  ;;  %v6439_v30 = vmul.f32 %v14479_v54, %v14479_v54 }
 0xad5   :  { %v14493_v59 = vadd.f32 %v14417_v28, %v6212_v24  ;;  %v6346_v36 = vadd.f32 %v6345_v33, %v6344_v52  ;;  %v6485_v4 = vrot.slane %v6484_v18, 1  ;;  %v6441_v11 = vmul.f32 %v14487_v22, %v14487_v22 }
 0xad6   :  { %v6369_v26 = vadd.f32 %v6368_v38, %v14454_v7  ;;  %v6509_v3 = vadd.f32 %v6508_v1, %v6433_v23  ;;  %v6214_v31 = vadd.f32 %v6213_v56, %v6125_v34 }
 0xad7   :  { %v6302_v27 = vpop.f32.mrf.mxu3  ;;  %v6443_v38 = vmul.f32 %v14493_v59, %v14493_v59  ;;  %v14506_v50 = vmul.f32 0.00390625, %v6346_v36  ;;  %v6486_v44 = vadd.f32 %v6485_v4, %v6484_v18 }
 0xad8   :  { %v6038_v8 = vpop.f32.mrf.mxu0  ;;  %v6370_v57 = vadd.f32 %v6369_v26, %v14463_v45  ;;  %v6510_v12 = vadd.f32 %v6509_v3, %v6435_v29  ;;  %v14498_v56 = vadd.f32 %v6302_v27, %v6214_v31 }
 0xad9   :  { %v6039_v15 = vadd.f32 %v6038_v8, %v14077_v62  ;;  %v6526_v18 = vmul.f32 %v14506_v50, %v14506_v50 }
 0xada   :  { %v6371_v40 = vadd.f32 %v6370_v57, %v14472_v55  ;;  %v6511_v39 = vadd.f32 %v6510_v12, %v6437_v13 }
 0xadb   :  { %v6127_v51 = vpop.f32.mrf.mxu1 }
 0xadc   :  { %v6216_v9 = vpop.f32.mrf.mxu2  ;;  %v6128_v17 = vadd.f32 %v6127_v51, %v6039_v15  ;;  %v6372_v19 = vadd.f32 %v6371_v40, %v14479_v54  ;;  %v6512_v42 = vadd.f32 %v6511_v39, %v6439_v30  ;;  %v6445_v51 = vmul.f32 %v14498_v56, %v14498_v56 }
 0xade   :  { %v6217_v60 = vadd.f32 %v6216_v9, %v6128_v17  ;;  %v6373_v23 = vadd.f32 %v6372_v19, %v14487_v22  ;;  %v6513_v8 = vadd.f32 %v6512_v42, %v6441_v11 }
 0xadf   :  { %v6305_v63 = vpop.f32.mrf.mxu3 }
 0xae0   :  { %v6040_v25 = vpop.f32.mrf.mxu0  ;;  %v14503_v28 = vadd.f32 %v6305_v63, %v6217_v60  ;;  %v6374_v27 = vadd.f32 %v6373_v23, %v14493_v59  ;;  %v6514_v24 = vadd.f32 %v6513_v8, %v6443_v38 }
 0xae1   :  { %v6041_v52 = vadd.f32 %v6040_v25, %v14077_v62  ;;  %v6524_v62 = vmul.f32 0.00390625, %v6486_v44 }
 0xae2   :  { %v6375_v34 = vadd.f32 %v6374_v27, %v14498_v56  ;;  %v6447_v15 = vmul.f32 %v14503_v28, %v14503_v28  ;;  %v6515_v3 = vadd.f32 %v6514_v24, %v6445_v51 }
 0xae3   :  { %v6129_v1 = vpop.f32.mrf.mxu1  ;;  %v6528_v30 = vsub.f32 %v6524_v62, %v6526_v18 }
 0xae4   :  { %v6218_v29 = vpop.f32.mrf.mxu2  ;;  %v6130_v26 = vadd.f32 %v6129_v1, %v6041_v52  ;;  %v6376_v13 = vadd.f32 %v6375_v34, %v14503_v28  ;;  %v6516_v31 = vadd.f32 %v6515_v3, %v6447_v15 }
 0xae5   :  { %v6530_v4 = vmax.f32 %v6528_v30, 0.0 }
 0xae6   :  { %v6219_v9 = vadd.f32 %v6218_v29, %v6130_v26 }
 0xae7   :  { %v6307_v33 = vpop.f32.mrf.mxu3  ;;  %v6532_v25 = vadd.f32 1e-05, %v6530_v4 }
 0xae8   :  { %v6308_v57 = vadd.f32 %v6307_v33, %v6219_v9 }
 0xae9   :  { %8698 = vrsqrt.f32 %v6532_v25  ;;  %vm6540_vm4 = vweird.f32 %v6532_v25 }
 0xaea   :  { %v6377_v17 = vadd.f32 %v6376_v13, %v6308_v57  ;;  %v6449_v12 = vmul.f32 %v6308_v57, %v6308_v57 }
 0xaec   :  { %v6378_v63 = vrot.slane %v6377_v17, 4  ;;  %v6517_v40 = vadd.f32 %v6516_v31, %v6449_v12 }
 0xaee   :  { %v6379_v60 = vadd.f32 %v6378_v63, %v6377_v17  ;;  %v6518_v36 = vrot.slane %v6517_v40, 4 }
 0xaef   :  { %v8699_v26 = vpop.eup %8698 }
 0xaf0   :  { %v6380_v39 = vrot.slane %v6379_v60, 2  ;;  %v6519_v19 = vadd.f32 %v6518_v36, %v6517_v40  ;;  %v6535_v15 = vmul.f32 %v8699_v26, %v6532_v25  ;;  %vm6541_vm1 = vweird.f32 %v8699_v26  ;;  %v7225_v40 = vld [vmem:[%s14915_s4 + $0x4] ss:$8 sm:$0x3] }
 0xaf1   :  { %vm6542_vm5 = vmor %vm6540_vm4, %vm6541_vm1  ;;  %v8656_v25 = vld [vmem:[%s14914_s3 + $0x8] sm:$0xff] }
 0xaf2   :  { %v6381_v11 = vadd.f32 %v6380_v39, %v6379_v60  ;;  %v6520_v42 = vrot.slane %v6519_v19, 2  ;;  %v6536_v9 = vmul.f32 %v8699_v26, %v6535_v15  ;;  %7000 = vmatpush.bf16.msrb.mxu0 %v8656_v25  ;;  %v16354_v15 = vld [vmem:[#allocation122_spill] sm:$0xff] }
 0xaf4   :  { %v6382_v23 = vrot.slane %v6381_v11, 1  ;;  %v6521_v38 = vadd.f32 %v6520_v42, %v6519_v19  ;;  %v6537_v33 = vmul.f32 0.5, %v6536_v9 }
 0xaf6   :  { %v6383_v52 = vadd.f32 %v6382_v23, %v6381_v11  ;;  %v6522_v44 = vrot.slane %v6521_v38, 1  ;;  %v6538_v13 = vsub.f32 1.5, %v6537_v33 }
 0xaf8   :  { %v6385_v1 = vmul.f32 0.00390625, %v6383_v52  ;;  %v6523_v29 = vadd.f32 %v6522_v44, %v6521_v38  ;;  %v6539_v12 = vmul.f32 %v8699_v26, %v6538_v13  ;;  %v8664_v38 = vld [vmem:[%s14914_s3 + $0x48] sm:$0xff] }
 0xaf9   :  { %v7226_v52 = vld [vmem:[%s14915_s4 + $0x5] ss:$8 sm:$0x3]  ;;  %7089 = vmatpush.bf16.msrb.mxu1 %v8664_v38 }
 0xafa   :  { %v6525_v8 = vmul.f32 0.00390625, %v6523_v29  ;;  %v6527_v27 = vmul.f32 %v6385_v1, %v6385_v1  ;;  %v6543_v36 = vsel %vm6542_vm5, %v8699_v26, %v6539_v12  ;;  %v16353_v26 = vld [vmem:[#allocation104_spill] sm:$0xff] }
 0xafc   :  { %v6529_v51 = vsub.f32 %v6525_v8, %v6527_v27 }
 0xafe   :  { %v6531_v24 = vmax.f32 %v6529_v51, 0.0 }
 0xb00   :  { %v6533_v34 = vadd.f32 1e-05, %v6531_v24 }
 0xb02   :  { %8700 = vrsqrt.f32 %v6533_v34  ;;  %vm6550_vm2 = vweird.f32 %v6533_v34 }
 0xb08   :  { %v8701_v62 = vpop.eup %8700 }
 0xb09   :  { %v6545_v18 = vmul.f32 %v8701_v62, %v6533_v34  ;;  %vm6551_vm0 = vweird.f32 %v8701_v62 }
 0xb0a   :  { %vm6552_vm3 = vmor %vm6550_vm2, %vm6551_vm0 }
 0xb0b   :  { %v6546_v3 = vmul.f32 %v8701_v62, %v6545_v18 }
 0xb0d   :  { %v6547_v31 = vmul.f32 0.5, %v6546_v3 }
 0xb0f   :  { %v6548_v17 = vsub.f32 1.5, %v6547_v31 }
 0xb11   :  { %v6549_v30 = vmul.f32 %v8701_v62, %v6548_v17 }
 0xb13   :  { %v6553_v63 = vsel %vm6552_vm3, %v8701_v62, %v6549_v30  ;;  %v16355_v62 = vld [vmem:[#allocation64_spill] sm:$0xff] }
 0xb14   :  { %v6556_v60 = vrot.slane %v6553_v63, 7 }
 0xb16   :  { %v6557_v4 = vsel %vm4591_vm12, %v6543_v36, %v6556_v60 }
 0xb17   :  { %v6559_v39 = vmul.f32 %v7225_v40, %v6557_v4 }
 0xb19   :  { %v14521_v19 = vperm.slane %v6559_v39, 0  ;;  %v14523_v11 = vperm.slane %v6559_v39, 1 }
 0xb1b   :  { %v6566_v42 = vmul.f32 %v14523_v11, %v6385_v1  ;;  %v6636_v23 = vmul.f32 %v14523_v11, %v6308_v57  ;;  %v6565_v44 = vmul.f32 %v14521_v19, %v14506_v50  ;;  %v8655_v57 = vld [vmem:[%s14914_s3] sm:$0xff]  ;;  %v6573_v24 = vmul.f32 %v14521_v19, %v16353_v26 }
 0xb1c   :  { %v8663_v1 = vld [vmem:[%s14914_s3 + $0x40] sm:$0xff]  ;;  %7001 = vmatpush.bf16.msrb.mxu0 %v8655_v57  ;;  %v6574_v34 = vmul.f32 %v14523_v11, %v14081_v32  ;;  %v6575_v9 = vmul.f32 %v14521_v19, %v16354_v15  ;;  %v6576_v33 = vmul.f32 %v14523_v11, %v16355_v62  ;;  %v6590_v3 = vmul.f32 %v14523_v11, %v14129_v58 }
 0xb1d   :  { %v6569_v29 = vrot.slane %v6566_v42, 7  ;;  %7090 = vmatpush.bf16.msrb.mxu1 %v8663_v1  ;;  %v6592_v13 = vmul.f32 %v14523_v11, %v14139_v35  ;;  %v6594_v31 = vmul.f32 %v14523_v11, %v14142_v41  ;;  %v6596_v32 = vmul.f32 %v14523_v11, %v14149_v20 }
 0xb1e   :  { %v6598_v17 = vmul.f32 %v14523_v11, %v14155_v48  ;;  %v6600_v12 = vmul.f32 %v14523_v11, %v14165_v10  ;;  %v6602_v30 = vmul.f32 %v14523_v11, %v14168_v43  ;;  %v6604_v58 = vmul.f32 %v14523_v11, %v14171_v0 }
 0xb1f   :  { %v6570_v8 = vsel %vm4591_vm12, %v6565_v44, %v6569_v29  ;;  %v6606_v35 = vmul.f32 %v14523_v11, %v14177_v47  ;;  %v6608_v41 = vmul.f32 %v14523_v11, %v14183_v2  ;;  %v6610_v20 = vmul.f32 %v14523_v11, %v14186_v46 }
 0xb20   :  { %v6572_v27 = vsub.f32 %v7226_v52, %v6570_v8  ;;  %v6612_v48 = vmul.f32 %v14523_v11, %v14191_v14  ;;  %v6614_v10 = vmul.f32 %v14523_v11, %v16350_v37  ;;  %v6616_v43 = vmul.f32 %v14523_v11, %v14434_v6 }
 0xb21   :  { %v6618_v0 = vmul.f32 %v14523_v11, %v14444_v49  ;;  %v6620_v47 = vmul.f32 %v14523_v11, %v14454_v7  ;;  %v6622_v2 = vmul.f32 %v14523_v11, %v14463_v45  ;;  %v6624_v46 = vmul.f32 %v14523_v11, %v14472_v55 }
 0xb22   :  { %v14545_v51 = vperm.slane %v6572_v27, 1  ;;  %v14558_v18 = vperm.slane %v6572_v27, 0  ;;  %v6626_v37 = vmul.f32 %v14523_v11, %v14479_v54  ;;  %v6628_v45 = vmul.f32 %v14523_v11, %v14487_v22 }
 0xb23   :  { %v6630_v55 = vmul.f32 %v14523_v11, %v14493_v59  ;;  %v6632_v40 = vmul.f32 %v14523_v11, %v14498_v56  ;;  %v6634_v1 = vmul.f32 %v14523_v11, %v14503_v28 }
 0xb24   :  { %v14548_v50 = vadd.f32 %v14545_v51, %v6636_v23  ;;  %v14597_v14 = vadd.f32 %v14545_v51, %v6590_v3  ;;  %v14602_v6 = vadd.f32 %v14545_v51, %v6592_v13  ;;  %v14605_v49 = vadd.f32 %v14545_v51, %v6594_v31 }
 0xb25   :  { %v14608_v7 = vadd.f32 %v14545_v51, %v6596_v32  ;;  %v14615_v63 = vadd.f32 %v14545_v51, %v6598_v17  ;;  %v14618_v54 = vadd.f32 %v14545_v51, %v6600_v12  ;;  %v14623_v60 = vadd.f32 %v14545_v51, %v6602_v30  ;;  %v16356_v30 = vld [vmem:[#allocation51_spill] sm:$0xff] }
 0xb26   :  { %v14626_v36 = vadd.f32 %v14545_v51, %v6604_v58  ;;  %v14629_v22 = vadd.f32 %v14545_v51, %v6606_v35  ;;  %v6642_v59 = vadd.f32 %v14558_v18, %v6573_v24  ;;  %v14633_v4 = vadd.f32 %v14545_v51, %v6608_v41  ;;  %v16357_v35 = vld [vmem:[#allocation21_spill] sm:$0xff] }
 0xb27   :  { %v14636_v39 = vadd.f32 %v14545_v51, %v6610_v20  ;;  %v14639_v42 = vadd.f32 %v14545_v51, %v6612_v48  ;;  %v6643_v56 = vadd.f32 %v14545_v51, %v6574_v34  ;;  %v6644_v23 = vadd.f32 %v14558_v18, %v6575_v9 }
 0xb28   :  { %v14644_v25 = vadd.f32 %v14545_v51, %v6614_v10  ;;  %v14647_v38 = vadd.f32 %v14545_v51, %v6616_v43  ;;  %v6645_v52 = vadd.f32 %v14545_v51, %v6576_v33  ;;  %v14651_v44 = vadd.f32 %v14545_v51, %v6618_v0 }
 0xb29   :  { %v14654_v29 = vadd.f32 %v14545_v51, %v6620_v47  ;;  %v14657_v57 = vadd.f32 %v14545_v51, %v6622_v2  ;;  %v14662_v8 = vadd.f32 %v14545_v51, %v6624_v46  ;;  %v14665_v27 = vadd.f32 %v14545_v51, %v6626_v37 }
 0xb2a   :  { %v14668_v26 = vadd.f32 %v14545_v51, %v6628_v45  ;;  %v14671_v24 = vadd.f32 %v14545_v51, %v6630_v55  ;;  %v14674_v34 = vadd.f32 %v14545_v51, %v6632_v40  ;;  %v14677_v15 = vadd.f32 %v14545_v51, %v6634_v1  ;;  %v16359_v1 = vld [vmem:[#allocation25_spill] sm:$0xff] }
 0xb2b   :  { %v6706_v9 = vmul.f32 0.01, %v6642_v59  ;;  %v6707_v28 = vmul.f32 0.01, %v6643_v56  ;;  %v6708_v62 = vmul.f32 0.01, %v6644_v23  ;;  %v6577_v58 = vmul.f32 %v14521_v19, %v16356_v30 }
 0xb2c   :  { %v6709_v33 = vmul.f32 0.01, %v6645_v52  ;;  %v6579_v41 = vmul.f32 %v14521_v19, %v16357_v35  ;;  %v6578_v20 = vmul.f32 %v14523_v11, %v14090_v53  ;;  %v6580_v48 = vmul.f32 %v14523_v11, %v14097_v61  ;;  %v16358_v61 = vld [vmem:[#allocation50_spill] sm:$0xff] }
 0xb2d   :  { %v6770_v3 = vmax.f32 %v6642_v59, %v6706_v9  ;;  %v6771_v13 = vmax.f32 %v6643_v56, %v6707_v28  ;;  %v6772_v31 = vmax.f32 %v6644_v23, %v6708_v62  ;;  %v6646_v10 = vadd.f32 %v14558_v18, %v6577_v58 }
 0xb2e   :  { %v6773_v32 = vmax.f32 %v6645_v52, %v6709_v33  ;;  %v6648_v43 = vadd.f32 %v14558_v18, %v6579_v41  ;;  %v6647_v0 = vadd.f32 %v14545_v51, %v6578_v20  ;;  %v6649_v47 = vadd.f32 %v14545_v51, %v6580_v48  ;;  %v16360_v20 = vld [vmem:[#allocation82_spill] sm:$0xff] }
 0xb2f   :  { %v6834_v17 = vpack.c.bf16 %v6772_v31, %v6770_v3  ;;  %v6710_v2 = vmul.f32 0.01, %v6646_v10  ;;  %v6581_v52 = vmul.f32 %v14521_v19, %v16358_v61  ;;  %v6583_v9 = vmul.f32 %v14521_v19, %v16359_v1 }
 0xb30   :  { %v6835_v12 = vpack.c.bf16 %v6773_v32, %v6771_v13  ;;  %v6712_v46 = vmul.f32 0.01, %v6648_v43  ;;  %v6711_v37 = vmul.f32 0.01, %v6647_v0  ;;  %v6713_v45 = vmul.f32 0.01, %v6649_v47 }
 0xb31   :  { %7002 = vmatmul.bf16.vlgmr.msrb.gmra.mxu0 %v6834_v17  ;;  %v6774_v55 = vmax.f32 %v6646_v10, %v6710_v2  ;;  %v6582_v28 = vmul.f32 %v14523_v11, %v14103_v5  ;;  %v6584_v62 = vmul.f32 %v14523_v11, %v14113_v21  ;;  %v6650_v33 = vadd.f32 %v14558_v18, %v6581_v52  ;;  %v16361_v10 = vld [vmem:[#allocation74_spill] sm:$0xff] }
 0xb32   :  { %7091 = vmatmul.bf16.vlgmr.msrb.gmra.mxu1 %v6835_v12  ;;  %v6776_v40 = vmax.f32 %v6648_v43, %v6712_v46  ;;  %v6775_v59 = vmax.f32 %v6647_v0, %v6711_v37  ;;  %v6777_v53 = vmax.f32 %v6649_v47, %v6713_v45  ;;  %v6652_v3 = vadd.f32 %v14558_v18, %v6583_v9  ;;  %v16362_v0 = vld [vmem:[#allocation77_spill] sm:$0xff] }
 0xb33   :  { %v6651_v13 = vadd.f32 %v14545_v51, %v6582_v28  ;;  %v6653_v31 = vadd.f32 %v14545_v51, %v6584_v62  ;;  %v6714_v32 = vmul.f32 0.01, %v6650_v33  ;;  %v6585_v21 = vmul.f32 %v14521_v19, %v16360_v20 }
 0xb34   :  { %v6836_v56 = vpack.c.bf16 %v6776_v40, %v6774_v55  ;;  %v6837_v23 = vpack.c.bf16 %v6777_v53, %v6775_v59  ;;  %v6716_v17 = vmul.f32 0.01, %v6652_v3  ;;  %v6586_v48 = vmul.f32 %v14523_v11, %v14116_v16 }
 0xb35   :  { %v6715_v12 = vmul.f32 0.01, %v6651_v13  ;;  %v6717_v30 = vmul.f32 0.01, %v6653_v31  ;;  %v6778_v58 = vmax.f32 %v6650_v33, %v6714_v32  ;;  %v6587_v43 = vmul.f32 %v14521_v19, %v16361_v10 }
 0xb36   :  { %v6780_v35 = vmax.f32 %v6652_v3, %v6716_v17  ;;  %v6588_v47 = vmul.f32 %v14523_v11, %v16362_v0  ;;  %v6654_v46 = vadd.f32 %v14558_v18, %v6585_v21  ;;  %v6723_v45 = vmul.f32 0.01, %v14597_v14 }
 0xb37   :  { %v6779_v41 = vmax.f32 %v6651_v13, %v6715_v12  ;;  %v6781_v5 = vmax.f32 %v6653_v31, %v6717_v30  ;;  %v6725_v55 = vmul.f32 0.01, %v14602_v6  ;;  %v6655_v40 = vadd.f32 %v14545_v51, %v6586_v48 }
 0xb38   :  { %v6838_v2 = vpack.c.bf16 %v6780_v35, %v6778_v58  ;;  %v6656_v59 = vadd.f32 %v14558_v18, %v6587_v43  ;;  %v6727_v16 = vmul.f32 0.01, %v14605_v49  ;;  %v6729_v53 = vmul.f32 0.01, %v14608_v7 }
 0xb39   :  { %v6839_v37 = vpack.c.bf16 %v6781_v5, %v6779_v41  ;;  %v6657_v11 = vadd.f32 %v14545_v51, %v6588_v47  ;;  %v6731_v9 = vmul.f32 0.01, %v14615_v63  ;;  %v6733_v28 = vmul.f32 0.01, %v14618_v54  ;;  %v16363_v47 = vld [vmem:[#allocation70_spill] sm:$0xff] }
 0xb3a   :  { %v6791_v61 = vmax.f32 %v14605_v49, %v6727_v16  ;;  %v6793_v52 = vmax.f32 %v14608_v7, %v6729_v53  ;;  %v6718_v62 = vmul.f32 0.01, %v6654_v46  ;;  %v6720_v33 = vmul.f32 0.01, %v6656_v59 }
 0xb3b   :  { %v6719_v3 = vmul.f32 0.01, %v6655_v40  ;;  %v6721_v51 = vmul.f32 0.01, %v6657_v11  ;;  %v6735_v49 = vmul.f32 0.01, %v14623_v60 }
 0xb3c   :  { %v14727_v13 = vpack.c.bf16 %v6793_v52, %v6791_v61  ;;  %v6737_v7 = vmul.f32 0.01, %v14626_v36  ;;  %v6739_v12 = vmul.f32 0.01, %v14629_v22  ;;  %v6741_v30 = vmul.f32 0.01, %v14633_v4 }
 0xb3d   :  { %v6799_v32 = vmax.f32 %v14623_v60, %v6735_v49  ;;  %v6782_v58 = vmax.f32 %v6654_v46, %v6718_v62  ;;  %v6784_v35 = vmax.f32 %v6656_v59, %v6720_v33  ;;  %v6783_v41 = vmax.f32 %v6655_v40, %v6719_v3 }
 0xb3e   :  { %v6801_v17 = vmax.f32 %v14626_v36, %v6737_v7  ;;  %v6805_v20 = vmax.f32 %v14633_v4, %v6741_v30  ;;  %v6743_v21 = vmul.f32 0.01, %v14636_v39  ;;  %v6745_v60 = vmul.f32 0.01, %v14639_v42 }
 0xb3f   :  { %v6747_v43 = vmul.f32 0.01, %v14644_v25  ;;  %v6749_v0 = vmul.f32 0.01, %v14647_v38  ;;  %v6753_v40 = vmul.f32 0.01, %v14654_v29 }
 0xb40   :  { %v14739_v5 = vpack.c.bf16 %v6801_v17, %v6799_v32  ;;  %v6807_v36 = vmax.f32 %v14636_v39, %v6743_v21  ;;  %v6809_v10 = vmax.f32 %v14639_v42, %v6745_v60  ;;  %v16364_v39 = vld [vmem:[#allocation15_spill] sm:$0xff]  ;;  %v6767_v49 = vmul.f32 0.01, %v14677_v15 }
 0xb41   :  { %7007 = vmatmul.bf16.gmra.mxu0 %v6836_v56  ;;  %v6787_v56 = vmax.f32 %v14597_v14, %v6723_v45  ;;  %v6795_v14 = vmax.f32 %v14615_v63, %v6731_v9  ;;  %v6785_v63 = vmax.f32 %v6657_v11, %v6721_v51  ;;  %v6813_v45 = vmax.f32 %v14647_v38, %v6749_v0 }
 0xb42   :  { %7096 = vmatmul.bf16.gmra.mxu1 %v6837_v23  ;;  %v6789_v23 = vmax.f32 %v14602_v6, %v6725_v55  ;;  %v6797_v6 = vmax.f32 %v14618_v54, %v6733_v28  ;;  %v6803_v54 = vmax.f32 %v14629_v22, %v6739_v12  ;;  %v6840_v22 = vpack.c.bf16 %v6784_v35, %v6782_v58  ;;  %v16365_v35 = vld [vmem:[#allocation92_spill] sm:$0xff] }
 0xb43   :  { %v6841_v46 = vpack.c.bf16 %v6785_v63, %v6783_v41  ;;  %v14753_v4 = vpack.c.bf16 %v6809_v10, %v6807_v36  ;;  %v6751_v55 = vmul.f32 0.01, %v14651_v44  ;;  %v6591_v42 = vmul.f32 %v14521_v19, %v16364_v39  ;;  %v16366_v41 = vld [vmem:[#allocation19_spill] sm:$0xff] }
 0xb44   :  { %v14723_v1 = vpack.c.bf16 %v6789_v23, %v6787_v56  ;;  %v14733_v31 = vpack.c.bf16 %v6797_v6, %v6795_v14  ;;  %v14745_v48 = vpack.c.bf16 %v6805_v20, %v6803_v54  ;;  %v6755_v38 = vmul.f32 0.01, %v14657_v57  ;;  %v16367_v36 = vld [vmem:[#allocation75_spill] sm:$0xff] }
 0xb45   :  { %v6815_v53 = vmax.f32 %v14651_v44, %v6751_v55  ;;  %v6660_v11 = vadd.f32 %v14558_v18, %v6591_v42  ;;  %v6757_v56 = vmul.f32 0.01, %v14662_v8  ;;  %v6759_v9 = vmul.f32 0.01, %v14665_v27  ;;  %v16369_v55 = vld [vmem:[#allocation23_spill] sm:$0xff]  ;;  %v16370_v42 = vld [vmem:[#allocation28_spill] sm:$0xff] }
 0xb46   :  { %v6819_v61 = vmax.f32 %v14657_v57, %v6755_v38  ;;  %v6761_v28 = vmul.f32 0.01, %v14668_v26  ;;  %v6763_v51 = vmul.f32 0.01, %v14671_v24  ;;  %v6765_v14 = vmul.f32 0.01, %v14674_v34 }
 0xb47   :  { %v6821_v52 = vmax.f32 %v14662_v8, %v6757_v56  ;;  %v6724_v44 = vmul.f32 0.01, %v6660_v11  ;;  %v6769_v17 = vmul.f32 0.01, %v14548_v50  ;;  %v6597_v10 = vmul.f32 %v14521_v19, %v16367_v36 }
 0xb48   :  { %v6825_v3 = vmax.f32 %v14668_v26, %v6761_v28  ;;  %v6827_v57 = vmax.f32 %v14671_v24, %v6763_v51  ;;  %v6829_v8 = vmax.f32 %v14674_v34, %v6765_v14  ;;  %v6593_v24 = vmul.f32 %v14521_v19, %v16365_v35  ;;  %v14824_v14 = vld [vmem:[%s14915_s4 + $0x6] ss:$0 sm:$0xff]  ;;  %s8732_s4 = smov [#allocation2]  }
 0xb49   :  { %v14775_v33 = vpack.c.bf16 %v6821_v52, %v6819_v61  ;;  %v6788_v32 = vmax.f32 %v6660_v11, %v6724_v44  ;;  %v6833_v26 = vmax.f32 %v14548_v50, %v6769_v17  ;;  %v6595_v34 = vmul.f32 %v14521_v19, %v16366_v41  ;;  %v16371_v61 = vld [vmem:[#allocation85_spill] sm:$0xff]  ;;  %s7208_s19 = sshll.u32 %s8732_s4, 4  ;;  %s7209_s19 = int_to_ptr.vmem [resolvable:$true] %s7208_s19 }
 0xb4a   :  { %v14787_v12 = vpack.c.bf16 %v6829_v8, %v6827_v57  ;;  %v6662_v63 = vadd.f32 %v14558_v18, %v6593_v24  ;;  %v6601_v39 = vmul.f32 %v14521_v19, %v16369_v55  ;;  %v6605_v52 = vmul.f32 %v14521_v19, %v16371_v61  ;;  %v16374_v17 = vld [vmem:[#allocation57_spill] sm:$0xff] }
 0xb4b   :  { %v6664_v54 = vadd.f32 %v14558_v18, %v6595_v34 }
 0xb4c   :  { %v6726_v20 = vmul.f32 0.01, %v6662_v63 }
 0xb4e   :  { %v6790_v21 = vmax.f32 %v6662_v63, %v6726_v20 }
 0xb51   :  { %7012 = vmatmul.bf16.gmra.mxu0 %v6838_v2  ;;  %v6589_v2 = vmul.f32 %v14521_v19, %v16363_v47 }
 0xb52   :  { %7101 = vmatmul.bf16.gmra.mxu1 %v6839_v37  ;;  %v6811_v37 = vmax.f32 %v14644_v25, %v6747_v43  ;;  %v6817_v25 = vmax.f32 %v14654_v29, %v6753_v40  ;;  %v6823_v29 = vmax.f32 %v14665_v27, %v6759_v9  ;;  %v6831_v27 = vmax.f32 %v14677_v15, %v6767_v49  ;;  %v16368_v43 = vld [vmem:[#allocation54_spill] sm:$0xff]  ;;  %v16372_v9 = vld [vmem:[#allocation59_spill] sm:$0xff] }
 0xb53   :  { %v6658_v59 = vadd.f32 %v14558_v18, %v6589_v2  ;;  %v6728_v15 = vmul.f32 0.01, %v6664_v54  ;;  %v6599_v0 = vmul.f32 %v14521_v19, %v16368_v43  ;;  %v6603_v40 = vmul.f32 %v14521_v19, %v16370_v42 }
 0xb54   :  { %v14762_v16 = vpack.c.bf16 %v6813_v45, %v6811_v37  ;;  %v14769_v23 = vpack.c.bf16 %v6817_v25, %v6815_v53  ;;  %v14781_v6 = vpack.c.bf16 %v6825_v3, %v6823_v29  ;;  %v14791_v58 = vpack.c.bf16 %v6833_v26, %v6831_v27 }
 0xb55   :  { %v6722_v62 = vmul.f32 0.01, %v6658_v59  ;;  %v6792_v50 = vmax.f32 %v6664_v54, %v6728_v15  ;;  %v6668_v47 = vadd.f32 %v14558_v18, %v6599_v0  ;;  %v6607_v28 = vmul.f32 %v14521_v19, %v16372_v9  ;;  %v16376_v0 = vld [vmem:[#allocation58_spill] sm:$0xff] }
 0xb56   :  { %v6611_v27 = vmul.f32 %v14521_v19, %v16374_v17 }
 0xb57   :  { %v6786_v7 = vmax.f32 %v6658_v59, %v6722_v62  ;;  %v6844_v60 = vpack.c.bf16 %v6792_v50, %v6790_v21  ;;  %v6672_v59 = vadd.f32 %v14558_v18, %v6603_v40  ;;  %v6676_v62 = vadd.f32 %v14558_v18, %v6607_v28 }
 0xb58   :  { %v6680_v35 = vadd.f32 %v14558_v18, %v6611_v27  ;;  %v16380_v27 = vld [vmem:[#allocation71_spill] sm:$0xff] }
 0xb59   :  { %v6842_v30 = vpack.c.bf16 %v6788_v32, %v6786_v7  ;;  %v6736_v11 = vmul.f32 0.01, %v6672_v59  ;;  %v6740_v29 = vmul.f32 0.01, %v6676_v62  ;;  %v16373_v32 = vld [vmem:[#allocation27_spill] sm:$0xff] }
 0xb5a   :  { %v6744_v54 = vmul.f32 0.01, %v6680_v35 }
 0xb5b   :  { %v6800_v38 = vmax.f32 %v6672_v59, %v6736_v11  ;;  %v6804_v51 = vmax.f32 %v6676_v62, %v6740_v29 }
 0xb5c   :  { %v6808_v21 = vmax.f32 %v6680_v35, %v6744_v54 }
 0xb61   :  { %7017 = vmatmul.bf16.gmra.mxu0 %v6840_v22  ;;  %v6732_v22 = vmul.f32 0.01, %v6668_v47 }
 0xb62   :  { %7106 = vmatmul.bf16.gmra.mxu1 %v6841_v46 }
 0xb63   :  { %v6796_v37 = vmax.f32 %v6668_v47, %v6732_v22 }
 0xb71   :  { %7022 = vmatmul.bf16.gmra.mxu0 %v6842_v30 }
 0xb72   :  { %7111 = vmatmul.bf16.gmra.mxu1 %v14723_v1  ;;  %v6666_v1 = vadd.f32 %v14558_v18, %v6597_v10  ;;  %v16375_v10 = vld [vmem:[#allocation95_spill] sm:$0xff] }
 0xb73   :  { %v6613_v43 = vmul.f32 %v14521_v19, %v16375_v10  ;;  %v16381_v10 = vld [vmem:[#allocation149_spill] sm:$0xff] }
 0xb74   :  { %v6730_v2 = vmul.f32 0.01, %v6666_v1 }
 0xb76   :  { %v6794_v46 = vmax.f32 %v6666_v1, %v6730_v2  ;;  %v6615_v1 = vmul.f32 %v14521_v19, %v16376_v0  ;;  %v6682_v2 = vadd.f32 %v14558_v18, %v6613_v43  ;;  %v6625_v43 = vmul.f32 %v14521_v19, %v16381_v10  ;;  %v16382_v0 = vld [vmem:[#allocation69_spill] sm:$0xff] }
 0xb78   :  { %v6846_v45 = vpack.c.bf16 %v6796_v37, %v6794_v46  ;;  %v6684_v22 = vadd.f32 %v14558_v18, %v6615_v1  ;;  %v6746_v55 = vmul.f32 0.01, %v6682_v2  ;;  %v6627_v1 = vmul.f32 %v14521_v19, %v16382_v0 }
 0xb7a   :  { %v6810_v40 = vmax.f32 %v6682_v2, %v6746_v55  ;;  %v6694_v2 = vadd.f32 %v14558_v18, %v6625_v43 }
 0xb7c   :  { %v6758_v55 = vmul.f32 0.01, %v6694_v2 }
 0xb81   :  { %7027 = vmatmul.bf16.gmra.mxu0 %v6844_v60 }
 0xb82   :  { %7116 = vmatmul.bf16.gmra.mxu1 %v14727_v13  ;;  %v6670_v13 = vadd.f32 %v14558_v18, %v6601_v39  ;;  %v6748_v39 = vmul.f32 0.01, %v6684_v22 }
 0xb84   :  { %v6734_v53 = vmul.f32 0.01, %v6670_v13 }
 0xb86   :  { %v6798_v25 = vmax.f32 %v6670_v13, %v6734_v53  ;;  %v6812_v13 = vmax.f32 %v6684_v22, %v6748_v39  ;;  %v6696_v22 = vadd.f32 %v14558_v18, %v6627_v1 }
 0xb88   :  { %v6848_v56 = vpack.c.bf16 %v6800_v38, %v6798_v25  ;;  %v16377_v25 = vld [vmem:[#allocation29_spill] sm:$0xff]  ;;  %v6760_v39 = vmul.f32 0.01, %v6696_v22 }
 0xb89   :  { %v6617_v38 = vmul.f32 %v14521_v19, %v16377_v25 }
 0xb8b   :  { %v6686_v9 = vadd.f32 %v14558_v18, %v6617_v38  ;;  %v16384_v38 = vld [vmem:[#allocation73_spill] sm:$0xff] }
 0xb8d   :  { %v6750_v29 = vmul.f32 0.01, %v6686_v9 }
 0xb91   :  { %7032 = vmatmul.bf16.gmra.mxu0 %v6846_v45 }
 0xb92   :  { %7121 = vmatmul.bf16.gmra.mxu1 %v14733_v31  ;;  %v6674_v31 = vadd.f32 %v14558_v18, %v6605_v52 }
 0xb94   :  { %v6738_v44 = vmul.f32 0.01, %v6674_v31 }
 0xb96   :  { %v6802_v3 = vmax.f32 %v6674_v31, %v6738_v44 }
 0xb98   :  { %v6850_v7 = vpack.c.bf16 %v6804_v51, %v6802_v3 }
 0xba1   :  { %7037 = vmatmul.bf16.gmra.mxu0 %v6848_v56  ;;  %v16378_v56 = vld [vmem:[#allocation97_spill] sm:$0xff] }
 0xba2   :  { %7126 = vmatmul.bf16.gmra.mxu1 %v14739_v5  ;;  %v6609_v5 = vmul.f32 %v14521_v19, %v16373_v32  ;;  %v6619_v61 = vmul.f32 %v14521_v19, %v16378_v56  ;;  %v6631_v56 = vmul.f32 %v14521_v19, %v16384_v38 }
 0xba4   :  { %v6678_v30 = vadd.f32 %v14558_v18, %v6609_v5  ;;  %v6688_v28 = vadd.f32 %v14558_v18, %v6619_v61  ;;  %v16379_v5 = vld [vmem:[#allocation163_spill] sm:$0xff] }
 0xba5   :  { %v6621_v17 = vmul.f32 %v14521_v19, %v16379_v5  ;;  %v16386_v5 = vld [vmem:[#allocation164_spill] sm:$0xff] }
 0xba6   :  { %v6742_v63 = vmul.f32 0.01, %v6678_v30  ;;  %v6752_v3 = vmul.f32 0.01, %v6688_v28 }
 0xba7   :  { %v6690_v35 = vadd.f32 %v14558_v18, %v6621_v17  ;;  %v6635_v17 = vmul.f32 %v14521_v19, %v16386_v5 }
 0xba8   :  { %v6806_v15 = vmax.f32 %v6678_v30, %v6742_v63 }
 0xba9   :  { %v6754_v54 = vmul.f32 0.01, %v6690_v35 }
 0xbae   :  { %v7003_v57 = vpop.f32.mrf.mxu0 }
 0xbaf   :  { %v7004_v8 = vadd.f32 %v7003_v57, %v14824_v14  ;;  %v7092_v49 = vpop.f32.mrf.mxu1  ;;  %v6814_v57 = vmax.f32 %v6686_v9, %v6750_v29  ;;  %v6700_v9 = vadd.f32 %v14558_v18, %v6631_v56 }
 0xbb1   :  { %v7093_v26 = vadd.f32 %v7092_v49, %v7004_v8  ;;  %7042 = vmatmul.bf16.gmra.mxu0 %v6850_v7  ;;  %v6816_v8 = vmax.f32 %v6688_v28, %v6752_v3  ;;  %v6764_v29 = vmul.f32 0.01, %v6700_v9 }
 0xbb2   :  { %7131 = vmatmul.bf16.gmra.mxu1 %v14745_v48  ;;  %v6852_v48 = vpack.c.bf16 %v6808_v21, %v6806_v15  ;;  %v6818_v21 = vmax.f32 %v6690_v35, %v6754_v54 }
 0xbb3   :  { %7172 = vst [vmem:[#allocation2] sm:$0xff] %v7093_v26  ;;  %v6623_v26 = vmul.f32 %v14521_v19, %v16380_v27 }
 0xbb6   :  { %v7005_v24 = vpop.f32.mrf.mxu0 }
 0xbb7   :  { %v7006_v41 = vadd.f32 %v7005_v24, %v14824_v14  ;;  %v7094_v34 = vpop.f32.mrf.mxu1  ;;  %v6692_v24 = vadd.f32 %v14558_v18, %v6623_v26 }
 0xbb9   :  { %v7095_v20 = vadd.f32 %v7094_v34, %v7006_v41 }
 0xbbb   :  { %7173 = vst [vmem:[#allocation2 + $0x8] sm:$0xff] %v7095_v20  ;;  %v6756_v20 = vmul.f32 0.01, %v6692_v24 }
 0xbbe   :  { %v7008_v50 = vpop.f32.mrf.mxu0 }
 0xbbf   :  { %v7009_v60 = vadd.f32 %v7008_v50, %v14824_v14  ;;  %v7097_v36 = vpop.f32.mrf.mxu1  ;;  %v6820_v50 = vmax.f32 %v6692_v24, %v6756_v20 }
 0xbc1   :  { %v7098_v47 = vadd.f32 %v7097_v36, %v7009_v60  ;;  %7047 = vmatmul.bf16.gmra.mxu0 %v6852_v48 }
 0xbc2   :  { %7136 = vmatmul.bf16.gmra.mxu1 %v14753_v4  ;;  %v6854_v4 = vpack.c.bf16 %v6812_v13, %v6810_v40  ;;  %v6822_v40 = vmax.f32 %v6694_v2, %v6758_v55  ;;  %v6824_v13 = vmax.f32 %v6696_v22, %v6760_v39 }
 0xbc3   :  { %7174 = vst [vmem:[#allocation2 + $0x10] sm:$0xff] %v7098_v47 }
 0xbc6   :  { %v7010_v46 = vpop.f32.mrf.mxu0 }
 0xbc7   :  { %v7011_v37 = vadd.f32 %v7010_v46, %v14824_v14  ;;  %v7099_v45 = vpop.f32.mrf.mxu1 }
 0xbc9   :  { %v7100_v42 = vadd.f32 %v7099_v45, %v7011_v37 }
 0xbcb   :  { %7175 = vst [vmem:[#allocation2 + $0x18] sm:$0xff] %v7100_v42 }
 0xbce   :  { %v7013_v59 = vpop.f32.mrf.mxu0 }
 0xbcf   :  { %v7014_v53 = vadd.f32 %v7013_v59, %v14824_v14  ;;  %v7102_v11 = vpop.f32.mrf.mxu1 }
 0xbd1   :  { %v7103_v52 = vadd.f32 %v7102_v11, %v7014_v53  ;;  %7052 = vmatmul.bf16.gmra.mxu0 %v6854_v4  ;;  %v16383_v4 = vld [vmem:[#allocation32_spill] sm:$0xff] }
 0xbd2   :  { %7141 = vmatmul.bf16.gmra.mxu1 %v14762_v16  ;;  %v6856_v16 = vpack.c.bf16 %v6816_v8, %v6814_v57  ;;  %v6629_v25 = vmul.f32 %v14521_v19, %v16383_v4  ;;  %v6828_v57 = vmax.f32 %v6700_v9, %v6764_v29 }
 0xbd3   :  { %7176 = vst [vmem:[#allocation2 + $0x20] sm:$0xff] %v7103_v52 }
 0xbd4   :  { %v6698_v52 = vadd.f32 %v14558_v18, %v6629_v25 }
 0xbd6   :  { %v7015_v31 = vpop.f32.mrf.mxu0 }
 0xbd7   :  { %v7016_v62 = vadd.f32 %v7015_v31, %v14824_v14  ;;  %v7104_v44 = vpop.f32.mrf.mxu1 }
 0xbd9   :  { %v7105_v51 = vadd.f32 %v7104_v44, %v7016_v62  ;;  %v6762_v44 = vmul.f32 0.01, %v6698_v52 }
 0xbdb   :  { %7177 = vst [vmem:[#allocation2 + $0x28] sm:$0xff] %v7105_v51  ;;  %v6826_v51 = vmax.f32 %v6698_v52, %v6762_v44 }
 0xbde   :  { %v7018_v49 = vpop.f32.mrf.mxu0 }
 0xbdf   :  { %v7019_v7 = vadd.f32 %v7018_v49, %v14824_v14  ;;  %v7107_v32 = vpop.f32.mrf.mxu1 }
 0xbe1   :  { %v7108_v30 = vadd.f32 %v7107_v32, %v7019_v7  ;;  %7057 = vmatmul.bf16.gmra.mxu0 %v6856_v16  ;;  %v16385_v32 = vld [vmem:[#allocation83_spill] sm:$0xff] }
 0xbe2   :  { %7146 = vmatmul.bf16.gmra.mxu1 %v14769_v23  ;;  %v6858_v23 = vpack.c.bf16 %v6820_v50, %v6818_v21  ;;  %v6633_v16 = vmul.f32 %v14521_v19, %v16385_v32 }
 0xbe3   :  { %7178 = vst [vmem:[#allocation2 + $0x30] sm:$0xff] %v7108_v30  ;;  %v6704_v30 = vadd.f32 %v14558_v18, %v6635_v17 }
 0xbe4   :  { %v6702_v26 = vadd.f32 %v14558_v18, %v6633_v16 }
 0xbe6   :  { %v7020_v41 = vpop.f32.mrf.mxu0 }
 0xbe7   :  { %v7021_v34 = vadd.f32 %v7020_v41, %v14824_v14  ;;  %v7109_v63 = vpop.f32.mrf.mxu1 }
 0xbe9   :  { %v7110_v15 = vadd.f32 %v7109_v63, %v7021_v34  ;;  %v6766_v34 = vmul.f32 0.01, %v6702_v26  ;;  %v6768_v63 = vmul.f32 0.01, %v6704_v30 }
 0xbeb   :  { %7179 = vst [vmem:[#allocation2 + $0x38] sm:$0xff] %v7110_v15  ;;  %v6830_v20 = vmax.f32 %v6702_v26, %v6766_v34  ;;  %v6832_v15 = vmax.f32 %v6704_v30, %v6768_v63 }
 0xbee   :  { %v7023_v60 = vpop.f32.mrf.mxu0 }
 0xbef   :  { %v7024_v36 = vadd.f32 %v7023_v60, %v14824_v14  ;;  %v7112_v48 = vpop.f32.mrf.mxu1 }
 0xbf1   :  { %v7113_v47 = vadd.f32 %v7112_v48, %v7024_v36  ;;  %7062 = vmatmul.bf16.gmra.mxu0 %v6858_v23 }
 0xbf2   :  { %7151 = vmatmul.bf16.gmra.mxu1 %v14775_v33  ;;  %v6860_v33 = vpack.c.bf16 %v6824_v13, %v6822_v40 }
 0xbf3   :  { %7180 = vst [vmem:[#allocation2 + $0x40] sm:$0xff] %v7113_v47 }
 0xbf6   :  { %v7025_v46 = vpop.f32.mrf.mxu0 }
 0xbf7   :  { %v7026_v37 = vadd.f32 %v7025_v46, %v14824_v14  ;;  %v7114_v45 = vpop.f32.mrf.mxu1 }
 0xbf9   :  { %v7115_v42 = vadd.f32 %v7114_v45, %v7026_v37 }
 0xbfb   :  { %7181 = vst [vmem:[#allocation2 + $0x48] sm:$0xff] %v7115_v42 }
 0xbfe   :  { %v7028_v59 = vpop.f32.mrf.mxu0 }
 0xbff   :  { %v7029_v53 = vadd.f32 %v7028_v59, %v14824_v14  ;;  %v7117_v11 = vpop.f32.mrf.mxu1 }
 0xc01   :  { %v7118_v61 = vadd.f32 %v7117_v11, %v7029_v53  ;;  %7067 = vmatmul.bf16.gmra.mxu0 %v6860_v33 }
 0xc02   :  { %7156 = vmatmul.bf16.gmra.mxu1 %v14781_v6  ;;  %v6862_v6 = vpack.c.bf16 %v6828_v57, %v6826_v51 }
 0xc03   :  { %7182 = vst [vmem:[#allocation2 + $0x50] sm:$0xff] %v7118_v61 }
 0xc06   :  { %v7030_v28 = vpop.f32.mrf.mxu0 }
 0xc07   :  { %v7031_v31 = vadd.f32 %v7030_v28, %v14824_v14  ;;  %v7119_v62 = vpop.f32.mrf.mxu1 }
 0xc09   :  { %v7120_v3 = vadd.f32 %v7119_v62, %v7031_v31 }
 0xc0b   :  { %7183 = vst [vmem:[#allocation2 + $0x58] sm:$0xff] %v7120_v3 }
 0xc0e   :  { %v7033_v8 = vpop.f32.mrf.mxu0 }
 0xc0f   :  { %v7034_v49 = vadd.f32 %v7033_v8, %v14824_v14  ;;  %v7122_v7 = vpop.f32.mrf.mxu1 }
 0xc11   :  { %v7123_v27 = vadd.f32 %v7122_v7, %v7034_v49  ;;  %7072 = vmatmul.bf16.gmra.mxu0 %v6862_v6 }
 0xc12   :  { %7161 = vmatmul.bf16.gmra.mxu1 %v14787_v12  ;;  %v6864_v12 = vpack.c.bf16 %v6832_v15, %v6830_v20 }
 0xc13   :  { %7184 = vst [vmem:[#allocation2 + $0x60] sm:$0xff] %v7123_v27 }
 0xc16   :  { %v7035_v35 = vpop.f32.mrf.mxu0 }
 0xc17   :  { %v7036_v24 = vadd.f32 %v7035_v35, %v14824_v14  ;;  %v7124_v41 = vpop.f32.mrf.mxu1 }
 0xc19   :  { %v7125_v54 = vadd.f32 %v7124_v41, %v7036_v24 }
 0xc1b   :  { %7185 = vst [vmem:[#allocation2 + $0x68] sm:$0xff] %v7125_v54 }
 0xc1e   :  { %v7038_v19 = vpop.f32.mrf.mxu0 }
 0xc1f   :  { %v7039_v21 = vadd.f32 %v7038_v19, %v14824_v14  ;;  %v7127_v50 = vpop.f32.mrf.mxu1 }
 0xc21   :  { %v7128_v60 = vadd.f32 %v7127_v50, %v7039_v21  ;;  %7077 = vmatmul.bf16.gmra.mxu0 %v6864_v12 }
 0xc22   :  { %7166 = vmatmul.bf16.gmra.mxu1 %v14791_v58 }
 0xc23   :  { %7186 = vst [vmem:[#allocation2 + $0x70] sm:$0xff] %v7128_v60 }
 0xc26   :  { %v7040_v18 = vpop.f32.mrf.mxu0 }
 0xc27   :  { %v7041_v36 = vadd.f32 %v7040_v18, %v14824_v14  ;;  %v7129_v48 = vpop.f32.mrf.mxu1 }
 0xc29   :  { %v7130_v23 = vadd.f32 %v7129_v48, %v7041_v36 }
 0xc2b   :  { %7187 = vst [vmem:[#allocation2 + $0x78] sm:$0xff] %v7130_v23 }
 0xc2e   :  { %v7043_v10 = vpop.f32.mrf.mxu0 }
 0xc2f   :  { %v7044_v43 = vadd.f32 %v7043_v10, %v14824_v14  ;;  %v7132_v0 = vpop.f32.mrf.mxu1 }
 0xc31   :  { %v7133_v1 = vadd.f32 %v7132_v0, %v7044_v43 }
 0xc33   :  { %7188 = vst [vmem:[#allocation2 + $0x80] sm:$0xff] %v7133_v1 }
 0xc36   :  { %v7045_v47 = vpop.f32.mrf.mxu0 }
 0xc37   :  { %v7046_v2 = vadd.f32 %v7045_v47, %v14824_v14  ;;  %v7134_v22 = vpop.f32.mrf.mxu1 }
 0xc39   :  { %v7135_v46 = vadd.f32 %v7134_v22, %v7046_v2 }
 0xc3b   :  { %7189 = vst [vmem:[#allocation2 + $0x88] sm:$0xff] %v7135_v46 }
 0xc3e   :  { %v7048_v58 = vpop.f32.mrf.mxu0 }
 0xc3f   :  { %v7049_v37 = vadd.f32 %v7048_v58, %v14824_v14  ;;  %v7137_v45 = vpop.f32.mrf.mxu1 }
 0xc41   :  { %v7138_v55 = vadd.f32 %v7137_v45, %v7049_v37 }
 0xc43   :  { %7190 = vst [vmem:[#allocation2 + $0x90] sm:$0xff] %v7138_v55 }
 0xc46   :  { %v7050_v39 = vpop.f32.mrf.mxu0 }
 0xc47   :  { %v7051_v42 = vadd.f32 %v7050_v39, %v14824_v14  ;;  %v7139_v40 = vpop.f32.mrf.mxu1 }
 0xc49   :  { %v7140_v13 = vadd.f32 %v7139_v40, %v7051_v42 }
 0xc4b   :  { %7191 = vst [vmem:[#allocation2 + $0x98] sm:$0xff] %v7140_v13 }
 0xc4e   :  { %v7053_v59 = vpop.f32.mrf.mxu0 }
 0xc4f   :  { %v7054_v53 = vadd.f32 %v7053_v59, %v14824_v14  ;;  %v7142_v11 = vpop.f32.mrf.mxu1 }
 0xc51   :  { %v7143_v33 = vadd.f32 %v7142_v11, %v7054_v53 }
 0xc53   :  { %7192 = vst [vmem:[#allocation2 + $0xa0] sm:$0xff] %v7143_v33 }
 0xc56   :  { %v7055_v4 = vpop.f32.mrf.mxu0 }
 0xc57   :  { %v7056_v25 = vadd.f32 %v7055_v4, %v14824_v14  ;;  %v7144_v38 = vpop.f32.mrf.mxu1 }
 0xc59   :  { %v7145_v56 = vadd.f32 %v7144_v38, %v7056_v25 }
 0xc5b   :  { %7193 = vst [vmem:[#allocation2 + $0xa8] sm:$0xff] %v7145_v56 }
 0xc5e   :  { %v7058_v61 = vpop.f32.mrf.mxu0 }
 0xc5f   :  { %v7059_v52 = vadd.f32 %v7058_v61, %v14824_v14  ;;  %v7147_v9 = vpop.f32.mrf.mxu1 }
 0xc61   :  { %v7148_v28 = vadd.f32 %v7147_v9, %v7059_v52 }
 0xc63   :  { %7194 = vst [vmem:[#allocation2 + $0xb0] sm:$0xff] %v7148_v28 }
 0xc66   :  { %v7060_v31 = vpop.f32.mrf.mxu0 }
 0xc67   :  { %v7061_v62 = vadd.f32 %v7060_v31, %v14824_v14  ;;  %v7149_v44 = vpop.f32.mrf.mxu1 }
 0xc69   :  { %v7150_v29 = vadd.f32 %v7149_v44, %v7061_v62 }
 0xc6b   :  { %7195 = vst [vmem:[#allocation2 + $0xb8] sm:$0xff] %v7150_v29 }
 0xc6e   :  { %v7063_v3 = vpop.f32.mrf.mxu0 }
 0xc6f   :  { %v7064_v51 = vadd.f32 %v7063_v3, %v14824_v14  ;;  %v7152_v57 = vpop.f32.mrf.mxu1 }
 0xc71   :  { %v7153_v8 = vadd.f32 %v7152_v57, %v7064_v51 }
 0xc73   :  { %7196 = vst [vmem:[#allocation2 + $0xc0] sm:$0xff] %v7153_v8 }
 0xc76   :  { %v7065_v49 = vpop.f32.mrf.mxu0 }
 0xc77   :  { %v7066_v7 = vadd.f32 %v7065_v49, %v14824_v14  ;;  %v7154_v6 = vpop.f32.mrf.mxu1 }
 0xc79   :  { %v7155_v32 = vadd.f32 %v7154_v6, %v7066_v7 }
 0xc7b   :  { %7197 = vst [vmem:[#allocation2 + $0xc8] sm:$0xff] %v7155_v32 }
 0xc7e   :  { %v7068_v16 = vpop.f32.mrf.mxu0 }
 0xc7f   :  { %v7069_v5 = vadd.f32 %v7068_v16, %v14824_v14  ;;  %v7157_v17 = vpop.f32.mrf.mxu1 }
 0xc81   :  { %v7158_v27 = vadd.f32 %v7157_v17, %v7069_v5 }
 0xc83   :  { %7198 = vst [vmem:[#allocation2 + $0xd0] sm:$0xff] %v7158_v27 }
 0xc86   :  { %v7070_v26 = vpop.f32.mrf.mxu0 }
 0xc87   :  { %v7071_v30 = vadd.f32 %v7070_v26, %v14824_v14  ;;  %v7159_v35 = vpop.f32.mrf.mxu1 }
 0xc89   :  { %v7160_v24 = vadd.f32 %v7159_v35, %v7071_v30 }
 0xc8b   :  { %7199 = vst [vmem:[#allocation2 + $0xd8] sm:$0xff] %v7160_v24 }
 0xc8e   :  { %v7073_v41 = vpop.f32.mrf.mxu0 }
 0xc8f   :  { %v7074_v34 = vadd.f32 %v7073_v41, %v14824_v14  ;;  %v7162_v63 = vpop.f32.mrf.mxu1 }
 0xc91   :  { %v7163_v54 = vadd.f32 %v7162_v63, %v7074_v34 }
 0xc93   :  { %7200 = vst [vmem:[#allocation2 + $0xe0] sm:$0xff] %v7163_v54 }
 0xc96   :  { %v7075_v20 = vpop.f32.mrf.mxu0 }
 0xc97   :  { %v7076_v15 = vadd.f32 %v7075_v20, %v14824_v14  ;;  %v7164_v19 = vpop.f32.mrf.mxu1 }
 0xc99   :  { %v7165_v21 = vadd.f32 %v7164_v19, %v7076_v15 }
 0xc9b   :  { %7201 = vst [vmem:[#allocation2 + $0xe8] sm:$0xff] %v7165_v21 }
 0xc9e   :  { %v7078_v50 = vpop.f32.mrf.mxu0 }
 0xc9f   :  { %v7079_v12 = vadd.f32 %v7078_v50, %v14824_v14  ;;  %v7167_v60 = vpop.f32.mrf.mxu1 }
 0xca1   :  { %v7168_v18 = vadd.f32 %v7167_v60, %v7079_v12 }
 0xca3   :  { %7202 = vst [vmem:[#allocation2 + $0xf0] sm:$0xff] %v7168_v18 }
 0xca6   :  { %v7080_v36 = vpop.f32.mrf.mxu0 }
 0xca7   :  { %v7081_v48 = vadd.f32 %v7080_v36, %v14824_v14  ;;  %v7169_v23 = vpop.f32.mrf.mxu1 }
 0xca9   :  { %v7170_v10 = vadd.f32 %v7169_v23, %v7081_v48 }
 0xcab   :  { %7203 = vst [vmem:[#allocation2 + $0xf8] sm:$0xff] %v7170_v10 }
 0xcac   :  { %7216 = dma.vmem_to_hbm [thread:$0]  %s7209_s19, 4096, %s7211_s21, [#allocation3], %s8733_s22, %s8733_s22, %s8734_s23  }
 0xcad   :  { %8730 = dma.done.wait [#allocation3], 4096  }
 0xcae   :  { %8731 = vsyncadd [#allocation3], 4294963200 }
 0xcaf   :  { %7221 = vsyncpa [#allocation3], 1 }

</bundles_post_ra>
